<compile_context>
chip_gen: v5e
topology: v5e:2x2
jax: 0.10.0
libtpu: 0.0.40
codegen_flags: <defaults>
</compile_context>

<pallas_src>
import jax
import jax.numpy as jnp
from jax.experimental import pallas as pl
from jax.experimental.pallas import tpu as pltpu

# ---- synthetic "config" (small shapes consistent with the module) ----------
N_Z = 64            # latent dim
N_C = 1             # image channels
IMAGE_SIZE = 16     # image spatial size
OUT_FEAT = N_C * IMAGE_SIZE * IMAGE_SIZE          # 256
HIDDEN = (128, 256, 512, 1024)
BN_EPS = 0.8        # nn.BatchNorm1d(out_feat, 0.8) -> eps=0.8
LRELU_SLOPE = 0.2

GROUP = 128         # rows per grid step (= one BatchNorm batch group)
NUM_GROUPS = 8      # grid steps in the demo call
BATCH = GROUP * NUM_GROUPS

# Packed (1, H) f32 vector-parameter layout:
#   [b1, b2, g2, be2, b3, g3, be3, b4, g4, be4, b5]
_VEC_SIZES = (HIDDEN[0],
              HIDDEN[1], HIDDEN[1], HIDDEN[1],
              HIDDEN[2], HIDDEN[2], HIDDEN[2],
              HIDDEN[3], HIDDEN[3], HIDDEN[3],
              OUT_FEAT)
_VEC_OFFS = tuple(int(sum(_VEC_SIZES[:i])) for i in range(len(_VEC_SIZES) + 1))
VEC_TOTAL = _VEC_OFFS[-1]   # 5760, every offset a multiple of 128 (lane-aligned)


def generator_kernel(z_ref,
                     w1_ref, w2_ref, w3_ref, w4_ref, w5_ref,
                     vec_ref,
                     out_ref):
    """Fused MLP generator forward for one 128-row batch group."""

    def vparam(i):
        # Static, 128-aligned lane slice of the packed (1, VEC_TOTAL) f32 array.
        return vec_ref[:, _VEC_OFFS[i]:_VEC_OFFS[i + 1]]

    b1 = vparam(0)
    b2, g2, be2 = vparam(1), vparam(2), vparam(3)
    b3, g3, be3 = vparam(4), vparam(5), vparam(6)
    b4, g4, be4 = vparam(7), vparam(8), vparam(9)
    b5 = vparam(10)

    def linear(x_bf16, w_ref, b):
        # bf16 x bf16 on the MXU, f32 accumulation; bias add in f32.
        return jnp.dot(x_bf16, w_ref[...],
                       preferred_element_type=jnp.float32) + b

    def leaky_relu_bf16(x):
        # slope < 1  =>  max(x, slope*x) == LeakyReLU(x); bf16 for next matmul.
        return jnp.maximum(x, LRELU_SLOPE * x).astype(jnp.bfloat16)

    def batchnorm(x, gamma, beta):
        # Training-mode BatchNorm1d over this 128-row group (biased variance,
        # eps=0.8), fused: one pass for mean / E[x^2], per-feature scale/shift
        # computed on the (1,H) vectors, then a single x*scale+shift pass.
        mean = jnp.mean(x, axis=0, keepdims=True)
        mean_sq = jnp.mean(x * x, axis=0, keepdims=True)
        var = mean_sq - mean * mean
        scale = jax.lax.rsqrt(var + BN_EPS) * gamma
        shift = beta - mean * scale
        return x * scale + shift

    x = z_ref[...].astype(jnp.bfloat16)                                   # (G, N_Z)
    h = leaky_relu_bf16(linear(x, w1_ref, b1))                            # block 1 (no norm)
    h = leaky_relu_bf16(batchnorm(linear(h, w2_ref, b2), g2, be2))        # block 2
    h = leaky_relu_bf16(batchnorm(linear(h, w3_ref, b3), g3, be3))        # block 3
    h = leaky_relu_bf16(batchnorm(linear(h, w4_ref, b4), g4, be4))        # block 4
    out_ref[...] = jnp.tanh(linear(h, w5_ref, b5))                        # head + Tanh, f32


def _linear_wb(key, fan_in, fan_out):
    # PyTorch nn.Linear default init: U(-1/sqrt(fan_in), 1/sqrt(fan_in)).
    # Weight stored transposed vs. PyTorch (in, out) and cast to bf16 so the
    # HBM->VMEM stream is half-width; bias stays f32.
    kw, kb = jax.random.split(key)
    bound = 1.0 / jnp.sqrt(float(fan_in))
    w = jax.random.uniform(kw, (fan_in, fan_out), jnp.float32, -bound, bound)
    b = jax.random.uniform(kb, (fan_out,), jnp.float32, -bound, bound)
    return w.astype(jnp.bfloat16), b


def init_generator_params(key):
    ks = jax.random.split(key, 5)
    w1, b1 = _linear_wb(ks[0], N_Z, HIDDEN[0])
    w2, b2 = _linear_wb(ks[1], HIDDEN[0], HIDDEN[1])
    w3, b3 = _linear_wb(ks[2], HIDDEN[1], HIDDEN[2])
    w4, b4 = _linear_wb(ks[3], HIDDEN[2], HIDDEN[3])
    w5, b5 = _linear_wb(ks[4], HIDDEN[3], OUT_FEAT)
    ones = lambda n: jnp.ones((n,), jnp.float32)
    zeros = lambda n: jnp.zeros((n,), jnp.float32)
    # BatchNorm affine params (PyTorch defaults: gamma=1, beta=0), f32, packed
    # with the biases into one (1, VEC_TOTAL) array.
    vec = jnp.concatenate([
        b1,
        b2, ones(HIDDEN[1]), zeros(HIDDEN[1]),
        b3, ones(HIDDEN[2]), zeros(HIDDEN[2]),
        b4, ones(HIDDEN[3]), zeros(HIDDEN[3]),
        b5,
    ]).reshape(1, VEC_TOTAL)
    return (w1, w2, w3, w4, w5), vec


def _cost_estimate(batch):
    dims = [(N_Z, HIDDEN[0]), (HIDDEN[0], HIDDEN[1]), (HIDDEN[1], HIDDEN[2]),
            (HIDDEN[2], HIDDEN[3]), (HIDDEN[3], OUT_FEAT)]
    flops = sum(2 * batch * fi * fo for fi, fo in dims)
    # tanh on the output + one rsqrt per BN feature per batch group
    transcendentals = batch * OUT_FEAT + (batch // GROUP) * sum(HIDDEN[1:])
    weight_bytes = sum(fi * fo * 2 for fi, fo in dims)     # bf16, fetched once
    bytes_accessed = (batch * N_Z * 4                      # z (f32 in)
                      + batch * OUT_FEAT * 4               # output (f32)
                      + weight_bytes + VEC_TOTAL * 4)
    return pl.CostEstimate(flops=flops,
                           transcendentals=transcendentals,
                           bytes_accessed=bytes_accessed)


def generator_forward(z, weights, vec):
    batch = z.shape[0]
    assert batch % GROUP == 0, "batch must be a multiple of the BN group size"
    num_groups = batch // GROUP
    w1, w2, w3, w4, w5 = weights

    # Constant index_map -> fetched once, VMEM-resident across all grid steps.
    const = lambda shape: pl.BlockSpec(shape, lambda g: (0, 0))

    flat = pl.pallas_call(
        generator_kernel,
        out_shape=jax.ShapeDtypeStruct((batch, OUT_FEAT), jnp.float32),
        grid=(num_groups,),
        in_specs=[
            pl.BlockSpec((GROUP, N_Z), lambda g: (g, 0)),     # z: per-group tile
            const(w1.shape), const(w2.shape), const(w3.shape),
            const(w4.shape), const(w5.shape),
            const(vec.shape),                                 # packed biases + BN params
        ],
        out_specs=pl.BlockSpec((GROUP, OUT_FEAT), lambda g: (g, 0)),
        cost_estimate=_cost_estimate(batch),
        compiler_params=pltpu.CompilerParams(
            dimension_semantics=("parallel",),                # megacore on v7x
            vmem_limit_bytes=32 * 1024 * 1024),
    )(z, w1, w2, w3, w4, w5, vec)
    # PyTorch: img.view(B, N_C, IMAGE_SIZE, IMAGE_SIZE)  (NCHW)
    return flat.reshape(batch, N_C, IMAGE_SIZE, IMAGE_SIZE)


if __name__ == "__main__":
    key = jax.random.PRNGKey(0)
    kz, kp = jax.random.split(key)
    z = jax.random.normal(kz, (BATCH, N_Z), jnp.float32)
    weights, vec = init_generator_params(kp)

    img = generator_forward(z, weights, vec)
    jax.block_until_ready(img)

    assert img.shape == (BATCH, N_C, IMAGE_SIZE, IMAGE_SIZE)
    assert img.dtype == jnp.float32
    assert bool(jnp.all(jnp.isfinite(img)))
    assert bool(jnp.all(jnp.abs(img) <= 1.0))  # tanh range
    print("KERNEL_OK")
</pallas_src>

<mosaic_0001>
module attributes {stable_mosaic.version = 11 : i64} {
  func.func @generator_kernel(%arg0: i32, %arg1: memref<128x64xf32, #tpu.memory_space<vmem>>, %arg2: memref<64x128xbf16, #tpu.memory_space<vmem>>, %arg3: memref<128x256xbf16, #tpu.memory_space<vmem>>, %arg4: memref<256x512xbf16, #tpu.memory_space<vmem>>, %arg5: memref<512x1024xbf16, #tpu.memory_space<vmem>>, %arg6: memref<1024x256xbf16, #tpu.memory_space<vmem>>, %arg7: memref<1x5760xf32, #tpu.memory_space<vmem>>, %arg8: memref<128x256xf32, #tpu.memory_space<vmem>>) attributes {dimension_semantics = [#tpu.dimension_semantics<parallel>], iteration_bounds = array<i64: 8>, scalar_prefetch = 0 : i64, scratch_operands = 0 : i64, tpu.core_type = #tpu.core_type<tc>, window_params = [{transform_indices = @transform_0, window_bounds = array<i64: 128, 64>}, {pipeline_mode = #tpu.pipeline_mode<synchronous>, transform_indices = @transform_1, window_bounds = array<i64: 64, 128>}, {pipeline_mode = #tpu.pipeline_mode<synchronous>, transform_indices = @transform_2, window_bounds = array<i64: 128, 256>}, {pipeline_mode = #tpu.pipeline_mode<synchronous>, transform_indices = @transform_3, window_bounds = array<i64: 256, 512>}, {pipeline_mode = #tpu.pipeline_mode<synchronous>, transform_indices = @transform_4, window_bounds = array<i64: 512, 1024>}, {pipeline_mode = #tpu.pipeline_mode<synchronous>, transform_indices = @transform_5, window_bounds = array<i64: 1024, 256>}, {pipeline_mode = #tpu.pipeline_mode<synchronous>, transform_indices = @transform_6, window_bounds = array<i64: 1, 5760>}, {transform_indices = @transform_7, window_bounds = array<i64: 128, 256>}]} {
    %c0 = arith.constant 0 : index
    %c0_0 = arith.constant 0 : index
    %0 = vector.load %arg7[%c0, %c0_0] : memref<1x5760xf32, #tpu.memory_space<vmem>>, vector<1x128xf32>
    %c0_1 = arith.constant 0 : index
    %c128 = arith.constant 128 : index
    %1 = vector.load %arg7[%c0_1, %c128] : memref<1x5760xf32, #tpu.memory_space<vmem>>, vector<1x256xf32>
    %c0_2 = arith.constant 0 : index
    %c384 = arith.constant 384 : index
    %2 = vector.load %arg7[%c0_2, %c384] : memref<1x5760xf32, #tpu.memory_space<vmem>>, vector<1x256xf32>
    %c0_3 = arith.constant 0 : index
    %c640 = arith.constant 640 : index
    %3 = vector.load %arg7[%c0_3, %c640] : memref<1x5760xf32, #tpu.memory_space<vmem>>, vector<1x256xf32>
    %c0_4 = arith.constant 0 : index
    %c896 = arith.constant 896 : index
    %4 = vector.load %arg7[%c0_4, %c896] : memref<1x5760xf32, #tpu.memory_space<vmem>>, vector<1x512xf32>
    %c0_5 = arith.constant 0 : index
    %c1408 = arith.constant 1408 : index
    %5 = vector.load %arg7[%c0_5, %c1408] : memref<1x5760xf32, #tpu.memory_space<vmem>>, vector<1x512xf32>
    %c0_6 = arith.constant 0 : index
    %c1920 = arith.constant 1920 : index
    %6 = vector.load %arg7[%c0_6, %c1920] : memref<1x5760xf32, #tpu.memory_space<vmem>>, vector<1x512xf32>
    %c0_7 = arith.constant 0 : index
    %c2432 = arith.constant 2432 : index
    %7 = vector.load %arg7[%c0_7, %c2432] : memref<1x5760xf32, #tpu.memory_space<vmem>>, vector<1x1024xf32>
    %c0_8 = arith.constant 0 : index
    %c3456 = arith.constant 3456 : index
    %8 = vector.load %arg7[%c0_8, %c3456] : memref<1x5760xf32, #tpu.memory_space<vmem>>, vector<1x1024xf32>
    %c0_9 = arith.constant 0 : index
    %c4480 = arith.constant 4480 : index
    %9 = vector.load %arg7[%c0_9, %c4480] : memref<1x5760xf32, #tpu.memory_space<vmem>>, vector<1x1024xf32>
    %c0_10 = arith.constant 0 : index
    %c5504 = arith.constant 5504 : index
    %10 = vector.load %arg7[%c0_10, %c5504] : memref<1x5760xf32, #tpu.memory_space<vmem>>, vector<1x256xf32>
    %c0_11 = arith.constant 0 : index
    %c0_12 = arith.constant 0 : index
    %11 = vector.load %arg1[%c0_11, %c0_12] : memref<128x64xf32, #tpu.memory_space<vmem>>, vector<128x64xf32>
    %12 = arith.truncf %11 : vector<128x64xf32> to vector<128x64xbf16>
    %c0_13 = arith.constant 0 : index
    %c0_14 = arith.constant 0 : index
    %13 = vector.load %arg2[%c0_13, %c0_14] : memref<64x128xbf16, #tpu.memory_space<vmem>>, vector<64x128xbf16>
    %cst = arith.constant dense<0.000000e+00> : vector<128x128xf32>
    %14 = tpu.matmul %12, %13, %cst {dimension_numbers = #tpu.dot_dimension_numbers<[1], [0], [0], [1], [0, 0, 1, 1], [], []>} : vector<128x64xbf16>, vector<64x128xbf16>, vector<128x128xf32> -> vector<128x128xf32>
    %15 = vector.broadcast %0 : vector<1x128xf32> to vector<128x128xf32>
    %16 = arith.addf %14, %15 : vector<128x128xf32>
    %cst_15 = arith.constant 2.000000e-01 : f32
    %17 = vector.broadcast %cst_15 : f32 to vector<128x128xf32>
    %18 = arith.mulf %17, %16 : vector<128x128xf32>
    %19 = arith.maximumf %16, %18 : vector<128x128xf32>
    %20 = arith.truncf %19 : vector<128x128xf32> to vector<128x128xbf16>
    %c0_16 = arith.constant 0 : index
    %c0_17 = arith.constant 0 : index
    %21 = vector.load %arg3[%c0_16, %c0_17] : memref<128x256xbf16, #tpu.memory_space<vmem>>, vector<128x256xbf16>
    %cst_18 = arith.constant dense<0.000000e+00> : vector<128x256xf32>
    %22 = tpu.matmul %20, %21, %cst_18 {dimension_numbers = #tpu.dot_dimension_numbers<[1], [0], [0], [1], [0, 0, 1, 1], [], []>} : vector<128x128xbf16>, vector<128x256xbf16>, vector<128x256xf32> -> vector<128x256xf32>
    %23 = vector.broadcast %1 : vector<1x256xf32> to vector<128x256xf32>
    %24 = arith.addf %22, %23 : vector<128x256xf32>
    %cst_19 = arith.constant dense<0.000000e+00> : vector<256xf32>
    %25 = vector.multi_reduction <add>, %24, %cst_19 [0] : vector<128x256xf32> to vector<256xf32>
    %26 = vector.shape_cast %25 : vector<256xf32> to vector<1x256xf32>
    %cst_20 = arith.constant 1.280000e+02 : f32
    %27 = vector.broadcast %cst_20 : f32 to vector<1x256xf32>
    %28 = arith.divf %26, %27 : vector<1x256xf32>
    %29 = arith.mulf %24, %24 : vector<128x256xf32>
    %cst_21 = arith.constant dense<0.000000e+00> : vector<256xf32>
    %30 = vector.multi_reduction <add>, %29, %cst_21 [0] : vector<128x256xf32> to vector<256xf32>
    %31 = vector.shape_cast %30 : vector<256xf32> to vector<1x256xf32>
    %cst_22 = arith.constant 1.280000e+02 : f32
    %32 = vector.broadcast %cst_22 : f32 to vector<1x256xf32>
    %33 = arith.divf %31, %32 : vector<1x256xf32>
    %34 = arith.mulf %28, %28 : vector<1x256xf32>
    %35 = arith.subf %33, %34 : vector<1x256xf32>
    %cst_23 = arith.constant 8.000000e-01 : f32
    %36 = vector.broadcast %cst_23 : f32 to vector<1x256xf32>
    %37 = arith.addf %35, %36 : vector<1x256xf32>
    %38 = math.rsqrt %37 : vector<1x256xf32>
    %39 = arith.mulf %38, %2 : vector<1x256xf32>
    %40 = arith.mulf %28, %39 : vector<1x256xf32>
    %41 = arith.subf %3, %40 : vector<1x256xf32>
    %42 = vector.broadcast %39 : vector<1x256xf32> to vector<128x256xf32>
    %43 = arith.mulf %24, %42 : vector<128x256xf32>
    %44 = vector.broadcast %41 : vector<1x256xf32> to vector<128x256xf32>
    %45 = arith.addf %43, %44 : vector<128x256xf32>
    %cst_24 = arith.constant 2.000000e-01 : f32
    %46 = vector.broadcast %cst_24 : f32 to vector<128x256xf32>
    %47 = arith.mulf %46, %45 : vector<128x256xf32>
    %48 = arith.maximumf %45, %47 : vector<128x256xf32>
    %49 = arith.truncf %48 : vector<128x256xf32> to vector<128x256xbf16>
    %c0_25 = arith.constant 0 : index
    %c0_26 = arith.constant 0 : index
    %50 = vector.load %arg4[%c0_25, %c0_26] : memref<256x512xbf16, #tpu.memory_space<vmem>>, vector<256x512xbf16>
    %cst_27 = arith.constant dense<0.000000e+00> : vector<128x512xf32>
    %51 = tpu.matmul %49, %50, %cst_27 {dimension_numbers = #tpu.dot_dimension_numbers<[1], [0], [0], [1], [0, 0, 1, 1], [], []>} : vector<128x256xbf16>, vector<256x512xbf16>, vector<128x512xf32> -> vector<128x512xf32>
    %52 = vector.broadcast %4 : vector<1x512xf32> to vector<128x512xf32>
    %53 = arith.addf %51, %52 : vector<128x512xf32>
    %cst_28 = arith.constant dense<0.000000e+00> : vector<512xf32>
    %54 = vector.multi_reduction <add>, %53, %cst_28 [0] : vector<128x512xf32> to vector<512xf32>
    %55 = vector.shape_cast %54 : vector<512xf32> to vector<1x512xf32>
    %cst_29 = arith.constant 1.280000e+02 : f32
    %56 = vector.broadcast %cst_29 : f32 to vector<1x512xf32>
    %57 = arith.divf %55, %56 : vector<1x512xf32>
    %58 = arith.mulf %53, %53 : vector<128x512xf32>
    %cst_30 = arith.constant dense<0.000000e+00> : vector<512xf32>
    %59 = vector.multi_reduction <add>, %58, %cst_30 [0] : vector<128x512xf32> to vector<512xf32>
    %60 = vector.shape_cast %59 : vector<512xf32> to vector<1x512xf32>
    %cst_31 = arith.constant 1.280000e+02 : f32
    %61 = vector.broadcast %cst_31 : f32 to vector<1x512xf32>
    %62 = arith.divf %60, %61 : vector<1x512xf32>
    %63 = arith.mulf %57, %57 : vector<1x512xf32>
    %64 = arith.subf %62, %63 : vector<1x512xf32>
    %cst_32 = arith.constant 8.000000e-01 : f32
    %65 = vector.broadcast %cst_32 : f32 to vector<1x512xf32>
    %66 = arith.addf %64, %65 : vector<1x512xf32>
    %67 = math.rsqrt %66 : vector<1x512xf32>
    %68 = arith.mulf %67, %5 : vector<1x512xf32>
    %69 = arith.mulf %57, %68 : vector<1x512xf32>
    %70 = arith.subf %6, %69 : vector<1x512xf32>
    %71 = vector.broadcast %68 : vector<1x512xf32> to vector<128x512xf32>
    %72 = arith.mulf %53, %71 : vector<128x512xf32>
    %73 = vector.broadcast %70 : vector<1x512xf32> to vector<128x512xf32>
    %74 = arith.addf %72, %73 : vector<128x512xf32>
    %cst_33 = arith.constant 2.000000e-01 : f32
    %75 = vector.broadcast %cst_33 : f32 to vector<128x512xf32>
    %76 = arith.mulf %75, %74 : vector<128x512xf32>
    %77 = arith.maximumf %74, %76 : vector<128x512xf32>
    %78 = arith.truncf %77 : vector<128x512xf32> to vector<128x512xbf16>
    %c0_34 = arith.constant 0 : index
    %c0_35 = arith.constant 0 : index
    %79 = vector.load %arg5[%c0_34, %c0_35] : memref<512x1024xbf16, #tpu.memory_space<vmem>>, vector<512x1024xbf16>
    %cst_36 = arith.constant dense<0.000000e+00> : vector<128x1024xf32>
    %80 = tpu.matmul %78, %79, %cst_36 {dimension_numbers = #tpu.dot_dimension_numbers<[1], [0], [0], [1], [0, 0, 1, 1], [], []>} : vector<128x512xbf16>, vector<512x1024xbf16>, vector<128x1024xf32> -> vector<128x1024xf32>
    %81 = vector.broadcast %7 : vector<1x1024xf32> to vector<128x1024xf32>
    %82 = arith.addf %80, %81 : vector<128x1024xf32>
    %cst_37 = arith.constant dense<0.000000e+00> : vector<1024xf32>
    %83 = vector.multi_reduction <add>, %82, %cst_37 [0] : vector<128x1024xf32> to vector<1024xf32>
    %84 = vector.shape_cast %83 : vector<1024xf32> to vector<1x1024xf32>
    %cst_38 = arith.constant 1.280000e+02 : f32
    %85 = vector.broadcast %cst_38 : f32 to vector<1x1024xf32>
    %86 = arith.divf %84, %85 : vector<1x1024xf32>
    %87 = arith.mulf %82, %82 : vector<128x1024xf32>
    %cst_39 = arith.constant dense<0.000000e+00> : vector<1024xf32>
    %88 = vector.multi_reduction <add>, %87, %cst_39 [0] : vector<128x1024xf32> to vector<1024xf32>
    %89 = vector.shape_cast %88 : vector<1024xf32> to vector<1x1024xf32>
    %cst_40 = arith.constant 1.280000e+02 : f32
    %90 = vector.broadcast %cst_40 : f32 to vector<1x1024xf32>
    %91 = arith.divf %89, %90 : vector<1x1024xf32>
    %92 = arith.mulf %86, %86 : vector<1x1024xf32>
    %93 = arith.subf %91, %92 : vector<1x1024xf32>
    %cst_41 = arith.constant 8.000000e-01 : f32
    %94 = vector.broadcast %cst_41 : f32 to vector<1x1024xf32>
    %95 = arith.addf %93, %94 : vector<1x1024xf32>
    %96 = math.rsqrt %95 : vector<1x1024xf32>
    %97 = arith.mulf %96, %8 : vector<1x1024xf32>
    %98 = arith.mulf %86, %97 : vector<1x1024xf32>
    %99 = arith.subf %9, %98 : vector<1x1024xf32>
    %100 = vector.broadcast %97 : vector<1x1024xf32> to vector<128x1024xf32>
    %101 = arith.mulf %82, %100 : vector<128x1024xf32>
    %102 = vector.broadcast %99 : vector<1x1024xf32> to vector<128x1024xf32>
    %103 = arith.addf %101, %102 : vector<128x1024xf32>
    %cst_42 = arith.constant 2.000000e-01 : f32
    %104 = vector.broadcast %cst_42 : f32 to vector<128x1024xf32>
    %105 = arith.mulf %104, %103 : vector<128x1024xf32>
    %106 = arith.maximumf %103, %105 : vector<128x1024xf32>
    %107 = arith.truncf %106 : vector<128x1024xf32> to vector<128x1024xbf16>
    %c0_43 = arith.constant 0 : index
    %c0_44 = arith.constant 0 : index
    %108 = vector.load %arg6[%c0_43, %c0_44] : memref<1024x256xbf16, #tpu.memory_space<vmem>>, vector<1024x256xbf16>
    %cst_45 = arith.constant dense<0.000000e+00> : vector<128x256xf32>
    %109 = tpu.matmul %107, %108, %cst_45 {dimension_numbers = #tpu.dot_dimension_numbers<[1], [0], [0], [1], [0, 0, 1, 1], [], []>} : vector<128x1024xbf16>, vector<1024x256xbf16>, vector<128x256xf32> -> vector<128x256xf32>
    %110 = vector.broadcast %10 : vector<1x256xf32> to vector<128x256xf32>
    %111 = arith.addf %109, %110 : vector<128x256xf32>
    %112 = math.tanh %111 : vector<128x256xf32>
    %c0_46 = arith.constant 0 : index
    %c0_47 = arith.constant 0 : index
    %113 = vector.load %arg8[%c0_46, %c0_47] : memref<128x256xf32, #tpu.memory_space<vmem>>, vector<128x256xf32>
    tpu.vector_store %arg8[%c0_46, %c0_47], %112 {strides = array<i32>} : memref<128x256xf32, #tpu.memory_space<vmem>>, vector<128x256xf32>,
    return
  }
  func.func @transform_0(%arg0: i32) -> (i32, i32) {
    %c0_i32 = arith.constant 0 : i32
    %c0_i32_0 = arith.constant 0 : i32
    return %arg0, %c0_i32 : i32, i32
  }
  func.func @transform_1(%arg0: i32) -> (i32, i32) {
    %c0_i32 = arith.constant 0 : i32
    %c0_i32_0 = arith.constant 0 : i32
    %c0_i32_1 = arith.constant 0 : i32
    return %c0_i32, %c0_i32_0 : i32, i32
  }
  func.func @transform_2(%arg0: i32) -> (i32, i32) {
    %c0_i32 = arith.constant 0 : i32
    %c0_i32_0 = arith.constant 0 : i32
    %c0_i32_1 = arith.constant 0 : i32
    return %c0_i32, %c0_i32_0 : i32, i32
  }
  func.func @transform_3(%arg0: i32) -> (i32, i32) {
    %c0_i32 = arith.constant 0 : i32
    %c0_i32_0 = arith.constant 0 : i32
    %c0_i32_1 = arith.constant 0 : i32
    return %c0_i32, %c0_i32_0 : i32, i32
  }
  func.func @transform_4(%arg0: i32) -> (i32, i32) {
    %c0_i32 = arith.constant 0 : i32
    %c0_i32_0 = arith.constant 0 : i32
    %c0_i32_1 = arith.constant 0 : i32
    return %c0_i32, %c0_i32_0 : i32, i32
  }
  func.func @transform_5(%arg0: i32) -> (i32, i32) {
    %c0_i32 = arith.constant 0 : i32
    %c0_i32_0 = arith.constant 0 : i32
    %c0_i32_1 = arith.constant 0 : i32
    return %c0_i32, %c0_i32_0 : i32, i32
  }
  func.func @transform_6(%arg0: i32) -> (i32, i32) {
    %c0_i32 = arith.constant 0 : i32
    %c0_i32_0 = arith.constant 0 : i32
    %c0_i32_1 = arith.constant 0 : i32
    return %c0_i32, %c0_i32_0 : i32, i32
  }
  func.func @transform_7(%arg0: i32) -> (i32, i32) {
    %c0_i32 = arith.constant 0 : i32
    %c0_i32_0 = arith.constant 0 : i32
    return %arg0, %c0_i32 : i32, i32
  }
}

</mosaic_0001>

<bundles_post_ra>
// kernel: tpu_custom_call.1
= control target key start
LH: loop header
LB: loop body
LE: loop exit
PB: predicated region body
PF: predicated region fallthrough
CT: control target
= control target key end

     0   :  { %s16747_s0 = inlined_call_operand.vmem [shape: f32[1024,64], index: 0, kind: input, shape index: {}]   ;;  %s16748_s1 = inlined_call_operand.hbm [shape: bf16[64,128], index: 1, kind: input, shape index: {}]   ;;  %s16749_s2 = inlined_call_operand.hbm [shape: bf16[128,256], index: 2, kind: input, shape index: {}]   ;;  %s16750_s3 = inlined_call_operand.vmem [shape: bf16[256,512], index: 3, kind: input, shape index: {}]   ;;  %s16751_s4 = inlined_call_operand.hbm [shape: bf16[512,1024], index: 4, kind: input, shape index: {}]   ;;  %s16752_s5 = inlined_call_operand.vmem [shape: bf16[1024,256], index: 5, kind: input, shape index: {}]   ;;  %s16753_s6 = inlined_call_operand.hbm [shape: f32[1,5760], index: 6, kind: input, shape index: {}]   ;;  %s16754_s7 = inlined_call_operand.hbm [shape: f32[1024,256], index: 7, kind: output, shape index: {}]  }
   0x1   :  { %17024 = sst [smem:[#allocation154_spill]] %s16748_s1 }
   0x2   :  { %17025 = sst [smem:[#allocation155_spill]] %s16749_s2 }
   0x3   :  { %12 = vsyncpa [#allocation3], 0 }
   0x4   :  { %13 = vsyncpa [#allocation6], 0 }
   0x5   :  { %14 = vsyncpa [#allocation9], 0 }
   0x6   :  { %15 = vsyncpa [#allocation4], 0 }
   0x7   :  { %17 = vsyncpa [#allocation4 + $0x1], 0  ;;  %s11393_s24 = smov 0   ;;  %s11395_s25 = smov 0  }
   0x8   :  { %s11397_s26 = smov 0   ;;  %s11399_s27 = smov 0  }
   0x9 LB: > { %17026 = sst [smem:[#allocation15_spill]] %s11334_s26  ;;  %s11414_s28 = sadd.s32 4294967295, %s11338_s27   ;;  %s11338_s27 = sphi %s11399_s27, %s17629_s27   ;;  %s11334_s26 = sphi %s11397_s26, %s17626_s26   ;;  %s11330_s25 = sphi %s11395_s25, %s17628_s25   ;;  %s11326_s24 = sphi %s11393_s24, %s17627_s24  }
   0xa   : > { %s8566_s29 = sadd.s32 4294967294, %s11338_s27   ;;  %s11418_s30 = sadd.s32 1, %s11338_s27  }
   0xb   : > { %s182_s8 = sadd.s32 1, %s11334_s26  ;;  %s179_s9 = ssub.s32 %s11338_s27, %s11418_s30 }
   0xc   : > { %p192_p0 = scmp.ne.s32.totalorder %s11334_s26, %s11330_s25  ;;  %p180_p1 = scmp.eq.s32.totalorder %s179_s9, 0 }
   0xd   : > { %p193_p2 = scmp.eq.s32.totalorder %s11414_s28, 7  ;;  %p198_p3 = scmp.ne.s32.totalorder %s11330_s25, %s11326_s24 }
   0xe   : > { %p199_p4 = scmp.eq.s32.totalorder %s8566_s29, 7  ;;  %p8567_p7 = scmp.ge.s32.totalorder %s11338_s27, 1 }
   0xf   : > { %s11429_s10 = scalar_select %p180_p1, %s11334_s26, %s182_s8  }
  0x10   : > { %p11431_p5 = por %p193_p2, %p192_p0  ;;  %p11435_p6 = por %p199_p4, %p198_p3 }
  0x11   : > { %17027 = sst [smem:[#allocation16_spill]] %s11429_s10  ;;  %p206_p8 = scmp.lt.s32.totalorder %s11338_s27, 9 }
  0x12   : > { %p10988_p9 = scmp.eq.s32.totalorder %s11414_s28, 0  ;;  %s17031_s2 = sld [smem:[#allocation155_spill]] }
  0x13   : > { %p11442_p10 = pnand %p8567_p7, %p206_p8  ;;  %s11340_s17 = smov [#allocation5]  }
  0x14   : > { %s233_s18 = sshll.u32 %s11340_s17, 4  ;;  %s17033_s1 = sld [smem:[#allocation154_spill]]  ;;  %s234_s18 = int_to_ptr.vmem [resolvable:$true] %s233_s18 }
  0x15   : > { %p10971_p11 = pneg %p11442_p10  ;;  %s11341_s23 = smov 128  }
  0x16   : > { %s11342_s29 = smov 8   ;;  %s11343_s8 = smov [#allocation2]  }
  0x17   : > { %p11453_p12 = pnand %p10988_p9, %p10971_p11  ;;  %s219_s9 = sshll.u32 %s11343_s8, 4  ;;  %s220_s9 = int_to_ptr.vmem [resolvable:$true] %s219_s9 }
  0x18   : > { %s231_s16 = sshll.u32 %s17031_s2, 4  ;;  %s11344_s14 = smov 64   ;;  %s232_s16 = int_to_ptr.hbm [resolvable:$true] %s231_s16 }
  0x19   : > { %10977 = dma.hbm_to_vmem [thread:$0]  (!%p11453_p12), %s232_s16, 2048, %s234_s18, [#allocation6], %s11341_s23, %s11341_s23, %s11342_s29  }
  0x1a   : > { %s217_s22 = sshll.u32 %s17033_s1, 4  ;;  %s11345_s15 = smov 4   ;;  %s218_s22 = int_to_ptr.hbm [resolvable:$true] %s217_s22 }
  0x1b   : > { %10974 = dma.hbm_to_vmem [thread:$0]  (!%p11453_p12), %s218_s22, 512, %s220_s9, [#allocation3], %s11344_s14, %s11344_s14, %s11345_s15  }
  0x1c   : > { %s248_s20 = sshll.u32 %s16751_s4, 4  ;;  %s11346_s21 = smov [#allocation7]   ;;  %s249_s20 = int_to_ptr.hbm [resolvable:$true] %s248_s20 }
  0x1d   : > { %s250_s1 = sshll.u32 %s11346_s21, 4  ;;  %s266_s16 = sshll.u32 %s16753_s6, 4  ;;  %s251_s1 = int_to_ptr.vmem [resolvable:$true] %s250_s1  ;;  %s267_s16 = int_to_ptr.hbm [resolvable:$true] %s266_s16 }
  0x1e   : > { %s11347_s18 = smov 512   ;;  %s11348_s23 = smov 32  }
  0x1f   : > { %10980 = dma.hbm_to_vmem [thread:$0]  (!%p11453_p12), %s249_s20, 32768, %s251_s1, [#allocation6], %s11347_s18, %s11347_s18, %s11348_s23  }
  0x20   : > { %s11349_s29 = smov [#allocation8]   ;;  %290 = sbr.rel (%p11442_p10) target bundleno = 2858 (0xb2a), region = 48 }
  0x21   : > { %s268_s8 = sshll.u32 %s11349_s29, 4  ;;  %s269_s8 = int_to_ptr.vmem [resolvable:$true] %s268_s8 }
  0x22   : > { %10983 = dma.hbm_to_vmem [thread:$0]  (!%p11453_p12), %s267_s16, 720, %s269_s8, [#allocation9]  }
  0x25   : > { %11309 = dma.done.wait (%p10988_p9), [#allocation3], 512  }
  0x26   : > { %11311 = vsyncadd (%p10988_p9), [#allocation3], 4294966784 }
  0x27   : > { %11313 = dma.done.wait (%p10988_p9), [#allocation6], 34816  }
  0x28   : > { %11315 = vsyncadd (%p10988_p9), [#allocation6], 4294932480 }
  0x29   : > { %11317 = dma.done.wait (%p10988_p9), [#allocation9], 720  }
  0x2a   : > { %11319 = vsyncadd (%p10988_p9), [#allocation9], 4294966576  ;;  %s8579_s1 = sshll.u32 %s11414_s28, 4  ;;  %v10470_v0 = vld [vmem:[#allocation2 + $0x18] sm:$0xff]  ;;  %v10469_v1 = vld [vmem:[#allocation2 + $0x10] sm:$0xff]  ;;  %vm416_vm0 = vcmask 523264  }
  0x2b   : > { %p339_p13 = scmp.lt.s32.totalorder %s8579_s1, 127  ;;  %445 = vmatpush.bf16.msra.mxu0 %v10470_v0  ;;  %v10468_v2 = vld [vmem:[#allocation2 + $0x8] sm:$0xff]  ;;  %v10467_v3 = vld [vmem:[#allocation2] sm:$0xff]  ;;  %v8663_v19 = vld [vmem:[#allocation5 + $0x70] sm:$0xf]  ;;  %vm894_vm8 = vcmask 1040384  }
  0x2c   : > { %v10486_v20 = vld [vmem:[#allocation5 + $0x74] sm:$0xf0]  ;;  %v8655_v25 = vld [vmem:[#allocation5 + $0x60] sm:$0xf]  ;;  %v10484_v26 = vld [vmem:[#allocation5 + $0x64] sm:$0xf0] }
  0x2d   : > { %s17631_s1 = smov (!%p339_p13, %s8579_s1), 127  ;;  %v8664_v21 = vor.u32 %v10486_v20, %v8663_v19  ;;  %v8647_v27 = vld [vmem:[#allocation5 + $0x50] sm:$0xf]  ;;  %v8656_v28 = vor.u32 %v10484_v26, %v8655_v25  ;;  %v10482_v29 = vld [vmem:[#allocation5 + $0x54] sm:$0xf0]  ;;  %s335_s20 = sand.u32 1, %s11330_s25  }
  0x2e   : > { %s8580_s2 = sshll.u32 %s17631_s1, 3  ;;  %v8648_v30 = vor.u32 %v10482_v29, %v8647_v27  ;;  %v8639_v31 = vld [vmem:[#allocation5 + $0x40] sm:$0xf]  ;;  %v10480_v32 = vld [vmem:[#allocation5 + $0x44] sm:$0xf0]  ;;  %s8578_s29 = sshll.u32 %s335_s20, 8 }
  0x2f   : > { %446 = vmatpush.bf16.msra.mxu0 %v10469_v1  ;;  %s11492_s13 = scalar_lea.vmem %s16747_s0, %s8580_s2  ;;  %631 = vmatpush.bf16.msra.mxu1 %v8664_v21  ;;  %v8640_v33 = vor.u32 %v10480_v32, %v8639_v31  ;;  %v8631_v37 = vld [vmem:[#allocation5 + $0x30] sm:$0xf]  ;;  %v10478_v38 = vld [vmem:[#allocation5 + $0x34] sm:$0xf0]  ;;  %v8623_v40 = vld [vmem:[#allocation5 + $0x20] sm:$0xf] }
  0x30   : > { %v357_v4 = vld [vmem:[%s11492_s13] sm:$0xff]  ;;  %v358_v5 = vld [vmem:[%s11492_s13 + $0x8] sm:$0xff]  ;;  %v359_v7 = vld [vmem:[%s11492_s13 + $0x10] sm:$0xff]  ;;  %10937 = vmatpush.bf16.msra.mxu3 %v8664_v21  ;;  %v8632_v39 = vor.u32 %v10478_v38, %v8631_v37  ;;  %s16404_s8 = scalar_lea.vmem [#allocation10], %s8578_s29  ;;  %s10936_s16 = sshll.u32 %s11414_s28, 8 }
  0x31   : > { %v373_v6 = vpack.c.bf16 %v358_v5, %v357_v4  ;;  %v360_v8 = vld [vmem:[%s11492_s13 + $0x18] sm:$0xff]  ;;  %v361_v10 = vld [vmem:[%s11492_s13 + $0x20] sm:$0xff]  ;;  %v362_v11 = vld [vmem:[%s11492_s13 + $0x28] sm:$0xff]  ;;  %s8459_s29 = scalar_lea.hbm %s16754_s7, %s10936_s16  ;;  %s8460_s1 = sshll.u32 %s16404_s8, 4  ;;  %s8461_s1 = int_to_ptr.vmem [resolvable:$true] %s8460_s1 }
  0x32   : > { %v374_v9 = vpack.c.bf16 %v360_v8, %v359_v7  ;;  %v375_v12 = vpack.c.bf16 %v362_v11, %v361_v10  ;;  %v363_v13 = vld [vmem:[%s11492_s13 + $0x30] sm:$0xff]  ;;  %v364_v14 = vld [vmem:[%s11492_s13 + $0x38] sm:$0xff]  ;;  %v365_v16 = vld [vmem:[%s11492_s13 + $0x40] sm:$0xff]  ;;  %s8462_s2 = sshll.u32 %s8459_s29, 4  ;;  %s8447_s26 = scalar_lea.sflag [#allocation4], %s335_s20  ;;  %s8463_s2 = int_to_ptr.hbm [resolvable:$true] %s8462_s2 }
  0x33   : > { %447 = vmatpush.bf16.msra.mxu0 %v10468_v2  ;;  %v376_v15 = vpack.c.bf16 %v364_v14, %v363_v13  ;;  %v366_v17 = vld [vmem:[%s11492_s13 + $0x48] sm:$0xff]  ;;  %v367_v22 = vld [vmem:[%s11492_s13 + $0x50] sm:$0xff]  ;;  %v368_v23 = vld [vmem:[%s11492_s13 + $0x58] sm:$0xff]  ;;  %632 = vmatpush.bf16.msra.mxu1 %v8656_v28  ;;  %s11278_s28 = sshra.s32 %s8463_s2, 4  ;;  %s11284_s22 = scalar_lea.hbm %s16754_s7, 2048  ;;  %s11279_s28 = int_to_ptr.hbm [resolvable:$true] %s11278_s28 }
  0x34   : > { %v377_v18 = vpack.c.bf16 %v366_v17, %v365_v16  ;;  %v378_v24 = vpack.c.bf16 %v368_v23, %v367_v22  ;;  %10938 = vmatpush.bf16.msra.mxu3 %v8656_v28  ;;  %v369_v34 = vld [vmem:[%s11492_s13 + $0x60] sm:$0xff]  ;;  %v370_v35 = vld [vmem:[%s11492_s13 + $0x68] sm:$0xff]  ;;  %v8615_v43 = vld [vmem:[#allocation5 + $0x10] sm:$0xf]  ;;  %s11280_s10 = scalar_lea.hbm %s11279_s28, 256  ;;  %p11285_p3 = scmp.lt.s32.totalorder %s11279_s28, %s16754_s7 }
  0x35   : > { %v379_v36 = vpack.c.bf16 %v370_v35, %v369_v34  ;;  %v10476_v41 = vld [vmem:[#allocation5 + $0x24] sm:$0xf0]  ;;  %v10474_v44 = vld [vmem:[#allocation5 + $0x14] sm:$0xf0]  ;;  %v8607_v46 = vld [vmem:[#allocation5] sm:$0xf]  ;;  %p11281_p0 = scmp.ne.s32.totalorder %s11279_s28, %s11280_s10  ;;  %p11286_p4 = scmp.lt.s32.totalorder %s11284_s22, %s11280_s10 }
  0x36   : > { %v8624_v42 = vor.u32 %v10476_v41, %v8623_v40  ;;  %v8616_v45 = vor.u32 %v10474_v44, %v8615_v43  ;;  %v10472_v47 = vld [vmem:[#allocation5 + $0x4] sm:$0xf0]  ;;  %v371_v48 = vld [vmem:[%s11492_s13 + $0x70] sm:$0xff]  ;;  %v372_v49 = vld [vmem:[%s11492_s13 + $0x78] sm:$0xff] }
  0x37   : > { %448 = vmatpush.bf16.msra.mxu0 %v10467_v3  ;;  %633 = vmatpush.bf16.msra.mxu1 %v8648_v30  ;;  %v8608_v50 = vor.u32 %v10472_v47, %v8607_v46  ;;  %v380_v51 = vpack.c.bf16 %v372_v49, %v371_v48  ;;  %v10485_v52 = vld [vmem:[#allocation5 + $0x74] sm:$0xf]  ;;  %v8665_v53 = vld [vmem:[#allocation5 + $0x78] sm:$0xf0]  ;;  %v10483_v55 = vld [vmem:[#allocation5 + $0x64] sm:$0xf]  ;;  %p11282_p1 = pnand %p11281_p0, %p11431_p5  ;;  %p11287_p7 = por %p11286_p4, %p11285_p3 }
  0x38   : > { %10939 = vmatpush.bf16.msra.mxu3 %v8648_v30  ;;  %v8668_v54 = vor.u32 %v10485_v52, %v8665_v53  ;;  %v8657_v56 = vld [vmem:[#allocation5 + $0x68] sm:$0xf0]  ;;  %v10481_v58 = vld [vmem:[#allocation5 + $0x54] sm:$0xf]  ;;  %v8649_v59 = vld [vmem:[#allocation5 + $0x58] sm:$0xf0] }
  0x39   : > { %v8660_v57 = vor.u32 %v10483_v55, %v8657_v56  ;;  %v8652_v60 = vor.u32 %v10481_v58, %v8649_v59  ;;  %v10479_v61 = vld [vmem:[#allocation5 + $0x44] sm:$0xf]  ;;  %v8641_v62 = vld [vmem:[#allocation5 + $0x48] sm:$0xf0]  ;;  %v10477_v0 = vld [vmem:[#allocation5 + $0x34] sm:$0xf]  ;;  %p11283_p2 = pneg %p11282_p1 }
  0x3a   : > { %8597 = vmatmul.msk.bf16.vlgmr.msra.gmra.mxu0 %vm416_vm0, %v373_v6  ;;  %10945 = vmatpush.bf16.msra.mxu2 %v8668_v54  ;;  %v8644_v63 = vor.u32 %v10479_v61, %v8641_v62  ;;  %v8633_v1 = vld [vmem:[#allocation5 + $0x38] sm:$0xf0]  ;;  %v11518_v4 = vld [vmem:[#allocation8] ss:$0 sm:$0xff]  ;;  %v10475_v5 = vld [vmem:[#allocation5 + $0x24] sm:$0xf] }
  0x3b   : > { %634 = vmatpush.bf16.msra.mxu1 %v8640_v33  ;;  %v8636_v3 = vor.u32 %v10477_v0, %v8633_v1  ;;  %v8625_v6 = vld [vmem:[#allocation5 + $0x28] sm:$0xf0]  ;;  %v8617_v10 = vld [vmem:[#allocation5 + $0x18] sm:$0xf0]  ;;  %v10471_v16 = vld [vmem:[#allocation5 + $0x4] sm:$0xf]  ;;  %p11288_p8 = pnand %p11287_p7, %p11283_p2 }
  0x3c   : > { %10940 = vmatpush.bf16.msra.mxu3 %v8640_v33  ;;  %v8628_v7 = vor.u32 %v10475_v5, %v8625_v6  ;;  %v8609_v17 = vld [vmem:[#allocation5 + $0x8] sm:$0xf0] }
  0x3e   : > { %10946 = vmatpush.bf16.msra.mxu2 %v8660_v57 }
  0x3f   : > { %635 = vmatpush.bf16.msra.mxu1 %v8632_v39 }
  0x40   : > { %10941 = vmatpush.bf16.msra.mxu3 %v8632_v39 }
  0x42   : > { %10947 = vmatpush.bf16.msra.mxu2 %v8652_v60 }
  0x43   : > { %636 = vmatpush.bf16.msra.mxu1 %v8624_v42 }
  0x44   : > { %10942 = vmatpush.bf16.msra.mxu3 %v8624_v42 }
  0x46   : > { %10948 = vmatpush.bf16.msra.mxu2 %v8644_v63 }
  0x47   : > { %637 = vmatpush.bf16.msra.mxu1 %v8616_v45 }
  0x48   : > { %10943 = vmatpush.bf16.msra.mxu3 %v8616_v45 }
  0x4a   : > { %8598 = vmatmul.msk.bf16.gmra.mxu0 %vm416_vm0, %v374_v9  ;;  %10949 = vmatpush.bf16.msra.mxu2 %v8636_v3  ;;  %v10473_v9 = vld [vmem:[#allocation5 + $0x14] sm:$0xf] }
  0x4b   : > { %638 = vmatpush.bf16.msra.mxu1 %v8608_v50 }
  0x4c   : > { %10944 = vmatpush.bf16.msra.mxu3 %v8608_v50 }
  0x4e   : > { %10950 = vmatpush.bf16.msra.mxu2 %v8628_v7 }
  0x4f   : > { %680 = vmatpush.bf16.msrb.mxu1 %v8668_v54 }
  0x53   : > { %681 = vmatpush.bf16.msrb.mxu1 %v8660_v57 }
  0x57   : > { %682 = vmatpush.bf16.msrb.mxu1 %v8652_v60 }
  0x5a   : > { %8599 = vmatmul.msk.bf16.gmra.mxu0 %vm416_vm0, %v375_v12  ;;  %v8620_v12 = vor.u32 %v10473_v9, %v8617_v10 }
  0x5b   : > { %683 = vmatpush.bf16.msrb.mxu1 %v8644_v63 }
  0x5c   : > { %10951 = vmatpush.bf16.msra.mxu2 %v8620_v12 }
  0x5f   : > { %684 = vmatpush.bf16.msrb.mxu1 %v8636_v3 }
  0x63   : > { %685 = vmatpush.bf16.msrb.mxu1 %v8628_v7 }
  0x67   : > { %686 = vmatpush.bf16.msrb.mxu1 %v8620_v12 }
  0x6a   : > { %8600 = vmatmul.msk.bf16.gmra.mxu0 %vm416_vm0, %v376_v15 }
  0x7a   : > { %8601 = vmatmul.msk.bf16.gmra.mxu0 %vm416_vm0, %v377_v18  ;;  %v8612_v18 = vor.u32 %v10471_v16, %v8609_v17 }
  0x7c   : > { %687 = vmatpush.bf16.msrb.mxu1 %v8612_v18  ;;  %10952 = vmatpush.bf16.msra.mxu2 %v8612_v18 }
  0x8a   : > { %8602 = vmatmul.msk.bf16.gmra.mxu0 %vm416_vm0, %v378_v24 }
  0x9a   : > { %8603 = vmatmul.msk.bf16.gmra.mxu0 %vm416_vm0, %v379_v36 }
  0xaa   : > { %8604 = vmatmul.msk.bf16.gmra.mxu0 %vm416_vm0, %v380_v51 }
  0xb7   : > { %v450_v2 = vpop.f32.mrf.mxu0 }
  0xb8   : > { %v451_v8 = vadd.f32 %v11518_v4, %v450_v2 }
  0xba   : > { %v490_v13 = vmul.f32 0.2, %v451_v8 }
  0xbc   : > { %v506_v19 = vmax.f32 %v451_v8, %v490_v13 }
  0xbf   : > { %v452_v11 = vpop.f32.mrf.mxu0 }
  0xc0   : > { %v453_v14 = vadd.f32 %v11518_v4, %v452_v11 }
  0xc2   : > { %v491_v15 = vmul.f32 0.2, %v453_v14 }
  0xc4   : > { %v507_v20 = vmax.f32 %v453_v14, %v491_v15 }
  0xc6   : > { %v522_v21 = vpack.c.bf16 %v507_v20, %v506_v19 }
  0xc7   : > { %v455_v22 = vpop.f32.mrf.mxu0 }
  0xc8   : > { %639 = vmatmul.bf16.vlgmr.msra.gmra.mxu1 %v522_v21  ;;  %v456_v23 = vadd.f32 %v11518_v4, %v455_v22 }
  0xca   : > { %v492_v25 = vmul.f32 0.2, %v456_v23 }
  0xcc   : > { %v508_v28 = vmax.f32 %v456_v23, %v492_v25  ;;  %v10549_v25 = vld [vmem:[%s16750_s3 + $0x1ec] sm:$0xf0] }
  0xcf   : > { %v457_v24 = vpop.f32.mrf.mxu0 }
  0xd0   : > { %v458_v26 = vadd.f32 %v11518_v4, %v457_v24  ;;  %v8911_v24 = vld [vmem:[%s16750_s3 + $0x1e0] sm:$0xf] }
  0xd2   : > { %v493_v27 = vmul.f32 0.2, %v458_v26 }
  0xd4   : > { %v509_v29 = vmax.f32 %v458_v26, %v493_v27 }
  0xd6   : > { %v523_v30 = vpack.c.bf16 %v509_v29, %v508_v28 }
  0xd7   : > { %v460_v31 = vpop.f32.mrf.mxu0 }
  0xd8   : > { %644 = vmatmul.bf16.gmra.mxu1 %v523_v30  ;;  %v461_v32 = vadd.f32 %v11518_v4, %v460_v31 }
  0xda   : > { %v494_v34 = vmul.f32 0.2, %v461_v32 }
  0xdc   : > { %v510_v37 = vmax.f32 %v461_v32, %v494_v34  ;;  %v8895_v32 = vld [vmem:[%s16750_s3 + $0x1c0] sm:$0xf] }
  0xdf   : > { %v462_v33 = vpop.f32.mrf.mxu0 }
  0xe0   : > { %v463_v35 = vadd.f32 %v11518_v4, %v462_v33  ;;  %v10545_v33 = vld [vmem:[%s16750_s3 + $0x1cc] sm:$0xf0] }
  0xe1   : > { %v8896_v34 = vor.u32 %v10545_v33, %v8895_v32 }
  0xe2   : > { %v495_v36 = vmul.f32 0.2, %v463_v35 }
  0xe4   : > { %v511_v38 = vmax.f32 %v463_v35, %v495_v36 }
  0xe6   : > { %v524_v39 = vpack.c.bf16 %v511_v38, %v510_v37  ;;  %v8783_v38 = vld [vmem:[%s16750_s3 + $0xe0] sm:$0xf] }
  0xe7   : > { %v465_v40 = vpop.f32.mrf.mxu0 }
  0xe8   : > { %649 = vmatmul.bf16.vlgmr.msra.gmra.mxu3 %v524_v39  ;;  %688 = vmatmul.bf16.vlgmr.msrb.gmra.mxu1 %v522_v21  ;;  %v466_v41 = vadd.f32 %v11518_v4, %v465_v40 }
  0xe9   : > { %698 = vmatmul.bf16.vlgmr.msra.gmra.mxu2 %v524_v39  ;;  %v10517_v39 = vld [vmem:[%s16750_s3 + $0xec] sm:$0xf0] }
  0xea   : > { %v496_v43 = vmul.f32 0.2, %v466_v41  ;;  %v8784_v40 = vor.u32 %v10517_v39, %v8783_v38 }
  0xec   : > { %v512_v46 = vmax.f32 %v466_v41, %v496_v43  ;;  %1442 = vmatpush.bf16.msrb.mxu3 %v8784_v40  ;;  %v10547_v43 = vld [vmem:[%s16750_s3 + $0x1e4] sm:$0xf] }
  0xef   : > { %v467_v42 = vpop.f32.mrf.mxu0 }
  0xf0   : > { %v468_v44 = vadd.f32 %v11518_v4, %v467_v42 }
  0xf2   : > { %v497_v45 = vmul.f32 0.2, %v468_v44 }
  0xf4   : > { %v513_v47 = vmax.f32 %v468_v44, %v497_v45  ;;  %v8913_v44 = vld [vmem:[%s16750_s3 + $0x1f0] sm:$0xf0]  ;;  %v8879_v45 = vld [vmem:[%s16750_s3 + $0x1a0] sm:$0xf] }
  0xf6   : > { %v525_v48 = vpack.c.bf16 %v513_v47, %v512_v46  ;;  %v8916_v47 = vor.u32 %v10547_v43, %v8913_v44 }
  0xf7   : > { %v470_v49 = vpop.f32.mrf.mxu0 }
  0xf8   : > { %654 = vmatmul.bf16.gmra.mxu3 %v525_v48  ;;  %693 = vmatmul.bf16.gmra.mxu1 %v523_v30  ;;  %v471_v50 = vadd.f32 %v11518_v4, %v470_v49 }
  0xf9   : > { %703 = vmatmul.bf16.gmra.mxu2 %v525_v48  ;;  %v10541_v48 = vld [vmem:[%s16750_s3 + $0x1ac] sm:$0xf0] }
  0xfa   : > { %v498_v52 = vmul.f32 0.2, %v471_v50  ;;  %1589 = vmatpush.bf16.msrb.mxu2 %v8916_v47 }
  0xfc   : > { %v514_v55 = vmax.f32 %v471_v50, %v498_v52  ;;  %v8880_v50 = vor.u32 %v10541_v48, %v8879_v45  ;;  %v8767_v52 = vld [vmem:[%s16750_s3 + $0xc0] sm:$0xf] }
  0xff   : > { %v472_v51 = vpop.f32.mrf.mxu0 }
 0x100   : > { %v473_v53 = vadd.f32 %v11518_v4, %v472_v51 }
 0x102   : > { %v499_v54 = vmul.f32 0.2, %v473_v53 }
 0x104   : > { %v515_v56 = vmax.f32 %v473_v53, %v499_v54  ;;  %v10513_v53 = vld [vmem:[%s16750_s3 + $0xcc] sm:$0xf0]  ;;  %v10543_v54 = vld [vmem:[%s16750_s3 + $0x1c4] sm:$0xf] }
 0x106   : > { %v526_v57 = vpack.c.bf16 %v515_v56, %v514_v55  ;;  %v8768_v55 = vor.u32 %v10513_v53, %v8767_v52  ;;  %v8897_v56 = vld [vmem:[%s16750_s3 + $0x1d0] sm:$0xf0] }
 0x107   : > { %v475_v58 = vpop.f32.mrf.mxu0 }
 0x108   : > { %659 = vmatmul.bf16.gmra.mxu3 %v526_v57  ;;  %v476_v59 = vadd.f32 %v11518_v4, %v475_v58  ;;  %v8900_v58 = vor.u32 %v10543_v54, %v8897_v56 }
 0x109   : > { %708 = vmatmul.bf16.gmra.mxu2 %v526_v57  ;;  %1443 = vmatpush.bf16.msrb.mxu3 %v8768_v55 }
 0x10a   : > { %v500_v61 = vmul.f32 0.2, %v476_v59  ;;  %1590 = vmatpush.bf16.msrb.mxu2 %v8900_v58 }
 0x10c   : > { %v516_v0 = vmax.f32 %v476_v59, %v500_v61  ;;  %v8751_v61 = vld [vmem:[%s16750_s3 + $0xa0] sm:$0xf] }
 0x10f   : > { %v477_v60 = vpop.f32.mrf.mxu0 }
 0x110   : > { %v478_v62 = vadd.f32 %v11518_v4, %v477_v60 }
 0x112   : > { %v501_v63 = vmul.f32 0.2, %v478_v62 }
 0x114   : > { %v517_v1 = vmax.f32 %v478_v62, %v501_v63  ;;  %v10509_v62 = vld [vmem:[%s16750_s3 + $0xac] sm:$0xf0]  ;;  %v8863_v63 = vld [vmem:[%s16750_s3 + $0x180] sm:$0xf] }
 0x116   : > { %v527_v2 = vpack.c.bf16 %v517_v1, %v516_v0  ;;  %v347_v0 = vld [vmem:[#allocation8 + $0x1] sm:$0x3]  ;;  %v8752_v1 = vor.u32 %v10509_v62, %v8751_v61 }
 0x117   : > { %v480_v3 = vpop.f32.mrf.mxu0 }
 0x118   : > { %664 = vmatmul.bf16.gmra.mxu3 %v527_v2  ;;  %v481_v5 = vadd.f32 %v11518_v4, %v480_v3  ;;  %v11622_v3 = vperm.slane %v347_v0, 1 }
 0x119   : > { %713 = vmatmul.bf16.gmra.mxu2 %v527_v2  ;;  %v10537_v2 = vld [vmem:[%s16750_s3 + $0x18c] sm:$0xf0]  ;;  %1444 = vmatpush.bf16.msrb.mxu3 %v8752_v1 }
 0x11a   : > { %v502_v7 = vmul.f32 0.2, %v481_v5 }
 0x11c   : > { %v518_v10 = vmax.f32 %v481_v5, %v502_v7 }
 0x11f   : > { %v482_v6 = vpop.f32.mrf.mxu0 }
 0x120   : > { %v483_v8 = vadd.f32 %v11518_v4, %v482_v6  ;;  %v8864_v6 = vor.u32 %v10537_v2, %v8863_v63 }
 0x122   : > { %v503_v9 = vmul.f32 0.2, %v483_v8 }
 0x124   : > { %v519_v11 = vmax.f32 %v483_v8, %v503_v9 }
 0x126   : > { %v528_v12 = vpack.c.bf16 %v519_v11, %v518_v10 }
 0x127   : > { %v485_v13 = vpop.f32.mrf.mxu0 }
 0x128   : > { %669 = vmatmul.bf16.gmra.mxu3 %v528_v12  ;;  %v486_v14 = vadd.f32 %v11518_v4, %v485_v13 }
 0x129   : > { %718 = vmatmul.bf16.gmra.mxu2 %v528_v12  ;;  %v11637_v12 = vperm.slane %v347_v0, 0 }
 0x12a   : > { %v504_v16 = vmul.f32 0.2, %v486_v14 }
 0x12c   : > { %v520_v19 = vmax.f32 %v486_v14, %v504_v16  ;;  %v8881_v16 = vld [vmem:[%s16750_s3 + $0x1b0] sm:$0xf0] }
 0x12f   : > { %v487_v15 = vpop.f32.mrf.mxu0 }
 0x130   : > { %v488_v17 = vadd.f32 %v11518_v4, %v487_v15  ;;  %v8912_v4 = vor.u32 %v10549_v25, %v8911_v24  ;;  %v10539_v15 = vld [vmem:[%s16750_s3 + $0x1a4] sm:$0xf] }
 0x132   : > { %v505_v18 = vmul.f32 0.2, %v488_v17  ;;  %1491 = vmatpush.bf16.msrb.mxu0 %v8912_v4 }
 0x134   : > { %v521_v20 = vmax.f32 %v488_v17, %v505_v18  ;;  %v8884_v18 = vor.u32 %v10539_v15, %v8881_v16 }
 0x136   : > { %v529_v21 = vpack.c.bf16 %v521_v20, %v520_v19  ;;  %1492 = vmatpush.bf16.msrb.mxu0 %v8896_v34  ;;  %1591 = vmatpush.bf16.msrb.mxu2 %v8884_v18 }
 0x138   : > { %674 = vmatmul.bf16.gmra.mxu3 %v529_v21 }
 0x139   : > { %723 = vmatmul.bf16.gmra.mxu2 %v529_v21 }
 0x13a   : > { %1493 = vmatpush.bf16.msrb.mxu0 %v8880_v50 }
 0x13e   : > { %1494 = vmatpush.bf16.msrb.mxu0 %v8864_v6 }
 0x145   : > { %v11536_v22 = vpop.f32.mrf.mxu1 }
 0x146   : > { %v11664_v25 = vadd.f32 %v11536_v22, %v11637_v12 }
 0x148   : > { %v780_v40 = vmul.f32 %v11664_v25, %v11664_v25 }
 0x14d   : > { %v11538_v23 = vpop.f32.mrf.mxu1 }
 0x14e   : > { %v11652_v17 = vadd.f32 %v11538_v23, %v11637_v12 }
 0x155   : > { %v11548_v27 = vpop.f32.mrf.mxu1 }
 0x156   : > { %v11668_v23 = vadd.f32 %v11548_v27, %v11637_v12 }
 0x158   : > { %v784_v43 = vmul.f32 %v11668_v23, %v11668_v23 }
 0x15d   : > { %v11556_v31 = vpop.f32.mrf.mxu1 }
 0x15e   : > { %v11679_v22 = vadd.f32 %v11556_v31, %v11637_v12  ;;  %v729_v31 = vadd.f32 %v11652_v17, %v11664_v25 }
 0x160   : > { %v730_v53 = vadd.f32 %v729_v31, %v11668_v23 }
 0x165   : > { %v689_v37 = vpop.f32.mrf.mxu1 }
 0x166   : > { %v11632_v10 = vadd.f32 %v689_v37, %v11622_v3  ;;  %v782_v37 = vmul.f32 %v11652_v17, %v11652_v17 }
 0x168   : > { %v781_v19 = vmul.f32 %v11632_v10, %v11632_v10 }
 0x16b   : > { %v11546_v26 = vpop.f32.mrf.mxu3 }
 0x16c   : > { %v11550_v28 = vpop.f32.mrf.mxu2  ;;  %v11692_v44 = vadd.f32 %v11546_v26, %v11637_v12 }
 0x16d   : > { %v691_v46 = vpop.f32.mrf.mxu1  ;;  %v11683_v27 = vadd.f32 %v11550_v28, %v11622_v3  ;;  %v786_v28 = vmul.f32 %v11679_v22, %v11679_v22 }
 0x16e   : > { %v11629_v8 = vadd.f32 %v691_v46, %v11622_v3  ;;  %v812_v46 = vadd.f32 %v782_v37, %v780_v40  ;;  %v788_v56 = vmul.f32 %v11692_v44, %v11692_v44 }
 0x16f   : > { %v789_v47 = vmul.f32 %v11683_v27, %v11683_v27 }
 0x170   : > { %v783_v13 = vmul.f32 %v11629_v8, %v11629_v8  ;;  %v750_v20 = vadd.f32 %v11629_v8, %v11632_v10  ;;  %v813_v54 = vadd.f32 %v812_v46, %v784_v43 }
 0x172   : > { %v833_v32 = vadd.f32 %v783_v13, %v781_v19  ;;  %v814_v61 = vadd.f32 %v813_v54, %v786_v28 }
 0x173   : > { %v11552_v29 = vpop.f32.mrf.mxu3 }
 0x174   : > { %v11554_v30 = vpop.f32.mrf.mxu2  ;;  %v11702_v48 = vadd.f32 %v11552_v29, %v11637_v12  ;;  %v815_v2 = vadd.f32 %v814_v61, %v788_v56 }
 0x175   : > { %v694_v59 = vpop.f32.mrf.mxu1  ;;  %v11706_v50 = vadd.f32 %v11554_v30, %v11622_v3 }
 0x176   : > { %v11635_v11 = vadd.f32 %v694_v59, %v11622_v3  ;;  %v731_v59 = vadd.f32 %v730_v53, %v11679_v22  ;;  %v790_v30 = vmul.f32 %v11702_v48, %v11702_v48 }
 0x177   : > { %v791_v62 = vmul.f32 %v11706_v50, %v11706_v50 }
 0x178   : > { %v785_v21 = vmul.f32 %v11635_v11, %v11635_v11  ;;  %v751_v33 = vadd.f32 %v750_v20, %v11635_v11  ;;  %v732_v1 = vadd.f32 %v731_v59, %v11692_v44  ;;  %v816_v16 = vadd.f32 %v815_v2, %v790_v30 }
 0x17a   : > { %v834_v38 = vadd.f32 %v833_v32, %v785_v21  ;;  %v733_v13 = vadd.f32 %v732_v1, %v11702_v48 }
 0x17b   : > { %v11564_v35 = vpop.f32.mrf.mxu3 }
 0x17c   : > { %v11566_v36 = vpop.f32.mrf.mxu2  ;;  %v11714_v58 = vadd.f32 %v11564_v35, %v11637_v12 }
 0x17d   : > { %v696_v9 = vpop.f32.mrf.mxu1  ;;  %v11723_v63 = vadd.f32 %v11566_v36, %v11622_v3 }
 0x17e   : > { %v11642_v14 = vadd.f32 %v696_v9, %v11622_v3  ;;  %v792_v6 = vmul.f32 %v11714_v58, %v11714_v58  ;;  %v734_v21 = vadd.f32 %v733_v13, %v11714_v58 }
 0x180   : > { %v787_v34 = vmul.f32 %v11642_v14, %v11642_v14  ;;  %v752_v39 = vadd.f32 %v751_v33, %v11642_v14  ;;  %v817_v33 = vadd.f32 %v816_v16, %v792_v6 }
 0x182   : > { %v835_v45 = vadd.f32 %v834_v38, %v787_v34  ;;  %v753_v26 = vadd.f32 %v752_v39, %v11683_v27 }
 0x183   : > { %v11574_v41 = vpop.f32.mrf.mxu3 }
 0x184   : > { %v11576_v42 = vpop.f32.mrf.mxu2  ;;  %v836_v29 = vadd.f32 %v835_v45, %v789_v47  ;;  %v754_v0 = vadd.f32 %v753_v26, %v11706_v50  ;;  %v11729_v35 = vadd.f32 %v11574_v41, %v11637_v12  ;;  %v793_v41 = vmul.f32 %v11723_v63, %v11723_v63 }
 0x185   : > { %v11736_v15 = vadd.f32 %v11576_v42, %v11622_v3  ;;  %v11350_v45 = vmov 128.0  }
 0x186   : > { %v837_v9 = vadd.f32 %v836_v29, %v791_v62  ;;  %v755_v18 = vadd.f32 %v754_v0, %v11723_v63  ;;  %v794_v42 = vmul.f32 %v11729_v35, %v11729_v35  ;;  %11043 = vrcp.f32 %v11350_v45  ;;  %v10515_v45 = vld [vmem:[%s16750_s3 + $0xe4] sm:$0xf] }
 0x187   : > { %v795_v38 = vmul.f32 %v11736_v15, %v11736_v15 }
 0x188   : > { %v838_v34 = vadd.f32 %v837_v9, %v793_v41  ;;  %v818_v31 = vadd.f32 %v817_v33, %v794_v42 }
 0x18a   : > { %v839_v47 = vadd.f32 %v838_v34, %v795_v38 }
 0x18b   : > { %v11590_v49 = vpop.f32.mrf.mxu3 }
 0x18c   : > { %v11592_v51 = vpop.f32.mrf.mxu2  ;;  %v11740_v36 = vadd.f32 %v11590_v49, %v11637_v12  ;;  %v11808_v9 = vpop.eup %11043 }
 0x18d   : > { %v11747_v19 = vadd.f32 %v11592_v51, %v11622_v3  ;;  %v735_v51 = vadd.f32 %v734_v21, %v11729_v35  ;;  %vm776_vm1 = vweird.f32 %v11808_v9 }
 0x18e   : > { %v796_v39 = vmul.f32 %v11740_v36, %v11740_v36 }
 0x18f   : > { %v797_v43 = vmul.f32 %v11747_v19, %v11747_v19  ;;  %v736_v46 = vadd.f32 %v735_v51, %v11740_v36 }
 0x190   : > { %v819_v54 = vadd.f32 %v818_v31, %v796_v39  ;;  %v8785_v31 = vld [vmem:[%s16750_s3 + $0xf0] sm:$0xf0] }
 0x193   : > { %v11606_v57 = vpop.f32.mrf.mxu3 }
 0x194   : > { %v11608_v60 = vpop.f32.mrf.mxu2  ;;  %v11754_v49 = vadd.f32 %v11606_v57, %v11637_v12  ;;  %v756_v57 = vadd.f32 %v755_v18, %v11736_v15 }
 0x195   : > { %v11758_v37 = vadd.f32 %v11608_v60, %v11622_v3 }
 0x196   : > { %v798_v28 = vmul.f32 %v11754_v49, %v11754_v49  ;;  %v757_v26 = vadd.f32 %v756_v57, %v11747_v19  ;;  %v737_v56 = vadd.f32 %v736_v46, %v11754_v49 }
 0x197   : > { %v799_v53 = vmul.f32 %v11758_v37, %v11758_v37 }
 0x198   : > { %v758_v61 = vadd.f32 %v757_v26, %v11758_v37  ;;  %v820_v0 = vadd.f32 %v819_v54, %v798_v28  ;;  %v8788_v26 = vor.u32 %v10515_v45, %v8785_v31  ;;  %v8753_v45 = vld [vmem:[%s16750_s3 + $0xb0] sm:$0xf0] }
 0x19a   : > { %1540 = vmatpush.bf16.msra.mxu1 %v8788_v26 }
 0x19b   : > { %v11624_v5 = vpop.f32.mrf.mxu3 }
 0x19c   : > { %v11626_v7 = vpop.f32.mrf.mxu2  ;;  %v11767_v40 = vadd.f32 %v11624_v5, %v11637_v12 }
 0x19d   : > { %v11774_v60 = vadd.f32 %v11626_v7, %v11622_v3 }
 0x19e   : > { %v800_v29 = vmul.f32 %v11767_v40, %v11767_v40  ;;  %v738_v1 = vadd.f32 %v737_v56, %v11767_v40 }
 0x19f   : > { %v801_v30 = vmul.f32 %v11774_v60, %v11774_v60  ;;  %v759_v16 = vadd.f32 %v758_v61, %v11774_v60 }
 0x1a0   : > { %v821_v18 = vadd.f32 %v820_v0, %v800_v29 }
 0x1a3   : > { %v11660_v24 = vpop.f32.mrf.mxu3 }
 0x1a4   : > { %v11670_v4 = vpop.f32.mrf.mxu2  ;;  %v11781_v5 = vadd.f32 %v11660_v24, %v11637_v12  ;;  %v840_v24 = vadd.f32 %v839_v47, %v797_v43  ;;  %v772_v43 = vmul.f32 128.0, %v11808_v9 }
 0x1a5   : > { %v11788_v7 = vadd.f32 %v11670_v4, %v11622_v3 }
 0x1a6   : > { %v802_v2 = vmul.f32 %v11781_v5, %v11781_v5  ;;  %v841_v13 = vadd.f32 %v840_v24, %v799_v53  ;;  %v739_v21 = vadd.f32 %v738_v1, %v11781_v5 }
 0x1a7   : > { %v760_v34 = vadd.f32 %v759_v16, %v11788_v7  ;;  %v8769_v16 = vld [vmem:[%s16750_s3 + $0xd0] sm:$0xf0] }
 0x1a8   : > { %v842_v33 = vadd.f32 %v841_v13, %v801_v30  ;;  %v10511_v13 = vld [vmem:[%s16750_s3 + $0xc4] sm:$0xf] }
 0x1ab   : > { %v670_v52 = vpop.f32.mrf.mxu3 }
 0x1ac   : > { %v719_v55 = vpop.f32.mrf.mxu2  ;;  %v11794_v59 = vadd.f32 %v670_v52, %v11637_v12 }
 0x1ad   : > { %v11800_v62 = vadd.f32 %v719_v55, %v11622_v3  ;;  %v803_v55 = vmul.f32 %v11788_v7, %v11788_v7 }
 0x1ae   : > { %v804_v42 = vmul.f32 %v11794_v59, %v11794_v59  ;;  %v740_v39 = vadd.f32 %v739_v21, %v11794_v59 }
 0x1af   : > { %v805_v51 = vmul.f32 %v11800_v62, %v11800_v62  ;;  %v843_v46 = vadd.f32 %v842_v33, %v803_v55  ;;  %v761_v28 = vadd.f32 %v760_v34, %v11800_v62 }
 0x1b1   : > { %v844_v29 = vadd.f32 %v843_v46, %v805_v51 }
 0x1b3   : > { %v672_v20 = vpop.f32.mrf.mxu3 }
 0x1b4   : > { %v721_v32 = vpop.f32.mrf.mxu2  ;;  %v11806_v6 = vadd.f32 %v672_v20, %v11637_v12 }
 0x1b5   : > { %v11814_v41 = vadd.f32 %v721_v32, %v11622_v3  ;;  %v822_v32 = vadd.f32 %v821_v18, %v802_v2  ;;  %v773_v2 = vsub.f32 1.0, %v772_v43 }
 0x1b6   : > { %v806_v57 = vmul.f32 %v11806_v6, %v11806_v6  ;;  %v741_v54 = vadd.f32 %v740_v39, %v11806_v6 }
 0x1b7   : > { %v807_v47 = vmul.f32 %v11814_v41, %v11814_v41  ;;  %v823_v53 = vadd.f32 %v822_v32, %v804_v42  ;;  %v762_v24 = vadd.f32 %v761_v28, %v11814_v41  ;;  %v8772_v42 = vor.u32 %v10511_v13, %v8769_v16 }
 0x1b8   : > { %v774_v31 = vmul.f32 %v11808_v9, %v773_v2 }
 0x1b9   : > { %v845_v55 = vadd.f32 %v844_v29, %v807_v47  ;;  %1541 = vmatpush.bf16.msra.mxu1 %v8772_v42  ;;  %v10503_v42 = vld [vmem:[%s16750_s3 + $0x84] sm:$0xf] }
 0x1bb   : > { %v675_v4 = vpop.f32.mrf.mxu3 }
 0x1bc   : > { %v724_v52 = vpop.f32.mrf.mxu2  ;;  %v11820_v20 = vadd.f32 %v675_v4, %v11637_v12  ;;  %v824_v4 = vadd.f32 %v823_v53, %v806_v57 }
 0x1bd   : > { %v11826_v38 = vadd.f32 %v724_v52, %v11622_v3 }
 0x1be   : > { %v808_v56 = vmul.f32 %v11820_v20, %v11820_v20  ;;  %v742_v0 = vadd.f32 %v741_v54, %v11820_v20 }
 0x1bf   : > { %v809_v61 = vmul.f32 %v11826_v38, %v11826_v38  ;;  %v763_v18 = vadd.f32 %v762_v24, %v11826_v38 }
 0x1c0   : > { %v825_v33 = vadd.f32 %v824_v4, %v808_v56  ;;  %v775_v4 = vadd.f32 %v11808_v9, %v774_v31 }
 0x1c1   : > { %v846_v51 = vadd.f32 %v845_v55, %v809_v61  ;;  %v8735_v61 = vld [vmem:[%s16750_s3 + $0x80] sm:$0xf] }
 0x1c3   : > { %v677_v30 = vpop.f32.mrf.mxu3 }
 0x1c4   : > { %v11849_v1 = vadd.f32 %v677_v30, %v11637_v12  ;;  %v726_v52 = vpop.f32.mrf.mxu2  ;;  %v10505_v30 = vld [vmem:[%s16750_s3 + $0x8c] sm:$0xf0] }
 0x1c5   : > { %v11859_v21 = vadd.f32 %v726_v52, %v11622_v3  ;;  %v10507_v3 = vld [vmem:[%s16750_s3 + $0xa4] sm:$0xf]  ;;  %v8736_v55 = vor.u32 %v10505_v30, %v8735_v61  ;;  %v8849_v61 = vld [vmem:[%s16750_s3 + $0x170] sm:$0xf0] }
 0x1c6   : > { %v743_v12 = vadd.f32 %v742_v0, %v11849_v1  ;;  %v810_v34 = vmul.f32 %v11849_v1, %v11849_v1  ;;  %v8756_v47 = vor.u32 %v10507_v3, %v8753_v45  ;;  %v10535_v52 = vld [vmem:[%s16750_s3 + $0x184] sm:$0xf]  ;;  %v11901_v45 = vsel %vm776_vm1, %v11808_v9, %v775_v4 }
 0x1c7   : > { %v764_v32 = vadd.f32 %v763_v18, %v11859_v21  ;;  %v811_v39 = vmul.f32 %v11859_v21, %v11859_v21  ;;  %v8865_v18 = vld [vmem:[%s16750_s3 + $0x190] sm:$0xf0]  ;;  %1445 = vmatpush.bf16.msrb.mxu3 %v8736_v55  ;;  %17034 = vst [vmem:[#allocation17_spill] sm:$0xff] %v11901_v45  ;;  %v10531_v9 = vld [vmem:[%s16750_s3 + $0x164] sm:$0xf] }
 0x1c8   : > { %v744_v57 = vrot.slane %v743_v12, 4  ;;  %v826_v43 = vadd.f32 %v825_v33, %v810_v34  ;;  %1542 = vmatpush.bf16.msra.mxu1 %v8756_v47  ;;  %v8868_v34 = vor.u32 %v10535_v52, %v8865_v18  ;;  %v8719_v47 = vld [vmem:[%s16750_s3 + $0x60] sm:$0xf]  ;;  %v10499_v30 = vld [vmem:[%s16750_s3 + $0x64] sm:$0xf] }
 0x1c9   : > { %v765_v46 = vrot.slane %v764_v32, 4  ;;  %v847_v28 = vadd.f32 %v846_v51, %v811_v39  ;;  %v8737_v51 = vld [vmem:[%s16750_s3 + $0x90] sm:$0xf0]  ;;  %v8831_v52 = vld [vmem:[%s16750_s3 + $0x140] sm:$0xf] }
 0x1ca   : > { %v745_v26 = vadd.f32 %v744_v57, %v743_v12  ;;  %v827_v53 = vrot.slane %v826_v43, 4  ;;  %v8847_v57 = vld [vmem:[%s16750_s3 + $0x160] sm:$0xf]  ;;  %v8740_v3 = vor.u32 %v10503_v42, %v8737_v51  ;;  %1592 = vmatpush.bf16.msrb.mxu2 %v8868_v34  ;;  %v8833_v34 = vld [vmem:[%s16750_s3 + $0x150] sm:$0xf0] }
 0x1cb   : > { %v766_v54 = vadd.f32 %v765_v46, %v764_v32  ;;  %v848_v56 = vrot.slane %v847_v28, 4 }
 0x1cc   : > { %v746_v29 = vrot.slane %v745_v26, 2  ;;  %v828_v24 = vadd.f32 %v827_v53, %v826_v43  ;;  %v10533_v43 = vld [vmem:[%s16750_s3 + $0x16c] sm:$0xf0]  ;;  %1543 = vmatpush.bf16.msra.mxu1 %v8740_v3  ;;  %v10495_v3 = vld [vmem:[%s16750_s3 + $0x44] sm:$0xf] }
 0x1cd   : > { %v767_v0 = vrot.slane %v766_v54, 2  ;;  %v849_v2 = vadd.f32 %v848_v56, %v847_v28  ;;  %v8848_v28 = vor.u32 %v10533_v43, %v8847_v57  ;;  %v8721_v43 = vld [vmem:[%s16750_s3 + $0x70] sm:$0xf0] }
 0x1ce   : > { %v747_v13 = vadd.f32 %v746_v29, %v745_v26  ;;  %v829_v16 = vrot.slane %v828_v24, 2  ;;  %v10501_v26 = vld [vmem:[%s16750_s3 + $0x6c] sm:$0xf0] }
 0x1cf   : > { %v768_v33 = vadd.f32 %v767_v0, %v766_v54  ;;  %v850_v12 = vrot.slane %v849_v2, 2  ;;  %v8720_v56 = vor.u32 %v10501_v26, %v8719_v47  ;;  %1495 = vmatpush.bf16.msrb.mxu0 %v8848_v28  ;;  %v8724_v47 = vor.u32 %v10499_v30, %v8721_v43  ;;  %v8817_v30 = vld [vmem:[%s16750_s3 + $0x130] sm:$0xf0] }
 0x1d0   : > { %v748_v32 = vrot.slane %v747_v13, 1  ;;  %v830_v39 = vadd.f32 %v829_v16, %v828_v24  ;;  %v8703_v16 = vld [vmem:[%s16750_s3 + $0x40] sm:$0xf] }
 0x1d1   : > { %v769_v31 = vrot.slane %v768_v33, 1  ;;  %v851_v46 = vadd.f32 %v850_v12, %v849_v2  ;;  %1446 = vmatpush.bf16.msrb.mxu3 %v8720_v56  ;;  %v8852_v2 = vor.u32 %v10531_v9, %v8849_v61  ;;  %v10527_v12 = vld [vmem:[%s16750_s3 + $0x144] sm:$0xf]  ;;  %v8815_v56 = vld [vmem:[%s16750_s3 + $0x120] sm:$0xf]  ;;  %1544 = vmatpush.bf16.msra.mxu1 %v8724_v47 }
 0x1d2   : > { %v749_v53 = vadd.f32 %v748_v32, %v747_v13  ;;  %v831_v54 = vrot.slane %v830_v39, 1  ;;  %v10529_v13 = vld [vmem:[%s16750_s3 + $0x14c] sm:$0xf0]  ;;  %v8836_v57 = vor.u32 %v10527_v12, %v8833_v34  ;;  %v10523_v61 = vld [vmem:[%s16750_s3 + $0x124] sm:$0xf] }
 0x1d3   : > { %v770_v29 = vadd.f32 %v769_v31, %v768_v33  ;;  %v852_v24 = vrot.slane %v851_v46, 1  ;;  %v8832_v42 = vor.u32 %v10529_v13, %v8831_v52  ;;  %v10497_v33 = vld [vmem:[%s16750_s3 + $0x4c] sm:$0xf0]  ;;  %1593 = vmatpush.bf16.msrb.mxu2 %v8852_v2  ;;  %v8705_v31 = vld [vmem:[%s16750_s3 + $0x50] sm:$0xf0]  ;;  %v8820_v13 = vor.u32 %v10523_v61, %v8817_v30 }
 0x1d4   : > { %v11919_v4 = vmul.f32 %v11901_v45, %v749_v53  ;;  %v832_v0 = vadd.f32 %v831_v54, %v830_v39  ;;  %v8704_v39 = vor.u32 %v10497_v33, %v8703_v16  ;;  %v8687_v53 = vld [vmem:[%s16750_s3 + $0x20] sm:$0xf]  ;;  %v10493_v54 = vld [vmem:[%s16750_s3 + $0x2c] sm:$0xf0]  ;;  %v10491_v16 = vld [vmem:[%s16750_s3 + $0x24] sm:$0xf] }
 0x1d5   : > { %v11931_v55 = vmul.f32 %v11901_v45, %v770_v29  ;;  %v853_v18 = vadd.f32 %v852_v24, %v851_v46  ;;  %1496 = vmatpush.bf16.msrb.mxu0 %v8832_v42  ;;  %v8688_v29 = vor.u32 %v10493_v54, %v8687_v53  ;;  %v10525_v24 = vld [vmem:[%s16750_s3 + $0x12c] sm:$0xf0]  ;;  %v8671_v33 = vld [vmem:[%s16750_s3] sm:$0xf]  ;;  %v10519_v34 = vld [vmem:[%s16750_s3 + $0x104] sm:$0xf] }
 0x1d6   : > { %v854_v51 = vmul.f32 %v832_v0, %v11901_v45  ;;  %v856_v32 = vmul.f32 %v11919_v4, %v11919_v4  ;;  %1447 = vmatpush.bf16.msrb.mxu3 %v8704_v39  ;;  %v8708_v0 = vor.u32 %v10495_v3, %v8705_v31  ;;  %v8816_v52 = vor.u32 %v10525_v24, %v8815_v56  ;;  %v10489_v12 = vld [vmem:[%s16750_s3 + $0xc] sm:$0xf0]  ;;  %v8799_v39 = vld [vmem:[%s16750_s3 + $0x100] sm:$0xf]  ;;  %v8791_v56 = vld [vmem:[%s16750_s3 + $0xe8] sm:$0xf] }
 0x1d7   : > { %v855_v46 = vmul.f32 %v853_v18, %v11901_v45  ;;  %v857_v28 = vmul.f32 %v11931_v55, %v11931_v55  ;;  %1594 = vmatpush.bf16.msrb.mxu2 %v8836_v57  ;;  %v8689_v18 = vld [vmem:[%s16750_s3 + $0x30] sm:$0xf0]  ;;  %v10521_v57 = vld [vmem:[%s16750_s3 + $0x10c] sm:$0xf0]  ;;  %v8921_v30 = vld [vmem:[%s16750_s3 + $0x1f8] sm:$0xf0] }
 0x1d8   : > { %v858_v26 = vsub.f32 %v854_v51, %v856_v32  ;;  %v8672_v51 = vor.u32 %v10489_v12, %v8671_v33  ;;  %1545 = vmatpush.bf16.msra.mxu1 %v8708_v0  ;;  %v8801_v32 = vld [vmem:[%s16750_s3 + $0x110] sm:$0xf0]  ;;  %v8692_v43 = vor.u32 %v10491_v16, %v8689_v18  ;;  %v8800_v31 = vor.u32 %v10521_v57, %v8799_v39  ;;  %v10516_v0 = vld [vmem:[%s16750_s3 + $0xec] sm:$0xf]  ;;  %v8793_v16 = vld [vmem:[%s16750_s3 + $0xf8] sm:$0xf0] }
 0x1d9   : > { %v859_v9 = vsub.f32 %v855_v46, %v857_v28  ;;  %1497 = vmatpush.bf16.msrb.mxu0 %v8816_v52  ;;  %v8804_v3 = vor.u32 %v10519_v34, %v8801_v32  ;;  %v10487_v46 = vld [vmem:[%s16750_s3 + $0x4] sm:$0xf]  ;;  %v8673_v28 = vld [vmem:[%s16750_s3 + $0x10] sm:$0xf0]  ;;  %v8919_v18 = vld [vmem:[%s16750_s3 + $0x1e8] sm:$0xf]  ;;  %v8796_v12 = vor.u32 %v10516_v0, %v8793_v16 }
 0x1da   : > { %v11975_v2 = vadd.f32 0.8, %v858_v26  ;;  %1448 = vmatpush.bf16.msrb.mxu3 %v8688_v29  ;;  %v8676_v47 = vor.u32 %v10487_v46, %v8673_v28  ;;  %v10548_v29 = vld [vmem:[%s16750_s3 + $0x1ec] sm:$0xf]  ;;  %v10550_v34 = vld [vmem:[%s16750_s3 + $0x1f4] sm:$0xf0] }
 0x1db   : > { %v11983_v42 = vadd.f32 0.8, %v859_v9  ;;  %1595 = vmatpush.bf16.msrb.mxu2 %v8820_v13  ;;  %v10518_v9 = vld [vmem:[%s16750_s3 + $0xf4] sm:$0xf0]  ;;  %v8924_v13 = vor.u32 %v10548_v29, %v8921_v30  ;;  %v8920_v39 = vor.u32 %v10550_v34, %v8919_v18 }
 0x1dc   : > { %11045 = vrsqrt.f32 %v11975_v2  ;;  %1546 = vmatpush.bf16.msra.mxu1 %v8692_v43  ;;  %v8792_v61 = vor.u32 %v10518_v9, %v8791_v56  ;;  %vm868_vm4 = vweird.f32 %v11975_v2  ;;  %v10546_v34 = vld [vmem:[%s16750_s3 + $0x1d4] sm:$0xf0] }
 0x1dd   : > { %11047 = vrsqrt.f32 %v11983_v42  ;;  %1498 = vmatpush.bf16.msrb.mxu0 %v8800_v31  ;;  %vm878_vm6 = vweird.f32 %v11983_v42 }
 0x1de   : > { %1449 = vmatpush.bf16.msrb.mxu3 %v8672_v51  ;;  %v348_v51 = vld [vmem:[#allocation8 + $0x3] sm:$0x3] }
 0x1df   : > { %1596 = vmatpush.bf16.msrb.mxu2 %v8804_v3  ;;  %v883_v3 = vperm.slane %v348_v51, 0  ;;  %v884_v28 = vperm.slane %v348_v51, 1 }
 0x1e0   : > { %1547 = vmatpush.bf16.msra.mxu1 %v8676_v47 }
 0x1e1   : > { %1687 = vmatpush.bf16.msra.mxu0 %v8920_v39 }
 0x1e2   : > { %v11046_v26 = vpop.eup %11045  ;;  %1638 = vmatpush.bf16.msra.mxu3 %v8792_v61 }
 0x1e3   : > { %v11048_v53 = vpop.eup %11047  ;;  %v863_v54 = vmul.f32 %v11046_v26, %v11975_v2  ;;  %1785 = vmatpush.bf16.msra.mxu2 %v8924_v13  ;;  %vm869_vm2 = vweird.f32 %v11046_v26  ;;  %v349_v2 = vld [vmem:[#allocation8 + $0x5] sm:$0x3] }
 0x1e4   : > { %v873_v24 = vmul.f32 %v11048_v53, %v11983_v42  ;;  %1736 = vmatpush.bf16.msrb.mxu1 %v8796_v12  ;;  %vm879_vm3 = vweird.f32 %v11048_v53  ;;  %vm870_vm5 = vmor %vm868_vm4, %vm869_vm2  ;;  %v8903_v12 = vld [vmem:[%s16750_s3 + $0x1c8] sm:$0xf] }
 0x1e5   : > { %v864_v52 = vmul.f32 %v11046_v26, %v863_v54  ;;  %vm880_vm7 = vmor %vm878_vm6, %vm879_vm3  ;;  %v8904_v39 = vor.u32 %v10546_v34, %v8903_v12  ;;  %vm2153_vm6 = vcmask 1041408  }
 0x1e6   : > { %v874_v33 = vmul.f32 %v11048_v53, %v873_v24 }
 0x1e7   : > { %v865_v32 = vmul.f32 0.5, %v864_v52  ;;  %1688 = vmatpush.bf16.msra.mxu0 %v8904_v39 }
 0x1e8   : > { %v875_v57 = vmul.f32 0.5, %v874_v33  ;;  %v8777_v33 = vld [vmem:[%s16750_s3 + $0xd8] sm:$0xf0] }
 0x1e9   : > { %v866_v43 = vsub.f32 1.5, %v865_v32 }
 0x1ea   : > { %v876_v31 = vsub.f32 1.5, %v875_v57 }
 0x1eb   : > { %v867_v46 = vmul.f32 %v11046_v26, %v866_v43 }
 0x1ec   : > { %v877_v47 = vmul.f32 %v11048_v53, %v876_v31 }
 0x1ed   : > { %v871_v54 = vsel %vm870_vm5, %v11046_v26, %v867_v46  ;;  %vm2151_vm5 = vcmask 1042434  }
 0x1ee   : > { %v887_v56 = vmul.f32 %v883_v3, %v871_v54  ;;  %v881_v9 = vsel %vm880_vm7, %v11048_v53, %v877_v47  ;;  %v8775_v53 = vld [vmem:[%s16750_s3 + $0xc8] sm:$0xf] }
 0x1ef   : > { %v888_v29 = vmul.f32 %v884_v28, %v881_v9 }
 0x1f0   : > { %v12039_v24 = vperm.slane %v887_v56, 0  ;;  %v889_v52 = vmul.f32 %v887_v56, %v11919_v4  ;;  %v8905_v4 = vld [vmem:[%s16750_s3 + $0x1d8] sm:$0xf0] }
 0x1f1   : > { %v890_v61 = vmul.f32 %v888_v29, %v11931_v55  ;;  %v12042_v30 = vperm.slane %v888_v29, 0  ;;  %v10514_v55 = vld [vmem:[%s16750_s3 + $0xd4] sm:$0xf0] }
 0x1f2   : > { %v12046_v0 = vmul.f32 %v12039_v24, %v11849_v1  ;;  %v8776_v13 = vor.u32 %v10514_v55, %v8775_v53  ;;  %v10544_v1 = vld [vmem:[%s16750_s3 + $0x1cc] sm:$0xf]  ;;  %v900_v57 = vmul.f32 %v12039_v24, %v11664_v25  ;;  %v902_v31 = vmul.f32 %v12039_v24, %v11652_v17 }
 0x1f3   : > { %v893_v42 = vrot.slane %v890_v61, 7  ;;  %v931_v26 = vmul.f32 %v12042_v30, %v11859_v21  ;;  %v10512_v21 = vld [vmem:[%s16750_s3 + $0xcc] sm:$0xf]  ;;  %v8908_v18 = vor.u32 %v10544_v1, %v8905_v4  ;;  %v901_v46 = vmul.f32 %v12042_v30, %v11632_v10 }
 0x1f4   : > { %1639 = vmatpush.bf16.msra.mxu3 %v8776_v13  ;;  %v8780_v32 = vor.u32 %v10512_v21, %v8777_v33  ;;  %v903_v28 = vmul.f32 %v12042_v30, %v11629_v8  ;;  %v904_v17 = vmul.f32 %v12039_v24, %v11668_v23  ;;  %v906_v10 = vmul.f32 %v12039_v24, %v11679_v22 }
 0x1f5   : > { %v895_v16 = vsel %vm894_vm8, %v889_v52, %v893_v42  ;;  %1786 = vmatpush.bf16.msra.mxu2 %v8908_v18  ;;  %v905_v8 = vmul.f32 %v12042_v30, %v11635_v11  ;;  %v908_v33 = vmul.f32 %v12039_v24, %v11692_v44  ;;  %v910_v34 = vmul.f32 %v12039_v24, %v11702_v48 }
 0x1f6   : > { %v897_v51 = vsub.f32 %v349_v2, %v895_v16  ;;  %1737 = vmatpush.bf16.msrb.mxu1 %v8780_v32  ;;  %v907_v2 = vmul.f32 %v12042_v30, %v11642_v14  ;;  %v10510_v32 = vld [vmem:[%s16750_s3 + $0xb4] sm:$0xf0]  ;;  %v916_v39 = vmul.f32 %v12039_v24, %v11740_v36  ;;  %v911_v48 = vmul.f32 %v12042_v30, %v11706_v50  ;;  %v8887_v50 = vld [vmem:[%s16750_s3 + $0x1a8] sm:$0xf] }
 0x1f8   : > { %v12078_v43 = vperm.slane %v897_v51, 0  ;;  %v12080_v3 = vperm.slane %v897_v51, 1  ;;  %v8759_v51 = vld [vmem:[%s16750_s3 + $0xa8] sm:$0xf] }
 0x1fa   : > { %v12089_v47 = vadd.f32 %v12080_v3, %v931_v26  ;;  %v937_v25 = vadd.f32 %v12078_v43, %v900_v57  ;;  %v939_v54 = vadd.f32 %v12078_v43, %v902_v31  ;;  %v938_v56 = vadd.f32 %v12080_v3, %v901_v46  ;;  %v10540_v46 = vld [vmem:[%s16750_s3 + $0x1ac] sm:$0xf] }
 0x1fb   : > { %v940_v9 = vadd.f32 %v12080_v3, %v903_v28  ;;  %v941_v26 = vadd.f32 %v12078_v43, %v904_v17  ;;  %v943_v53 = vadd.f32 %v12078_v43, %v906_v10  ;;  %v942_v23 = vadd.f32 %v12080_v3, %v905_v8  ;;  %v8889_v28 = vld [vmem:[%s16750_s3 + $0x1b8] sm:$0xf0]  ;;  %v10542_v10 = vld [vmem:[%s16750_s3 + $0x1b4] sm:$0xf0] }
 0x1fc   : > { %v969_v29 = vmul.f32 0.2, %v937_v25  ;;  %v971_v61 = vmul.f32 0.2, %v939_v54  ;;  %v970_v52 = vmul.f32 0.2, %v938_v56  ;;  %v944_v4 = vadd.f32 %v12080_v3, %v907_v2 }
 0x1fd   : > { %v972_v42 = vmul.f32 0.2, %v940_v9  ;;  %v973_v16 = vmul.f32 0.2, %v941_v26  ;;  %v975_v14 = vmul.f32 0.2, %v943_v53  ;;  %v12128_v44 = vadd.f32 %v12078_v43, %v908_v33 }
 0x1fe   : > { %v1001_v55 = vmax.f32 %v937_v25, %v969_v29  ;;  %v1003_v13 = vmax.f32 %v939_v54, %v971_v61  ;;  %v1002_v1 = vmax.f32 %v938_v56, %v970_v52  ;;  %v974_v18 = vmul.f32 0.2, %v942_v23  ;;  %v10508_v56 = vld [vmem:[%s16750_s3 + $0xac] sm:$0xf] }
 0x1ff   : > { %v1004_v22 = vmax.f32 %v940_v9, %v972_v42  ;;  %v976_v12 = vmul.f32 0.2, %v944_v4  ;;  %v909_v57 = vmul.f32 %v12042_v30, %v11683_v27  ;;  %v8760_v31 = vor.u32 %v10510_v32, %v8759_v51  ;;  %v8761_v27 = vld [vmem:[%s16750_s3 + $0xb8] sm:$0xf0] }
 0x200   : > { %v12107_v21 = vpack.c.bf16 %v1003_v13, %v1001_v55  ;;  %v1005_v25 = vmax.f32 %v941_v26, %v973_v16  ;;  %v1007_v36 = vmax.f32 %v943_v53, %v975_v14  ;;  %v8892_v54 = vor.u32 %v10540_v46, %v8889_v28 }
 0x201   : > { %v12109_v11 = vpack.c.bf16 %v1004_v22, %v1002_v1  ;;  %v953_v9 = vadd.f32 %v12078_v43, %v916_v39  ;;  %1640 = vmatpush.bf16.msra.mxu3 %v8760_v31  ;;  %v8764_v17 = vor.u32 %v10508_v56, %v8761_v27  ;;  %v918_v29 = vmul.f32 %v12039_v24, %v11754_v49 }
 0x202   : > { %1450 = vmatmul.bf16.vlgmr.msrb.gmra.mxu3 %v12107_v21  ;;  %1548 = vmatmul.bf16.vlgmr.msra.gmra.mxu1 %v12107_v21  ;;  %v917_v61 = vmul.f32 %v12042_v30, %v11747_v19  ;;  %v919_v8 = vmul.f32 %v12042_v30, %v11758_v37  ;;  %v1006_v2 = vmax.f32 %v942_v23, %v974_v18  ;;  %v12162_v53 = vmul.f32 0.2, %v12089_v47 }
 0x203   : > { %1499 = vmatmul.bf16.vlgmr.msrb.gmra.mxu0 %v12109_v11  ;;  %1597 = vmatmul.bf16.vlgmr.msrb.gmra.mxu2 %v12109_v11  ;;  %v1008_v52 = vmax.f32 %v944_v4, %v976_v12  ;;  %v8888_v42 = vor.u32 %v10542_v10, %v8887_v50  ;;  %v920_v26 = vmul.f32 %v12039_v24, %v11767_v40  ;;  %v985_v19 = vmul.f32 0.2, %v953_v9 }
 0x204   : > { %1787 = vmatpush.bf16.msra.mxu2 %v8892_v54  ;;  %v12165_v55 = vadd.f32 %v12078_v43, %v910_v34  ;;  %1738 = vmatpush.bf16.msrb.mxu1 %v8764_v17  ;;  %v955_v49 = vadd.f32 %v12078_v43, %v918_v29  ;;  %v12168_v13 = vpack.c.bf16 %v1007_v36, %v1005_v25  ;;  %v12171_v37 = vmul.f32 0.2, %v12128_v44 }
 0x205   : > { %v12174_v23 = vadd.f32 %v12080_v3, %v909_v57  ;;  %1689 = vmatpush.bf16.msra.mxu0 %v8888_v42  ;;  %v954_v40 = vadd.f32 %v12080_v3, %v917_v61  ;;  %v1017_v22 = vmax.f32 %v953_v9, %v985_v19  ;;  %v956_v4 = vadd.f32 %v12080_v3, %v919_v8  ;;  %v10536_v42 = vld [vmem:[%s16750_s3 + $0x18c] sm:$0xf] }
 0x206   : > { %v987_v1 = vmul.f32 0.2, %v955_v49  ;;  %v922_v16 = vmul.f32 %v12039_v24, %v11781_v5  ;;  %v12180_v14 = vpack.c.bf16 %v1008_v52, %v1006_v2  ;;  %v12183_v18 = vadd.f32 %v12080_v3, %v911_v48 }
 0x207   : > { %v986_v33 = vmul.f32 0.2, %v954_v40  ;;  %v957_v12 = vadd.f32 %v12078_v43, %v920_v26  ;;  %v988_v51 = vmul.f32 0.2, %v956_v4  ;;  %v921_v39 = vmul.f32 %v12042_v30, %v11774_v60 }
 0x208   : > { %v1019_v34 = vmax.f32 %v955_v49, %v987_v1  ;;  %v959_v32 = vadd.f32 %v12078_v43, %v922_v16  ;;  %v923_v5 = vmul.f32 %v12042_v30, %v11788_v7  ;;  %v924_v46 = vmul.f32 %v12039_v24, %v11794_v59  ;;  %v8873_v1 = vld [vmem:[%s16750_s3 + $0x198] sm:$0xf0] }
 0x209   : > { %v1018_v57 = vmax.f32 %v954_v40, %v986_v33  ;;  %v989_v31 = vmul.f32 0.2, %v957_v12  ;;  %v1020_v28 = vmax.f32 %v956_v4, %v988_v51  ;;  %v958_v36 = vadd.f32 %v12080_v3, %v921_v39  ;;  %v8745_v4 = vld [vmem:[%s16750_s3 + $0x98] sm:$0xf0]  ;;  %v10538_v39 = vld [vmem:[%s16750_s3 + $0x194] sm:$0xf0] }
 0x20a   : > { %v12193_v48 = vpack.c.bf16 %v1019_v34, %v1017_v22  ;;  %v991_v25 = vmul.f32 0.2, %v959_v32  ;;  %v960_v56 = vadd.f32 %v12080_v3, %v923_v5  ;;  %v926_v60 = vmul.f32 %v12039_v24, %v11806_v6  ;;  %v10504_v22 = vld [vmem:[%s16750_s3 + $0x8c] sm:$0xf] }
 0x20b   : > { %v1021_v54 = vmax.f32 %v957_v12, %v989_v31  ;;  %v961_v27 = vadd.f32 %v12078_v43, %v924_v46  ;;  %v12200_v50 = vpack.c.bf16 %v1020_v28, %v1018_v57  ;;  %v990_v9 = vmul.f32 0.2, %v958_v36 }
 0x20c   : > { %v1023_v7 = vmax.f32 %v959_v32, %v991_v25  ;;  %v925_v59 = vmul.f32 %v12042_v30, %v11800_v62  ;;  %v992_v17 = vmul.f32 0.2, %v960_v56  ;;  %v963_v10 = vadd.f32 %v12078_v43, %v926_v60  ;;  %v8743_v62 = vld [vmem:[%s16750_s3 + $0x88] sm:$0xf] }
 0x20d   : > { %v993_v29 = vmul.f32 0.2, %v961_v27  ;;  %v927_v61 = vmul.f32 %v12042_v30, %v11814_v41  ;;  %v979_v6 = vmul.f32 0.2, %v12165_v55  ;;  %v1022_v2 = vmax.f32 %v958_v36, %v990_v9  ;;  %v10506_v41 = vld [vmem:[%s16750_s3 + $0x94] sm:$0xf0] }
 0x20e   : > { %v12210_v8 = vpack.c.bf16 %v1023_v7, %v1021_v54  ;;  %v962_v52 = vadd.f32 %v12080_v3, %v925_v59  ;;  %v1024_v26 = vmax.f32 %v960_v56, %v992_v17  ;;  %v8744_v40 = vor.u32 %v10506_v41, %v8743_v62  ;;  %v8871_v32 = vld [vmem:[%s16750_s3 + $0x188] sm:$0xf] }
 0x20f   : > { %v1025_v49 = vmax.f32 %v961_v27, %v993_v29  ;;  %v964_v19 = vadd.f32 %v12080_v3, %v927_v61  ;;  %v928_v16 = vmul.f32 %v12039_v24, %v11820_v20  ;;  %v967_v33 = vadd.f32 %v12078_v43, %v12046_v0 }
 0x210   : > { %v929_v12 = vmul.f32 %v12042_v30, %v11826_v38  ;;  %v8876_v34 = vor.u32 %v10536_v42, %v8873_v1  ;;  %v8748_v51 = vor.u32 %v10504_v22, %v8745_v4  ;;  %v12246_v57 = vpack.c.bf16 %v1024_v26, %v1022_v2  ;;  %1641 = vmatpush.bf16.msra.mxu3 %v8744_v40  ;;  %v10534_v4 = vld [vmem:[%s16750_s3 + $0x174] sm:$0xf0] }
 0x211   : > { %v995_v31 = vmul.f32 0.2, %v963_v10  ;;  %v8872_v20 = vor.u32 %v10538_v39, %v8871_v32  ;;  %v994_v5 = vmul.f32 0.2, %v962_v52  ;;  %v996_v0 = vmul.f32 0.2, %v964_v19 }
 0x212   : > { %1455 = vmatmul.bf16.gmra.mxu3 %v12168_v13  ;;  %1553 = vmatmul.bf16.gmra.mxu1 %v12168_v13  ;;  %v965_v46 = vadd.f32 %v12078_v43, %v928_v16  ;;  %v978_v38 = vmul.f32 0.2, %v12174_v23  ;;  %v999_v25 = vmul.f32 0.2, %v967_v33  ;;  %v966_v36 = vadd.f32 %v12080_v3, %v929_v12 }
 0x213   : > { %1504 = vmatmul.bf16.gmra.mxu0 %v12180_v14  ;;  %1602 = vmatmul.bf16.gmra.mxu2 %v12180_v14  ;;  %v1027_v28 = vmax.f32 %v963_v10, %v995_v31  ;;  %v980_v54 = vmul.f32 0.2, %v12183_v18  ;;  %v1026_v56 = vmax.f32 %v962_v52, %v994_v5  ;;  %v1028_v60 = vmax.f32 %v964_v19, %v996_v0  ;;  %v8711_v0 = vld [vmem:[%s16750_s3 + $0x48] sm:$0xf] }
 0x214   : > { %1788 = vmatpush.bf16.msra.mxu2 %v8876_v34  ;;  %1739 = vmatpush.bf16.msrb.mxu1 %v8748_v51  ;;  %v997_v27 = vmul.f32 0.2, %v965_v46  ;;  %v1031_v9 = vmax.f32 %v967_v33, %v999_v25  ;;  %v998_v59 = vmul.f32 0.2, %v966_v36  ;;  %v1032_v17 = vmax.f32 %v12089_v47, %v12162_v53  ;;  %v8841_v25 = vld [vmem:[%s16750_s3 + $0x158] sm:$0xf0] }
 0x215   : > { %1690 = vmatpush.bf16.msra.mxu0 %v8872_v20  ;;  %v12252_v7 = vpack.c.bf16 %v1027_v28, %v1025_v49  ;;  %v12256_v29 = vpack.c.bf16 %v1028_v60, %v1026_v56  ;;  %v1009_v2 = vmax.f32 %v12128_v44, %v12171_v37  ;;  %v1011_v62 = vmax.f32 %v12165_v55, %v979_v6  ;;  %v8729_v6 = vld [vmem:[%s16750_s3 + $0x78] sm:$0xf0] }
 0x216   : > { %v1029_v61 = vmax.f32 %v965_v46, %v997_v27  ;;  %v1030_v10 = vmax.f32 %v966_v36, %v998_v59  ;;  %v1010_v52 = vmax.f32 %v12174_v23, %v978_v38  ;;  %v1012_v42 = vmax.f32 %v12183_v18, %v980_v54  ;;  %v8727_v23 = vld [vmem:[%s16750_s3 + $0x68] sm:$0xf]  ;;  %v10498_v46 = vld [vmem:[%s16750_s3 + $0x54] sm:$0xf0]  ;;  %v10528_v38 = vld [vmem:[%s16750_s3 + $0x14c] sm:$0xf] }
 0x217   : > { %v12267_v49 = vpack.c.bf16 %v1011_v62, %v1009_v2  ;;  %v912_v44 = vmul.f32 %v12039_v24, %v11714_v58  ;;  %v914_v53 = vmul.f32 %v12039_v24, %v11729_v35  ;;  %v913_v55 = vmul.f32 %v12042_v30, %v11723_v63  ;;  %v10502_v58 = vld [vmem:[%s16750_s3 + $0x74] sm:$0xf0]  ;;  %v10532_v35 = vld [vmem:[%s16750_s3 + $0x16c] sm:$0xf]  ;;  %v8713_v54 = vld [vmem:[%s16750_s3 + $0x58] sm:$0xf0] }
 0x218   : > { %v12261_v41 = vpack.c.bf16 %v1031_v9, %v1029_v61  ;;  %v12265_v26 = vpack.c.bf16 %v1032_v17, %v1030_v10  ;;  %v12269_v47 = vpack.c.bf16 %v1012_v42, %v1010_v52  ;;  %v915_v37 = vmul.f32 %v12042_v30, %v11736_v15  ;;  %v8857_v15 = vld [vmem:[%s16750_s3 + $0x178] sm:$0xf0]  ;;  %v10500_v30 = vld [vmem:[%s16750_s3 + $0x6c] sm:$0xf]  ;;  %v8839_v27 = vld [vmem:[%s16750_s3 + $0x148] sm:$0xf] }
 0x219   : > { %v949_v24 = vadd.f32 %v12078_v43, %v912_v44  ;;  %v951_v18 = vadd.f32 %v12078_v43, %v914_v53  ;;  %v8728_v63 = vor.u32 %v10502_v58, %v8727_v23  ;;  %v950_v19 = vadd.f32 %v12080_v3, %v913_v55  ;;  %v8855_v43 = vld [vmem:[%s16750_s3 + $0x168] sm:$0xf]  ;;  %v10496_v36 = vld [vmem:[%s16750_s3 + $0x4c] sm:$0xf]  ;;  %v10530_v9 = vld [vmem:[%s16750_s3 + $0x154] sm:$0xf0] }
 0x21a   : > { %v952_v40 = vadd.f32 %v12080_v3, %v915_v37  ;;  %v8860_v1 = vor.u32 %v10532_v35, %v8857_v15  ;;  %v8732_v22 = vor.u32 %v10500_v30, %v8729_v6  ;;  %v8856_v16 = vor.u32 %v10534_v4, %v8855_v43  ;;  %v8695_v17 = vld [vmem:[%s16750_s3 + $0x28] sm:$0xf]  ;;  %v10494_v61 = vld [vmem:[%s16750_s3 + $0x34] sm:$0xf0]  ;;  %v10524_v10 = vld [vmem:[%s16750_s3 + $0x12c] sm:$0xf] }
 0x21b   : > { %1642 = vmatpush.bf16.msra.mxu3 %v8728_v63  ;;  %v981_v33 = vmul.f32 0.2, %v949_v24  ;;  %v983_v12 = vmul.f32 0.2, %v951_v18  ;;  %v982_v34 = vmul.f32 0.2, %v950_v19  ;;  %v8712_v28 = vor.u32 %v10498_v46, %v8711_v0 }
 0x21c   : > { %1789 = vmatpush.bf16.msra.mxu2 %v8860_v1  ;;  %1740 = vmatpush.bf16.msrb.mxu1 %v8732_v22  ;;  %v984_v51 = vmul.f32 0.2, %v952_v40  ;;  %v8844_v56 = vor.u32 %v10528_v38, %v8841_v25  ;;  %v8716_v60 = vor.u32 %v10496_v36, %v8713_v54  ;;  %v8840_v59 = vor.u32 %v10530_v9, %v8839_v27  ;;  %v8825_v62 = vld [vmem:[%s16750_s3 + $0x138] sm:$0xf0]  ;;  %v10492_v52 = vld [vmem:[%s16750_s3 + $0x2c] sm:$0xf] }
 0x21d   : > { %1691 = vmatpush.bf16.msra.mxu0 %v8856_v16  ;;  %v1013_v3 = vmax.f32 %v949_v24, %v981_v33  ;;  %v1015_v32 = vmax.f32 %v951_v18, %v983_v12  ;;  %v1014_v39 = vmax.f32 %v950_v19, %v982_v34  ;;  %v8696_v2 = vor.u32 %v10494_v61, %v8695_v17  ;;  %v8697_v42 = vld [vmem:[%s16750_s3 + $0x38] sm:$0xf0]  ;;  %v8823_v55 = vld [vmem:[%s16750_s3 + $0x128] sm:$0xf]  ;;  %v10526_v37 = vld [vmem:[%s16750_s3 + $0x134] sm:$0xf0] }
 0x21e   : > { %v1016_v31 = vmax.f32 %v952_v40, %v984_v51  ;;  %v8828_v44 = vor.u32 %v10524_v10, %v8825_v62  ;;  %v8700_v53 = vor.u32 %v10492_v52, %v8697_v42  ;;  %v8824_v23 = vor.u32 %v10526_v37, %v8823_v55  ;;  %v8679_v58 = vld [vmem:[%s16750_s3 + $0x8] sm:$0xf]  ;;  %v10490_v35 = vld [vmem:[%s16750_s3 + $0x14] sm:$0xf0]  ;;  %v10520_v24 = vld [vmem:[%s16750_s3 + $0x10c] sm:$0xf] }
 0x21f   : > { %v12311_v20 = vpack.c.bf16 %v1015_v32, %v1013_v3  ;;  %1643 = vmatpush.bf16.msra.mxu3 %v8712_v28  ;;  %v8680_v18 = vor.u32 %v10490_v35, %v8679_v58  ;;  %v8809_v63 = vld [vmem:[%s16750_s3 + $0x118] sm:$0xf0]  ;;  %v10488_v15 = vld [vmem:[%s16750_s3 + $0xc] sm:$0xf]  ;;  %v8807_v40 = vld [vmem:[%s16750_s3 + $0x108] sm:$0xf] }
 0x220   : > { %v12313_v5 = vpack.c.bf16 %v1016_v31, %v1014_v39  ;;  %1790 = vmatpush.bf16.msra.mxu2 %v8844_v56  ;;  %1741 = vmatpush.bf16.msrb.mxu1 %v8716_v60  ;;  %v8681_v30 = vld [vmem:[%s16750_s3 + $0x18] sm:$0xf0]  ;;  %v8812_v6 = vor.u32 %v10520_v24, %v8809_v63  ;;  %v10522_v1 = vld [vmem:[%s16750_s3 + $0x114] sm:$0xf0]  ;;  %v12407_v43 = vld [vmem:[#allocation8 + $0x7] sm:$0xf] }
 0x221   : > { %1692 = vmatpush.bf16.msra.mxu0 %v8840_v59  ;;  %v8684_v19 = vor.u32 %v10488_v15, %v8681_v30  ;;  %v8808_v22 = vor.u32 %v10522_v1, %v8807_v40  ;;  %v12410_v33 = vperm.slane %v12407_v43, 1  ;;  %v12415_v12 = vperm.slane %v12407_v43, 0 }
 0x222   : > { %1460 = vmatmul.bf16.gmra.mxu3 %v12267_v49  ;;  %1558 = vmatmul.bf16.gmra.mxu1 %v12267_v49 }
 0x223   : > { %1509 = vmatmul.bf16.gmra.mxu0 %v12269_v47  ;;  %1607 = vmatmul.bf16.gmra.mxu2 %v12269_v47 }
 0x224   : > { %1644 = vmatpush.bf16.msra.mxu3 %v8696_v2  ;;  %1791 = vmatpush.bf16.msra.mxu2 %v8828_v44 }
 0x225   : > { %1742 = vmatpush.bf16.msrb.mxu1 %v8700_v53  ;;  %1693 = vmatpush.bf16.msra.mxu0 %v8824_v23 }
 0x228   : > { %1645 = vmatpush.bf16.msra.mxu3 %v8680_v18  ;;  %1792 = vmatpush.bf16.msra.mxu2 %v8812_v6 }
 0x229   : > { %1743 = vmatpush.bf16.msrb.mxu1 %v8684_v19  ;;  %1694 = vmatpush.bf16.msra.mxu0 %v8808_v22 }
 0x232   : > { %1465 = vmatmul.bf16.gmra.mxu3 %v12311_v20  ;;  %1563 = vmatmul.bf16.gmra.mxu1 %v12311_v20 }
 0x233   : > { %1514 = vmatmul.bf16.gmra.mxu0 %v12313_v5  ;;  %1612 = vmatmul.bf16.gmra.mxu2 %v12313_v5 }
 0x242   : > { %1470 = vmatmul.bf16.gmra.mxu3 %v12193_v48  ;;  %1568 = vmatmul.bf16.gmra.mxu1 %v12193_v48 }
 0x243   : > { %1519 = vmatmul.bf16.gmra.mxu0 %v12200_v50  ;;  %1617 = vmatmul.bf16.gmra.mxu2 %v12200_v50 }
 0x252   : > { %1475 = vmatmul.bf16.gmra.mxu3 %v12210_v8  ;;  %1573 = vmatmul.bf16.gmra.mxu1 %v12210_v8 }
 0x253   : > { %1524 = vmatmul.bf16.gmra.mxu0 %v12246_v57  ;;  %1622 = vmatmul.bf16.gmra.mxu2 %v12246_v57 }
 0x262   : > { %1480 = vmatmul.bf16.gmra.mxu3 %v12252_v7  ;;  %1578 = vmatmul.bf16.gmra.mxu1 %v12252_v7 }
 0x263   : > { %1529 = vmatmul.bf16.gmra.mxu0 %v12256_v29  ;;  %1627 = vmatmul.bf16.gmra.mxu2 %v12256_v29 }
 0x272   : > { %1485 = vmatmul.bf16.gmra.mxu3 %v12261_v41  ;;  %1583 = vmatmul.bf16.gmra.mxu1 %v12261_v41 }
 0x273   : > { %1534 = vmatmul.bf16.gmra.mxu0 %v12265_v26  ;;  %1632 = vmatmul.bf16.gmra.mxu2 %v12265_v26 }
 0x27f   : > { %v1549_v4 = vpop.f32.mrf.mxu1 }
 0x280   : > { %v1500_v16 = vpop.f32.mrf.mxu0  ;;  %v1550_v34 = vadd.f32 %v1549_v4, %v12410_v33 }
 0x282   : > { %1646 = vmatmul.bf16.vlgmr.msra.gmra.mxu3 %v12107_v21  ;;  %1744 = vmatmul.bf16.vlgmr.msrb.gmra.mxu1 %v12107_v21 }
 0x283   : > { %1695 = vmatmul.bf16.vlgmr.msra.gmra.mxu0 %v12109_v11  ;;  %1793 = vmatmul.bf16.vlgmr.msra.gmra.mxu2 %v12109_v11 }
 0x285   : > { %v1451_v51 = vpop.f32.mrf.mxu3 }
 0x286   : > { %v1452_v3 = vadd.f32 %v1451_v51, %v12415_v12  ;;  %v1598_v32 = vpop.f32.mrf.mxu2 }
 0x287   : > { %v12421_v39 = vadd.f32 %v1598_v32, %v1550_v34  ;;  %v1551_v31 = vpop.f32.mrf.mxu1 }
 0x288   : > { %v12423_v0 = vadd.f32 %v1500_v16, %v1452_v3  ;;  %v1502_v46 = vpop.f32.mrf.mxu0  ;;  %v1552_v21 = vadd.f32 %v1551_v31, %v12410_v33 }
 0x28a   : > { %17035 = vst [vmem:[#allocation18_spill] sm:$0xff] %v12423_v0 }
 0x28d   : > { %v1453_v38 = vpop.f32.mrf.mxu3 }
 0x28e   : > { %v1454_v28 = vadd.f32 %v1453_v38, %v12415_v12  ;;  %v1600_v25 = vpop.f32.mrf.mxu2 }
 0x28f   : > { %v12427_v36 = vadd.f32 %v1600_v25, %v1552_v21  ;;  %v1554_v11 = vpop.f32.mrf.mxu1 }
 0x290   : > { %v12429_v54 = vadd.f32 %v1502_v46, %v1454_v28  ;;  %v1505_v56 = vpop.f32.mrf.mxu0  ;;  %v1555_v60 = vadd.f32 %v1554_v11, %v12410_v33 }
 0x291   : > { %17036 = vst [vmem:[#allocation19_spill] sm:$0xff] %v12427_v36 }
 0x292   : > { %17037 = vst [vmem:[#allocation20_spill] sm:$0xff] %v12429_v54  ;;  %1651 = vmatmul.bf16.gmra.mxu3 %v12168_v13  ;;  %1749 = vmatmul.bf16.gmra.mxu1 %v12168_v13 }
 0x293   : > { %1700 = vmatmul.bf16.gmra.mxu0 %v12180_v14  ;;  %1798 = vmatmul.bf16.gmra.mxu2 %v12180_v14 }
 0x295   : > { %v1456_v27 = vpop.f32.mrf.mxu3 }
 0x296   : > { %v1457_v9 = vadd.f32 %v1456_v27, %v12415_v12  ;;  %v1603_v59 = vpop.f32.mrf.mxu2 }
 0x297   : > { %v12437_v17 = vadd.f32 %v1603_v59, %v1555_v60  ;;  %v1556_v61 = vpop.f32.mrf.mxu1 }
 0x298   : > { %v12439_v10 = vadd.f32 %v1505_v56, %v1457_v9  ;;  %v1507_v2 = vpop.f32.mrf.mxu0  ;;  %v1557_v62 = vadd.f32 %v1556_v61, %v12410_v33 }
 0x299   : > { %17038 = vst [vmem:[#allocation21_spill] sm:$0xff] %v12437_v17 }
 0x29a   : > { %17039 = vst [vmem:[#allocation22_spill] sm:$0xff] %v12439_v10 }
 0x29d   : > { %v1458_v52 = vpop.f32.mrf.mxu3 }
 0x29e   : > { %v1459_v13 = vadd.f32 %v1458_v52, %v12415_v12  ;;  %v1605_v42 = vpop.f32.mrf.mxu2 }
 0x29f   : > { %v12443_v44 = vadd.f32 %v1605_v42, %v1557_v62  ;;  %v1559_v14 = vpop.f32.mrf.mxu1 }
 0x2a0   : > { %v12445_v53 = vadd.f32 %v1507_v2, %v1459_v13  ;;  %v1510_v55 = vpop.f32.mrf.mxu0  ;;  %v1560_v37 = vadd.f32 %v1559_v14, %v12410_v33 }
 0x2a1   : > { %17040 = vst [vmem:[#allocation23_spill] sm:$0xff] %v12443_v44 }
 0x2a2   : > { %17041 = vst [vmem:[#allocation24_spill] sm:$0xff] %v12445_v53  ;;  %1656 = vmatmul.bf16.gmra.mxu3 %v12267_v49  ;;  %1754 = vmatmul.bf16.gmra.mxu1 %v12267_v49 }
 0x2a3   : > { %1705 = vmatmul.bf16.gmra.mxu0 %v12269_v47  ;;  %1803 = vmatmul.bf16.gmra.mxu2 %v12269_v47 }
 0x2a5   : > { %v1461_v23 = vpop.f32.mrf.mxu3 }
 0x2a6   : > { %v1462_v58 = vadd.f32 %v1461_v23, %v12415_v12  ;;  %v1608_v35 = vpop.f32.mrf.mxu2 }
 0x2a7   : > { %v12453_v24 = vadd.f32 %v1608_v35, %v1560_v37  ;;  %v1561_v18 = vpop.f32.mrf.mxu1 }
 0x2a8   : > { %v12455_v63 = vadd.f32 %v1510_v55, %v1462_v58  ;;  %v1512_v15 = vpop.f32.mrf.mxu0  ;;  %v1562_v30 = vadd.f32 %v1561_v18, %v12410_v33 }
 0x2a9   : > { %17042 = vst [vmem:[#allocation25_spill] sm:$0xff] %v12453_v24 }
 0x2aa   : > { %17043 = vst [vmem:[#allocation26_spill] sm:$0xff] %v12455_v63 }
 0x2ad   : > { %v1463_v6 = vpop.f32.mrf.mxu3 }
 0x2ae   : > { %v1464_v49 = vadd.f32 %v1463_v6, %v12415_v12  ;;  %v1610_v19 = vpop.f32.mrf.mxu2 }
 0x2af   : > { %v12459_v40 = vadd.f32 %v1610_v19, %v1562_v30  ;;  %v1564_v47 = vpop.f32.mrf.mxu1  ;;  %v1926_v19 = vmul.f32 %v12429_v54, %v12429_v54 }
 0x2b0   : > { %v12461_v1 = vadd.f32 %v1512_v15, %v1464_v49  ;;  %v1515_v22 = vpop.f32.mrf.mxu0  ;;  %v1565_v4 = vadd.f32 %v1564_v47, %v12410_v33  ;;  %v1923_v47 = vmul.f32 %v12421_v39, %v12421_v39 }
 0x2b1   : > { %17044 = vst [vmem:[#allocation27_spill] sm:$0xff] %v12459_v40 }
 0x2b2   : > { %17045 = vst [vmem:[#allocation28_spill] sm:$0xff] %v12461_v1  ;;  %1661 = vmatmul.bf16.gmra.mxu3 %v12311_v20  ;;  %1759 = vmatmul.bf16.gmra.mxu1 %v12311_v20 }
 0x2b3   : > { %1710 = vmatmul.bf16.gmra.mxu0 %v12313_v5  ;;  %1808 = vmatmul.bf16.gmra.mxu2 %v12313_v5 }
 0x2b5   : > { %v1466_v16 = vpop.f32.mrf.mxu3 }
 0x2b6   : > { %v1467_v34 = vadd.f32 %v1466_v16, %v12415_v12  ;;  %v1613_v51 = vpop.f32.mrf.mxu2  ;;  %v1930_v16 = vmul.f32 %v12439_v10, %v12439_v10 }
 0x2b7   : > { %v12469_v3 = vadd.f32 %v1613_v51, %v1565_v4  ;;  %v1566_v32 = vpop.f32.mrf.mxu1  ;;  %v1922_v4 = vmul.f32 %v12423_v0, %v12423_v0  ;;  %v1855_v51 = vadd.f32 %v12427_v36, %v12421_v39 }
 0x2b8   : > { %v12471_v31 = vadd.f32 %v1515_v22, %v1467_v34  ;;  %v1517_v46 = vpop.f32.mrf.mxu0  ;;  %v1567_v21 = vadd.f32 %v1566_v32, %v12410_v33  ;;  %v1931_v22 = vmul.f32 %v12437_v17, %v12437_v17  ;;  %v1834_v34 = vadd.f32 %v12429_v54, %v12423_v0 }
 0x2b9   : > { %17046 = vst [vmem:[#allocation29_spill] sm:$0xff] %v12469_v3 }
 0x2ba   : > { %17047 = vst [vmem:[#allocation30_spill] sm:$0xff] %v12471_v31 }
 0x2bd   : > { %v1468_v38 = vpop.f32.mrf.mxu3 }
 0x2be   : > { %v1469_v20 = vadd.f32 %v1468_v38, %v12415_v12  ;;  %v1615_v28 = vpop.f32.mrf.mxu2 }
 0x2bf   : > { %v12475_v25 = vadd.f32 %v1615_v28, %v1567_v21  ;;  %v1569_v5 = vpop.f32.mrf.mxu1  ;;  %v1935_v21 = vmul.f32 %v12443_v44, %v12443_v44  ;;  %v1835_v28 = vadd.f32 %v1834_v34, %v12439_v10 }
 0x2c0   : > { %v12477_v11 = vadd.f32 %v1517_v46, %v1469_v20  ;;  %v1520_v56 = vpop.f32.mrf.mxu0  ;;  %v1570_v60 = vadd.f32 %v1569_v5, %v12410_v33  ;;  %v1986_v46 = vadd.f32 %v1926_v19, %v1922_v4  ;;  %v1942_v19 = vmul.f32 %v12461_v1, %v12461_v1 }
 0x2c1   : > { %17048 = vst [vmem:[#allocation31_spill] sm:$0xff] %v12475_v25 }
 0x2c2   : > { %17049 = vst [vmem:[#allocation32_spill] sm:$0xff] %v12477_v11  ;;  %1666 = vmatmul.bf16.gmra.mxu3 %v12193_v48  ;;  %1764 = vmatmul.bf16.gmra.mxu1 %v12193_v48 }
 0x2c3   : > { %1715 = vmatmul.bf16.gmra.mxu0 %v12200_v50  ;;  %1813 = vmatmul.bf16.gmra.mxu2 %v12200_v50 }
 0x2c5   : > { %v1471_v27 = vpop.f32.mrf.mxu3 }
 0x2c6   : > { %v1472_v9 = vadd.f32 %v1471_v27, %v12415_v12  ;;  %v1618_v59 = vpop.f32.mrf.mxu2  ;;  %v1987_v27 = vadd.f32 %v1986_v46, %v1930_v16 }
 0x2c7   : > { %v12485_v61 = vadd.f32 %v1618_v59, %v1570_v60  ;;  %v12487_v2 = vpop.f32.mrf.mxu1  ;;  %v1939_v59 = vmul.f32 %v12453_v24, %v12453_v24 }
 0x2c8   : > { %v12489_v62 = vadd.f32 %v1520_v56, %v1472_v9  ;;  %v12491_v52 = vpop.f32.mrf.mxu0  ;;  %v1938_v9 = vmul.f32 %v12455_v63, %v12455_v63 }
 0x2c9   : > { %17050 = vst [vmem:[#allocation33_spill] sm:$0xff] %v12485_v61 }
 0x2ca   : > { %17051 = vst [vmem:[#allocation34_spill] sm:$0xff] %v12489_v62 }
 0x2cd   : > { %v1473_v13 = vpop.f32.mrf.mxu3 }
 0x2ce   : > { %v12493_v48 = vpop.f32.mrf.mxu2  ;;  %v1474_v16 = vadd.f32 %v1473_v13, %v12415_v12  ;;  %v1950_v13 = vmul.f32 %v12477_v11, %v12477_v11 }
 0x2cf   : > { %v1574_v42 = vpop.f32.mrf.mxu1 }
 0x2d0   : > { %v1525_v14 = vpop.f32.mrf.mxu0  ;;  %v1575_v50 = vadd.f32 %v1574_v42, %v12410_v33 }
 0x2d2   : > { %1671 = vmatmul.bf16.gmra.mxu3 %v12210_v8  ;;  %1769 = vmatmul.bf16.gmra.mxu1 %v12210_v8 }
 0x2d3   : > { %1720 = vmatmul.bf16.gmra.mxu0 %v12246_v57  ;;  %1818 = vmatmul.bf16.gmra.mxu2 %v12246_v57  ;;  %v1927_v57 = vmul.f32 %v12427_v36, %v12427_v36 }
 0x2d5   : > { %v1476_v55 = vpop.f32.mrf.mxu3  ;;  %v2007_v32 = vadd.f32 %v1927_v57, %v1923_v47  ;;  %v1943_v47 = vmul.f32 %v12459_v40, %v12459_v40 }
 0x2d6   : > { %v1477_v37 = vadd.f32 %v1476_v55, %v12415_v12  ;;  %v1623_v23 = vpop.f32.mrf.mxu2 }
 0x2d7   : > { %v12501_v58 = vadd.f32 %v1623_v23, %v1575_v50  ;;  %v12503_v35 = vpop.f32.mrf.mxu1  ;;  %v2008_v5 = vadd.f32 %v2007_v32, %v1931_v22  ;;  %v1836_v50 = vadd.f32 %v1835_v28, %v12445_v53  ;;  %v1947_v32 = vmul.f32 %v12469_v3, %v12469_v3 }
 0x2d8   : > { %v12505_v18 = vadd.f32 %v1525_v14, %v1477_v37  ;;  %v12507_v15 = vpop.f32.mrf.mxu0  ;;  %v1951_v28 = vmul.f32 %v12475_v25, %v12475_v25 }
 0x2d9   : > { %17052 = vst [vmem:[#allocation35_spill] sm:$0xff] %v12501_v58  ;;  %v2009_v57 = vadd.f32 %v2008_v5, %v1935_v21  ;;  %v1837_v22 = vadd.f32 %v1836_v50, %v12455_v63  ;;  %v1572_v21 = vadd.f32 %v12487_v2, %v12410_v33  ;;  %v1955_v50 = vmul.f32 %v12485_v61, %v12485_v61 }
 0x2da   : > { %17053 = vst [vmem:[#allocation36_spill] sm:$0xff] %v12505_v18 }
 0x2db   : > { %v1838_v46 = vadd.f32 %v1837_v22, %v12461_v1  ;;  %v10723_v1 = vld [vmem:[#allocation7 + $0x55c] sm:$0xf0] }
 0x2dd   : > { %v12509_v30 = vpop.f32.mrf.mxu3  ;;  %v1839_v2 = vadd.f32 %v1838_v46, %v12471_v31 }
 0x2de   : > { %v12511_v8 = vpop.f32.mrf.mxu2 }
 0x2df   : > { %v1579_v6 = vpop.f32.mrf.mxu1 }
 0x2e0   : > { %v1530_v49 = vpop.f32.mrf.mxu0  ;;  %v1580_v38 = vadd.f32 %v1579_v6, %v12410_v33 }
 0x2e2   : > { %1676 = vmatmul.bf16.gmra.mxu3 %v12252_v7  ;;  %1774 = vmatmul.bf16.gmra.mxu1 %v12252_v7  ;;  %v1934_v7 = vmul.f32 %v12445_v53, %v12445_v53 }
 0x2e3   : > { %1725 = vmatmul.bf16.gmra.mxu0 %v12256_v29  ;;  %1823 = vmatmul.bf16.gmra.mxu2 %v12256_v29  ;;  %v1856_v29 = vadd.f32 %v1855_v51, %v12437_v17  ;;  %v2010_v51 = vadd.f32 %v2009_v57, %v1939_v59  ;;  %v1954_v57 = vmul.f32 %v12489_v62, %v12489_v62 }
 0x2e4   : > { %v1988_v6 = vadd.f32 %v1987_v27, %v1934_v7 }
 0x2e5   : > { %v1481_v20 = vpop.f32.mrf.mxu3  ;;  %v1857_v55 = vadd.f32 %v1856_v29, %v12443_v44 }
 0x2e6   : > { %v1482_v56 = vadd.f32 %v1481_v20, %v12415_v12  ;;  %v1628_v60 = vpop.f32.mrf.mxu2  ;;  %v1989_v34 = vadd.f32 %v1988_v6, %v1938_v9  ;;  %v2011_v20 = vadd.f32 %v2010_v51, %v1943_v47 }
 0x2e7   : > { %v12545_v42 = vadd.f32 %v1628_v60, %v1580_v38  ;;  %v1581_v14 = vpop.f32.mrf.mxu1  ;;  %v1858_v4 = vadd.f32 %v1857_v55, %v12453_v24  ;;  %v12577_v60 = vadd.f32 %v12493_v48, %v1572_v21  ;;  %v1840_v48 = vadd.f32 %v1839_v2, %v12477_v11  ;;  %v10787_v11 = vld [vmem:[#allocation7 + $0x75c] sm:$0xf0] }
 0x2e8   : > { %v12549_v37 = vadd.f32 %v1530_v49, %v1482_v56  ;;  %v12551_v23 = vpop.f32.mrf.mxu0  ;;  %v1946_v49 = vmul.f32 %v12471_v31, %v12471_v31  ;;  %v1990_v38 = vadd.f32 %v1989_v34, %v1942_v19  ;;  %v12574_v56 = vadd.f32 %v12491_v52, %v1474_v16 }
 0x2e9   : > { %17054 = vst [vmem:[#allocation37_spill] sm:$0xff] %v12545_v42  ;;  %v1859_v7 = vadd.f32 %v1858_v4, %v12459_v40  ;;  %v2012_v59 = vadd.f32 %v2011_v20, %v1947_v32  ;;  %v1479_v52 = vadd.f32 %v12509_v30, %v12415_v12  ;;  %v1577_v4 = vadd.f32 %v12503_v35, %v12410_v33 }
 0x2ea   : > { %17055 = vst [vmem:[#allocation38_spill] sm:$0xff] %v12549_v37  ;;  %v1991_v9 = vadd.f32 %v1990_v38, %v1946_v49  ;;  %v1958_v34 = vmul.f32 %v12574_v56, %v12574_v56  ;;  %v1959_v51 = vmul.f32 %v12577_v60, %v12577_v60  ;;  %v1841_v30 = vadd.f32 %v1840_v48, %v12489_v62 }
 0x2eb   : > { %v1860_v5 = vadd.f32 %v1859_v7, %v12469_v3  ;;  %17056 = vst [vmem:[#allocation39_spill] sm:$0xff] %v12574_v56  ;;  %v2013_v22 = vadd.f32 %v2012_v59, %v1951_v28  ;;  %v12599_v32 = vadd.f32 %v12511_v8, %v1577_v4  ;;  %v12605_v7 = vadd.f32 %v12507_v15, %v1479_v52 }
 0x2ec   : > { %17057 = vst [vmem:[#allocation40_spill] sm:$0xff] %v12577_v60  ;;  %v1992_v47 = vadd.f32 %v1991_v9, %v1950_v13  ;;  %v1963_v38 = vmul.f32 %v12501_v58, %v12501_v58  ;;  %v1582_v8 = vadd.f32 %v1581_v14, %v12410_v33 }
 0x2ed   : > { %v1483_v29 = vpop.f32.mrf.mxu3  ;;  %v1861_v6 = vadd.f32 %v1860_v5, %v12475_v25  ;;  %v2014_v49 = vadd.f32 %v2013_v22, %v1955_v50  ;;  %17058 = vst [vmem:[#allocation41_spill] sm:$0xff] %v12599_v32  ;;  %v1962_v5 = vmul.f32 %v12505_v18, %v12505_v18  ;;  %v1967_v9 = vmul.f32 %v12599_v32, %v12599_v32 }
 0x2ee   : > { %v1630_v27 = vpop.f32.mrf.mxu2  ;;  %v1993_v35 = vadd.f32 %v1992_v47, %v1954_v57  ;;  %17059 = vst [vmem:[#allocation42_spill] sm:$0xff] %v12605_v7  ;;  %v1484_v21 = vadd.f32 %v1483_v29, %v12415_v12 }
 0x2ef   : > { %v1584_v55 = vpop.f32.mrf.mxu1  ;;  %v1862_v16 = vadd.f32 %v1861_v6, %v12485_v61  ;;  %v12619_v59 = vadd.f32 %v1630_v27, %v1582_v8  ;;  %v1966_v6 = vmul.f32 %v12605_v7, %v12605_v7  ;;  %v1971_v27 = vmul.f32 %v12545_v42, %v12545_v42 }
 0x2f0   : > { %v1535_v19 = vpop.f32.mrf.mxu0  ;;  %v1585_v20 = vadd.f32 %v1584_v55, %v12410_v33  ;;  %v1994_v28 = vadd.f32 %v1993_v35, %v1958_v34  ;;  %v12627_v57 = vadd.f32 %v12551_v23, %v1484_v21  ;;  %v1970_v34 = vmul.f32 %v12549_v37, %v12549_v37 }
 0x2f1   : > { %v1863_v46 = vadd.f32 %v1862_v16, %v12577_v60  ;;  %17060 = vst [vmem:[#allocation43_spill] sm:$0xff] %v12619_v59  ;;  %v1975_v23 = vmul.f32 %v12619_v59, %v12619_v59 }
 0x2f2   : > { %1681 = vmatmul.bf16.gmra.mxu3 %v12261_v41  ;;  %1779 = vmatmul.bf16.gmra.mxu1 %v12261_v41  ;;  %v1842_v41 = vadd.f32 %v1841_v30, %v12574_v56  ;;  %17062 = vst [vmem:[#allocation45_spill] sm:$0xff] %v12627_v57  ;;  %v1995_v4 = vadd.f32 %v1994_v28, %v1962_v5  ;;  %v10731_v56 = vld [vmem:[#allocation7 + $0x59c] sm:$0xf0] }
 0x2f3   : > { %1730 = vmatmul.bf16.gmra.mxu0 %v12265_v26  ;;  %1828 = vmatmul.bf16.gmra.mxu2 %v12265_v26  ;;  %v2015_v26 = vadd.f32 %v2014_v49, %v1959_v51  ;;  %v1864_v29 = vadd.f32 %v1863_v46, %v12501_v58  ;;  %v1974_v35 = vmul.f32 %v12627_v57, %v12627_v57 }
 0x2f4   : > { %v1843_v55 = vadd.f32 %v1842_v41, %v12505_v18 }
 0x2f5   : > { %v1486_v13 = vpop.f32.mrf.mxu3  ;;  %v2016_v47 = vadd.f32 %v2015_v26, %v1963_v38  ;;  %v1865_v22 = vadd.f32 %v1864_v29, %v12599_v32 }
 0x2f6   : > { %v1487_v15 = vadd.f32 %v1486_v13, %v12415_v12  ;;  %v1633_v2 = vpop.f32.mrf.mxu2  ;;  %v1844_v16 = vadd.f32 %v1843_v55, %v12605_v7 }
 0x2f7   : > { %v12621_v50 = vadd.f32 %v1633_v2, %v1585_v20  ;;  %v1586_v14 = vpop.f32.mrf.mxu1  ;;  %v2017_v51 = vadd.f32 %v2016_v47, %v1967_v9  ;;  %v1866_v30 = vadd.f32 %v1865_v22, %v12545_v42  ;;  %v9151_v42 = vld [vmem:[#allocation7 + $0x1c0] sm:$0xf] }
 0x2f8   : > { %v12629_v52 = vadd.f32 %v1535_v19, %v1487_v15  ;;  %v1537_v48 = vpop.f32.mrf.mxu0  ;;  %v1996_v19 = vadd.f32 %v1995_v4, %v1966_v6  ;;  %v1845_v49 = vadd.f32 %v1844_v16, %v12549_v37  ;;  %v1587_v38 = vadd.f32 %v1586_v14, %v12410_v33 }
 0x2f9   : > { %17061 = vst [vmem:[#allocation44_spill] sm:$0xff] %v12621_v50  ;;  %v2018_v46 = vadd.f32 %v2017_v51, %v1971_v27  ;;  %v1867_v21 = vadd.f32 %v1866_v30, %v12619_v59  ;;  %v1979_v41 = vmul.f32 %v12621_v50, %v12621_v50 }
 0x2fa   : > { %17063 = vst [vmem:[#allocation46_spill] sm:$0xff] %v12629_v52  ;;  %v1997_v20 = vadd.f32 %v1996_v19, %v1970_v34  ;;  %v1846_v13 = vadd.f32 %v1845_v49, %v12627_v57  ;;  %v1978_v28 = vmul.f32 %v12629_v52, %v12629_v52  ;;  %v10611_v57 = vld [vmem:[#allocation7 + $0x1dc] sm:$0xf0] }
 0x2fb   : > { %v2019_v15 = vadd.f32 %v2018_v46, %v1975_v23  ;;  %v1868_v2 = vadd.f32 %v1867_v21, %v12621_v50  ;;  %v12668_v46 = vperm.slane %v12407_v43, 2  ;;  %v9152_v32 = vor.u32 %v10611_v57, %v9151_v42 }
 0x2fc   : > { %v1998_v9 = vadd.f32 %v1997_v20, %v1974_v35  ;;  %v1847_v55 = vadd.f32 %v1846_v13, %v12629_v52 }
 0x2fd   : > { %v1488_v8 = vpop.f32.mrf.mxu3  ;;  %v2020_v47 = vadd.f32 %v2019_v15, %v1979_v41  ;;  %4011 = vmatpush.bf16.msrb.mxu3 %v9152_v32  ;;  %v10675_v32 = vld [vmem:[#allocation7 + $0x3dc] sm:$0xf0] }
 0x2fe   : > { %v1489_v26 = vadd.f32 %v1488_v8, %v12415_v12  ;;  %v1635_v5 = vpop.f32.mrf.mxu2  ;;  %v12661_v12 = vperm.slane %v12407_v43, 3  ;;  %v1999_v4 = vadd.f32 %v1998_v9, %v1978_v28 }
 0x2ff   : > { %v12652_v29 = vadd.f32 %v1635_v5, %v1587_v38  ;;  %v1745_v14 = vpop.f32.mrf.mxu1 }
 0x300   : > { %v12655_v6 = vadd.f32 %v1537_v48, %v1489_v26  ;;  %v1696_v33 = vpop.f32.mrf.mxu0  ;;  %v1746_v35 = vadd.f32 %v1745_v14, %v12661_v12 }
 0x301   : > { %v1869_v22 = vadd.f32 %v1868_v2, %v12652_v29  ;;  %v1983_v27 = vmul.f32 %v12652_v29, %v12652_v29 }
 0x302   : > { %v1848_v16 = vadd.f32 %v1847_v55, %v12655_v6  ;;  %v1982_v34 = vmul.f32 %v12655_v6, %v12655_v6 }
 0x303   : > { %v1870_v51 = vrot.slane %v1869_v22, 4  ;;  %v2021_v48 = vadd.f32 %v2020_v47, %v1983_v27 }
 0x304   : > { %v1849_v30 = vrot.slane %v1848_v16, 4  ;;  %v2000_v23 = vadd.f32 %v1999_v4, %v1982_v34 }
 0x305   : > { %v1871_v19 = vadd.f32 %v1870_v51, %v1869_v22  ;;  %v2022_v49 = vrot.slane %v2021_v48, 4  ;;  %v1647_v38 = vpop.f32.mrf.mxu3 }
 0x306   : > { %v1850_v21 = vadd.f32 %v1849_v30, %v1848_v16  ;;  %v2001_v41 = vrot.slane %v2000_v23, 4  ;;  %v1794_v8 = vpop.f32.mrf.mxu2  ;;  %v1648_v28 = vadd.f32 %v1647_v38, %v12668_v46 }
 0x307   : > { %v1872_v20 = vrot.slane %v1871_v19, 2  ;;  %v2023_v13 = vadd.f32 %v2022_v49, %v2021_v48  ;;  %v12671_v26 = vadd.f32 %v1794_v8, %v1746_v35  ;;  %v12675_v9 = vpop.f32.mrf.mxu1 }
 0x308   : > { %v1851_v5 = vrot.slane %v1850_v21, 2  ;;  %v2002_v15 = vadd.f32 %v2001_v41, %v2000_v23  ;;  %v12673_v2 = vpop.f32.mrf.mxu0  ;;  %v12677_v43 = vadd.f32 %v1696_v33, %v1648_v28 }
 0x309   : > { %17064 = vst [vmem:[#allocation47_spill] sm:$0xff] %v12671_v26  ;;  %v1873_v55 = vadd.f32 %v1872_v20, %v1871_v19  ;;  %v2024_v14 = vrot.slane %v2023_v13, 2 }
 0x30a   : > { %17065 = vst [vmem:[#allocation48_spill] sm:$0xff] %v12677_v43  ;;  %v1852_v47 = vadd.f32 %v1851_v5, %v1850_v21  ;;  %v2003_v22 = vrot.slane %v2002_v15, 2 }
 0x30b   : > { %v1874_v27 = vrot.slane %v1873_v55, 1  ;;  %v2025_v4 = vadd.f32 %v2024_v14, %v2023_v13 }
 0x30c   : > { %v1853_v16 = vrot.slane %v1852_v47, 1  ;;  %v2004_v34 = vadd.f32 %v2003_v22, %v2002_v15 }
 0x30d   : > { %v1875_v51 = vadd.f32 %v1874_v27, %v1873_v55  ;;  %v2026_v48 = vrot.slane %v2025_v4, 1  ;;  %v12679_v35 = vpop.f32.mrf.mxu3 }
 0x30e   : > { %v1854_v30 = vadd.f32 %v1853_v16, %v1852_v47  ;;  %v2005_v49 = vrot.slane %v2004_v34, 1  ;;  %v12681_v23 = vpop.f32.mrf.mxu2 }
 0x30f   : > { %v12684_v41 = vmul.f32 %v1875_v51, %v11901_v45  ;;  %v2027_v19 = vadd.f32 %v2026_v48, %v2025_v4  ;;  %v1750_v8 = vpop.f32.mrf.mxu1 }
 0x310   : > { %v12687_v33 = vmul.f32 %v1854_v30, %v11901_v45  ;;  %v2006_v21 = vadd.f32 %v2005_v49, %v2004_v34  ;;  %v1701_v38 = vpop.f32.mrf.mxu0  ;;  %v1751_v47 = vadd.f32 %v1750_v8, %v12661_v12 }
 0x311   : > { %v2071_v20 = vmul.f32 %v2027_v19, %v11901_v45  ;;  %v2075_v13 = vmul.f32 %v12684_v41, %v12684_v41 }
 0x312   : > { %v2070_v28 = vmul.f32 %v2006_v21, %v11901_v45  ;;  %v2074_v5 = vmul.f32 %v12687_v33, %v12687_v33 }
 0x313   : > { %v2079_v15 = vsub.f32 %v2071_v20, %v2075_v13 }
 0x314   : > { %v2078_v55 = vsub.f32 %v2070_v28, %v2074_v5 }
 0x315   : > { %v2083_v14 = vadd.f32 0.8, %v2079_v15  ;;  %v1652_v27 = vpop.f32.mrf.mxu3 }
 0x316   : > { %v2082_v22 = vadd.f32 0.8, %v2078_v55  ;;  %v1799_v4 = vpop.f32.mrf.mxu2  ;;  %v1653_v16 = vadd.f32 %v1652_v27, %v12668_v46 }
 0x317   : > { %11049 = vrsqrt.f32 %v2083_v14  ;;  %v12697_v34 = vadd.f32 %v1799_v4, %v1751_v47  ;;  %v12701_v48 = vpop.f32.mrf.mxu1  ;;  %v12709_v47 = vld [vmem:[#allocation8 + $0xb] sm:$0xf]  ;;  %vm2102_vm12 = vweird.f32 %v2083_v14 }
 0x318   : > { %11051 = vrsqrt.f32 %v2082_v22  ;;  %v12699_v51 = vpop.f32.mrf.mxu0  ;;  %v12703_v30 = vadd.f32 %v1701_v38, %v1653_v16  ;;  %v2127_v52 = vperm.slane %v12709_v47, 0  ;;  %v2128_v50 = vperm.slane %v12709_v47, 1 }
 0x319   : > { %vm2092_vm11 = vweird.f32 %v2082_v22  ;;  %v1933_v0 = vmul.f32 %v12697_v34, %v12697_v34 }
 0x31d   : > { %v11050_v49 = vpop.eup %11049  ;;  %v12705_v20 = vpop.f32.mrf.mxu3 }
 0x31e   : > { %v11052_v19 = vpop.eup %11051  ;;  %v2097_v21 = vmul.f32 %v11050_v49, %v2083_v14  ;;  %v12707_v8 = vpop.f32.mrf.mxu2  ;;  %vm2103_vm9 = vweird.f32 %v11050_v49 }
 0x31f   : > { %v2087_v13 = vmul.f32 %v11052_v19, %v2082_v22  ;;  %v1755_v15 = vpop.f32.mrf.mxu1  ;;  %vm2093_vm10 = vweird.f32 %v11052_v19  ;;  %vm2104_vm13 = vmor %vm2102_vm12, %vm2103_vm9 }
 0x320   : > { %v2098_v28 = vmul.f32 %v11050_v49, %v2097_v21  ;;  %v1706_v5 = vpop.f32.mrf.mxu0  ;;  %v1756_v59 = vadd.f32 %v1755_v15, %v12661_v12  ;;  %vm2094_vm14 = vmor %vm2092_vm11, %vm2093_vm10 }
 0x321   : > { %v2088_v55 = vmul.f32 %v11052_v19, %v2087_v13 }
 0x322   : > { %v2099_v27 = vmul.f32 0.5, %v2098_v28  ;;  %v9919_v28 = vld [vmem:[#allocation7 + $0x7c0] sm:$0xf] }
 0x323   : > { %v2089_v4 = vmul.f32 0.5, %v2088_v55  ;;  %v10803_v55 = vld [vmem:[#allocation7 + $0x7dc] sm:$0xf0] }
 0x324   : > { %v2100_v38 = vsub.f32 1.5, %v2099_v27  ;;  %v9920_v7 = vor.u32 %v10803_v55, %v9919_v28  ;;  %v10603_v55 = vld [vmem:[#allocation7 + $0x19c] sm:$0xf0] }
 0x325   : > { %v2090_v16 = vsub.f32 1.5, %v2089_v4  ;;  %v1657_v13 = vpop.f32.mrf.mxu3 }
 0x326   : > { %v2101_v21 = vmul.f32 %v11050_v49, %v2100_v38  ;;  %v1804_v37 = vpop.f32.mrf.mxu2  ;;  %v1658_v27 = vadd.f32 %v1657_v13, %v12668_v46  ;;  %4158 = vmatpush.bf16.msrb.mxu2 %v9920_v7 }
 0x327   : > { %v2091_v58 = vmul.f32 %v11052_v19, %v2090_v16  ;;  %v12716_v4 = vadd.f32 %v1804_v37, %v1756_v59  ;;  %v12721_v22 = vpop.f32.mrf.mxu1  ;;  %v9407_v16 = vld [vmem:[#allocation7 + $0x3c0] sm:$0xf] }
 0x328   : > { %v2105_v15 = vsel %vm2104_vm13, %v11050_v49, %v2101_v21  ;;  %v12719_v18 = vpop.f32.mrf.mxu0  ;;  %v12725_v57 = vadd.f32 %v1706_v5, %v1658_v27  ;;  %v10739_v5 = vld [vmem:[#allocation7 + $0x5dc] sm:$0xf0] }
 0x329   : > { %v2095_v14 = vsel %vm2094_vm14, %v11052_v19, %v2091_v58  ;;  %v12723_v42 = vmul.f32 %v2128_v50, %v2105_v15  ;;  %v9663_v19 = vld [vmem:[#allocation7 + $0x5c0] sm:$0xf] }
 0x32a   : > { %v12727_v38 = vmul.f32 %v2127_v52, %v2095_v14  ;;  %v9408_v52 = vor.u32 %v10675_v32, %v9407_v16  ;;  %v9664_v21 = vor.u32 %v10739_v5, %v9663_v19  ;;  %v9887_v27 = vld [vmem:[#allocation7 + $0x780] sm:$0xf] }
 0x32b   : > { %v12730_v37 = vperm.slane %v12723_v42, 0  ;;  %v9375_v19 = vld [vmem:[#allocation7 + $0x380] sm:$0xf] }
 0x32c   : > { %v12733_v59 = vperm.slane %v12727_v38, 0  ;;  %4060 = vmatpush.bf16.msrb.mxu0 %v9408_v52  ;;  %4109 = vmatpush.bf16.msra.mxu1 %v9664_v21  ;;  %v10667_v5 = vld [vmem:[#allocation7 + $0x39c] sm:$0xf0] }
 0x32d   : > { %v12737_v49 = vmul.f32 %v12730_v37, %v12652_v29  ;;  %v12743_v50 = vpop.f32.mrf.mxu3  ;;  %v9119_v29 = vld [vmem:[#allocation7 + $0x180] sm:$0xf]  ;;  %v9376_v61 = vor.u32 %v10667_v5, %v9375_v19 }
 0x32e   : > { %17066 = vst [vmem:[#allocation49_spill] sm:$0xff] %v12733_v59  ;;  %v12741_v58 = vmul.f32 %v12733_v59, %v12655_v6  ;;  %v12745_v7 = vpop.f32.mrf.mxu2  ;;  %v9120_v14 = vor.u32 %v10603_v55, %v9119_v29  ;;  %v9631_v52 = vld [vmem:[#allocation7 + $0x580] sm:$0xf]  ;;  %v1924_v59 = vmul.f32 %v12677_v43, %v12677_v43 }
 0x32f   : > { %17067 = vst [vmem:[#allocation50_spill] sm:$0xff] %v12737_v49  ;;  %v12749_v28 = vpop.f32.mrf.mxu1  ;;  %v10795_v49 = vld [vmem:[#allocation7 + $0x79c] sm:$0xf0]  ;;  %v9632_v62 = vor.u32 %v10731_v56, %v9631_v52 }
 0x330   : > { %17068 = vst [vmem:[#allocation51_spill] sm:$0xff] %v12741_v58  ;;  %v12747_v13 = vpop.f32.mrf.mxu0  ;;  %v9888_v58 = vor.u32 %v10795_v49, %v9887_v27  ;;  %4012 = vmatpush.bf16.msrb.mxu3 %v9120_v14  ;;  %4061 = vmatpush.bf16.msrb.mxu0 %v9376_v61  ;;  %v9087_v49 = vld [vmem:[#allocation7 + $0x140] sm:$0xf] }
 0x331   : > { %4110 = vmatpush.bf16.msra.mxu1 %v9632_v62  ;;  %v10595_v55 = vld [vmem:[#allocation7 + $0x15c] sm:$0xf0] }
 0x332   : > { %4159 = vmatpush.bf16.msrb.mxu2 %v9888_v58  ;;  %v9855_v27 = vld [vmem:[#allocation7 + $0x740] sm:$0xf]  ;;  %v9088_v3 = vor.u32 %v10595_v55, %v9087_v49 }
 0x333   : > { %v9856_v31 = vor.u32 %v10787_v11, %v9855_v27  ;;  %v9343_v56 = vld [vmem:[#allocation7 + $0x340] sm:$0xf] }
 0x334   : > { %4013 = vmatpush.bf16.msrb.mxu3 %v9088_v3  ;;  %v10659_v5 = vld [vmem:[#allocation7 + $0x35c] sm:$0xf0] }
 0x335   : > { %v12751_v15 = vpop.f32.mrf.mxu3  ;;  %v9599_v61 = vld [vmem:[#allocation7 + $0x540] sm:$0xf]  ;;  %v9344_v24 = vor.u32 %v10659_v5, %v9343_v56 }
 0x336   : > { %v12753_v6 = vpop.f32.mrf.mxu2  ;;  %4160 = vmatpush.bf16.msrb.mxu2 %v9856_v31  ;;  %v9600_v63 = vor.u32 %v10723_v1, %v9599_v61  ;;  %v9055_v11 = vld [vmem:[#allocation7 + $0x100] sm:$0xf]  ;;  %v1650_v31 = vadd.f32 %v12679_v35, %v12668_v46  ;;  %v1748_v1 = vadd.f32 %v12675_v9, %v12661_v12 }
 0x337   : > { %v12757_v32 = vpop.f32.mrf.mxu1  ;;  %4062 = vmatpush.bf16.msrb.mxu0 %v9344_v24  ;;  %v10587_v55 = vld [vmem:[#allocation7 + $0x11c] sm:$0xf0] }
 0x338   : > { %v12755_v16 = vpop.f32.mrf.mxu0  ;;  %4111 = vmatpush.bf16.msra.mxu1 %v9600_v63  ;;  %v9823_v3 = vld [vmem:[#allocation7 + $0x700] sm:$0xf]  ;;  %v9056_v10 = vor.u32 %v10587_v55, %v9055_v11  ;;  %v12796_v63 = vadd.f32 %v12673_v2, %v1650_v31  ;;  %v12799_v35 = vadd.f32 %v12681_v23, %v1748_v1  ;;  %v1655_v11 = vadd.f32 %v12705_v20, %v12668_v46 }
 0x339   : > { %v10779_v56 = vld [vmem:[#allocation7 + $0x71c] sm:$0xf0]  ;;  %v1753_v55 = vadd.f32 %v12701_v48, %v12661_v12  ;;  %v1925_v20 = vmul.f32 %v12671_v26, %v12671_v26 }
 0x33a   : > { %v9824_v5 = vor.u32 %v10779_v56, %v9823_v3  ;;  %4014 = vmatpush.bf16.msrb.mxu3 %v9056_v10  ;;  %17069 = vst [vmem:[#allocation52_spill] sm:$0xff] %v12796_v63  ;;  %v9311_v3 = vld [vmem:[#allocation7 + $0x300] sm:$0xf]  ;;  %v1928_v54 = vmul.f32 %v12796_v63, %v12796_v63  ;;  %v1929_v10 = vmul.f32 %v12799_v35, %v12799_v35 }
 0x33b   : > { %17070 = vst [vmem:[#allocation53_spill] sm:$0xff] %v12799_v35  ;;  %v10651_v9 = vld [vmem:[#allocation7 + $0x31c] sm:$0xf0]  ;;  %v12816_v48 = vadd.f32 %v12707_v8, %v1753_v55  ;;  %v12823_v17 = vadd.f32 %v12699_v51, %v1655_v11  ;;  %v1876_v8 = vadd.f32 %v12796_v63, %v12677_v43  ;;  %v1897_v55 = vadd.f32 %v12799_v35, %v12671_v26 }
 0x33c   : > { %4161 = vmatpush.bf16.msrb.mxu2 %v9824_v5  ;;  %v9567_v56 = vld [vmem:[#allocation7 + $0x500] sm:$0xf]  ;;  %v9312_v23 = vor.u32 %v10651_v9, %v9311_v3  ;;  %v1660_v3 = vadd.f32 %v12743_v50, %v12668_v46  ;;  %v2028_v11 = vadd.f32 %v1928_v54, %v1924_v59  ;;  %v2049_v50 = vadd.f32 %v1929_v10, %v1925_v20 }
 0x33d   : > { %v12759_v21 = vpop.f32.mrf.mxu3  ;;  %v10715_v5 = vld [vmem:[#allocation7 + $0x51c] sm:$0xf0]  ;;  %v1877_v36 = vadd.f32 %v1876_v8, %v12703_v30  ;;  %v1898_v63 = vadd.f32 %v1897_v55, %v12697_v34  ;;  %v1937_v43 = vmul.f32 %v12816_v48, %v12816_v48  ;;  %v1761_v59 = vadd.f32 %v12749_v28, %v12661_v12 }
 0x33e   : > { %v12761_v60 = vpop.f32.mrf.mxu2  ;;  %v9568_v1 = vor.u32 %v10715_v5, %v9567_v56  ;;  %4063 = vmatpush.bf16.msrb.mxu0 %v9312_v23  ;;  %v1932_v56 = vmul.f32 %v12703_v30, %v12703_v30  ;;  %v1758_v5 = vadd.f32 %v12721_v22, %v12661_v12  ;;  %v1663_v23 = vadd.f32 %v12751_v15, %v12668_v46 }
 0x33f   : > { %v12765_v29 = vpop.f32.mrf.mxu1  ;;  %v2050_v26 = vadd.f32 %v2049_v50, %v1933_v0  ;;  %v1936_v22 = vmul.f32 %v12823_v17, %v12823_v17  ;;  %v12851_v54 = vadd.f32 %v12719_v18, %v1660_v3  ;;  %v1899_v10 = vadd.f32 %v1898_v63, %v12816_v48 }
 0x340   : > { %v12763_v25 = vpop.f32.mrf.mxu0  ;;  %4112 = vmatpush.bf16.msra.mxu1 %v9568_v1  ;;  %v12846_v35 = vadd.f32 %v12745_v7, %v1758_v5  ;;  %v2029_v15 = vadd.f32 %v2028_v11, %v1932_v56  ;;  %v1941_v20 = vmul.f32 %v12716_v4, %v12716_v4  ;;  %v1665_v7 = vadd.f32 %v12759_v21, %v12668_v46 }
 0x341   : > { %v1940_v0 = vmul.f32 %v12725_v57, %v12725_v57  ;;  %v12863_v1 = vadd.f32 %v12747_v13, %v1663_v23  ;;  %v12866_v18 = vadd.f32 %v12753_v6, %v1761_v59  ;;  %v1763_v28 = vadd.f32 %v12757_v32, %v12661_v12 }
 0x342   : > { %v1878_v8 = vadd.f32 %v1877_v36, %v12823_v17  ;;  %v2051_v55 = vadd.f32 %v2050_v26, %v1937_v43  ;;  %v1945_v21 = vmul.f32 %v12846_v35, %v12846_v35  ;;  %v2030_v13 = vadd.f32 %v2029_v15, %v1936_v22 }
 0x343   : > { %v1900_v5 = vadd.f32 %v1899_v10, %v12716_v4  ;;  %v1944_v6 = vmul.f32 %v12851_v54, %v12851_v54  ;;  %v12881_v32 = vadd.f32 %v12761_v60, %v1763_v28  ;;  %v12885_v26 = vadd.f32 %v12755_v16, %v1665_v7 }
 0x344   : > { %v1879_v50 = vadd.f32 %v1878_v8, %v12725_v57  ;;  %v2052_v36 = vadd.f32 %v2051_v55, %v1941_v20  ;;  %v1766_v43 = vadd.f32 %v12765_v29, %v12661_v12  ;;  %v1948_v22 = vmul.f32 %v12863_v1, %v12863_v1 }
 0x345   : > { %v12767_v58 = vpop.f32.mrf.mxu3  ;;  %v1901_v23 = vadd.f32 %v1900_v5, %v12846_v35  ;;  %v1949_v60 = vmul.f32 %v12866_v18, %v12866_v18  ;;  %v1953_v7 = vmul.f32 %v12881_v32, %v12881_v32 }
 0x346   : > { %v12769_v14 = vpop.f32.mrf.mxu2  ;;  %v1668_v56 = vadd.f32 %v12767_v58, %v12668_v46  ;;  %v2031_v58 = vadd.f32 %v2030_v13, %v1940_v0  ;;  %v1880_v59 = vadd.f32 %v1879_v50, %v12851_v54  ;;  %v2053_v15 = vadd.f32 %v2052_v36, %v1945_v21 }
 0x347   : > { %v12773_v19 = vpop.f32.mrf.mxu1  ;;  %v12899_v16 = vadd.f32 %v12769_v14, %v1766_v43  ;;  %v1902_v55 = vadd.f32 %v1901_v23, %v12866_v18 }
 0x348   : > { %v12771_v40 = vpop.f32.mrf.mxu0  ;;  %v12896_v10 = vadd.f32 %v12763_v25, %v1668_v56  ;;  %v2032_v29 = vadd.f32 %v2031_v58, %v1944_v6  ;;  %v1768_v0 = vadd.f32 %v12773_v19, %v12661_v12  ;;  %v1881_v8 = vadd.f32 %v1880_v59, %v12863_v1 }
 0x349   : > { %v1952_v25 = vmul.f32 %v12885_v26, %v12885_v26  ;;  %v2054_v21 = vadd.f32 %v2053_v15, %v1949_v60  ;;  %v1903_v6 = vadd.f32 %v1902_v55, %v12881_v32  ;;  %v1957_v50 = vmul.f32 %v12899_v16, %v12899_v16 }
 0x34a   : > { %17071 = vst [vmem:[#allocation54_spill] sm:$0xff] %v12896_v10  ;;  %v2033_v14 = vadd.f32 %v2032_v29, %v1948_v22  ;;  %v1882_v43 = vadd.f32 %v1881_v8, %v12885_v26 }
 0x34b   : > { %v1904_v60 = vadd.f32 %v1903_v6, %v12899_v16 }
 0x34c   : > { %v2034_v22 = vadd.f32 %v2033_v14, %v1952_v25 }
 0x34d   : > { %v12775_v62 = vpop.f32.mrf.mxu3 }
 0x34e   : > { %v12777_v52 = vpop.f32.mrf.mxu2  ;;  %v1670_v28 = vadd.f32 %v12775_v62, %v12668_v46  ;;  %v1956_v62 = vmul.f32 %v12896_v10, %v12896_v10 }
 0x34f   : > { %v12781_v49 = vpop.f32.mrf.mxu1  ;;  %v12912_v56 = vadd.f32 %v12777_v52, %v1768_v0  ;;  %v2055_v52 = vadd.f32 %v2054_v21, %v1953_v7 }
 0x350   : > { %v12779_v44 = vpop.f32.mrf.mxu0  ;;  %v1771_v36 = vadd.f32 %v12781_v49, %v12661_v12  ;;  %v12925_v58 = vadd.f32 %v12771_v40, %v1670_v28  ;;  %v1883_v49 = vadd.f32 %v1882_v43, %v12896_v10  ;;  %v2035_v7 = vadd.f32 %v2034_v22, %v1956_v62 }
 0x351   : > { %v1961_v29 = vmul.f32 %v12912_v56, %v12912_v56  ;;  %v2056_v0 = vadd.f32 %v2055_v52, %v1957_v50  ;;  %v1905_v8 = vadd.f32 %v1904_v60, %v12912_v56 }
 0x352   : > { %17072 = vst [vmem:[#allocation55_spill] sm:$0xff] %v12925_v58 }
 0x353   : > { %v2057_v21 = vadd.f32 %v2056_v0, %v1961_v29 }
 0x355   : > { %v12785_v27 = vpop.f32.mrf.mxu3 }
 0x356   : > { %v12787_v53 = vpop.f32.mrf.mxu2  ;;  %v1673_v13 = vadd.f32 %v12785_v27, %v12668_v46 }
 0x357   : > { %v12793_v24 = vpop.f32.mrf.mxu1  ;;  %v12931_v59 = vadd.f32 %v12787_v53, %v1771_v36 }
 0x358   : > { %v12791_v61 = vpop.f32.mrf.mxu0  ;;  %v1773_v15 = vadd.f32 %v12793_v24, %v12661_v12  ;;  %v12939_v40 = vadd.f32 %v12779_v44, %v1673_v13  ;;  %v1960_v24 = vmul.f32 %v12925_v58, %v12925_v58 }
 0x359   : > { %17073 = vst [vmem:[#allocation56_spill] sm:$0xff] %v12931_v59  ;;  %v1965_v25 = vmul.f32 %v12931_v59, %v12931_v59 }
 0x35a   : > { %17074 = vst [vmem:[#allocation57_spill] sm:$0xff] %v12939_v40  ;;  %v1964_v13 = vmul.f32 %v12939_v40, %v12939_v40  ;;  %v2036_v43 = vadd.f32 %v2035_v7, %v1960_v24 }
 0x35d   : > { %v12809_v2 = vpop.f32.mrf.mxu3 }
 0x35e   : > { %v12811_v31 = vpop.f32.mrf.mxu2  ;;  %v1675_v27 = vadd.f32 %v12809_v2, %v12668_v46 }
 0x35f   : > { %v12827_v9 = vpop.f32.mrf.mxu1  ;;  %v12943_v28 = vadd.f32 %v12811_v31, %v1773_v15 }
 0x360   : > { %v12837_v51 = vpop.f32.mrf.mxu0  ;;  %v1776_v53 = vadd.f32 %v12827_v9, %v12661_v12  ;;  %v12951_v55 = vadd.f32 %v12791_v61, %v1675_v27  ;;  %v1906_v61 = vadd.f32 %v1905_v8, %v12931_v59 }
 0x361   : > { %17075 = vst [vmem:[#allocation58_spill] sm:$0xff] %v12943_v28  ;;  %v1969_v50 = vmul.f32 %v12943_v28, %v12943_v28 }
 0x362   : > { %17076 = vst [vmem:[#allocation59_spill] sm:$0xff] %v12951_v55  ;;  %v1968_v27 = vmul.f32 %v12951_v55, %v12951_v55  ;;  %v1907_v60 = vadd.f32 %v1906_v61, %v12943_v28 }
 0x365   : > { %v1677_v3 = vpop.f32.mrf.mxu3 }
 0x366   : > { %v12870_v63 = vpop.f32.mrf.mxu2  ;;  %v1678_v2 = vadd.f32 %v1677_v3, %v12668_v46  ;;  %v1884_v3 = vadd.f32 %v1883_v49, %v12925_v58  ;;  %v2037_v49 = vadd.f32 %v2036_v43, %v1964_v13 }
 0x367   : > { %v1777_v11 = vpop.f32.mrf.mxu1  ;;  %v12958_v31 = vadd.f32 %v12870_v63, %v1776_v53 }
 0x368   : > { %v1728_v20 = vpop.f32.mrf.mxu0  ;;  %v1778_v9 = vadd.f32 %v1777_v11, %v12661_v12  ;;  %v12965_v6 = vadd.f32 %v12837_v51, %v1678_v2  ;;  %v1885_v52 = vadd.f32 %v1884_v3, %v12939_v40  ;;  %v2058_v51 = vadd.f32 %v2057_v21, %v1965_v25  ;;  %v9377_v40 = vld [vmem:[#allocation7 + $0x3a0] sm:$0xf0] }
 0x369   : > { %17077 = vst [vmem:[#allocation60_spill] sm:$0xff] %v12958_v31  ;;  %v1973_v15 = vmul.f32 %v12958_v31, %v12958_v31  ;;  %v2038_v24 = vadd.f32 %v2037_v49, %v1968_v27 }
 0x36a   : > { %17078 = vst [vmem:[#allocation61_spill] sm:$0xff] %v12965_v6  ;;  %v1972_v29 = vmul.f32 %v12965_v6, %v12965_v6  ;;  %v2059_v0 = vadd.f32 %v2058_v51, %v1969_v50 }
 0x36c   : > { %v2060_v3 = vadd.f32 %v2059_v0, %v1973_v15  ;;  %v2039_v21 = vadd.f32 %v2038_v24, %v1972_v29 }
 0x36d   : > { %v1679_v5 = vpop.f32.mrf.mxu3 }
 0x36e   : > { %v1826_v19 = vpop.f32.mrf.mxu2  ;;  %v1680_v44 = vadd.f32 %v1679_v5, %v12668_v46 }
 0x36f   : > { %v1780_v23 = vpop.f32.mrf.mxu1  ;;  %v12969_v36 = vadd.f32 %v1826_v19, %v1778_v9 }
 0x370   : > { %v1731_v14 = vpop.f32.mrf.mxu0  ;;  %v1781_v63 = vadd.f32 %v1780_v23, %v12661_v12  ;;  %v12976_v22 = vadd.f32 %v1728_v20, %v1680_v44  ;;  %v1886_v23 = vadd.f32 %v1885_v52, %v12951_v55  ;;  %v1908_v20 = vadd.f32 %v1907_v60, %v12958_v31  ;;  %v10663_v55 = vld [vmem:[#allocation7 + $0x384] sm:$0xf] }
 0x371   : > { %17079 = vst [vmem:[#allocation62_spill] sm:$0xff] %v12969_v36  ;;  %v1977_v53 = vmul.f32 %v12969_v36, %v12969_v36  ;;  %v9380_v31 = vor.u32 %v10663_v55, %v9377_v40 }
 0x372   : > { %17080 = vst [vmem:[#allocation63_spill] sm:$0xff] %v12976_v22  ;;  %v1887_v8 = vadd.f32 %v1886_v23, %v12965_v6  ;;  %v1976_v44 = vmul.f32 %v12976_v22, %v12976_v22  ;;  %v1909_v25 = vadd.f32 %v1908_v20, %v12969_v36  ;;  %v9889_v6 = vld [vmem:[#allocation7 + $0x7a0] sm:$0xf0] }
 0x373   : > { %v2061_v50 = vadd.f32 %v2060_v3, %v1977_v53 }
 0x374   : > { %v1888_v13 = vadd.f32 %v1887_v8, %v12976_v22  ;;  %v2040_v52 = vadd.f32 %v2039_v21, %v1976_v44  ;;  %v17118_v22 = vld [vmem:[#allocation53_spill] sm:$0xff] }
 0x375   : > { %v1682_v5 = vpop.f32.mrf.mxu3 }
 0x376   : > { %v1829_v62 = vpop.f32.mrf.mxu2  ;;  %v1683_v11 = vadd.f32 %v1682_v5, %v12668_v46 }
 0x377   : > { %v12981_v19 = vadd.f32 %v1829_v62, %v1781_v63  ;;  %v1782_v7 = vpop.f32.mrf.mxu1 }
 0x378   : > { %v12986_v2 = vadd.f32 %v1731_v14, %v1683_v11  ;;  %v1783_v14 = vadd.f32 %v1782_v7, %v12661_v12  ;;  %v1733_v51 = vpop.f32.mrf.mxu0 }
 0x379   : > { %v1981_v9 = vmul.f32 %v12981_v19, %v12981_v19  ;;  %v1910_v63 = vadd.f32 %v1909_v25, %v12981_v19 }
 0x37a   : > { %17081 = vst [vmem:[#allocation64_spill] sm:$0xff] %v12986_v2  ;;  %v1980_v61 = vmul.f32 %v12986_v2, %v12986_v2  ;;  %v1889_v27 = vadd.f32 %v1888_v13, %v12986_v2 }
 0x37b   : > { %v2062_v12 = vadd.f32 %v2061_v50, %v1981_v9 }
 0x37c   : > { %v2041_v23 = vadd.f32 %v2040_v52, %v1980_v61 }
 0x37d   : > { %v1684_v5 = vpop.f32.mrf.mxu3 }
 0x37e   : > { %v1831_v62 = vpop.f32.mrf.mxu2  ;;  %v1685_v11 = vadd.f32 %v1684_v5, %v12668_v46 }
 0x37f   : > { %v13003_v43 = vadd.f32 %v1831_v62, %v1783_v14 }
 0x380   : > { %v13006_v60 = vadd.f32 %v1733_v51, %v1685_v11 }
 0x381   : > { %v1911_v15 = vadd.f32 %v1910_v63, %v13003_v43  ;;  %v1985_v49 = vmul.f32 %v13003_v43, %v13003_v43 }
 0x382   : > { %v1890_v29 = vadd.f32 %v1889_v27, %v13006_v60  ;;  %v1984_v46 = vmul.f32 %v13006_v60, %v13006_v60 }
 0x383   : > { %v1912_v7 = vrot.slane %v1911_v15, 4  ;;  %v2063_v0 = vadd.f32 %v2062_v12, %v1985_v49 }
 0x384   : > { %v1891_v20 = vrot.slane %v1890_v29, 4  ;;  %v2042_v53 = vadd.f32 %v2041_v23, %v1984_v46 }
 0x385   : > { %v1913_v24 = vadd.f32 %v1912_v7, %v1911_v15  ;;  %v2064_v8 = vrot.slane %v2063_v0, 4 }
 0x386   : > { %v1892_v44 = vadd.f32 %v1891_v20, %v1890_v29  ;;  %v2043_v3 = vrot.slane %v2042_v53, 4 }
 0x387   : > { %v1914_v25 = vrot.slane %v1913_v24, 2  ;;  %v2065_v9 = vadd.f32 %v2064_v8, %v2063_v0 }
 0x388   : > { %v1893_v14 = vrot.slane %v1892_v44, 2  ;;  %v2044_v21 = vadd.f32 %v2043_v3, %v2042_v53 }
 0x389   : > { %v1915_v13 = vadd.f32 %v1914_v25, %v1913_v24  ;;  %v2066_v5 = vrot.slane %v2065_v9, 2 }
 0x38a   : > { %v1894_v61 = vadd.f32 %v1893_v14, %v1892_v44  ;;  %v2045_v62 = vrot.slane %v2044_v21, 2  ;;  %v9023_v14 = vld [vmem:[#allocation7 + $0xc0] sm:$0xf] }
 0x38b   : > { %v1916_v50 = vrot.slane %v1915_v13, 1  ;;  %v2067_v63 = vadd.f32 %v2066_v5, %v2065_v9  ;;  %v13030_v9 = vmul.f32 %v12723_v42, %v12684_v41 }
 0x38c   : > { %v1895_v11 = vrot.slane %v1894_v61, 1  ;;  %v2046_v52 = vadd.f32 %v2045_v62, %v2044_v21  ;;  %v10579_v21 = vld [vmem:[#allocation7 + $0xdc] sm:$0xf0] }
 0x38d   : > { %v1917_v27 = vadd.f32 %v1916_v50, %v1915_v13  ;;  %v2068_v51 = vrot.slane %v2067_v63, 1  ;;  %v9791_v13 = vld [vmem:[#allocation7 + $0x6c0] sm:$0xf] }
 0x38e   : > { %v1896_v12 = vadd.f32 %v1895_v11, %v1894_v61  ;;  %v2047_v49 = vrot.slane %v2046_v52, 1  ;;  %v9024_v61 = vor.u32 %v10579_v21, %v9023_v14  ;;  %v10771_v62 = vld [vmem:[#allocation7 + $0x6dc] sm:$0xf0]  ;;  %v2130_v21 = vperm.slane %v12709_v47, 3 }
 0x38f   : > { %v13015_v15 = vmul.f32 %v1917_v27, %v11901_v45  ;;  %v2069_v23 = vadd.f32 %v2068_v51, %v2067_v63  ;;  %v9279_v50 = vld [vmem:[#allocation7 + $0x2c0] sm:$0xf] }
 0x390   : > { %v13018_v29 = vmul.f32 %v1896_v12, %v11901_v45  ;;  %v2048_v46 = vadd.f32 %v2047_v49, %v2046_v52  ;;  %v10643_v63 = vld [vmem:[#allocation7 + $0x2dc] sm:$0xf0]  ;;  %v9792_v52 = vor.u32 %v10771_v62, %v9791_v13  ;;  %4015 = vmatpush.bf16.msrb.mxu3 %v9024_v61 }
 0x391   : > { %v2073_v7 = vmul.f32 %v2069_v23, %v11901_v45  ;;  %v2077_v0 = vmul.f32 %v13015_v15, %v13015_v15  ;;  %v9280_v27 = vor.u32 %v10643_v63, %v9279_v50  ;;  %v9535_v51 = vld [vmem:[#allocation7 + $0x4c0] sm:$0xf] }
 0x392   : > { %v2072_v20 = vmul.f32 %v2048_v46, %v11901_v45  ;;  %v2076_v53 = vmul.f32 %v13018_v29, %v13018_v29  ;;  %v10707_v12 = vld [vmem:[#allocation7 + $0x4dc] sm:$0xf0]  ;;  %4162 = vmatpush.bf16.msrb.mxu2 %v9792_v52  ;;  %v9153_v45 = vld [vmem:[#allocation7 + $0x1e0] sm:$0xf0] }
 0x393   : > { %v2081_v24 = vsub.f32 %v2073_v7, %v2077_v0  ;;  %v9536_v42 = vor.u32 %v10707_v12, %v9535_v51  ;;  %v8991_v23 = vld [vmem:[#allocation7 + $0x80] sm:$0xf]  ;;  %4064 = vmatpush.bf16.msrb.mxu0 %v9280_v27  ;;  %v17088_v12 = vrot.slane %v13030_v9, 7  ;;  %v17089_v9 = vld [vmem:[#allocation18_spill] sm:$0xff] }
 0x394   : > { %v2080_v8 = vsub.f32 %v2072_v20, %v2076_v53  ;;  %v10571_v46 = vld [vmem:[#allocation7 + $0x9c] sm:$0xf0] }
 0x395   : > { %v2085_v44 = vadd.f32 0.8, %v2081_v24  ;;  %v9759_v7 = vld [vmem:[#allocation7 + $0x680] sm:$0xf]  ;;  %v8992_v20 = vor.u32 %v10571_v46, %v8991_v23  ;;  %4113 = vmatpush.bf16.msra.mxu1 %v9536_v42 }
 0x396   : > { %v2084_v3 = vadd.f32 0.8, %v2080_v8  ;;  %v10763_v53 = vld [vmem:[#allocation7 + $0x69c] sm:$0xf0] }
 0x397   : > { %11053 = vrsqrt.f32 %v2085_v44  ;;  %v9247_v24 = vld [vmem:[#allocation7 + $0x280] sm:$0xf]  ;;  %v9760_v13 = vor.u32 %v10763_v53, %v9759_v7  ;;  %vm2122_vm1 = vweird.f32 %v2085_v44  ;;  %4016 = vmatpush.bf16.msrb.mxu3 %v8992_v20  ;;  %v2129_v20 = vperm.slane %v12709_v47, 2 }
 0x398   : > { %11055 = vrsqrt.f32 %v2084_v3  ;;  %v9503_v61 = vld [vmem:[#allocation7 + $0x480] sm:$0xf]  ;;  %vm2112_vm3 = vweird.f32 %v2084_v3 }
 0x399   : > { %v10699_v50 = vld [vmem:[#allocation7 + $0x49c] sm:$0xf0]  ;;  %4163 = vmatpush.bf16.msrb.mxu2 %v9760_v13 }
 0x39a   : > { %v8959_v63 = vld [vmem:[#allocation7 + $0x40] sm:$0xf] }
 0x39b   : > { %v10563_v52 = vld [vmem:[#allocation7 + $0x5c] sm:$0xf0] }
 0x39c   : > { %v9727_v42 = vld [vmem:[#allocation7 + $0x640] sm:$0xf] }
 0x39d   : > { %v13026_v25 = vpop.eup %11053  ;;  %v10755_v23 = vld [vmem:[#allocation7 + $0x65c] sm:$0xf0] }
 0x39e   : > { %v2117_v5 = vmul.f32 %v13026_v25, %v2085_v44  ;;  %v13033_v11 = vpop.eup %11055  ;;  %vm2123_vm15 = vweird.f32 %v13026_v25  ;;  %v2139_v44 = vmul.f32 %v12727_v38, %v12687_v33  ;;  %v9728_v46 = vor.u32 %v10755_v23, %v9727_v42  ;;  %v9215_v7 = vld [vmem:[#allocation7 + $0x240] sm:$0xf] }
 0x39f   : > { %v2107_v49 = vmul.f32 %v13033_v11, %v2084_v3  ;;  %vm2113_vm0 = vweird.f32 %v13033_v11  ;;  %vm13044_vm2 = vmor %vm2122_vm1, %vm2123_vm15  ;;  %v10627_v53 = vld [vmem:[#allocation7 + $0x25c] sm:$0xf0] }
 0x3a0   : > { %v2118_v41 = vmul.f32 %v13026_v25, %v2117_v5  ;;  %v10635_v5 = vld [vmem:[#allocation7 + $0x29c] sm:$0xf0]  ;;  %vm13052_vm4 = vmor %vm2112_vm3, %vm2113_vm0  ;;  %v9216_v33 = vor.u32 %v10627_v53, %v9215_v7  ;;  %v17087_v53 = vld [vmem:[#allocation21_spill] sm:$0xff]  ;;  %4164 = vmatpush.bf16.msrb.mxu2 %v9728_v46 }
 0x3a1   : > { %v2108_v8 = vmul.f32 %v13033_v11, %v2107_v49  ;;  %v9248_v62 = vor.u32 %v10635_v5, %v9247_v24  ;;  %v9504_v49 = vor.u32 %v10699_v50, %v9503_v61  ;;  %v9471_v24 = vld [vmem:[#allocation7 + $0x440] sm:$0xf]  ;;  %v10671_v46 = vld [vmem:[#allocation7 + $0x3c4] sm:$0xf] }
 0x3a2   : > { %v2119_v14 = vmul.f32 0.5, %v2118_v41  ;;  %v8960_v41 = vor.u32 %v10563_v52, %v8959_v63  ;;  %v10691_v38 = vld [vmem:[#allocation7 + $0x45c] sm:$0xf0]  ;;  %v13060_v63 = vmul.f32 %v12730_v37, %v12421_v39 }
 0x3a3   : > { %v2109_v27 = vmul.f32 0.5, %v2108_v8  ;;  %4065 = vmatpush.bf16.msrb.mxu0 %v9248_v62  ;;  %4114 = vmatpush.bf16.msra.mxu1 %v9504_v49  ;;  %v8927_v3 = vld [vmem:[#allocation7] sm:$0xf]  ;;  %v9472_v13 = vor.u32 %v10691_v38, %v9471_v24  ;;  %v13072_v24 = vmul.f32 %v12730_v37, %v17087_v53  ;;  %v17091_v53 = vld [vmem:[#allocation20_spill] sm:$0xff] }
 0x3a4   : > { %v2120_v51 = vsub.f32 1.5, %v2119_v14  ;;  %v10555_v61 = vld [vmem:[#allocation7 + $0x1c] sm:$0xf0]  ;;  %4017 = vmatpush.bf16.msrb.mxu3 %v8960_v41 }
 0x3a5   : > { %v2110_v8 = vsub.f32 1.5, %v2109_v27  ;;  %v9695_v62 = vld [vmem:[#allocation7 + $0x600] sm:$0xf]  ;;  %v8928_v49 = vor.u32 %v10555_v61, %v8927_v3  ;;  %v10799_v61 = vld [vmem:[#allocation7 + $0x7c4] sm:$0xf] }
 0x3a6   : > { %v2121_v5 = vmul.f32 %v13026_v25, %v2120_v51  ;;  %v10747_v50 = vld [vmem:[#allocation7 + $0x61c] sm:$0xf0] }
 0x3a7   : > { %v17086_v52 = vld [vmem:[#allocation19_spill] sm:$0xff]  ;;  %v2111_v47 = vmul.f32 %v13033_v11, %v2110_v8  ;;  %4066 = vmatpush.bf16.msrb.mxu0 %v9216_v33  ;;  %v9696_v38 = vor.u32 %v10747_v50, %v9695_v62  ;;  %4115 = vmatpush.bf16.msra.mxu1 %v9472_v13 }
 0x3a8   : > { %v13064_v27 = vmul.f32 %v12730_v37, %v17086_v52  ;;  %v2125_v51 = vsel %vm13044_vm2, %v13026_v25, %v2121_v5  ;;  %v9183_v42 = vld [vmem:[#allocation7 + $0x200] sm:$0xf]  ;;  %v10607_v8 = vld [vmem:[#allocation7 + $0x1c4] sm:$0xf]  ;;  %v2150_v25 = vsel %vm894_vm8, %v2139_v44, %v17088_v12  ;;  %4018 = vmatpush.bf16.msrb.mxu3 %v8928_v49  ;;  %v17090_v44 = vld [vmem:[#allocation49_spill] sm:$0xff] }
 0x3a9   : > { %v10619_v23 = vld [vmem:[#allocation7 + $0x21c] sm:$0xf0]  ;;  %v2138_v39 = vmul.f32 %v2130_v21, %v2125_v51  ;;  %v2115_v41 = vsel %vm13052_vm4, %v13033_v11, %v2111_v47  ;;  %v9156_v3 = vor.u32 %v10607_v8, %v9153_v45  ;;  %v9921_v21 = vld [vmem:[#allocation7 + $0x7e0] sm:$0xf0]  ;;  %v2165_v11 = vmul.f32 %v17090_v44, %v17091_v53  ;;  %4165 = vmatpush.bf16.msrb.mxu2 %v9696_v38  ;;  %v17095_v12 = vld [vmem:[#allocation26_spill] sm:$0xff] }
 0x3aa   : > { %v9439_v7 = vld [vmem:[#allocation7 + $0x400] sm:$0xf]  ;;  %v9184_v52 = vor.u32 %v10619_v23, %v9183_v42  ;;  %v2137_v33 = vmul.f32 %v2129_v20, %v2115_v41  ;;  %v9924_v51 = vor.u32 %v10799_v61, %v9921_v21  ;;  %v9409_v42 = vld [vmem:[#allocation7 + $0x3e0] sm:$0xf0]  ;;  %v2161_v23 = vmul.f32 %v17090_v44, %v17089_v9  ;;  %v17099_v9 = vld [vmem:[#allocation30_spill] sm:$0xff] }
 0x3ab   : > { %v10683_v0 = vld [vmem:[#allocation7 + $0x41c] sm:$0xf0]  ;;  %v2142_v62 = vmul.f32 %v2138_v39, %v13015_v15  ;;  %v13081_v50 = vperm.slane %v2138_v39, 0  ;;  %v9412_v14 = vor.u32 %v10671_v46, %v9409_v42  ;;  %v10735_v13 = vld [vmem:[#allocation7 + $0x5c4] sm:$0xf] }
 0x3ac   : > { %v9440_v5 = vor.u32 %v10683_v0, %v9439_v7  ;;  %v17092_v0 = vld [vmem:[#allocation22_spill] sm:$0xff]  ;;  %v2141_v20 = vmul.f32 %v2137_v33, %v13018_v29  ;;  %4067 = vmatpush.bf16.msrb.mxu0 %v9184_v52  ;;  %v9665_v47 = vld [vmem:[#allocation7 + $0x5e0] sm:$0xf0]  ;;  %4207 = vmatpush.bf16.msra.mxu3 %v9156_v3  ;;  %v17097_v3 = vld [vmem:[#allocation25_spill] sm:$0xff] }
 0x3ad   : > { %v13089_v45 = vmul.f32 %v17090_v44, %v17092_v0  ;;  %v2220_v15 = vmul.f32 %v13081_v50, %v12981_v19  ;;  %v17093_v49 = vld [vmem:[#allocation24_spill] sm:$0xff]  ;;  %v2224_v39 = vmul.f32 %v13081_v50, %v13003_v43  ;;  %v17094_v8 = vld [vmem:[#allocation23_spill] sm:$0xff]  ;;  %v13106_v19 = vmul.f32 %v17090_v44, %v17095_v12  ;;  %4354 = vmatpush.bf16.msra.mxu2 %v9924_v51  ;;  %v352_v43 = vld [vmem:[#allocation8 + $0xf] sm:$0xf] }
 0x3ae   : > { %v13096_v7 = vmul.f32 %v17090_v44, %v17093_v49  ;;  %4116 = vmatpush.bf16.msra.mxu1 %v9440_v5  ;;  %v13102_v29 = vmul.f32 %v12730_v37, %v17094_v8  ;;  %v2148_v38 = vrot.slane %v2141_v20, 6  ;;  %v2149_v52 = vrot.slane %v2142_v62, 5  ;;  %v17096_v41 = vld [vmem:[#allocation28_spill] sm:$0xff]  ;;  %v17098_v46 = vld [vmem:[#allocation27_spill] sm:$0xff]  ;;  %v17103_v0 = vld [vmem:[#allocation29_spill] sm:$0xff] }
 0x3af   : > { %v13110_v61 = vmul.f32 %v17090_v44, %v17096_v41  ;;  %v9668_v5 = vor.u32 %v10735_v13, %v9665_v47  ;;  %v13114_v21 = vmul.f32 %v12730_v37, %v17097_v3  ;;  %v13118_v42 = vmul.f32 %v12730_v37, %v17098_v46  ;;  %v17101_v53 = vld [vmem:[#allocation32_spill] sm:$0xff]  ;;  %v17105_v13 = vld [vmem:[#allocation31_spill] sm:$0xff]  ;;  %v17107_v12 = vld [vmem:[#allocation34_spill] sm:$0xff] }
 0x3b0   : > { %4256 = vmatpush.bf16.msra.mxu0 %v9412_v14  ;;  %v13122_v62 = vmul.f32 %v17090_v44, %v17099_v9  ;;  %v2152_v51 = vsel %vm2151_vm5, %v2148_v38, %v2149_v52  ;;  %v13127_v14 = vmul.f32 %v17090_v44, %v17101_v53  ;;  %v13131_v20 = vmul.f32 %v12730_v37, %v17103_v0  ;;  %v17109_v52 = vld [vmem:[#allocation39_spill] sm:$0xff]  ;;  %v17111_v0 = vld [vmem:[#allocation33_spill] sm:$0xff] }
 0x3b1   : > { %v13135_v47 = vmul.f32 %v12730_v37, %v17105_v13  ;;  %v13137_v49 = vperm.slane %v2137_v33, 0  ;;  %v2154_v8 = vsel %vm2153_vm6, %v2150_v25, %v2152_v51  ;;  %v13142_v38 = vmul.f32 %v17090_v44, %v17107_v12  ;;  %v10599_v46 = vld [vmem:[#allocation7 + $0x184] sm:$0xf] }
 0x3b2   : > { %17100 = vst [vmem:[#allocation19_spill] sm:$0xff] %v13122_v62  ;;  %4305 = vmatpush.bf16.msrb.mxu1 %v9668_v5  ;;  %v13146_v41 = vmul.f32 %v17090_v44, %v17109_v52  ;;  %v2156_v3 = vsub.f32 %v352_v43, %v2154_v8  ;;  %v9121_v9 = vld [vmem:[#allocation7 + $0x1a0] sm:$0xf0]  ;;  %v13150_v13 = vmul.f32 %v12730_v37, %v17111_v0  ;;  %v17119_v0 = vld [vmem:[#allocation42_spill] sm:$0xff] }
 0x3b3   : > { %17102 = vst [vmem:[#allocation21_spill] sm:$0xff] %v13127_v14  ;;  %v10791_v53 = vld [vmem:[#allocation7 + $0x784] sm:$0xf]  ;;  %v2168_v43 = vmul.f32 %v13081_v50, %v17118_v22  ;;  %v9124_v8 = vor.u32 %v10599_v46, %v9121_v9  ;;  %v13166_v58 = vmul.f32 %v17090_v44, %v17119_v0 }
 0x3b4   : > { %17104 = vst [vmem:[#allocation18_spill] sm:$0xff] %v13131_v20  ;;  %v17113_v33 = vld [vmem:[#allocation40_spill] sm:$0xff]  ;;  %v17117_v12 = vld [vmem:[#allocation47_spill] sm:$0xff]  ;;  %v13170_v10 = vperm.slane %v2156_v3, 1  ;;  %v13174_v2 = vperm.slane %v2156_v3, 3  ;;  %v9892_v9 = vor.u32 %v10791_v53, %v9889_v6  ;;  %4257 = vmatpush.bf16.msra.mxu0 %v9380_v31 }
 0x3b5   : > { %17106 = vst [vmem:[#allocation49_spill] sm:$0xff] %v13135_v47  ;;  %v13154_v25 = vmul.f32 %v12730_v37, %v17113_v33  ;;  %v17115_v5 = vld [vmem:[#allocation36_spill] sm:$0xff]  ;;  %v2164_v52 = vmul.f32 %v13081_v50, %v17117_v12  ;;  %v13168_v33 = vperm.slane %v2156_v3, 0  ;;  %4208 = vmatpush.bf16.msra.mxu3 %v9124_v8  ;;  %v17124_v62 = vld [vmem:[#allocation35_spill] sm:$0xff] }
 0x3b6   : > { %17108 = vst [vmem:[#allocation20_spill] sm:$0xff] %v13142_v38  ;;  %v13158_v51 = vmul.f32 %v17090_v44, %v17115_v5  ;;  %v13172_v5 = vperm.slane %v2156_v3, 2  ;;  %v17121_v12 = vld [vmem:[#allocation48_spill] sm:$0xff]  ;;  %v2293_v0 = vadd.f32 %v13174_v2, %v2220_v15  ;;  %v2297_v28 = vadd.f32 %v13174_v2, %v2224_v39  ;;  %4355 = vmatpush.bf16.msra.mxu2 %v9892_v9 }
 0x3b7   : > { %17110 = vst [vmem:[#allocation22_spill] sm:$0xff] %v13146_v41  ;;  %v2163_v36 = vmul.f32 %v13137_v49, %v17121_v12  ;;  %v17122_v22 = vld [vmem:[#allocation52_spill] sm:$0xff]  ;;  %v2234_v59 = vadd.f32 %v13168_v33, %v2161_v23  ;;  %v2235_v3 = vadd.f32 %v13170_v10, %v13060_v63  ;;  %v2239_v12 = vadd.f32 %v13170_v10, %v13064_v27 }
 0x3b8   : > { %17112 = vst [vmem:[#allocation24_spill] sm:$0xff] %v13150_v13  ;;  %v2167_v46 = vmul.f32 %v13137_v49, %v17122_v22  ;;  %v2357_v40 = vmul.f32 0.2, %v2293_v0  ;;  %v2361_v55 = vmul.f32 0.2, %v2297_v28  ;;  %v2237_v15 = vadd.f32 %v13174_v2, %v2164_v52 }
 0x3b9   : > { %17114 = vst [vmem:[#allocation23_spill] sm:$0xff] %v13154_v25  ;;  %v2298_v6 = vmul.f32 0.2, %v2234_v59  ;;  %v2299_v39 = vmul.f32 0.2, %v2235_v3  ;;  %v2241_v53 = vadd.f32 %v13174_v2, %v2168_v43  ;;  %v13200_v43 = vmul.f32 %v12730_v37, %v17124_v62 }
 0x3ba   : > { %17116 = vst [vmem:[#allocation26_spill] sm:$0xff] %v13158_v51  ;;  %v2236_v51 = vadd.f32 %v13172_v5, %v2163_v36  ;;  %v2240_v8 = vadd.f32 %v13172_v5, %v2167_v46  ;;  %v2421_v63 = vmax.f32 %v2293_v0, %v2357_v40  ;;  %v2425_v22 = vmax.f32 %v2297_v28, %v2361_v55  ;;  %v17125_v0 = vld [vmem:[#allocation41_spill] sm:$0xff]  ;;  %v17131_v55 = vld [vmem:[#allocation43_spill] sm:$0xff] }
 0x3bb   : > { %17120 = vst [vmem:[#allocation28_spill] sm:$0xff] %v13166_v58  ;;  %v2238_v58 = vadd.f32 %v13168_v33, %v2165_v11  ;;  %v2303_v11 = vmul.f32 0.2, %v2239_v12  ;;  %v2362_v25 = vmax.f32 %v2234_v59, %v2298_v6  ;;  %v2363_v36 = vmax.f32 %v2235_v3, %v2299_v39 }
 0x3bc   : > { %v2300_v27 = vmul.f32 0.2, %v2236_v51  ;;  %v2304_v46 = vmul.f32 0.2, %v2240_v8  ;;  %v13192_v9 = vpack.c.bf16 %v2425_v22, %v2421_v63  ;;  %v2301_v20 = vmul.f32 0.2, %v2237_v15 }
 0x3bd   : > { %v2302_v23 = vmul.f32 0.2, %v2238_v58  ;;  %v2367_v41 = vmax.f32 %v2239_v12, %v2303_v11  ;;  %v2305_v38 = vmul.f32 0.2, %v2241_v53  ;;  %v13206_v3 = vmul.f32 %v12730_v37, %v17125_v0  ;;  %v17129_v12 = vld [vmem:[#allocation45_spill] sm:$0xff] }
 0x3be   : > { %17123 = vst [vmem:[#allocation25_spill] sm:$0xff] %v13192_v9  ;;  %v2364_v47 = vmax.f32 %v2236_v51, %v2300_v27  ;;  %v2368_v14 = vmax.f32 %v2240_v8, %v2304_v46  ;;  %v2365_v59 = vmax.f32 %v2237_v15, %v2301_v20  ;;  %v2175_v62 = vmul.f32 %v13137_v49, %v12823_v17  ;;  %v17128_v51 = vld [vmem:[#allocation38_spill] sm:$0xff]  ;;  %v10591_v0 = vld [vmem:[#allocation7 + $0x144] sm:$0xf] }
 0x3bf   : > { %v2366_v13 = vmax.f32 %v2238_v58, %v2302_v23  ;;  %v13196_v31 = vpack.c.bf16 %v2367_v41, %v2363_v36  ;;  %v2369_v28 = vmax.f32 %v2241_v53, %v2305_v38  ;;  %v2171_v58 = vmul.f32 %v13137_v49, %v12703_v30 }
 0x3c0   : > { %v13210_v41 = vpack.c.bf16 %v2368_v14, %v2364_v47  ;;  %v13222_v30 = vadd.f32 %v13168_v33, %v13096_v7  ;;  %v13226_v38 = vadd.f32 %v13170_v10, %v13072_v24  ;;  %v2172_v14 = vmul.f32 %v13081_v50, %v12697_v34  ;;  %v10727_v47 = vld [vmem:[#allocation7 + $0x584] sm:$0xf] }
 0x3c1   : > { %v13194_v52 = vpack.c.bf16 %v2366_v13, %v2362_v25  ;;  %4068 = vmatmul.bf16.vlgmr.msrb.gmra.mxu0 %v13196_v31  ;;  %v13214_v13 = vadd.f32 %v13168_v33, %v13089_v45  ;;  %v13218_v20 = vpack.c.bf16 %v2369_v28, %v2365_v59  ;;  %v9633_v25 = vld [vmem:[#allocation7 + $0x5a0] sm:$0xf0]  ;;  %v2247_v17 = vadd.f32 %v13170_v10, %v13102_v29  ;;  %v17130_v29 = vld [vmem:[#allocation37_spill] sm:$0xff] }
 0x3c2   : > { %17126 = vst [vmem:[#allocation27_spill] sm:$0xff] %v13210_v41  ;;  %4117 = vmatmul.bf16.vlgmr.msra.gmra.mxu1 %v13210_v41  ;;  %v13234_v45 = vadd.f32 %v13172_v5, %v2171_v58  ;;  %v13237_v7 = vadd.f32 %v13172_v5, %v2175_v62  ;;  %v2176_v24 = vmul.f32 %v13081_v50, %v12816_v48  ;;  %v2310_v11 = vmul.f32 0.2, %v13222_v30  ;;  %v9089_v62 = vld [vmem:[#allocation7 + $0x160] sm:$0xf0] }
 0x3c3   : > { %4019 = vmatmul.bf16.vlgmr.msrb.gmra.mxu3 %v13194_v52  ;;  %17127 = vst [vmem:[#allocation30_spill] sm:$0xff] %v13218_v20  ;;  %4166 = vmatmul.bf16.vlgmr.msrb.gmra.mxu2 %v13218_v20  ;;  %v13244_v34 = vmul.f32 %v17090_v44, %v17128_v51  ;;  %v13248_v8 = vmul.f32 %v17090_v44, %v17129_v12  ;;  %v2306_v48 = vmul.f32 0.2, %v13214_v13  ;;  %v2307_v53 = vmul.f32 0.2, %v13226_v38 }
 0x3c4   : > { %v13252_v40 = vmul.f32 %v12730_v37, %v17130_v29  ;;  %v13256_v6 = vmul.f32 %v12730_v37, %v17131_v55  ;;  %v13260_v15 = vadd.f32 %v13174_v2, %v2172_v14  ;;  %v13263_v23 = vadd.f32 %v13174_v2, %v2176_v24  ;;  %v9857_v51 = vld [vmem:[#allocation7 + $0x760] sm:$0xf0] }
 0x3c5   : > { %v9636_v39 = vor.u32 %v10727_v47, %v9633_v25  ;;  %v2179_v63 = vmul.f32 %v13137_v49, %v12725_v57  ;;  %v2183_v22 = vmul.f32 %v13137_v49, %v12851_v54  ;;  %v2311_v27 = vmul.f32 0.2, %v2247_v17  ;;  %v9345_v12 = vld [vmem:[#allocation7 + $0x360] sm:$0xf0] }
 0x3c6   : > { %v2308_v36 = vmul.f32 0.2, %v13234_v45  ;;  %v2312_v46 = vmul.f32 0.2, %v13237_v7  ;;  %v13275_v59 = vadd.f32 %v13168_v33, %v13106_v19  ;;  %v13279_v28 = vadd.f32 %v13168_v33, %v13110_v61 }
 0x3c7   : > { %4306 = vmatpush.bf16.msrb.mxu1 %v9636_v39  ;;  %v13283_v57 = vadd.f32 %v13170_v10, %v13114_v21  ;;  %v13287_v54 = vadd.f32 %v13170_v10, %v13118_v42  ;;  %v2180_v58 = vmul.f32 %v13081_v50, %v12716_v4  ;;  %v2370_v19 = vmax.f32 %v13214_v13, %v2306_v48  ;;  %v10783_v21 = vld [vmem:[#allocation7 + $0x744] sm:$0xf] }
 0x3c8   : > { %v2309_v14 = vmul.f32 0.2, %v13260_v15  ;;  %v2313_v61 = vmul.f32 0.2, %v13263_v23  ;;  %v2184_v47 = vmul.f32 %v13081_v50, %v12846_v35  ;;  %v2374_v25 = vmax.f32 %v13222_v30, %v2310_v11  ;;  %v10655_v13 = vld [vmem:[#allocation7 + $0x344] sm:$0xf] }
 0x3c9   : > { %v2371_v42 = vmax.f32 %v13226_v38, %v2307_v53  ;;  %v13299_v24 = vadd.f32 %v13172_v5, %v2179_v63  ;;  %v13302_v4 = vadd.f32 %v13172_v5, %v2183_v22  ;;  %v2375_v29 = vmax.f32 %v2247_v17, %v2311_v27  ;;  %v10719_v39 = vld [vmem:[#allocation7 + $0x544] sm:$0xf] }
 0x3ca   : > { %v2372_v55 = vmax.f32 %v13234_v45, %v2308_v36  ;;  %v2376_v48 = vmax.f32 %v13237_v7, %v2312_v46  ;;  %v2314_v35 = vmul.f32 0.2, %v13275_v59  ;;  %v9601_v30 = vld [vmem:[#allocation7 + $0x560] sm:$0xf0]  ;;  %v2318_v38 = vmul.f32 0.2, %v13279_v28 }
 0x3cb   : > { %v2315_v11 = vmul.f32 0.2, %v13283_v57  ;;  %v2319_v53 = vmul.f32 0.2, %v13287_v54  ;;  %v9092_v63 = vor.u32 %v10591_v0, %v9089_v62  ;;  %v2373_v22 = vmax.f32 %v13260_v15, %v2309_v14 }
 0x3cc   : > { %v2377_v20 = vmax.f32 %v13263_v23, %v2313_v61  ;;  %v13313_v17 = vadd.f32 %v13174_v2, %v2180_v58  ;;  %v9860_v45 = vor.u32 %v10783_v21, %v9857_v51  ;;  %v2316_v7 = vmul.f32 0.2, %v13299_v24  ;;  %v17134_v23 = vld [vmem:[#allocation44_spill] sm:$0xff] }
 0x3cd   : > { %v2320_v27 = vmul.f32 0.2, %v13302_v4  ;;  %v13318_v36 = vadd.f32 %v13174_v2, %v2184_v47  ;;  %4209 = vmatpush.bf16.msra.mxu3 %v9092_v63  ;;  %v9348_v46 = vor.u32 %v10655_v13, %v9345_v12  ;;  %v13320_v41 = vpack.c.bf16 %v2374_v25, %v2370_v19  ;;  %v10583_v13 = vld [vmem:[#allocation7 + $0x104] sm:$0xf] }
 0x3ce   : > { %v13322_v0 = vpack.c.bf16 %v2375_v29, %v2371_v42  ;;  %4356 = vmatpush.bf16.msra.mxu2 %v9860_v45  ;;  %v9604_v15 = vor.u32 %v10719_v39, %v9601_v30  ;;  %v13326_v58 = vmul.f32 %v12730_v37, %v17134_v23  ;;  %v2378_v62 = vmax.f32 %v13275_v59, %v2314_v35  ;;  %v17136_v59 = vld [vmem:[#allocation46_spill] sm:$0xff]  ;;  %v9057_v12 = vld [vmem:[#allocation7 + $0x120] sm:$0xf0] }
 0x3cf   : > { %17132 = vst [vmem:[#allocation32_spill] sm:$0xff] %v13320_v41  ;;  %v2382_v14 = vmax.f32 %v13279_v28, %v2318_v38  ;;  %v2379_v61 = vmax.f32 %v13283_v57, %v2315_v11  ;;  %v2383_v47 = vmax.f32 %v13287_v54, %v2319_v53  ;;  %4258 = vmatpush.bf16.msra.mxu0 %v9348_v46  ;;  %v2317_v37 = vmul.f32 0.2, %v13313_v17  ;;  %v17140_v29 = vld [vmem:[#allocation19_spill] sm:$0xff]  ;;  %v17144_v45 = vld [vmem:[#allocation18_spill] sm:$0xff] }
 0x3d0   : > { %17133 = vst [vmem:[#allocation29_spill] sm:$0xff] %v13322_v0  ;;  %v13334_v19 = vmul.f32 %v13137_v49, %v13006_v60  ;;  %v13338_v21 = vpack.c.bf16 %v2376_v48, %v2372_v55  ;;  %v13343_v28 = vmul.f32 %v17090_v44, %v17136_v59  ;;  %v13345_v57 = vpack.c.bf16 %v2377_v20, %v2373_v22  ;;  %v17141_v55 = vld [vmem:[#allocation21_spill] sm:$0xff]  ;;  %v10775_v39 = vld [vmem:[#allocation7 + $0x704] sm:$0xf] }
 0x3d1   : > { %4073 = vmatmul.bf16.gmra.mxu0 %v13322_v0  ;;  %v2380_v54 = vmax.f32 %v13299_v24, %v2316_v7  ;;  %v2384_v25 = vmax.f32 %v13302_v4, %v2320_v27  ;;  %v2321_v60 = vmul.f32 0.2, %v13318_v36  ;;  %4307 = vmatpush.bf16.msrb.mxu1 %v9604_v15  ;;  %v2187_v42 = vmul.f32 %v13137_v49, %v12863_v1  ;;  %v9825_v30 = vld [vmem:[#allocation7 + $0x720] sm:$0xf0]  ;;  %v17145_v27 = vld [vmem:[#allocation49_spill] sm:$0xff] }
 0x3d2   : > { %17135 = vst [vmem:[#allocation31_spill] sm:$0xff] %v13338_v21  ;;  %4122 = vmatmul.bf16.gmra.mxu1 %v13338_v21  ;;  %v2191_v51 = vmul.f32 %v13137_v49, %v12885_v26  ;;  %v2188_v44 = vmul.f32 %v13081_v50, %v12866_v18  ;;  %v13359_v20 = vmul.f32 %v13081_v50, %v12881_v32  ;;  %v10647_v53 = vld [vmem:[#allocation7 + $0x304] sm:$0xf] }
 0x3d3   : > { %4024 = vmatmul.bf16.gmra.mxu3 %v13320_v41  ;;  %17137 = vst [vmem:[#allocation34_spill] sm:$0xff] %v13345_v57  ;;  %4171 = vmatmul.bf16.gmra.mxu2 %v13345_v57  ;;  %v13362_v24 = vpack.c.bf16 %v2382_v14, %v2378_v62  ;;  %v13364_v4 = vpack.c.bf16 %v2383_v47, %v2379_v61  ;;  %v10711_v63 = vld [vmem:[#allocation7 + $0x504] sm:$0xf]  ;;  %v17146_v62 = vld [vmem:[#allocation22_spill] sm:$0xff] }
 0x3d4   : > { %v2196_v1 = vmul.f32 %v13081_v50, %v12899_v16  ;;  %v2200_v26 = vmul.f32 %v13081_v50, %v12912_v56  ;;  %v2381_v18 = vmax.f32 %v13313_v17, %v2317_v37  ;;  %v13373_v32 = vadd.f32 %v13168_v33, %v17140_v29  ;;  %v9313_v56 = vld [vmem:[#allocation7 + $0x320] sm:$0xf0] }
 0x3d5   : > { %17138 = vst [vmem:[#allocation39_spill] sm:$0xff] %v13362_v24  ;;  %v13377_v48 = vadd.f32 %v13168_v33, %v17141_v55  ;;  %v9060_v35 = vor.u32 %v10583_v13, %v9057_v12  ;;  %v13379_v38 = vpack.c.bf16 %v2384_v25, %v2380_v54  ;;  %v2385_v16 = vmax.f32 %v13318_v36, %v2321_v60  ;;  %v17143_v22 = vld [vmem:[#allocation20_spill] sm:$0xff]  ;;  %v17148_v59 = vld [vmem:[#allocation23_spill] sm:$0xff] }
 0x3d6   : > { %17139 = vst [vmem:[#allocation33_spill] sm:$0xff] %v13364_v4  ;;  %v9828_v11 = vor.u32 %v10775_v39, %v9825_v30  ;;  %v2266_v17 = vadd.f32 %v13168_v33, %v17143_v22  ;;  %v13386_v7 = vadd.f32 %v13170_v10, %v17144_v45  ;;  %v13390_v46 = vadd.f32 %v13170_v10, %v17145_v27  ;;  %v9569_v23 = vld [vmem:[#allocation7 + $0x520] sm:$0xf0]  ;;  %v17149_v45 = vld [vmem:[#allocation26_spill] sm:$0xff] }
 0x3d7   : > { %17142 = vst [vmem:[#allocation40_spill] sm:$0xff] %v13379_v38  ;;  %4210 = vmatpush.bf16.msra.mxu3 %v9060_v35  ;;  %v9316_v15 = vor.u32 %v10647_v53, %v9313_v56  ;;  %v2270_v36 = vadd.f32 %v13168_v33, %v17146_v62  ;;  %v9572_v14 = vor.u32 %v10711_v63, %v9569_v23  ;;  %v17147_v47 = vld [vmem:[#allocation24_spill] sm:$0xff]  ;;  %v13399_v25 = vmul.f32 0.2, %v13373_v32 }
 0x3d8   : > { %4357 = vmatpush.bf16.msra.mxu2 %v9828_v11  ;;  %v2330_v61 = vmul.f32 0.2, %v2266_v17  ;;  %v2267_v37 = vadd.f32 %v13170_v10, %v17147_v47  ;;  %v2271_v54 = vadd.f32 %v13170_v10, %v17148_v59  ;;  %v13402_v60 = vmul.f32 0.2, %v13377_v48  ;;  %v17151_v62 = vld [vmem:[#allocation28_spill] sm:$0xff] }
 0x3d9   : > { %v13405_v13 = vadd.f32 %v13172_v5, %v2187_v42  ;;  %4259 = vmatpush.bf16.msra.mxu0 %v9316_v15  ;;  %v2334_v12 = vmul.f32 0.2, %v2270_v36  ;;  %4308 = vmatpush.bf16.msrb.mxu1 %v9572_v14  ;;  %v2269_v39 = vadd.f32 %v13174_v2, %v2196_v1  ;;  %v13409_v30 = vadd.f32 %v13172_v5, %v2191_v51 }
 0x3da   : > { %v2394_v29 = vmax.f32 %v2266_v17, %v2330_v61  ;;  %v2331_v55 = vmul.f32 0.2, %v2267_v37  ;;  %v2335_v35 = vmul.f32 0.2, %v2271_v54  ;;  %v13412_v11 = vadd.f32 %v13174_v2, %v2188_v44 }
 0x3db   : > { %v2398_v53 = vmax.f32 %v2270_v36, %v2334_v12  ;;  %v2273_v56 = vadd.f32 %v13174_v2, %v2200_v26  ;;  %v2333_v22 = vmul.f32 0.2, %v2269_v39  ;;  %v2274_v27 = vadd.f32 %v13168_v33, %v17149_v45  ;;  %v9025_v45 = vld [vmem:[#allocation7 + $0xe0] sm:$0xf0] }
 0x3dc   : > { %v2395_v63 = vmax.f32 %v2267_v37, %v2331_v55  ;;  %v2399_v42 = vmax.f32 %v2271_v54, %v2335_v35  ;;  %v13417_v17 = vpack.c.bf16 %v2385_v16, %v2381_v18  ;;  %v13420_v15 = vmul.f32 0.2, %v13386_v7 }
 0x3dd   : > { %v13422_v1 = vpack.c.bf16 %v2398_v53, %v2394_v29  ;;  %v2337_v51 = vmul.f32 0.2, %v2273_v56  ;;  %v2397_v44 = vmax.f32 %v2269_v39, %v2333_v22  ;;  %v2278_v26 = vadd.f32 %v13168_v33, %v17151_v62  ;;  %v17154_v39 = vld [vmem:[#allocation58_spill] sm:$0xff] }
 0x3de   : > { %17150 = vst [vmem:[#allocation36_spill] sm:$0xff] %v13417_v17  ;;  %v13424_v23 = vpack.c.bf16 %v2399_v42, %v2395_v63  ;;  %v2338_v36 = vmul.f32 0.2, %v2274_v27  ;;  %v13429_v14 = vmul.f32 0.2, %v13390_v46  ;;  %v2275_v18 = vadd.f32 %v13170_v10, %v13200_v43  ;;  %v17153_v43 = vld [vmem:[#allocation56_spill] sm:$0xff] }
 0x3df   : > { %v2401_v61 = vmax.f32 %v2273_v56, %v2337_v51  ;;  %v2279_v16 = vadd.f32 %v13170_v10, %v13206_v3  ;;  %v2386_v47 = vmax.f32 %v13373_v32, %v13399_v25  ;;  %v13438_v37 = vmul.f32 0.2, %v13405_v13 }
 0x3e0   : > { %v2342_v59 = vmul.f32 0.2, %v2278_v26  ;;  %v2402_v54 = vmax.f32 %v2274_v27, %v2338_v36  ;;  %v2339_v29 = vmul.f32 0.2, %v2275_v18  ;;  %v2204_v35 = vmul.f32 %v13081_v50, %v17153_v43  ;;  %v10767_v27 = vld [vmem:[#allocation7 + $0x6c4] sm:$0xf] }
 0x3e1   : > { %4078 = vmatmul.bf16.gmra.mxu0 %v13364_v4  ;;  %v13442_v12 = vpack.c.bf16 %v2401_v61, %v2397_v44  ;;  %v2343_v55 = vmul.f32 0.2, %v2279_v16  ;;  %v2390_v3 = vmax.f32 %v13377_v48, %v13402_v60  ;;  %v13449_v32 = vmul.f32 0.2, %v13409_v30  ;;  %v10575_v60 = vld [vmem:[#allocation7 + $0xc4] sm:$0xf] }
 0x3e2   : > { %v2406_v25 = vmax.f32 %v2278_v26, %v2342_v59  ;;  %v2208_v53 = vmul.f32 %v13081_v50, %v17154_v39  ;;  %4127 = vmatmul.bf16.gmra.mxu1 %v13379_v38  ;;  %v2403_v56 = vmax.f32 %v2275_v18, %v2339_v29  ;;  %v2277_v42 = vadd.f32 %v13174_v2, %v2204_v35  ;;  %v9793_v36 = vld [vmem:[#allocation7 + $0x6e0] sm:$0xf0] }
 0x3e3   : > { %4029 = vmatmul.bf16.gmra.mxu3 %v13362_v24  ;;  %17152 = vst [vmem:[#allocation47_spill] sm:$0xff] %v13442_v12  ;;  %v2407_v63 = vmax.f32 %v2279_v16, %v2343_v55  ;;  %v2282_v22 = vadd.f32 %v13168_v33, %v13244_v34  ;;  %4176 = vmatmul.bf16.gmra.mxu2 %v13417_v17  ;;  %v10639_v61 = vld [vmem:[#allocation7 + $0x2c4] sm:$0xf] }
 0x3e4   : > { %v13460_v48 = vadd.f32 %v13174_v2, %v13359_v20  ;;  %v13462_v51 = vpack.c.bf16 %v2406_v25, %v2402_v54  ;;  %v2281_v44 = vadd.f32 %v13174_v2, %v2208_v53  ;;  %v2286_v62 = vadd.f32 %v13168_v33, %v13248_v8  ;;  %v9281_v34 = vld [vmem:[#allocation7 + $0x2e0] sm:$0xf0] }
 0x3e5   : > { %v9028_v26 = vor.u32 %v10575_v60, %v9025_v45  ;;  %v13467_v18 = vpack.c.bf16 %v2407_v63, %v2403_v56  ;;  %v2283_v20 = vadd.f32 %v13170_v10, %v13252_v40  ;;  %v2287_v16 = vadd.f32 %v13170_v10, %v13256_v6  ;;  %v10703_v8 = vld [vmem:[#allocation7 + $0x4c4] sm:$0xf] }
 0x3e6   : > { %v2387_v59 = vmax.f32 %v13386_v7, %v13420_v15  ;;  %v2325_v54 = vmul.f32 0.2, %v13412_v11  ;;  %v9796_v29 = vor.u32 %v10767_v27, %v9793_v36  ;;  %v9284_v55 = vor.u32 %v10639_v61, %v9281_v34  ;;  %v9537_v43 = vld [vmem:[#allocation7 + $0x4e0] sm:$0xf0] }
 0x3e7   : > { %17155 = vst [vmem:[#allocation53_spill] sm:$0xff] %v13467_v18  ;;  %4211 = vmatpush.bf16.msra.mxu3 %v9028_v26  ;;  %v9540_v35 = vor.u32 %v10703_v8, %v9537_v43  ;;  %v2341_v25 = vmul.f32 0.2, %v2277_v42  ;;  %v2345_v39 = vmul.f32 0.2, %v2281_v44  ;;  %v2391_v40 = vmax.f32 %v13390_v46, %v13429_v14  ;;  %v17161_v43 = vld [vmem:[#allocation50_spill] sm:$0xff] }
 0x3e8   : > { %v2346_v53 = vmul.f32 0.2, %v2282_v22  ;;  %4358 = vmatpush.bf16.msra.mxu2 %v9796_v29  ;;  %4260 = vmatpush.bf16.msra.mxu0 %v9284_v55  ;;  %v2350_v6 = vmul.f32 0.2, %v2286_v62  ;;  %v2347_v56 = vmul.f32 0.2, %v2283_v20  ;;  %v2388_v27 = vmax.f32 %v13405_v13, %v13438_v37 }
 0x3e9   : > { %v2351_v63 = vmul.f32 0.2, %v2287_v16  ;;  %v2329_v7 = vmul.f32 0.2, %v13460_v48  ;;  %4309 = vmatpush.bf16.msrb.mxu1 %v9540_v35  ;;  %v2405_v15 = vmax.f32 %v2277_v42, %v2341_v25  ;;  %v2409_v60 = vmax.f32 %v2281_v44, %v2345_v39  ;;  %v17157_v29 = vld [vmem:[#allocation60_spill] sm:$0xff] }
 0x3ea   : > { %v2410_v45 = vmax.f32 %v2282_v22, %v2346_v53  ;;  %v2414_v26 = vmax.f32 %v2286_v62, %v2350_v6  ;;  %v2411_v36 = vmax.f32 %v2283_v20, %v2347_v56  ;;  %v13481_v34 = vpack.c.bf16 %v2390_v3, %v2386_v47  ;;  %v17159_v22 = vld [vmem:[#allocation62_spill] sm:$0xff] }
 0x3eb   : > { %v2415_v61 = vmax.f32 %v2287_v16, %v2351_v63  ;;  %v2392_v46 = vmax.f32 %v13409_v30, %v13449_v32  ;;  %v13485_v14 = vpack.c.bf16 %v2409_v60, %v2405_v15  ;;  %v2212_v55 = vmul.f32 %v13081_v50, %v17157_v29  ;;  %v17160_v32 = vld [vmem:[#allocation51_spill] sm:$0xff]  ;;  %v17163_v63 = vld [vmem:[#allocation54_spill] sm:$0xff] }
 0x3ec   : > { %v13489_v8 = vpack.c.bf16 %v2414_v26, %v2410_v45  ;;  %v2216_v13 = vmul.f32 %v13081_v50, %v17159_v22  ;;  %v2290_v37 = vadd.f32 %v13168_v33, %v13343_v28  ;;  %v2389_v47 = vmax.f32 %v13412_v11, %v2325_v54  ;;  %v17164_v15 = vld [vmem:[#allocation55_spill] sm:$0xff] }
 0x3ed   : > { %17156 = vst [vmem:[#allocation42_spill] sm:$0xff] %v13485_v14  ;;  %v13491_v42 = vpack.c.bf16 %v2415_v61, %v2411_v36  ;;  %v2393_v3 = vmax.f32 %v13460_v48, %v2329_v7  ;;  %v2285_v30 = vadd.f32 %v13174_v2, %v2212_v55  ;;  %v2294_v44 = vadd.f32 %v13168_v33, %v17160_v32  ;;  %v10567_v26 = vld [vmem:[#allocation7 + $0x84] sm:$0xf] }
 0x3ee   : > { %v2289_v62 = vadd.f32 %v13174_v2, %v2216_v13  ;;  %v2354_v20 = vmul.f32 0.2, %v2290_v37  ;;  %v2291_v16 = vadd.f32 %v13170_v10, %v13326_v58  ;;  %v2295_v50 = vadd.f32 %v13170_v10, %v17161_v43  ;;  %v8993_v36 = vld [vmem:[#allocation7 + $0xa0] sm:$0xf0] }
 0x3ef   : > { %17158 = vst [vmem:[#allocation48_spill] sm:$0xff] %v13491_v42  ;;  %v13507_v35 = vpack.c.bf16 %v2391_v40, %v2387_v59  ;;  %v13509_v28 = vpack.c.bf16 %v2392_v46, %v2388_v27  ;;  %v2349_v11 = vmul.f32 0.2, %v2285_v30  ;;  %v2358_v48 = vmul.f32 0.2, %v2294_v44  ;;  %v17162_v40 = vld [vmem:[#allocation64_spill] sm:$0xff] }
 0x3f0   : > { %v2353_v54 = vmul.f32 0.2, %v2289_v62  ;;  %v2418_v25 = vmax.f32 %v2290_v37, %v2354_v20  ;;  %v2355_v39 = vmul.f32 0.2, %v2291_v16  ;;  %v2359_v53 = vmul.f32 0.2, %v2295_v50 }
 0x3f1   : > { %4083 = vmatmul.bf16.gmra.mxu0 %v13507_v35  ;;  %v13513_v2 = vpack.c.bf16 %v2393_v3, %v2389_v47  ;;  %v2413_v33 = vmax.f32 %v2285_v30, %v2349_v11  ;;  %v2422_v58 = vmax.f32 %v2294_v44, %v2358_v48  ;;  %v2219_v56 = vmul.f32 %v13137_v49, %v17162_v40  ;;  %v10759_v61 = vld [vmem:[#allocation7 + $0x684] sm:$0xf] }
 0x3f2   : > { %v2417_v6 = vmax.f32 %v2289_v62, %v2353_v54  ;;  %v2419_v10 = vmax.f32 %v2291_v16, %v2355_v39  ;;  %v2423_v59 = vmax.f32 %v2295_v50, %v2359_v53  ;;  %4132 = vmatmul.bf16.gmra.mxu1 %v13509_v28  ;;  %v2195_v7 = vmul.f32 %v13137_v49, %v17163_v63  ;;  %v9761_v47 = vld [vmem:[#allocation7 + $0x6a0] sm:$0xf0] }
 0x3f3   : > { %4034 = vmatmul.bf16.gmra.mxu3 %v13481_v34  ;;  %v2199_v60 = vmul.f32 %v13137_v49, %v17164_v15  ;;  %v13522_v45 = vpack.c.bf16 %v2422_v58, %v2418_v25  ;;  %v2296_v27 = vadd.f32 %v13172_v5, %v13334_v19  ;;  %4181 = vmatmul.bf16.gmra.mxu2 %v13513_v2  ;;  %v10631_v3 = vld [vmem:[#allocation7 + $0x284] sm:$0xf]  ;;  %v17170_v58 = vld [vmem:[#allocation57_spill] sm:$0xff] }
 0x3f4   : > { %v13527_v46 = vpack.c.bf16 %v2417_v6, %v2413_v33  ;;  %v13529_v29 = vpack.c.bf16 %v2423_v59, %v2419_v10  ;;  %v2292_v55 = vadd.f32 %v13172_v5, %v2219_v56  ;;  %v2268_v22 = vadd.f32 %v13172_v5, %v2195_v7  ;;  %v9249_v30 = vld [vmem:[#allocation7 + $0x2a0] sm:$0xf0] }
 0x3f5   : > { %17165 = vst [vmem:[#allocation52_spill] sm:$0xff] %v13522_v45  ;;  %v2272_v13 = vadd.f32 %v13172_v5, %v2199_v60  ;;  %v8996_v37 = vor.u32 %v10567_v26, %v8993_v36  ;;  %v9764_v19 = vor.u32 %v10759_v61, %v9761_v47  ;;  %v9252_v32 = vor.u32 %v10631_v3, %v9249_v30  ;;  %v10695_v44 = vld [vmem:[#allocation7 + $0x484] sm:$0xf] }
 0x3f6   : > { %17166 = vst [vmem:[#allocation35_spill] sm:$0xff] %v13527_v46  ;;  %v9505_v62 = vld [vmem:[#allocation7 + $0x4a0] sm:$0xf0]  ;;  %v2356_v20 = vmul.f32 0.2, %v2292_v55  ;;  %v2203_v6 = vmul.f32 %v13137_v49, %v17170_v58 }
 0x3f7   : > { %17167 = vst [vmem:[#allocation41_spill] sm:$0xff] %v13529_v29  ;;  %4212 = vmatpush.bf16.msra.mxu3 %v8996_v37  ;;  %v9508_v16 = vor.u32 %v10695_v44, %v9505_v62  ;;  %v2360_v43 = vmul.f32 0.2, %v2296_v27  ;;  %4359 = vmatpush.bf16.msra.mxu2 %v9764_v19  ;;  %v2332_v11 = vmul.f32 0.2, %v2268_v22  ;;  %v17171_v10 = vld [vmem:[#allocation59_spill] sm:$0xff] }
 0x3f8   : > { %4261 = vmatpush.bf16.msra.mxu0 %v9252_v32  ;;  %v2420_v50 = vmax.f32 %v2292_v55, %v2356_v20  ;;  %v2336_v48 = vmul.f32 0.2, %v2272_v13  ;;  %v2207_v59 = vmul.f32 %v13137_v49, %v17171_v10  ;;  %v10559_v40 = vld [vmem:[#allocation7 + $0x44] sm:$0xf]  ;;  %v2276_v7 = vadd.f32 %v13172_v5, %v2203_v6  ;;  %v17173_v44 = vld [vmem:[#allocation61_spill] sm:$0xff] }
 0x3f9   : > { %4310 = vmatpush.bf16.msrb.mxu1 %v9508_v16  ;;  %v2424_v54 = vmax.f32 %v2296_v27, %v2360_v43  ;;  %v2396_v39 = vmax.f32 %v2268_v22, %v2332_v11  ;;  %v8961_v56 = vld [vmem:[#allocation7 + $0x60] sm:$0xf0]  ;;  %v2211_v62 = vmul.f32 %v13137_v49, %v17173_v44  ;;  %v9127_v44 = vld [vmem:[#allocation7 + $0x188] sm:$0xf] }
 0x3fa   : > { %v2400_v53 = vmax.f32 %v2272_v13, %v2336_v48  ;;  %v10751_v63 = vld [vmem:[#allocation7 + $0x644] sm:$0xf]  ;;  %v2280_v15 = vadd.f32 %v13172_v5, %v2207_v59  ;;  %v8964_v60 = vor.u32 %v10559_v40, %v8961_v56  ;;  %v2340_v47 = vmul.f32 0.2, %v2276_v7 }
 0x3fb   : > { %v13534_v25 = vpack.c.bf16 %v2424_v54, %v2420_v50  ;;  %v9729_v27 = vld [vmem:[#allocation7 + $0x660] sm:$0xf0]  ;;  %v2284_v48 = vadd.f32 %v13172_v5, %v2211_v62  ;;  %v10604_v62 = vld [vmem:[#allocation7 + $0x1a4] sm:$0xf0] }
 0x3fc   : > { %v13538_v33 = vpack.c.bf16 %v2400_v53, %v2396_v39  ;;  %v10623_v26 = vld [vmem:[#allocation7 + $0x244] sm:$0xf]  ;;  %v9732_v61 = vor.u32 %v10751_v63, %v9729_v27  ;;  %4213 = vmatpush.bf16.msra.mxu3 %v8964_v60  ;;  %v2344_v3 = vmul.f32 0.2, %v2280_v15  ;;  %v2404_v30 = vmax.f32 %v2276_v7, %v2340_v47  ;;  %v9159_v27 = vld [vmem:[#allocation7 + $0x1c8] sm:$0xf] }
 0x3fd   : > { %17168 = vst [vmem:[#allocation38_spill] sm:$0xff] %v13534_v25  ;;  %v9217_v36 = vld [vmem:[#allocation7 + $0x260] sm:$0xf0]  ;;  %v9671_v47 = vld [vmem:[#allocation7 + $0x5c8] sm:$0xf] }
 0x3fe   : > { %17169 = vst [vmem:[#allocation45_spill] sm:$0xff] %v13538_v33  ;;  %v9220_v55 = vor.u32 %v10623_v26, %v9217_v36  ;;  %v10687_v22 = vld [vmem:[#allocation7 + $0x444] sm:$0xf]  ;;  %4360 = vmatpush.bf16.msra.mxu2 %v9732_v61  ;;  %v2408_v19 = vmax.f32 %v2280_v15, %v2344_v3  ;;  %v10612_v26 = vld [vmem:[#allocation7 + $0x1e4] sm:$0xf0] }
 0x3ff   : > { %v9473_v13 = vld [vmem:[#allocation7 + $0x460] sm:$0xf0]  ;;  %v9160_v36 = vor.u32 %v10612_v26, %v9159_v27  ;;  %v9927_v61 = vld [vmem:[#allocation7 + $0x7c8] sm:$0xf] }
 0x400   : > { %v9476_v37 = vor.u32 %v10687_v22, %v9473_v13  ;;  %4262 = vmatpush.bf16.msra.mxu0 %v9220_v55  ;;  %v13550_v32 = vpack.c.bf16 %v2408_v19, %v2404_v30  ;;  %v17174_v20 = vld [vmem:[#allocation63_spill] sm:$0xff]  ;;  %v10804_v55 = vld [vmem:[#allocation7 + $0x7e4] sm:$0xf0] }
 0x401   : > { %4088 = vmatmul.bf16.gmra.mxu0 %v13424_v23  ;;  %v2215_v16 = vmul.f32 %v13137_v49, %v17174_v20  ;;  %v10551_v43 = vld [vmem:[#allocation7 + $0x4] sm:$0xf]  ;;  %v2348_v49 = vmul.f32 0.2, %v2284_v48  ;;  %v9415_v22 = vld [vmem:[#allocation7 + $0x3c8] sm:$0xf]  ;;  %v9928_v13 = vor.u32 %v10804_v55, %v9927_v61  ;;  %v9128_v20 = vor.u32 %v10604_v62, %v9127_v44 }
 0x402   : > { %4137 = vmatmul.bf16.gmra.mxu1 %v13538_v33  ;;  %17172 = vst [vmem:[#allocation37_spill] sm:$0xff] %v13550_v32  ;;  %v8929_v50 = vld [vmem:[#allocation7 + $0x20] sm:$0xf0]  ;;  %v10740_v3 = vld [vmem:[#allocation7 + $0x5e4] sm:$0xf0] }
 0x403   : > { %4039 = vmatmul.bf16.gmra.mxu3 %v13422_v1  ;;  %4186 = vmatmul.bf16.gmra.mxu2 %v13442_v12  ;;  %v10743_v11 = vld [vmem:[#allocation7 + $0x604] sm:$0xf]  ;;  %v2288_v54 = vadd.f32 %v13172_v5, %v2215_v16  ;;  %v8932_v39 = vor.u32 %v10551_v43, %v8929_v50  ;;  %v2412_v15 = vmax.f32 %v2284_v48, %v2348_v49  ;;  %v13570_v43 = vld [vmem:[#allocation8 + $0x13] sm:$0xff]  ;;  %v9895_v50 = vld [vmem:[#allocation7 + $0x788] sm:$0xf] }
 0x404   : > { %4311 = vmatpush.bf16.msrb.mxu1 %v9476_v37  ;;  %v9697_v53 = vld [vmem:[#allocation7 + $0x620] sm:$0xf0]  ;;  %v10676_v37 = vld [vmem:[#allocation7 + $0x3e4] sm:$0xf0]  ;;  %v9672_v19 = vor.u32 %v10740_v3, %v9671_v47 }
 0x405   : > { %v10615_v58 = vld [vmem:[#allocation7 + $0x204] sm:$0xf]  ;;  %v9700_v10 = vor.u32 %v10743_v11, %v9697_v53  ;;  %4214 = vmatpush.bf16.msra.mxu3 %v8932_v39  ;;  %v2352_v7 = vmul.f32 0.2, %v2288_v54  ;;  %v9416_v30 = vor.u32 %v10676_v37, %v9415_v22  ;;  %v10796_v11 = vld [vmem:[#allocation7 + $0x7a4] sm:$0xf0] }
 0x406   : > { %v9185_v6 = vld [vmem:[#allocation7 + $0x220] sm:$0xf0]  ;;  %v9383_v48 = vld [vmem:[#allocation7 + $0x388] sm:$0xf]  ;;  %v9896_v39 = vor.u32 %v10796_v11, %v9895_v50 }
 0x407   : > { %v9188_v59 = vor.u32 %v10615_v58, %v9185_v6  ;;  %v10679_v40 = vld [vmem:[#allocation7 + $0x404] sm:$0xf]  ;;  %4361 = vmatpush.bf16.msra.mxu2 %v9700_v10  ;;  %v2416_v60 = vmax.f32 %v2288_v54, %v2352_v7  ;;  %v10668_v53 = vld [vmem:[#allocation7 + $0x3a4] sm:$0xf0]  ;;  %v13575_v10 = vperm.slane %v13570_v43, 0 }
 0x408   : > { %v9441_v56 = vld [vmem:[#allocation7 + $0x420] sm:$0xf0]  ;;  %v9639_v58 = vld [vmem:[#allocation7 + $0x588] sm:$0xf] }
 0x409   : > { %v9444_v63 = vor.u32 %v10679_v40, %v9441_v56  ;;  %4263 = vmatpush.bf16.msra.mxu0 %v9188_v59  ;;  %v13562_v5 = vpack.c.bf16 %v2416_v60, %v2412_v15  ;;  %4403 = vmatpush.bf16.msrb.mxu3 %v9160_v36  ;;  %v10732_v6 = vld [vmem:[#allocation7 + $0x5a4] sm:$0xf0]  ;;  %v9384_v59 = vor.u32 %v10668_v53, %v9383_v48  ;;  %v17176_v56 = vld [vmem:[#allocation27_spill] sm:$0xff] }
 0x40a   : > { %v9640_v40 = vor.u32 %v10732_v6, %v9639_v58  ;;  %v9095_v26 = vld [vmem:[#allocation7 + $0x148] sm:$0xf] }
 0x40b   : > { %4312 = vmatpush.bf16.msrb.mxu1 %v9444_v63  ;;  %17175 = vst [vmem:[#allocation43_spill] sm:$0xff] %v13562_v5  ;;  %4550 = vmatpush.bf16.msrb.mxu2 %v9928_v13  ;;  %v17177_v63 = vld [vmem:[#allocation30_spill] sm:$0xff]  ;;  %v10596_v36 = vld [vmem:[#allocation7 + $0x164] sm:$0xf0] }
 0x40c   : > { %v9096_v55 = vor.u32 %v10596_v36, %v9095_v26  ;;  %v9863_v44 = vld [vmem:[#allocation7 + $0x748] sm:$0xf] }
 0x40d   : > { %4452 = vmatpush.bf16.msrb.mxu0 %v9416_v30  ;;  %4404 = vmatpush.bf16.msrb.mxu3 %v9128_v20  ;;  %v10788_v62 = vld [vmem:[#allocation7 + $0x764] sm:$0xf0] }
 0x40e   : > { %v9351_v20 = vld [vmem:[#allocation7 + $0x348] sm:$0xf] }
 0x40f   : > { %4501 = vmatpush.bf16.msra.mxu1 %v9672_v19  ;;  %4551 = vmatpush.bf16.msrb.mxu2 %v9896_v39  ;;  %v10660_v11 = vld [vmem:[#allocation7 + $0x364] sm:$0xf0] }
 0x410   : > { %v9607_v48 = vld [vmem:[#allocation7 + $0x548] sm:$0xf] }
 0x411   : > { %4093 = vmatmul.bf16.gmra.mxu0 %v13467_v18  ;;  %4405 = vmatpush.bf16.msrb.mxu3 %v9096_v55  ;;  %v10724_v39 = vld [vmem:[#allocation7 + $0x564] sm:$0xf0] }
 0x412   : > { %4142 = vmatmul.bf16.gmra.mxu1 %v13550_v32  ;;  %4453 = vmatpush.bf16.msrb.mxu0 %v9384_v59  ;;  %v9608_v58 = vor.u32 %v10724_v39, %v9607_v48  ;;  %v9575_v48 = vld [vmem:[#allocation7 + $0x508] sm:$0xf] }
 0x413   : > { %4044 = vmatmul.bf16.gmra.mxu3 %v13462_v51  ;;  %4191 = vmatmul.bf16.gmra.mxu2 %v13485_v14  ;;  %v10716_v39 = vld [vmem:[#allocation7 + $0x524] sm:$0xf0] }
 0x414   : > { %4502 = vmatpush.bf16.msra.mxu1 %v9640_v40 }
 0x418   : > { %4503 = vmatpush.bf16.msra.mxu1 %v9608_v58 }
 0x421   : > { %4098 = vmatmul.bf16.gmra.mxu0 %v13491_v42 }
 0x422   : > { %4147 = vmatmul.bf16.gmra.mxu1 %v13562_v5 }
 0x423   : > { %4049 = vmatmul.bf16.gmra.mxu3 %v13489_v8  ;;  %4196 = vmatmul.bf16.gmra.mxu2 %v13527_v46 }
 0x431   : > { %4103 = vmatmul.bf16.gmra.mxu0 %v13529_v29 }
 0x432   : > { %4152 = vmatmul.bf16.gmra.mxu1 %v13534_v25 }
 0x433   : > { %4054 = vmatmul.bf16.gmra.mxu3 %v13522_v45  ;;  %4201 = vmatmul.bf16.gmra.mxu2 %v13192_v9 }
 0x43e   : > { %v4069_v16 = vpop.f32.mrf.mxu0 }
 0x43f   : > { %v4118_v54 = vpop.f32.mrf.mxu1 }
 0x441   : > { %4264 = vmatmul.bf16.vlgmr.msra.gmra.mxu0 %v13196_v31 }
 0x442   : > { %4313 = vmatmul.bf16.vlgmr.msrb.gmra.mxu1 %v17176_v56 }
 0x443   : > { %4215 = vmatmul.bf16.vlgmr.msra.gmra.mxu3 %v13194_v52  ;;  %4362 = vmatmul.bf16.vlgmr.msra.gmra.mxu2 %v17177_v63 }
 0x446   : > { %v4020_v49 = vpop.f32.mrf.mxu3  ;;  %v4071_v15 = vpop.f32.mrf.mxu0 }
 0x447   : > { %v4021_v7 = vadd.f32 %v4020_v49, %v13575_v10  ;;  %v4167_v27 = vpop.f32.mrf.mxu2  ;;  %v4120_v61 = vpop.f32.mrf.mxu1 }
 0x449   : > { %v4070_v60 = vadd.f32 %v4069_v16, %v4021_v7  ;;  %v9864_v16 = vor.u32 %v10788_v62, %v9863_v44  ;;  %v9831_v44 = vld [vmem:[#allocation7 + $0x708] sm:$0xf] }
 0x44a   : > { %v10780_v62 = vld [vmem:[#allocation7 + $0x724] sm:$0xf0] }
 0x44b   : > { %v4119_v22 = vadd.f32 %v4118_v54, %v4070_v60  ;;  %v9352_v54 = vor.u32 %v10660_v11, %v9351_v20  ;;  %4552 = vmatpush.bf16.msrb.mxu2 %v9864_v16  ;;  %v9063_v60 = vld [vmem:[#allocation7 + $0x108] sm:$0xf] }
 0x44c   : > { %v9319_v20 = vld [vmem:[#allocation7 + $0x308] sm:$0xf] }
 0x44d   : > { %v13580_v13 = vadd.f32 %v4167_v27, %v4119_v22  ;;  %4454 = vmatpush.bf16.msrb.mxu0 %v9352_v54  ;;  %v10588_v27 = vld [vmem:[#allocation7 + $0x124] sm:$0xf0]  ;;  %v9576_v54 = vor.u32 %v10716_v39, %v9575_v48 }
 0x44e   : > { %v4022_v37 = vpop.f32.mrf.mxu3  ;;  %v4074_v3 = vpop.f32.mrf.mxu0  ;;  %v9064_v36 = vor.u32 %v10588_v27, %v9063_v60  ;;  %v10652_v11 = vld [vmem:[#allocation7 + $0x324] sm:$0xf0] }
 0x44f   : > { %17178 = vst [vmem:[#allocation44_spill] sm:$0xff] %v13580_v13  ;;  %v4023_v47 = vadd.f32 %v4022_v37, %v13575_v10  ;;  %v4169_v19 = vpop.f32.mrf.mxu2  ;;  %v4123_v50 = vpop.f32.mrf.mxu1  ;;  %4504 = vmatpush.bf16.msra.mxu1 %v9576_v54  ;;  %v9031_v60 = vld [vmem:[#allocation7 + $0xc8] sm:$0xf] }
 0x450   : > { %4406 = vmatpush.bf16.msrb.mxu3 %v9064_v36  ;;  %v10580_v27 = vld [vmem:[#allocation7 + $0xe4] sm:$0xf0] }
 0x451   : > { %v4072_v30 = vadd.f32 %v4071_v15, %v4023_v47  ;;  %4269 = vmatmul.bf16.gmra.mxu0 %v13322_v0  ;;  %v9032_v36 = vor.u32 %v10580_v27, %v9031_v60  ;;  %v10644_v39 = vld [vmem:[#allocation7 + $0x2e4] sm:$0xf0] }
 0x452   : > { %4318 = vmatmul.bf16.gmra.mxu1 %v13338_v21 }
 0x453   : > { %v4121_v53 = vadd.f32 %v4120_v61, %v4072_v30  ;;  %4220 = vmatmul.bf16.gmra.mxu3 %v13320_v41  ;;  %4367 = vmatmul.bf16.gmra.mxu2 %v13345_v57 }
 0x454   : > { %4407 = vmatpush.bf16.msrb.mxu3 %v9032_v36  ;;  %v10572_v36 = vld [vmem:[#allocation7 + $0xa4] sm:$0xf0] }
 0x455   : > { %v13585_v6 = vadd.f32 %v4169_v19, %v4121_v53 }
 0x456   : > { %v4025_v59 = vpop.f32.mrf.mxu3  ;;  %v4076_v49 = vpop.f32.mrf.mxu0 }
 0x457   : > { %17179 = vst [vmem:[#allocation46_spill] sm:$0xff] %v13585_v6  ;;  %v4026_v40 = vadd.f32 %v4025_v59, %v13575_v10  ;;  %v4172_v15 = vpop.f32.mrf.mxu2  ;;  %v4125_v26 = vpop.f32.mrf.mxu1 }
 0x459   : > { %v4075_v7 = vadd.f32 %v4074_v3, %v4026_v40  ;;  %v9832_v3 = vor.u32 %v10780_v62, %v9831_v44 }
 0x45b   : > { %v4124_v61 = vadd.f32 %v4123_v50, %v4075_v7  ;;  %v9320_v50 = vor.u32 %v10652_v11, %v9319_v20  ;;  %4553 = vmatpush.bf16.msrb.mxu2 %v9832_v3  ;;  %v9799_v20 = vld [vmem:[#allocation7 + $0x6c8] sm:$0xf] }
 0x45c   : > { %v10772_v3 = vld [vmem:[#allocation7 + $0x6e4] sm:$0xf0] }
 0x45d   : > { %v13590_v55 = vadd.f32 %v4172_v15, %v4124_v61  ;;  %4455 = vmatpush.bf16.msrb.mxu0 %v9320_v50  ;;  %v9287_v11 = vld [vmem:[#allocation7 + $0x2c8] sm:$0xf] }
 0x45e   : > { %v4027_v22 = vpop.f32.mrf.mxu3  ;;  %v4079_v47 = vpop.f32.mrf.mxu0  ;;  %v10708_v50 = vld [vmem:[#allocation7 + $0x4e4] sm:$0xf0] }
 0x45f   : > { %17180 = vst [vmem:[#allocation19_spill] sm:$0xff] %v13590_v55  ;;  %v4028_v37 = vadd.f32 %v4027_v22, %v13575_v10  ;;  %v4174_v19 = vpop.f32.mrf.mxu2  ;;  %v4128_v16 = vpop.f32.mrf.mxu1 }
 0x461   : > { %v4077_v30 = vadd.f32 %v4076_v49, %v4028_v37  ;;  %4274 = vmatmul.bf16.gmra.mxu0 %v13364_v4 }
 0x462   : > { %4323 = vmatmul.bf16.gmra.mxu1 %v13379_v38 }
 0x463   : > { %v4126_v53 = vadd.f32 %v4125_v26, %v4077_v30  ;;  %4225 = vmatmul.bf16.gmra.mxu3 %v13362_v24  ;;  %4372 = vmatmul.bf16.gmra.mxu2 %v13417_v17 }
 0x465   : > { %v13595_v58 = vadd.f32 %v4174_v19, %v4126_v53  ;;  %v9543_v53 = vld [vmem:[#allocation7 + $0x4c8] sm:$0xf] }
 0x466   : > { %v4030_v59 = vpop.f32.mrf.mxu3  ;;  %v4081_v49 = vpop.f32.mrf.mxu0 }
 0x467   : > { %17181 = vst [vmem:[#allocation21_spill] sm:$0xff] %v13595_v58  ;;  %v4031_v40 = vadd.f32 %v4030_v59, %v13575_v10  ;;  %v4177_v15 = vpop.f32.mrf.mxu2  ;;  %v4130_v26 = vpop.f32.mrf.mxu1  ;;  %v9544_v59 = vor.u32 %v10708_v50, %v9543_v53  ;;  %v10764_v53 = vld [vmem:[#allocation7 + $0x6a4] sm:$0xf0] }
 0x468   : > { %v9255_v50 = vld [vmem:[#allocation7 + $0x288] sm:$0xf] }
 0x469   : > { %v4080_v7 = vadd.f32 %v4079_v47, %v4031_v40  ;;  %v9800_v47 = vor.u32 %v10772_v3, %v9799_v20  ;;  %4505 = vmatpush.bf16.msra.mxu1 %v9544_v59  ;;  %v9511_v59 = vld [vmem:[#allocation7 + $0x488] sm:$0xf] }
 0x46b   : > { %v4129_v61 = vadd.f32 %v4128_v16, %v4080_v7  ;;  %v9288_v16 = vor.u32 %v10644_v39, %v9287_v11  ;;  %4554 = vmatpush.bf16.msrb.mxu2 %v9800_v47  ;;  %v9767_v39 = vld [vmem:[#allocation7 + $0x688] sm:$0xf] }
 0x46d   : > { %v13600_v22 = vadd.f32 %v4177_v15, %v4129_v61  ;;  %4456 = vmatpush.bf16.msrb.mxu0 %v9288_v16  ;;  %v10636_v16 = vld [vmem:[#allocation7 + $0x2a4] sm:$0xf0] }
 0x46e   : > { %v4032_v37 = vpop.f32.mrf.mxu3  ;;  %v4084_v19 = vpop.f32.mrf.mxu0 }
 0x46f   : > { %17182 = vst [vmem:[#allocation20_spill] sm:$0xff] %v13600_v22  ;;  %v4033_v30 = vadd.f32 %v4032_v37, %v13575_v10  ;;  %v4179_v62 = vpop.f32.mrf.mxu2  ;;  %v4133_v48 = vpop.f32.mrf.mxu1 }
 0x471   : > { %v4082_v44 = vadd.f32 %v4081_v49, %v4033_v30  ;;  %4279 = vmatmul.bf16.gmra.mxu0 %v13507_v35 }
 0x472   : > { %4328 = vmatmul.bf16.gmra.mxu1 %v13509_v28 }
 0x473   : > { %v4131_v54 = vadd.f32 %v4130_v26, %v4082_v44  ;;  %4230 = vmatmul.bf16.gmra.mxu3 %v13481_v34  ;;  %4377 = vmatmul.bf16.gmra.mxu2 %v13513_v2  ;;  %v8999_v26 = vld [vmem:[#allocation7 + $0x88] sm:$0xf] }
 0x474   : > { %v9000_v37 = vor.u32 %v10572_v36, %v8999_v26 }
 0x475   : > { %v13605_v40 = vadd.f32 %v4179_v62, %v4131_v54 }
 0x476   : > { %v4035_v49 = vpop.f32.mrf.mxu3  ;;  %v4086_v15 = vpop.f32.mrf.mxu0  ;;  %4408 = vmatpush.bf16.msrb.mxu3 %v9000_v37 }
 0x477   : > { %17183 = vst [vmem:[#allocation18_spill] sm:$0xff] %v13605_v40  ;;  %v4036_v7 = vadd.f32 %v4035_v49, %v13575_v10  ;;  %v4182_v27 = vpop.f32.mrf.mxu2  ;;  %v4135_v61 = vpop.f32.mrf.mxu1  ;;  %v10700_v49 = vld [vmem:[#allocation7 + $0x4a4] sm:$0xf0] }
 0x479   : > { %v4085_v60 = vadd.f32 %v4084_v19, %v4036_v7  ;;  %v9768_v19 = vor.u32 %v10764_v53, %v9767_v39 }
 0x47b   : > { %v4134_v30 = vadd.f32 %v4133_v48, %v4085_v60  ;;  %v9256_v48 = vor.u32 %v10636_v16, %v9255_v50  ;;  %v9512_v60 = vor.u32 %v10700_v49, %v9511_v59  ;;  %4555 = vmatpush.bf16.msrb.mxu2 %v9768_v19  ;;  %v9735_v49 = vld [vmem:[#allocation7 + $0x648] sm:$0xf] }
 0x47d   : > { %v13610_v44 = vadd.f32 %v4182_v27, %v4134_v30  ;;  %4457 = vmatpush.bf16.msrb.mxu0 %v9256_v48  ;;  %4506 = vmatpush.bf16.msra.mxu1 %v9512_v60  ;;  %v8967_v30 = vld [vmem:[#allocation7 + $0x48] sm:$0xf] }
 0x47e   : > { %v4037_v62 = vpop.f32.mrf.mxu3  ;;  %v4089_v3 = vpop.f32.mrf.mxu0  ;;  %v9223_v48 = vld [vmem:[#allocation7 + $0x248] sm:$0xf] }
 0x47f   : > { %17184 = vst [vmem:[#allocation49_spill] sm:$0xff] %v13610_v44  ;;  %v4038_v20 = vadd.f32 %v4037_v62, %v13575_v10  ;;  %v4184_v47 = vpop.f32.mrf.mxu2  ;;  %v4138_v54 = vpop.f32.mrf.mxu1  ;;  %v10564_v62 = vld [vmem:[#allocation7 + $0x64] sm:$0xf0] }
 0x481   : > { %v4087_v11 = vadd.f32 %v4086_v15, %v4038_v20  ;;  %4284 = vmatmul.bf16.gmra.mxu0 %v13424_v23 }
 0x482   : > { %4333 = vmatmul.bf16.gmra.mxu1 %v13538_v33 }
 0x483   : > { %v4136_v7 = vadd.f32 %v4135_v61, %v4087_v11  ;;  %4235 = vmatmul.bf16.gmra.mxu3 %v13422_v1  ;;  %4382 = vmatmul.bf16.gmra.mxu2 %v13442_v12  ;;  %v8968_v11 = vor.u32 %v10564_v62, %v8967_v30  ;;  %v10692_v12 = vld [vmem:[#allocation7 + $0x464] sm:$0xf0] }
 0x485   : > { %v13615_v27 = vadd.f32 %v4184_v47, %v4136_v7  ;;  %4409 = vmatpush.bf16.msrb.mxu3 %v8968_v11  ;;  %v10756_v7 = vld [vmem:[#allocation7 + $0x664] sm:$0xf0] }
 0x486   : > { %v4040_v15 = vpop.f32.mrf.mxu3  ;;  %v4091_v36 = vpop.f32.mrf.mxu0 }
 0x487   : > { %17185 = vst [vmem:[#allocation22_spill] sm:$0xff] %v13615_v27  ;;  %v4041_v26 = vadd.f32 %v4040_v15, %v13575_v10  ;;  %v4187_v37 = vpop.f32.mrf.mxu2  ;;  %v4140_v20 = vpop.f32.mrf.mxu1  ;;  %v10628_v15 = vld [vmem:[#allocation7 + $0x264] sm:$0xf0] }
 0x489   : > { %v4090_v61 = vadd.f32 %v4089_v3, %v4041_v26  ;;  %v9736_v3 = vor.u32 %v10756_v7, %v9735_v49  ;;  %v9479_v26 = vld [vmem:[#allocation7 + $0x448] sm:$0xf] }
 0x48b   : > { %v4139_v39 = vadd.f32 %v4138_v54, %v4090_v61  ;;  %v9224_v54 = vor.u32 %v10628_v15, %v9223_v48  ;;  %v9480_v61 = vor.u32 %v10692_v12, %v9479_v26  ;;  %4556 = vmatpush.bf16.msrb.mxu2 %v9736_v3  ;;  %v9703_v3 = vld [vmem:[#allocation7 + $0x608] sm:$0xf] }
 0x48c   : > { %v10748_v15 = vld [vmem:[#allocation7 + $0x624] sm:$0xf0] }
 0x48d   : > { %v13620_v47 = vadd.f32 %v4187_v37, %v4139_v39  ;;  %4458 = vmatpush.bf16.msrb.mxu0 %v9224_v54  ;;  %4507 = vmatpush.bf16.msra.mxu1 %v9480_v61  ;;  %v8935_v39 = vld [vmem:[#allocation7 + $0x8] sm:$0xf]  ;;  %v9704_v61 = vor.u32 %v10748_v15, %v9703_v3  ;;  %v5779_v3 = vmul.f32 %v13595_v58, %v13595_v58 }
 0x48e   : > { %v4042_v53 = vpop.f32.mrf.mxu3  ;;  %v4094_v19 = vpop.f32.mrf.mxu0  ;;  %v9191_v26 = vld [vmem:[#allocation7 + $0x208] sm:$0xf] }
 0x48f   : > { %17186 = vst [vmem:[#allocation24_spill] sm:$0xff] %v13620_v47  ;;  %v4043_v50 = vadd.f32 %v4042_v53, %v13575_v10  ;;  %v4189_v59 = vpop.f32.mrf.mxu2  ;;  %v4143_v60 = vpop.f32.mrf.mxu1  ;;  %v10556_v53 = vld [vmem:[#allocation7 + $0x24] sm:$0xf0]  ;;  %4557 = vmatpush.bf16.msrb.mxu2 %v9704_v61 }
 0x491   : > { %v4092_v16 = vadd.f32 %v4091_v36, %v4043_v50  ;;  %4289 = vmatmul.bf16.gmra.mxu0 %v13467_v18 }
 0x492   : > { %4338 = vmatmul.bf16.gmra.mxu1 %v13550_v32 }
 0x493   : > { %v4141_v33 = vadd.f32 %v4140_v20, %v4092_v16  ;;  %4240 = vmatmul.bf16.gmra.mxu3 %v13462_v51  ;;  %4387 = vmatmul.bf16.gmra.mxu2 %v13485_v14  ;;  %v8936_v16 = vor.u32 %v10556_v53, %v8935_v39 }
 0x495   : > { %v13625_v37 = vadd.f32 %v4189_v59, %v4141_v33  ;;  %4410 = vmatpush.bf16.msrb.mxu3 %v8936_v16 }
 0x496   : > { %v4045_v36 = vpop.f32.mrf.mxu3  ;;  %v4096_v62 = vpop.f32.mrf.mxu0 }
 0x497   : > { %17187 = vst [vmem:[#allocation23_spill] sm:$0xff] %v13625_v37  ;;  %v4046_v30 = vadd.f32 %v4045_v36, %v13575_v10  ;;  %v4192_v11 = vpop.f32.mrf.mxu2  ;;  %v4145_v50 = vpop.f32.mrf.mxu1  ;;  %v9447_v36 = vld [vmem:[#allocation7 + $0x408] sm:$0xf] }
 0x499   : > { %v4095_v20 = vadd.f32 %v4094_v19, %v4046_v30  ;;  %v10620_v19 = vld [vmem:[#allocation7 + $0x224] sm:$0xf0] }
 0x49a   : > { %v10684_v30 = vld [vmem:[#allocation7 + $0x424] sm:$0xf0] }
 0x49b   : > { %v4144_v12 = vadd.f32 %v4143_v60, %v4095_v20  ;;  %v9192_v60 = vor.u32 %v10620_v19, %v9191_v26  ;;  %v9448_v20 = vor.u32 %v10684_v30, %v9447_v36  ;;  %v5787_v19 = vmul.f32 %v13600_v22, %v13600_v22 }
 0x49d   : > { %v13630_v33 = vadd.f32 %v4192_v11, %v4144_v12  ;;  %4459 = vmatpush.bf16.msrb.mxu0 %v9192_v60  ;;  %4508 = vmatpush.bf16.msra.mxu1 %v9448_v20 }
 0x49e   : > { %v4047_v59 = vpop.f32.mrf.mxu3  ;;  %v4099_v54 = vpop.f32.mrf.mxu0 }
 0x49f   : > { %17188 = vst [vmem:[#allocation26_spill] sm:$0xff] %v13630_v33  ;;  %v4048_v49 = vadd.f32 %v4047_v59, %v13575_v10  ;;  %v4194_v48 = vpop.f32.mrf.mxu2  ;;  %v4148_v11 = vpop.f32.mrf.mxu1  ;;  %v5755_v59 = vmul.f32 %v13580_v13, %v13580_v13 }
 0x4a1   : > { %v4097_v7 = vadd.f32 %v4096_v62, %v4048_v49  ;;  %4294 = vmatmul.bf16.gmra.mxu0 %v13491_v42  ;;  %v5579_v49 = vadd.f32 %v13585_v6, %v13580_v13 }
 0x4a2   : > { %4343 = vmatmul.bf16.gmra.mxu1 %v13562_v5 }
 0x4a3   : > { %v4146_v14 = vadd.f32 %v4145_v50, %v4097_v7  ;;  %4245 = vmatmul.bf16.gmra.mxu3 %v13489_v8  ;;  %4392 = vmatmul.bf16.gmra.mxu2 %v13527_v46  ;;  %v5763_v50 = vmul.f32 %v13585_v6, %v13585_v6  ;;  %v5580_v26 = vadd.f32 %v5579_v49, %v13590_v55 }
 0x4a5   : > { %v13635_v39 = vadd.f32 %v4194_v48, %v4146_v14  ;;  %v5771_v14 = vmul.f32 %v13590_v55, %v13590_v55  ;;  %v5883_v48 = vadd.f32 %v5763_v50, %v5755_v59  ;;  %v5581_v60 = vadd.f32 %v5580_v26, %v13595_v58  ;;  %v10632_v55 = vld [vmem:[#allocation7 + $0x28c] sm:$0xf] }
 0x4a6   : > { %v4050_v62 = vpop.f32.mrf.mxu3  ;;  %v4101_v15 = vpop.f32.mrf.mxu0  ;;  %v5803_v59 = vmul.f32 %v13610_v44, %v13610_v44 }
 0x4a7   : > { %17189 = vst [vmem:[#allocation28_spill] sm:$0xff] %v13635_v39  ;;  %v4051_v53 = vadd.f32 %v4050_v62, %v13575_v10  ;;  %v4197_v12 = vpop.f32.mrf.mxu2  ;;  %v4150_v36 = vpop.f32.mrf.mxu1  ;;  %v5795_v62 = vmul.f32 %v13605_v40, %v13605_v40 }
 0x4a9   : > { %v4100_v16 = vadd.f32 %v4099_v54, %v4051_v53  ;;  %v5884_v54 = vadd.f32 %v5883_v48, %v5771_v14  ;;  %v5582_v53 = vadd.f32 %v5581_v60, %v13600_v22  ;;  %v5811_v48 = vmul.f32 %v13615_v27, %v13615_v27 }
 0x4ab   : > { %v4149_v7 = vadd.f32 %v4148_v11, %v4100_v16  ;;  %v5885_v11 = vadd.f32 %v5884_v54, %v5779_v3  ;;  %v5583_v14 = vadd.f32 %v5582_v53, %v13605_v40  ;;  %v5819_v54 = vmul.f32 %v13620_v47, %v13620_v47 }
 0x4ad   : > { %v13651_v61 = vadd.f32 %v4197_v12, %v4149_v7  ;;  %v5886_v12 = vadd.f32 %v5885_v11, %v5787_v19  ;;  %v5584_v3 = vadd.f32 %v5583_v14, %v13610_v44  ;;  %v5827_v11 = vmul.f32 %v13625_v37, %v13625_v37 }
 0x4ae   : > { %v4052_v30 = vpop.f32.mrf.mxu3  ;;  %v4104_v19 = vpop.f32.mrf.mxu0 }
 0x4af   : > { %17190 = vst [vmem:[#allocation56_spill] sm:$0xff] %v13651_v61  ;;  %v4053_v20 = vadd.f32 %v4052_v30, %v13575_v10  ;;  %v4199_v16 = vpop.f32.mrf.mxu2  ;;  %v5887_v7 = vadd.f32 %v5886_v12, %v5795_v62  ;;  %v5585_v30 = vadd.f32 %v5584_v3, %v13615_v27  ;;  %v4153_v62 = vpop.f32.mrf.mxu1  ;;  %v5835_v12 = vmul.f32 %v13630_v33, %v13630_v33 }
 0x4b0   : > { %v5843_v3 = vmul.f32 %v13635_v39, %v13635_v39 }
 0x4b1   : > { %v4102_v50 = vadd.f32 %v4101_v15, %v4053_v20  ;;  %4299 = vmatmul.bf16.gmra.mxu0 %v13529_v29  ;;  %v5888_v15 = vadd.f32 %v5887_v7, %v5803_v59  ;;  %v5586_v53 = vadd.f32 %v5585_v30, %v13620_v47  ;;  %v9385_v47 = vld [vmem:[#allocation7 + $0x3a8] sm:$0xf0] }
 0x4b2   : > { %4348 = vmatmul.bf16.gmra.mxu1 %v13534_v25 }
 0x4b3   : > { %v4151_v49 = vadd.f32 %v4150_v36, %v4102_v50  ;;  %4250 = vmatmul.bf16.gmra.mxu3 %v13522_v45  ;;  %4397 = vmatmul.bf16.gmra.mxu2 %v13192_v9  ;;  %v5889_v20 = vadd.f32 %v5888_v15, %v5811_v48  ;;  %v5587_v14 = vadd.f32 %v5586_v53, %v13625_v37  ;;  %v10792_v37 = vld [vmem:[#allocation7 + $0x78c] sm:$0xf] }
 0x4b5   : > { %v13668_v26 = vadd.f32 %v4199_v16, %v4151_v49  ;;  %v5890_v16 = vadd.f32 %v5889_v20, %v5819_v54  ;;  %v5588_v48 = vadd.f32 %v5587_v14, %v13630_v33  ;;  %v9129_v33 = vld [vmem:[#allocation7 + $0x1a8] sm:$0xf0] }
 0x4b6   : > { %v4055_v36 = vpop.f32.mrf.mxu3  ;;  %v4106_v53 = vpop.f32.mrf.mxu0 }
 0x4b7   : > { %17191 = vst [vmem:[#allocation58_spill] sm:$0xff] %v13668_v26  ;;  %v4056_v60 = vadd.f32 %v4055_v36, %v13575_v10  ;;  %v4202_v59 = vpop.f32.mrf.mxu2  ;;  %v5891_v7 = vadd.f32 %v5890_v16, %v5827_v11  ;;  %v5589_v30 = vadd.f32 %v5588_v48, %v13635_v39 }
 0x4b9   : > { %v4105_v50 = vadd.f32 %v4104_v19, %v4056_v60  ;;  %v5892_v36 = vadd.f32 %v5891_v7, %v5835_v12  ;;  %v5851_v19 = vmul.f32 %v13651_v61, %v13651_v61  ;;  %v5590_v11 = vadd.f32 %v5589_v30, %v13651_v61  ;;  %v9673_v61 = vld [vmem:[#allocation7 + $0x5e8] sm:$0xf0] }
 0x4bb   : > { %v4154_v49 = vadd.f32 %v4153_v62, %v4105_v50  ;;  %v5893_v20 = vadd.f32 %v5892_v36, %v5843_v3  ;;  %v5859_v62 = vmul.f32 %v13668_v26, %v13668_v26  ;;  %v5591_v12 = vadd.f32 %v5590_v11, %v13668_v26 }
 0x4bd   : > { %v13685_v15 = vadd.f32 %v4202_v59, %v4154_v49  ;;  %v5894_v16 = vadd.f32 %v5893_v20, %v5851_v19  ;;  %v4155_v59 = vpop.f32.mrf.mxu1 }
 0x4be   : > { %v4057_v54 = vpop.f32.mrf.mxu3 }
 0x4bf   : > { %17192 = vst [vmem:[#allocation60_spill] sm:$0xff] %v13685_v15  ;;  %v4058_v60 = vadd.f32 %v4057_v54, %v13575_v10  ;;  %v5867_v14 = vmul.f32 %v13685_v15, %v13685_v15  ;;  %v4204_v10 = vpop.f32.mrf.mxu2  ;;  %v5895_v7 = vadd.f32 %v5894_v16, %v5859_v62  ;;  %v5592_v3 = vadd.f32 %v5591_v12, %v13685_v15  ;;  %v4265_v15 = vpop.f32.mrf.mxu0 }
 0x4c1   : > { %v4107_v50 = vadd.f32 %v4106_v53, %v4058_v60  ;;  %4460 = vmatmul.bf16.vlgmr.msrb.gmra.mxu0 %v13196_v31  ;;  %v5896_v36 = vadd.f32 %v5895_v7, %v5867_v14  ;;  %v10608_v14 = vld [vmem:[#allocation7 + $0x1cc] sm:$0xf] }
 0x4c2   : > { %4509 = vmatmul.bf16.vlgmr.msra.gmra.mxu1 %v17176_v56  ;;  %v9161_v7 = vld [vmem:[#allocation7 + $0x1e8] sm:$0xf0] }
 0x4c3   : > { %v4156_v49 = vadd.f32 %v4155_v59, %v4107_v50  ;;  %4411 = vmatmul.bf16.vlgmr.msrb.gmra.mxu3 %v13194_v52  ;;  %4558 = vmatmul.bf16.vlgmr.msrb.gmra.mxu2 %v17177_v63 }
 0x4c5   : > { %v13700_v48 = vadd.f32 %v4204_v10, %v4156_v49  ;;  %v4314_v26 = vpop.f32.mrf.mxu1 }
 0x4c7   : > { %v5593_v19 = vadd.f32 %v5592_v3, %v13700_v48  ;;  %v5875_v54 = vmul.f32 %v13700_v48, %v13700_v48  ;;  %v13708_v3 = vperm.slane %v13570_v43, 1  ;;  %v10736_v43 = vld [vmem:[#allocation7 + $0x5cc] sm:$0xf] }
 0x4c9   : > { %v5594_v30 = vrot.slane %v5593_v19, 4  ;;  %v5897_v60 = vadd.f32 %v5896_v36, %v5875_v54  ;;  %v9164_v36 = vor.u32 %v10608_v14, %v9161_v7  ;;  %v4363_v54 = vpop.f32.mrf.mxu2  ;;  %v9676_v14 = vor.u32 %v10736_v43, %v9673_v61  ;;  %v10600_v7 = vld [vmem:[#allocation7 + $0x18c] sm:$0xf] }
 0x4ca   : > { %v10592_v43 = vld [vmem:[#allocation7 + $0x14c] sm:$0xf] }
 0x4cb   : > { %v5595_v20 = vadd.f32 %v5594_v30, %v5593_v19  ;;  %v5898_v53 = vrot.slane %v5897_v60, 4  ;;  %v4216_v19 = vpop.f32.mrf.mxu3  ;;  %v10800_v30 = vld [vmem:[#allocation7 + $0x7cc] sm:$0xf]  ;;  %4599 = vmatpush.bf16.msra.mxu3 %v9164_v36  ;;  %4697 = vmatpush.bf16.msrb.mxu1 %v9676_v14 }
 0x4cc   : > { %v9865_v14 = vld [vmem:[#allocation7 + $0x768] sm:$0xf0] }
 0x4cd   : > { %v5596_v11 = vrot.slane %v5595_v20, 2  ;;  %v5899_v62 = vadd.f32 %v5898_v53, %v5897_v60  ;;  %v9929_v60 = vld [vmem:[#allocation7 + $0x7e8] sm:$0xf0] }
 0x4ce   : > { %v17193_v53 = vld [vmem:[#allocation17_spill] sm:$0xff] }
 0x4cf   : > { %v5597_v50 = vadd.f32 %v5596_v11, %v5595_v20  ;;  %v5900_v16 = vrot.slane %v5899_v62, 2  ;;  %v10672_v20 = vld [vmem:[#allocation7 + $0x3cc] sm:$0xf] }
 0x4d1   : > { %v5598_v59 = vrot.slane %v5597_v50, 1  ;;  %v5901_v12 = vadd.f32 %v5900_v16, %v5899_v62  ;;  %4465 = vmatmul.bf16.gmra.mxu0 %v13322_v0  ;;  %v9932_v16 = vor.u32 %v10800_v30, %v9929_v60  ;;  %v9897_v30 = vld [vmem:[#allocation7 + $0x7a8] sm:$0xf0] }
 0x4d2   : > { %4514 = vmatmul.bf16.gmra.mxu1 %v13338_v21  ;;  %v10664_v60 = vld [vmem:[#allocation7 + $0x38c] sm:$0xf]  ;;  %v9900_v36 = vor.u32 %v10792_v37, %v9897_v30 }
 0x4d3   : > { %v5599_v49 = vadd.f32 %v5598_v59, %v5597_v50  ;;  %v5902_v10 = vrot.slane %v5901_v12, 1  ;;  %4416 = vmatmul.bf16.gmra.mxu3 %v13320_v41  ;;  %v4217_v50 = vadd.f32 %v4216_v19, %v13708_v3  ;;  %v9417_v59 = vld [vmem:[#allocation7 + $0x3e8] sm:$0xf0]  ;;  %4563 = vmatmul.bf16.gmra.mxu2 %v13345_v57  ;;  %v9132_v19 = vor.u32 %v10600_v7, %v9129_v33  ;;  %v4267_v33 = vpop.f32.mrf.mxu0 }
 0x4d4   : > { %v9420_v39 = vor.u32 %v10672_v20, %v9417_v59  ;;  %4746 = vmatpush.bf16.msra.mxu2 %v9932_v16  ;;  %v9388_v61 = vor.u32 %v10664_v60, %v9385_v47  ;;  %v10728_v20 = vld [vmem:[#allocation7 + $0x58c] sm:$0xf]  ;;  %v4218_v16 = vpop.f32.mrf.mxu3 }
 0x4d5   : > { %v13713_v11 = vmul.f32 %v5599_v49, %v17193_v53  ;;  %v5903_v62 = vadd.f32 %v5902_v10, %v5901_v12  ;;  %v4266_v10 = vadd.f32 %v4265_v15, %v4217_v50  ;;  %v9641_v59 = vld [vmem:[#allocation7 + $0x5a8] sm:$0xf0]  ;;  %4600 = vmatpush.bf16.msra.mxu3 %v9132_v19  ;;  %v4316_v50 = vpop.f32.mrf.mxu1  ;;  %v4219_v47 = vadd.f32 %v4218_v16, %v13708_v3  ;;  %v13731_v16 = vld [vmem:[#allocation8 + $0x1b] sm:$0xff] }
 0x4d6   : > { %4648 = vmatpush.bf16.msra.mxu0 %v9420_v39  ;;  %v9644_v40 = vor.u32 %v10728_v20, %v9641_v59  ;;  %v4365_v39 = vpop.f32.mrf.mxu2  ;;  %v10656_v7 = vld [vmem:[#allocation7 + $0x34c] sm:$0xf] }
 0x4d7   : > { %v6051_v49 = vmul.f32 %v5903_v62, %v17193_v53  ;;  %v6059_v12 = vmul.f32 %v13713_v11, %v13713_v11  ;;  %v4315_v44 = vadd.f32 %v4314_v26, %v4266_v10  ;;  %v9097_v62 = vld [vmem:[#allocation7 + $0x168] sm:$0xf0]  ;;  %v4268_v37 = vadd.f32 %v4267_v33, %v4219_v47 }
 0x4d8   : > { %v9100_v22 = vor.u32 %v10592_v43, %v9097_v62  ;;  %4747 = vmatpush.bf16.msra.mxu2 %v9900_v36  ;;  %4698 = vmatpush.bf16.msrb.mxu1 %v9644_v40  ;;  %v10784_v26 = vld [vmem:[#allocation7 + $0x74c] sm:$0xf] }
 0x4d9   : > { %v6067_v27 = vsub.f32 %v6051_v49, %v6059_v12  ;;  %v13721_v15 = vadd.f32 %v4363_v54, %v4315_v44  ;;  %v9868_v49 = vor.u32 %v10784_v26, %v9865_v14  ;;  %v9353_v12 = vld [vmem:[#allocation7 + $0x368] sm:$0xf0]  ;;  %v4317_v54 = vadd.f32 %v4316_v50, %v4268_v37 }
 0x4da   : > { %4649 = vmatpush.bf16.msra.mxu0 %v9388_v61  ;;  %4601 = vmatpush.bf16.msra.mxu3 %v9100_v22  ;;  %v9609_v44 = vld [vmem:[#allocation7 + $0x568] sm:$0xf0]  ;;  %v9356_v10 = vor.u32 %v10656_v7, %v9353_v12  ;;  %v6164_v14 = vperm.slane %v13731_v16, 0 }
 0x4db   : > { %v6075_v58 = vadd.f32 0.8, %v6067_v27  ;;  %17194 = vst [vmem:[#allocation62_spill] sm:$0xff] %v13721_v15  ;;  %v10720_v27 = vld [vmem:[#allocation7 + $0x54c] sm:$0xf]  ;;  %v13724_v60 = vadd.f32 %v4365_v39, %v4317_v54  ;;  %v4270_v40 = vpop.f32.mrf.mxu0 }
 0x4dc   : > { %v9612_v19 = vor.u32 %v10720_v27, %v9609_v44  ;;  %4748 = vmatpush.bf16.msra.mxu2 %v9868_v49  ;;  %v4221_v61 = vpop.f32.mrf.mxu3  ;;  %v10584_v33 = vld [vmem:[#allocation7 + $0x10c] sm:$0xf] }
 0x4dd   : > { %11057 = vrsqrt.f32 %v6075_v58  ;;  %17195 = vst [vmem:[#allocation51_spill] sm:$0xff] %v13724_v60  ;;  %v4319_v36 = vpop.f32.mrf.mxu1  ;;  %v4222_v59 = vadd.f32 %v4221_v61, %v13708_v3  ;;  %v9065_v50 = vld [vmem:[#allocation7 + $0x128] sm:$0xf0]  ;;  %vm6089_vm9 = vweird.f32 %v6075_v58 }
 0x4de   : > { %v4368_v20 = vpop.f32.mrf.mxu2  ;;  %4650 = vmatpush.bf16.msra.mxu0 %v9356_v10  ;;  %4699 = vmatpush.bf16.msrb.mxu1 %v9612_v19  ;;  %v9068_v47 = vor.u32 %v10584_v33, %v9065_v50  ;;  %v9833_v61 = vld [vmem:[#allocation7 + $0x728] sm:$0xf0] }
 0x4df   : > { %v4271_v62 = vadd.f32 %v4270_v40, %v4222_v59  ;;  %v10648_v59 = vld [vmem:[#allocation7 + $0x30c] sm:$0xf] }
 0x4e0   : > { %4602 = vmatpush.bf16.msra.mxu3 %v9068_v47  ;;  %v9577_v33 = vld [vmem:[#allocation7 + $0x528] sm:$0xf0] }
 0x4e1   : > { %4470 = vmatmul.bf16.gmra.mxu0 %v13364_v4  ;;  %v4320_v37 = vadd.f32 %v4319_v36, %v4271_v62  ;;  %v9321_v62 = vld [vmem:[#allocation7 + $0x328] sm:$0xf0] }
 0x4e2   : > { %4519 = vmatmul.bf16.gmra.mxu1 %v13379_v38 }
 0x4e3   : > { %v11058_v30 = vpop.eup %11057  ;;  %4421 = vmatmul.bf16.gmra.mxu3 %v13362_v24  ;;  %4568 = vmatmul.bf16.gmra.mxu2 %v13417_v17  ;;  %v13734_v7 = vadd.f32 %v4368_v20, %v4320_v37  ;;  %v4272_v49 = vpop.f32.mrf.mxu0  ;;  %v10712_v20 = vld [vmem:[#allocation7 + $0x50c] sm:$0xf] }
 0x4e4   : > { %v6084_v22 = vmul.f32 %v11058_v30, %v6075_v58  ;;  %vm6090_vm7 = vweird.f32 %v11058_v30  ;;  %v4223_v44 = vpop.f32.mrf.mxu3  ;;  %v9580_v47 = vor.u32 %v10712_v20, %v9577_v33  ;;  %v10768_v33 = vld [vmem:[#allocation7 + $0x6cc] sm:$0xf] }
 0x4e5   : > { %17196 = vst [vmem:[#allocation50_spill] sm:$0xff] %v13734_v7  ;;  %v4321_v12 = vpop.f32.mrf.mxu1  ;;  %vm6091_vm10 = vmor %vm6089_vm9, %vm6090_vm7  ;;  %v4224_v10 = vadd.f32 %v4223_v44, %v13708_v3  ;;  %v10576_v44 = vld [vmem:[#allocation7 + $0xcc] sm:$0xf] }
 0x4e6   : > { %v6085_v43 = vmul.f32 %v11058_v30, %v6084_v22  ;;  %v4370_v54 = vpop.f32.mrf.mxu2  ;;  %v10776_v22 = vld [vmem:[#allocation7 + $0x70c] sm:$0xf]  ;;  %4700 = vmatpush.bf16.msrb.mxu1 %v9580_v47 }
 0x4e7   : > { %v4273_v36 = vadd.f32 %v4272_v49, %v4224_v10 }
 0x4e8   : > { %v6086_v39 = vmul.f32 0.5, %v6085_v43  ;;  %v9836_v43 = vor.u32 %v10776_v22, %v9833_v61 }
 0x4e9   : > { %v4322_v58 = vadd.f32 %v4321_v12, %v4273_v36 }
 0x4ea   : > { %v6087_v26 = vsub.f32 1.5, %v6086_v39  ;;  %v9324_v39 = vor.u32 %v10648_v59, %v9321_v62  ;;  %4749 = vmatpush.bf16.msra.mxu2 %v9836_v43 }
 0x4eb   : > { %v13746_v37 = vadd.f32 %v4370_v54, %v4322_v58  ;;  %v9033_v54 = vld [vmem:[#allocation7 + $0xe8] sm:$0xf0] }
 0x4ec   : > { %v6088_v27 = vmul.f32 %v11058_v30, %v6087_v26  ;;  %v4275_v26 = vpop.f32.mrf.mxu0  ;;  %v4226_v49 = vpop.f32.mrf.mxu3  ;;  %4651 = vmatpush.bf16.msra.mxu0 %v9324_v39  ;;  %v9036_v10 = vor.u32 %v10576_v44, %v9033_v54  ;;  %v9801_v58 = vld [vmem:[#allocation7 + $0x6e8] sm:$0xf0] }
 0x4ed   : > { %17199 = vst [vmem:[#allocation55_spill] sm:$0xff] %v13746_v37  ;;  %v4227_v12 = vadd.f32 %v4226_v49, %v13708_v3  ;;  %v10640_v39 = vld [vmem:[#allocation7 + $0x2cc] sm:$0xf]  ;;  %v9804_v47 = vor.u32 %v10768_v33, %v9801_v58 }
 0x4ee   : > { %v6092_v19 = vsel %vm6091_vm10, %v11058_v30, %v6088_v27  ;;  %v4373_v27 = vpop.f32.mrf.mxu2  ;;  %4603 = vmatpush.bf16.msra.mxu3 %v9036_v10  ;;  %v9289_v49 = vld [vmem:[#allocation7 + $0x2e8] sm:$0xf0]  ;;  %vm6214_vm10 = vcmask 1044484  }
 0x4ef   : > { %v13737_v40 = vmul.f32 %v6164_v14, %v6092_v19  ;;  %v4324_v14 = vpop.f32.mrf.mxu1  ;;  %v9292_v44 = vor.u32 %v10640_v39, %v9289_v49  ;;  %4750 = vmatpush.bf16.msra.mxu2 %v9804_v47 }
 0x4f1   : > { %v13740_v50 = vperm.slane %v13737_v40, 0  ;;  %4475 = vmatmul.bf16.gmra.mxu0 %v13507_v35 }
 0x4f2   : > { %4524 = vmatmul.bf16.gmra.mxu1 %v13509_v28  ;;  %4652 = vmatpush.bf16.msra.mxu0 %v9292_v44 }
 0x4f3   : > { %17197 = vst [vmem:[#allocation64_spill] sm:$0xff] %v13740_v50  ;;  %v13744_v30 = vmul.f32 %v13740_v50, %v13700_v48  ;;  %4426 = vmatmul.bf16.gmra.mxu3 %v13481_v34  ;;  %4573 = vmatmul.bf16.gmra.mxu2 %v13513_v2  ;;  %v4276_v48 = vadd.f32 %v4275_v26, %v4227_v12  ;;  %v10704_v26 = vld [vmem:[#allocation7 + $0x4cc] sm:$0xf] }
 0x4f4   : > { %v4277_v22 = vpop.f32.mrf.mxu0  ;;  %v4228_v59 = vpop.f32.mrf.mxu3  ;;  %v9545_v12 = vld [vmem:[#allocation7 + $0x4e8] sm:$0xf0] }
 0x4f5   : > { %17198 = vst [vmem:[#allocation54_spill] sm:$0xff] %v13744_v30  ;;  %v4325_v19 = vadd.f32 %v4324_v14, %v4276_v48  ;;  %v4229_v62 = vadd.f32 %v4228_v59, %v13708_v3  ;;  %v9548_v14 = vor.u32 %v10704_v26, %v9545_v12  ;;  %v17202_v59 = vld [vmem:[#allocation45_spill] sm:$0xff] }
 0x4f6   : > { %v4375_v43 = vpop.f32.mrf.mxu2  ;;  %v9257_v50 = vld [vmem:[#allocation7 + $0x2a8] sm:$0xf0] }
 0x4f7   : > { %v13753_v36 = vadd.f32 %v4373_v27, %v4325_v19  ;;  %v4326_v61 = vpop.f32.mrf.mxu1  ;;  %v4278_v20 = vadd.f32 %v4277_v22, %v4229_v62  ;;  %4701 = vmatpush.bf16.msrb.mxu1 %v9548_v14  ;;  %v10760_v14 = vld [vmem:[#allocation7 + $0x68c] sm:$0xf] }
 0x4f9   : > { %17200 = vst [vmem:[#allocation57_spill] sm:$0xff] %v13753_v36  ;;  %v4327_v30 = vadd.f32 %v4326_v61, %v4278_v20  ;;  %v17203_v61 = vld [vmem:[#allocation47_spill] sm:$0xff]  ;;  %v10568_v20 = vld [vmem:[#allocation7 + $0x8c] sm:$0xf] }
 0x4fb   : > { %v13756_v27 = vadd.f32 %v4375_v43, %v4327_v30  ;;  %v9001_v30 = vld [vmem:[#allocation7 + $0xa8] sm:$0xf0] }
 0x4fc   : > { %v4280_v48 = vpop.f32.mrf.mxu0  ;;  %v4231_v10 = vpop.f32.mrf.mxu3  ;;  %v9004_v43 = vor.u32 %v10568_v20, %v9001_v30  ;;  %v9260_v20 = vor.u32 %v10632_v55, %v9257_v50 }
 0x4fd   : > { %17201 = vst [vmem:[#allocation59_spill] sm:$0xff] %v13756_v27  ;;  %v4232_v22 = vadd.f32 %v4231_v10, %v13708_v3  ;;  %v9769_v10 = vld [vmem:[#allocation7 + $0x6a8] sm:$0xf0] }
 0x4fe   : > { %v4378_v19 = vpop.f32.mrf.mxu2  ;;  %4604 = vmatpush.bf16.msra.mxu3 %v9004_v43  ;;  %v9772_v6 = vor.u32 %v10760_v14, %v9769_v10  ;;  %4653 = vmatpush.bf16.msra.mxu0 %v9260_v20  ;;  %v10752_v20 = vld [vmem:[#allocation7 + $0x64c] sm:$0xf] }
 0x4ff   : > { %v4329_v54 = vpop.f32.mrf.mxu1  ;;  %v4281_v62 = vadd.f32 %v4280_v48, %v4232_v22  ;;  %v10696_v48 = vld [vmem:[#allocation7 + $0x48c] sm:$0xf] }
 0x500   : > { %v9513_v22 = vld [vmem:[#allocation7 + $0x4a8] sm:$0xf0]  ;;  %4751 = vmatpush.bf16.msra.mxu2 %v9772_v6 }
 0x501   : > { %4480 = vmatmul.bf16.gmra.mxu0 %v13424_v23  ;;  %v4330_v33 = vadd.f32 %v4329_v54, %v4281_v62  ;;  %v9516_v54 = vor.u32 %v10696_v48, %v9513_v22  ;;  %v10560_v6 = vld [vmem:[#allocation7 + $0x4c] sm:$0xf] }
 0x502   : > { %4529 = vmatmul.bf16.gmra.mxu1 %v17202_v59 }
 0x503   : > { %4431 = vmatmul.bf16.gmra.mxu3 %v13422_v1  ;;  %4578 = vmatmul.bf16.gmra.mxu2 %v17203_v61  ;;  %v13763_v58 = vadd.f32 %v4378_v19, %v4330_v33 }
 0x504   : > { %v4282_v39 = vpop.f32.mrf.mxu0  ;;  %v4233_v49 = vpop.f32.mrf.mxu3  ;;  %4702 = vmatpush.bf16.msrb.mxu1 %v9516_v54  ;;  %v9737_v54 = vld [vmem:[#allocation7 + $0x668] sm:$0xf0] }
 0x505   : > { %17204 = vst [vmem:[#allocation61_spill] sm:$0xff] %v13763_v58  ;;  %v4234_v12 = vadd.f32 %v4233_v49, %v13708_v3 }
 0x506   : > { %v4380_v26 = vpop.f32.mrf.mxu2 }
 0x507   : > { %v4331_v47 = vpop.f32.mrf.mxu1  ;;  %v4283_v44 = vadd.f32 %v4282_v39, %v4234_v12 }
 0x509   : > { %v4332_v13 = vadd.f32 %v4331_v47, %v4283_v44  ;;  %v17206_v47 = vld [vmem:[#allocation42_spill] sm:$0xff] }
 0x50b   : > { %v13766_v19 = vadd.f32 %v4380_v26, %v4332_v13  ;;  %v8969_v13 = vld [vmem:[#allocation7 + $0x68] sm:$0xf0] }
 0x50c   : > { %v4285_v62 = vpop.f32.mrf.mxu0  ;;  %v4236_v43 = vpop.f32.mrf.mxu3  ;;  %v8972_v50 = vor.u32 %v10560_v6, %v8969_v13 }
 0x50d   : > { %17205 = vst [vmem:[#allocation63_spill] sm:$0xff] %v13766_v19  ;;  %v4237_v39 = vadd.f32 %v4236_v43, %v13708_v3  ;;  %v10624_v43 = vld [vmem:[#allocation7 + $0x24c] sm:$0xf] }
 0x50e   : > { %v4383_v33 = vpop.f32.mrf.mxu2  ;;  %4605 = vmatpush.bf16.msra.mxu3 %v8972_v50 }
 0x50f   : > { %v4334_v30 = vpop.f32.mrf.mxu1  ;;  %v4286_v55 = vadd.f32 %v4285_v62, %v4237_v39  ;;  %v10688_v62 = vld [vmem:[#allocation7 + $0x44c] sm:$0xf] }
 0x510   : > { %v9481_v39 = vld [vmem:[#allocation7 + $0x468] sm:$0xf0] }
 0x511   : > { %4485 = vmatmul.bf16.gmra.mxu0 %v13467_v18  ;;  %v4335_v49 = vadd.f32 %v4334_v30, %v4286_v55  ;;  %v9484_v30 = vor.u32 %v10688_v62, %v9481_v39  ;;  %v10744_v39 = vld [vmem:[#allocation7 + $0x60c] sm:$0xf] }
 0x512   : > { %4534 = vmatmul.bf16.gmra.mxu1 %v13550_v32  ;;  %v9740_v32 = vor.u32 %v10752_v20, %v9737_v54 }
 0x513   : > { %4436 = vmatmul.bf16.gmra.mxu3 %v13462_v51  ;;  %4583 = vmatmul.bf16.gmra.mxu2 %v17206_v47  ;;  %v13773_v26 = vadd.f32 %v4383_v33, %v4335_v49  ;;  %v9225_v47 = vld [vmem:[#allocation7 + $0x268] sm:$0xf0] }
 0x514   : > { %v4287_v12 = vpop.f32.mrf.mxu0  ;;  %v4238_v14 = vpop.f32.mrf.mxu3  ;;  %v9228_v6 = vor.u32 %v10624_v43, %v9225_v47  ;;  %4752 = vmatpush.bf16.msra.mxu2 %v9740_v32  ;;  %4703 = vmatpush.bf16.msrb.mxu1 %v9484_v30  ;;  %v10552_v32 = vld [vmem:[#allocation7 + $0xc] sm:$0xf] }
 0x515   : > { %17207 = vst [vmem:[#allocation45_spill] sm:$0xff] %v13773_v26  ;;  %v4239_v48 = vadd.f32 %v4238_v14, %v13708_v3  ;;  %v10616_v30 = vld [vmem:[#allocation7 + $0x20c] sm:$0xf] }
 0x516   : > { %v4385_v10 = vpop.f32.mrf.mxu2  ;;  %4654 = vmatpush.bf16.msra.mxu0 %v9228_v6  ;;  %v9705_v6 = vld [vmem:[#allocation7 + $0x628] sm:$0xf0] }
 0x517   : > { %v4336_v44 = vpop.f32.mrf.mxu1  ;;  %v4288_v22 = vadd.f32 %v4287_v12, %v4239_v48 }
 0x519   : > { %v4337_v18 = vadd.f32 %v4336_v44, %v4288_v22 }
 0x51b   : > { %v13776_v33 = vadd.f32 %v4385_v10, %v4337_v18  ;;  %v8937_v18 = vld [vmem:[#allocation7 + $0x28] sm:$0xf0] }
 0x51c   : > { %v4290_v55 = vpop.f32.mrf.mxu0  ;;  %v4241_v50 = vpop.f32.mrf.mxu3  ;;  %v8940_v44 = vor.u32 %v10552_v32, %v8937_v18 }
 0x51d   : > { %17208 = vst [vmem:[#allocation47_spill] sm:$0xff] %v13776_v33  ;;  %v4242_v12 = vadd.f32 %v4241_v50, %v13708_v3  ;;  %v9708_v50 = vor.u32 %v10744_v39, %v9705_v6  ;;  %v5780_v39 = vmul.f32 %v13746_v37, %v13746_v37 }
 0x51e   : > { %v4388_v49 = vpop.f32.mrf.mxu2  ;;  %4606 = vmatpush.bf16.msra.mxu3 %v8940_v44 }
 0x51f   : > { %v4339_v13 = vpop.f32.mrf.mxu1  ;;  %v4291_v47 = vadd.f32 %v4290_v55, %v4242_v12  ;;  %v10680_v55 = vld [vmem:[#allocation7 + $0x40c] sm:$0xf]  ;;  %4753 = vmatpush.bf16.msra.mxu2 %v9708_v50 }
 0x520   : > { %v9449_v12 = vld [vmem:[#allocation7 + $0x428] sm:$0xf0] }
 0x521   : > { %4490 = vmatmul.bf16.gmra.mxu0 %v13491_v42  ;;  %v4340_v14 = vadd.f32 %v4339_v13, %v4291_v47  ;;  %v9452_v13 = vor.u32 %v10680_v55, %v9449_v12  ;;  %v5788_v12 = vmul.f32 %v13753_v36, %v13753_v36 }
 0x522   : > { %4539 = vmatmul.bf16.gmra.mxu1 %v13562_v5 }
 0x523   : > { %4441 = vmatmul.bf16.gmra.mxu3 %v13489_v8  ;;  %4588 = vmatmul.bf16.gmra.mxu2 %v13527_v46  ;;  %v13783_v10 = vadd.f32 %v4388_v49, %v4340_v14  ;;  %v9193_v46 = vld [vmem:[#allocation7 + $0x228] sm:$0xf0] }
 0x524   : > { %v4292_v48 = vpop.f32.mrf.mxu0  ;;  %v4243_v20 = vpop.f32.mrf.mxu3  ;;  %v9196_v32 = vor.u32 %v10616_v30, %v9193_v46  ;;  %4704 = vmatpush.bf16.msrb.mxu1 %v9452_v13  ;;  %v5764_v46 = vmul.f32 %v13724_v60, %v13724_v60 }
 0x525   : > { %17209 = vst [vmem:[#allocation65_spill] sm:$0xff] %v13783_v10  ;;  %v4244_v43 = vadd.f32 %v4243_v20, %v13708_v3  ;;  %v5772_v20 = vmul.f32 %v13734_v7, %v13734_v7 }
 0x526   : > { %v4390_v54 = vpop.f32.mrf.mxu2  ;;  %4655 = vmatpush.bf16.msra.mxu0 %v9196_v32 }
 0x527   : > { %v4341_v22 = vpop.f32.mrf.mxu1  ;;  %v4293_v62 = vadd.f32 %v4292_v48, %v4244_v43 }
 0x529   : > { %v4342_v5 = vadd.f32 %v4341_v22, %v4293_v62  ;;  %v5756_v22 = vmul.f32 %v13721_v15, %v13721_v15 }
 0x52b   : > { %v13786_v49 = vadd.f32 %v4390_v54, %v4342_v5  ;;  %v5600_v54 = vadd.f32 %v13724_v60, %v13721_v15  ;;  %v5904_v62 = vadd.f32 %v5764_v46, %v5756_v22  ;;  %v10597_v15 = vld [vmem:[#allocation7 + $0x16c] sm:$0xf0] }
 0x52c   : > { %v4295_v47 = vpop.f32.mrf.mxu0  ;;  %v4246_v44 = vpop.f32.mrf.mxu3 }
 0x52d   : > { %17210 = vst [vmem:[#allocation66_spill] sm:$0xff] %v13786_v49  ;;  %v4247_v48 = vadd.f32 %v4246_v44, %v13708_v3  ;;  %v5601_v6 = vadd.f32 %v5600_v54, %v13734_v7  ;;  %v5905_v55 = vadd.f32 %v5904_v62, %v5772_v20  ;;  %v5804_v54 = vmul.f32 %v13763_v58, %v13763_v58 }
 0x52e   : > { %v4393_v14 = vpop.f32.mrf.mxu2 }
 0x52f   : > { %v4344_v18 = vpop.f32.mrf.mxu1  ;;  %v4296_v5 = vadd.f32 %v4295_v47, %v4247_v48  ;;  %v5602_v47 = vadd.f32 %v5601_v6, %v13746_v37  ;;  %v5796_v48 = vmul.f32 %v13756_v27, %v13756_v27  ;;  %v9647_v37 = vld [vmem:[#allocation7 + $0x590] sm:$0xf] }
 0x531   : > { %4495 = vmatmul.bf16.gmra.mxu0 %v13529_v29  ;;  %v4345_v43 = vadd.f32 %v4344_v18, %v4296_v5  ;;  %v5906_v18 = vadd.f32 %v5905_v55, %v5780_v39  ;;  %v5603_v5 = vadd.f32 %v5602_v47, %v13753_v36  ;;  %v5812_v39 = vmul.f32 %v13766_v19, %v13766_v19 }
 0x532   : > { %4544 = vmatmul.bf16.gmra.mxu1 %v13534_v25 }
 0x533   : > { %4446 = vmatmul.bf16.gmra.mxu3 %v13522_v45  ;;  %4593 = vmatmul.bf16.gmra.mxu2 %v13192_v9  ;;  %v13804_v30 = vadd.f32 %v4393_v14, %v4345_v43  ;;  %v5907_v22 = vadd.f32 %v5906_v18, %v5788_v12  ;;  %v5604_v20 = vadd.f32 %v5603_v5, %v13756_v27  ;;  %v10797_v27 = vld [vmem:[#allocation7 + $0x7ac] sm:$0xf0] }
 0x534   : > { %v4297_v50 = vpop.f32.mrf.mxu0  ;;  %v4248_v13 = vpop.f32.mrf.mxu3  ;;  %v5828_v5 = vmul.f32 %v13776_v33, %v13776_v33 }
 0x535   : > { %17211 = vst [vmem:[#allocation67_spill] sm:$0xff] %v13804_v30  ;;  %v4249_v44 = vadd.f32 %v4248_v13, %v13708_v3  ;;  %v5908_v62 = vadd.f32 %v5907_v22, %v5796_v48  ;;  %v5605_v6 = vadd.f32 %v5604_v20, %v13763_v58 }
 0x536   : > { %v4395_v46 = vpop.f32.mrf.mxu2 }
 0x537   : > { %v4346_v32 = vpop.f32.mrf.mxu1  ;;  %v4298_v14 = vadd.f32 %v4297_v50, %v4249_v44  ;;  %v5909_v13 = vadd.f32 %v5908_v62, %v5804_v54  ;;  %v5606_v47 = vadd.f32 %v5605_v6, %v13766_v19 }
 0x539   : > { %v4347_v43 = vadd.f32 %v4346_v32, %v4298_v14  ;;  %v5820_v32 = vmul.f32 %v13773_v26, %v13773_v26  ;;  %v5910_v48 = vadd.f32 %v5909_v13, %v5812_v39  ;;  %v5844_v39 = vmul.f32 %v13786_v49, %v13786_v49 }
 0x53b   : > { %v13819_v55 = vadd.f32 %v4395_v46, %v4347_v43  ;;  %v5607_v46 = vadd.f32 %v5606_v47, %v13773_v26  ;;  %v5911_v20 = vadd.f32 %v5910_v48, %v5820_v32  ;;  %v5836_v43 = vmul.f32 %v13783_v10, %v13783_v10 }
 0x53c   : > { %v4300_v50 = vpop.f32.mrf.mxu0  ;;  %v4251_v12 = vpop.f32.mrf.mxu3  ;;  %v5852_v32 = vmul.f32 %v13804_v30, %v13804_v30 }
 0x53d   : > { %17212 = vst [vmem:[#allocation68_spill] sm:$0xff] %v13819_v55  ;;  %v4252_v44 = vadd.f32 %v4251_v12, %v13708_v3  ;;  %v5608_v54 = vadd.f32 %v5607_v46, %v13776_v33  ;;  %v5912_v6 = vadd.f32 %v5911_v20, %v5828_v5  ;;  %v5860_v5 = vmul.f32 %v13819_v55, %v13819_v55  ;;  %v9903_v33 = vld [vmem:[#allocation7 + $0x790] sm:$0xf] }
 0x53e   : > { %v4398_v22 = vpop.f32.mrf.mxu2 }
 0x53f   : > { %v4349_v18 = vpop.f32.mrf.mxu1  ;;  %v4301_v14 = vadd.f32 %v4300_v50, %v4252_v44  ;;  %v5609_v12 = vadd.f32 %v5608_v54, %v13783_v10  ;;  %v5913_v26 = vadd.f32 %v5912_v6, %v5836_v43 }
 0x541   : > { %4656 = vmatmul.bf16.vlgmr.msra.gmra.mxu0 %v13196_v31  ;;  %v4350_v62 = vadd.f32 %v4349_v18, %v4301_v14  ;;  %v5610_v50 = vadd.f32 %v5609_v12, %v13786_v49  ;;  %v5914_v46 = vadd.f32 %v5913_v26, %v5844_v39  ;;  %v13863_v49 = vld [vmem:[#allocation8 + $0x13] sm:$0xff] }
 0x542   : > { %4705 = vmatmul.bf16.vlgmr.msrb.gmra.mxu1 %v17176_v56 }
 0x543   : > { %4607 = vmatmul.bf16.vlgmr.msra.gmra.mxu3 %v13194_v52  ;;  %4754 = vmatmul.bf16.vlgmr.msra.gmra.mxu2 %v17177_v63  ;;  %v13838_v13 = vadd.f32 %v4398_v22, %v4350_v62  ;;  %v5611_v18 = vadd.f32 %v5610_v50, %v13804_v30  ;;  %v5915_v22 = vadd.f32 %v5914_v46, %v5852_v32  ;;  %v10613_v30 = vld [vmem:[#allocation7 + $0x1ec] sm:$0xf0] }
 0x544   : > { %v4253_v47 = vpop.f32.mrf.mxu3  ;;  %v4302_v48 = vpop.f32.mrf.mxu0 }
 0x545   : > { %17213 = vst [vmem:[#allocation69_spill] sm:$0xff] %v13838_v13  ;;  %v4254_v44 = vadd.f32 %v4253_v47, %v13708_v3  ;;  %v5612_v54 = vadd.f32 %v5611_v18, %v13819_v55  ;;  %v5868_v43 = vmul.f32 %v13838_v13, %v13838_v13  ;;  %v5916_v12 = vadd.f32 %v5915_v22, %v5860_v5  ;;  %v9167_v55 = vld [vmem:[#allocation7 + $0x1d0] sm:$0xf] }
 0x546   : > { %v4400_v6 = vpop.f32.mrf.mxu2 }
 0x547   : > { %v4303_v14 = vadd.f32 %v4302_v48, %v4254_v44  ;;  %v4351_v20 = vpop.f32.mrf.mxu1  ;;  %v5613_v3 = vadd.f32 %v5612_v54, %v13838_v13  ;;  %v5917_v26 = vadd.f32 %v5916_v12, %v5868_v43 }
 0x549   : > { %v4352_v62 = vadd.f32 %v4351_v20, %v4303_v14 }
 0x54b   : > { %v13851_v47 = vadd.f32 %v4400_v6, %v4352_v62 }
 0x54c   : > { %v4461_v6 = vpop.f32.mrf.mxu0 }
 0x54d   : > { %v5614_v39 = vadd.f32 %v5613_v3, %v13851_v47  ;;  %v5876_v50 = vmul.f32 %v13851_v47, %v13851_v47 }
 0x54f   : > { %v5615_v32 = vrot.slane %v5614_v39, 4  ;;  %v5918_v44 = vadd.f32 %v5917_v26, %v5876_v50  ;;  %v4510_v12 = vpop.f32.mrf.mxu1  ;;  %v13866_v26 = vperm.slane %v13863_v49, 2  ;;  %v4559_v50 = vpop.f32.mrf.mxu2 }
 0x551   : > { %4661 = vmatmul.bf16.gmra.mxu0 %v13322_v0  ;;  %v5616_v48 = vadd.f32 %v5615_v32, %v5614_v39  ;;  %v5919_v46 = vrot.slane %v5918_v44, 4  ;;  %v4412_v39 = vpop.f32.mrf.mxu3  ;;  %v9168_v32 = vor.u32 %v10613_v30, %v9167_v55  ;;  %v9135_v30 = vld [vmem:[#allocation7 + $0x190] sm:$0xf] }
 0x552   : > { %4710 = vmatmul.bf16.gmra.mxu1 %v13338_v21  ;;  %v10605_v55 = vld [vmem:[#allocation7 + $0x1ac] sm:$0xf0] }
 0x553   : > { %4612 = vmatmul.bf16.gmra.mxu3 %v13320_v41  ;;  %4759 = vmatmul.bf16.gmra.mxu2 %v13345_v57  ;;  %v5617_v18 = vrot.slane %v5616_v48, 2  ;;  %v5920_v5 = vadd.f32 %v5919_v46, %v5918_v44  ;;  %v9935_v44 = vld [vmem:[#allocation7 + $0x7d0] sm:$0xf]  ;;  %v9136_v58 = vor.u32 %v10605_v55, %v9135_v30 }
 0x554   : > { %v9423_v46 = vld [vmem:[#allocation7 + $0x3d0] sm:$0xf]  ;;  %4795 = vmatpush.bf16.msrb.mxu3 %v9168_v32 }
 0x555   : > { %v5618_v14 = vadd.f32 %v5617_v18, %v5616_v48  ;;  %v5921_v20 = vrot.slane %v5920_v5, 2  ;;  %v10805_v48 = vld [vmem:[#allocation7 + $0x7ec] sm:$0xf0] }
 0x556   : > { %v10733_v32 = vld [vmem:[#allocation7 + $0x5ac] sm:$0xf0] }
 0x557   : > { %v5619_v22 = vrot.slane %v5618_v14, 1  ;;  %v5922_v54 = vadd.f32 %v5921_v20, %v5920_v5  ;;  %v9936_v20 = vor.u32 %v10805_v48, %v9935_v44  ;;  %v10669_v44 = vld [vmem:[#allocation7 + $0x3ac] sm:$0xf0]  ;;  %v9904_v48 = vor.u32 %v10797_v27, %v9903_v33  ;;  %v4512_v7 = vpop.f32.mrf.mxu1 }
 0x558   : > { %v9648_v60 = vor.u32 %v10733_v32, %v9647_v37  ;;  %4796 = vmatpush.bf16.msrb.mxu3 %v9136_v58  ;;  %v10661_v37 = vld [vmem:[#allocation7 + $0x36c] sm:$0xf0] }
 0x559   : > { %v5620_v43 = vadd.f32 %v5619_v22, %v5618_v14  ;;  %v5923_v62 = vrot.slane %v5922_v54, 1  ;;  %v4413_v14 = vadd.f32 %v4412_v39, %v13866_v26  ;;  %v10677_v22 = vld [vmem:[#allocation7 + $0x3ec] sm:$0xf0]  ;;  %4942 = vmatpush.bf16.msrb.mxu2 %v9936_v20 }
 0x55a   : > { %v9391_v39 = vld [vmem:[#allocation7 + $0x390] sm:$0xf] }
 0x55b   : > { %v13861_v3 = vmul.f32 %v5620_v43, %v17193_v53  ;;  %v5924_v13 = vadd.f32 %v5923_v62, %v5922_v54  ;;  %v9679_v54 = vld [vmem:[#allocation7 + $0x5d0] sm:$0xf]  ;;  %v9424_v62 = vor.u32 %v10677_v22, %v9423_v46  ;;  %v4462_v19 = vadd.f32 %v4461_v6, %v4413_v14  ;;  %v4561_v14 = vpop.f32.mrf.mxu2 }
 0x55c   : > { %v10741_v43 = vld [vmem:[#allocation7 + $0x5ec] sm:$0xf0]  ;;  %v9392_v36 = vor.u32 %v10669_v44, %v9391_v39 }
 0x55d   : > { %v6052_v18 = vmul.f32 %v5924_v13, %v17193_v53  ;;  %v6060_v5 = vmul.f32 %v13861_v3, %v13861_v3  ;;  %v9680_v10 = vor.u32 %v10741_v43, %v9679_v54  ;;  %4844 = vmatpush.bf16.msrb.mxu0 %v9424_v62  ;;  %v9103_v46 = vld [vmem:[#allocation7 + $0x150] sm:$0xf]  ;;  %v4511_v54 = vadd.f32 %v4510_v12, %v4462_v19  ;;  %v4463_v43 = vpop.f32.mrf.mxu0 }
 0x55e   : > { %v9104_v6 = vor.u32 %v10597_v15, %v9103_v46  ;;  %4943 = vmatpush.bf16.msrb.mxu2 %v9904_v48  ;;  %v10789_v19 = vld [vmem:[#allocation7 + $0x76c] sm:$0xf0] }
 0x55f   : > { %v6068_v13 = vsub.f32 %v6052_v18, %v6060_v5  ;;  %4893 = vmatpush.bf16.msra.mxu1 %v9680_v10  ;;  %v13876_v18 = vadd.f32 %v4559_v50, %v4511_v54  ;;  %v4414_v5 = vpop.f32.mrf.mxu3  ;;  %v9871_v10 = vld [vmem:[#allocation7 + $0x750] sm:$0xf]  ;;  %v4515_v39 = vpop.f32.mrf.mxu1 }
 0x560   : > { %v4415_v27 = vadd.f32 %v4414_v5, %v13866_v26  ;;  %4797 = vmatpush.bf16.msrb.mxu3 %v9104_v6  ;;  %v9359_v12 = vld [vmem:[#allocation7 + $0x350] sm:$0xf]  ;;  %v9872_v20 = vor.u32 %v10789_v19, %v9871_v10 }
 0x561   : > { %4666 = vmatmul.bf16.gmra.mxu0 %v13364_v4  ;;  %v6076_v22 = vadd.f32 0.8, %v6068_v13  ;;  %17214 = vst [vmem:[#allocation70_spill] sm:$0xff] %v13876_v18  ;;  %v9615_v62 = vld [vmem:[#allocation7 + $0x550] sm:$0xf]  ;;  %v9360_v30 = vor.u32 %v10661_v37, %v9359_v12 }
 0x562   : > { %4715 = vmatmul.bf16.gmra.mxu1 %v13379_v38  ;;  %4845 = vmatpush.bf16.msrb.mxu0 %v9392_v36  ;;  %v4464_v33 = vadd.f32 %v4463_v43, %v4415_v27  ;;  %v10725_v58 = vld [vmem:[#allocation7 + $0x56c] sm:$0xf0] }
 0x563   : > { %4617 = vmatmul.bf16.gmra.mxu3 %v13362_v24  ;;  %4764 = vmatmul.bf16.gmra.mxu2 %v13417_v17  ;;  %11059 = vrsqrt.f32 %v6076_v22  ;;  %v9616_v50 = vor.u32 %v10725_v58, %v9615_v62  ;;  %v4564_v36 = vpop.f32.mrf.mxu2  ;;  %v9071_v43 = vld [vmem:[#allocation7 + $0x110] sm:$0xf]  ;;  %vm6099_vm12 = vweird.f32 %v6076_v22 }
 0x564   : > { %4894 = vmatpush.bf16.msra.mxu1 %v9648_v60  ;;  %v4513_v15 = vadd.f32 %v4512_v7, %v4464_v33  ;;  %4944 = vmatpush.bf16.msrb.mxu2 %v9872_v20  ;;  %v10589_v6 = vld [vmem:[#allocation7 + $0x12c] sm:$0xf0]  ;;  %v6165_v33 = vperm.slane %v13731_v16, 1 }
 0x565   : > { %v4466_v13 = vpop.f32.mrf.mxu0  ;;  %v9072_v5 = vor.u32 %v10589_v6, %v9071_v43 }
 0x566   : > { %v13879_v48 = vadd.f32 %v4561_v14, %v4513_v15  ;;  %4846 = vmatpush.bf16.msrb.mxu0 %v9360_v30 }
 0x567   : > { %v4417_v60 = vpop.f32.mrf.mxu3  ;;  %v4517_v19 = vpop.f32.mrf.mxu1  ;;  %4798 = vmatpush.bf16.msrb.mxu3 %v9072_v5 }
 0x568   : > { %17215 = vst [vmem:[#allocation71_spill] sm:$0xff] %v13879_v48  ;;  %4895 = vmatpush.bf16.msra.mxu1 %v9616_v50  ;;  %v4418_v7 = vadd.f32 %v4417_v60, %v13866_v26 }
 0x569   : > { %v11060_v55 = vpop.eup %11059 }
 0x56a   : > { %v6094_v44 = vmul.f32 %v11060_v55, %v6076_v22  ;;  %v4467_v54 = vadd.f32 %v4466_v13, %v4418_v7  ;;  %vm6100_vm11 = vweird.f32 %v11060_v55  ;;  %v9839_v13 = vld [vmem:[#allocation7 + $0x710] sm:$0xf] }
 0x56b   : > { %vm6101_vm13 = vmor %vm6099_vm12, %vm6100_vm11  ;;  %v4566_v62 = vpop.f32.mrf.mxu2  ;;  %v10653_v7 = vld [vmem:[#allocation7 + $0x32c] sm:$0xf0] }
 0x56c   : > { %v6095_v32 = vmul.f32 %v11060_v55, %v6094_v44  ;;  %v4516_v27 = vadd.f32 %v4515_v39, %v4467_v54  ;;  %v10781_v44 = vld [vmem:[#allocation7 + $0x72c] sm:$0xf0] }
 0x56d   : > { %v4468_v10 = vpop.f32.mrf.mxu0  ;;  %v9327_v39 = vld [vmem:[#allocation7 + $0x310] sm:$0xf] }
 0x56e   : > { %v6096_v46 = vmul.f32 0.5, %v6095_v32  ;;  %v13887_v20 = vadd.f32 %v4564_v36, %v4516_v27  ;;  %v9840_v32 = vor.u32 %v10781_v44, %v9839_v13  ;;  %v9583_v22 = vld [vmem:[#allocation7 + $0x510] sm:$0xf] }
 0x56f   : > { %v4419_v37 = vpop.f32.mrf.mxu3  ;;  %v10717_v54 = vld [vmem:[#allocation7 + $0x52c] sm:$0xf0] }
 0x570   : > { %v6097_v14 = vsub.f32 1.5, %v6096_v46  ;;  %17216 = vst [vmem:[#allocation72_spill] sm:$0xff] %v13887_v20  ;;  %v4420_v15 = vadd.f32 %v4419_v37, %v13866_v26  ;;  %v9328_v46 = vor.u32 %v10653_v7, %v9327_v39  ;;  %4945 = vmatpush.bf16.msrb.mxu2 %v9840_v32  ;;  %v10773_v32 = vld [vmem:[#allocation7 + $0x6ec] sm:$0xf0] }
 0x571   : > { %4671 = vmatmul.bf16.gmra.mxu0 %v13507_v35  ;;  %v9295_v7 = vld [vmem:[#allocation7 + $0x2d0] sm:$0xf] }
 0x572   : > { %4720 = vmatmul.bf16.gmra.mxu1 %v13509_v28  ;;  %v6098_v12 = vmul.f32 %v11060_v55, %v6097_v14  ;;  %v4469_v50 = vadd.f32 %v4468_v10, %v4420_v15  ;;  %v4520_v14 = vpop.f32.mrf.mxu1  ;;  %4847 = vmatpush.bf16.msrb.mxu0 %v9328_v46  ;;  %v9551_v46 = vld [vmem:[#allocation7 + $0x4d0] sm:$0xf] }
 0x573   : > { %4622 = vmatmul.bf16.gmra.mxu3 %v13481_v34  ;;  %4769 = vmatmul.bf16.gmra.mxu2 %v13513_v2 }
 0x574   : > { %v6102_v58 = vsel %vm6101_vm13, %v11060_v55, %v6098_v12  ;;  %v4518_v36 = vadd.f32 %v4517_v19, %v4469_v50  ;;  %v6188_v55 = vmul.f32 %v13737_v40, %v13713_v11  ;;  %v4569_v19 = vpop.f32.mrf.mxu2  ;;  %v10581_v12 = vld [vmem:[#allocation7 + $0xec] sm:$0xf0] }
 0x575   : > { %v6181_v30 = vmul.f32 %v6165_v33, %v6102_v58  ;;  %v4471_v5 = vpop.f32.mrf.mxu0 }
 0x576   : > { %v13899_v27 = vadd.f32 %v4566_v62, %v4518_v36  ;;  %v10645_v36 = vld [vmem:[#allocation7 + $0x2ec] sm:$0xf0] }
 0x577   : > { %v6189_v16 = vmul.f32 %v6181_v30, %v13861_v3  ;;  %v13891_v60 = vperm.slane %v6181_v30, 0  ;;  %v9584_v3 = vor.u32 %v10717_v54, %v9583_v22  ;;  %v4422_v10 = vpop.f32.mrf.mxu3  ;;  %v10709_v54 = vld [vmem:[#allocation7 + $0x4ec] sm:$0xf0] }
 0x578   : > { %17219 = vst [vmem:[#allocation75_spill] sm:$0xff] %v13899_v27  ;;  %v4423_v11 = vadd.f32 %v4422_v10, %v13866_v26 }
 0x579   : > { %17217 = vst [vmem:[#allocation73_spill] sm:$0xff] %v13891_v60  ;;  %v6204_v43 = vrot.slane %v6189_v16, 7  ;;  %v13897_v6 = vmul.f32 %v13891_v60, %v13851_v47  ;;  %4896 = vmatpush.bf16.msra.mxu1 %v9584_v3  ;;  %v9039_v47 = vld [vmem:[#allocation7 + $0xd0] sm:$0xf] }
 0x57a   : > { %v4472_v40 = vadd.f32 %v4471_v5, %v4423_v11  ;;  %v9040_v37 = vor.u32 %v10581_v12, %v9039_v47  ;;  %v4522_v15 = vpop.f32.mrf.mxu1  ;;  %v9807_v16 = vld [vmem:[#allocation7 + $0x6d0] sm:$0xf]  ;;  %v9552_v5 = vor.u32 %v10709_v54, %v9551_v46 }
 0x57b   : > { %17218 = vst [vmem:[#allocation74_spill] sm:$0xff] %v13897_v6  ;;  %v13902_v33 = vsel %vm894_vm8, %v6188_v55, %v6204_v43  ;;  %v9808_v22 = vor.u32 %v10773_v32, %v9807_v16  ;;  %v9296_v43 = vor.u32 %v10645_v36, %v9295_v7  ;;  %v17223_v47 = vld [vmem:[#allocation53_spill] sm:$0xff] }
 0x57c   : > { %17220 = vst [vmem:[#allocation76_spill] sm:$0xff] %v13902_v33  ;;  %v4521_v62 = vadd.f32 %v4520_v14, %v4472_v40  ;;  %4799 = vmatpush.bf16.msrb.mxu3 %v9040_v37  ;;  %v4571_v13 = vpop.f32.mrf.mxu2  ;;  %v17224_v12 = vld [vmem:[#allocation37_spill] sm:$0xff] }
 0x57d   : > { %v4473_v58 = vpop.f32.mrf.mxu0  ;;  %4946 = vmatpush.bf16.msrb.mxu2 %v9808_v22  ;;  %4848 = vmatpush.bf16.msrb.mxu0 %v9296_v43  ;;  %v9775_v46 = vld [vmem:[#allocation7 + $0x690] sm:$0xf] }
 0x57e   : > { %v13909_v30 = vadd.f32 %v4569_v19, %v4521_v62  ;;  %4897 = vmatpush.bf16.msra.mxu1 %v9552_v5  ;;  %v17225_v62 = vld [vmem:[#allocation42_spill] sm:$0xff]  ;;  %v10765_v54 = vld [vmem:[#allocation7 + $0x6ac] sm:$0xf0] }
 0x57f   : > { %v4424_v50 = vpop.f32.mrf.mxu3  ;;  %v9776_v43 = vor.u32 %v10765_v54, %v9775_v46  ;;  %v10637_v5 = vld [vmem:[#allocation7 + $0x2ac] sm:$0xf0] }
 0x580   : > { %17221 = vst [vmem:[#allocation77_spill] sm:$0xff] %v13909_v30  ;;  %v4425_v44 = vadd.f32 %v4424_v50, %v13866_v26  ;;  %v10565_v46 = vld [vmem:[#allocation7 + $0x6c] sm:$0xf0] }
 0x581   : > { %4676 = vmatmul.bf16.gmra.mxu0 %v13424_v23  ;;  %4947 = vmatpush.bf16.msrb.mxu2 %v9776_v43  ;;  %v9231_v6 = vld [vmem:[#allocation7 + $0x250] sm:$0xf] }
 0x582   : > { %4725 = vmatmul.bf16.gmra.mxu1 %v17202_v59  ;;  %v4474_v39 = vadd.f32 %v4473_v58, %v4425_v44  ;;  %v4525_v3 = vpop.f32.mrf.mxu1  ;;  %v9007_v58 = vld [vmem:[#allocation7 + $0x90] sm:$0xf] }
 0x583   : > { %4627 = vmatmul.bf16.gmra.mxu3 %v13422_v1  ;;  %4774 = vmatmul.bf16.gmra.mxu2 %v17203_v61  ;;  %v9487_v60 = vld [vmem:[#allocation7 + $0x450] sm:$0xf] }
 0x584   : > { %v4523_v55 = vadd.f32 %v4522_v15, %v4474_v39  ;;  %v4574_v11 = vpop.f32.mrf.mxu2  ;;  %v10573_v15 = vld [vmem:[#allocation7 + $0xac] sm:$0xf0] }
 0x585   : > { %v4476_v14 = vpop.f32.mrf.mxu0  ;;  %v9008_v50 = vor.u32 %v10573_v15, %v9007_v58  ;;  %v10693_v33 = vld [vmem:[#allocation7 + $0x46c] sm:$0xf0] }
 0x586   : > { %v13912_v10 = vadd.f32 %v4571_v13, %v4523_v55  ;;  %v9263_v55 = vld [vmem:[#allocation7 + $0x290] sm:$0xf] }
 0x587   : > { %v4427_v19 = vpop.f32.mrf.mxu3  ;;  %4800 = vmatpush.bf16.msrb.mxu3 %v9008_v50  ;;  %v9264_v58 = vor.u32 %v10637_v5, %v9263_v55 }
 0x588   : > { %17222 = vst [vmem:[#allocation78_spill] sm:$0xff] %v13912_v10  ;;  %v4428_v40 = vadd.f32 %v4427_v19, %v13866_v26  ;;  %v10701_v19 = vld [vmem:[#allocation7 + $0x4ac] sm:$0xf0] }
 0x589   : > { %4849 = vmatpush.bf16.msrb.mxu0 %v9264_v58 }
 0x58a   : > { %v4477_v37 = vadd.f32 %v4476_v14, %v4428_v40  ;;  %v4527_v39 = vpop.f32.mrf.mxu1  ;;  %v9519_v14 = vld [vmem:[#allocation7 + $0x490] sm:$0xf] }
 0x58c   : > { %v4526_v13 = vadd.f32 %v4525_v3, %v4477_v37  ;;  %v4576_v7 = vpop.f32.mrf.mxu2  ;;  %v9520_v3 = vor.u32 %v10701_v19, %v9519_v14 }
 0x58d   : > { %v4478_v44 = vpop.f32.mrf.mxu0 }
 0x58e   : > { %v13919_v16 = vadd.f32 %v4574_v11, %v4526_v13  ;;  %4898 = vmatpush.bf16.msra.mxu1 %v9520_v3  ;;  %v9743_v3 = vld [vmem:[#allocation7 + $0x650] sm:$0xf] }
 0x58f   : > { %v4429_v32 = vpop.f32.mrf.mxu3 }
 0x590   : > { %17226 = vst [vmem:[#allocation53_spill] sm:$0xff] %v13919_v16  ;;  %v4430_v22 = vadd.f32 %v4429_v32, %v13866_v26  ;;  %v17228_v32 = vld [vmem:[#allocation43_spill] sm:$0xff] }
 0x591   : > { %4681 = vmatmul.bf16.gmra.mxu0 %v17223_v47 }
 0x592   : > { %4730 = vmatmul.bf16.gmra.mxu1 %v17224_v12  ;;  %v4479_v36 = vadd.f32 %v4478_v44, %v4430_v22  ;;  %v4530_v15 = vpop.f32.mrf.mxu1  ;;  %v17229_v22 = vld [vmem:[#allocation35_spill] sm:$0xff] }
 0x593   : > { %4632 = vmatmul.bf16.gmra.mxu3 %v13462_v51  ;;  %4779 = vmatmul.bf16.gmra.mxu2 %v17225_v62 }
 0x594   : > { %v4528_v40 = vadd.f32 %v4527_v39, %v4479_v36  ;;  %v4579_v13 = vpop.f32.mrf.mxu2  ;;  %v8975_v36 = vld [vmem:[#allocation7 + $0x50] sm:$0xf] }
 0x595   : > { %v4481_v37 = vpop.f32.mrf.mxu0  ;;  %v8976_v54 = vor.u32 %v10565_v46, %v8975_v36 }
 0x596   : > { %v13922_v11 = vadd.f32 %v4576_v7, %v4528_v40 }
 0x597   : > { %v4432_v50 = vpop.f32.mrf.mxu3  ;;  %4801 = vmatpush.bf16.msrb.mxu3 %v8976_v54 }
 0x598   : > { %17227 = vst [vmem:[#allocation37_spill] sm:$0xff] %v13922_v11  ;;  %v4433_v44 = vadd.f32 %v4432_v50, %v13866_v26  ;;  %v10757_v50 = vld [vmem:[#allocation7 + $0x66c] sm:$0xf0] }
 0x59a   : > { %v4482_v39 = vadd.f32 %v4481_v37, %v4433_v44  ;;  %v4532_v43 = vpop.f32.mrf.mxu1  ;;  %v9744_v37 = vor.u32 %v10757_v50, %v9743_v3  ;;  %v10629_v44 = vld [vmem:[#allocation7 + $0x26c] sm:$0xf0] }
 0x59b   : > { %v9232_v36 = vor.u32 %v10629_v44, %v9231_v6  ;;  %v10557_v6 = vld [vmem:[#allocation7 + $0x2c] sm:$0xf0] }
 0x59c   : > { %v4531_v7 = vadd.f32 %v4530_v15, %v4482_v39  ;;  %v4581_v19 = vpop.f32.mrf.mxu2  ;;  %v9488_v15 = vor.u32 %v10693_v33, %v9487_v60  ;;  %4948 = vmatpush.bf16.msrb.mxu2 %v9744_v37  ;;  %v8943_v60 = vld [vmem:[#allocation7 + $0x10] sm:$0xf] }
 0x59d   : > { %v4483_v55 = vpop.f32.mrf.mxu0  ;;  %4850 = vmatpush.bf16.msrb.mxu0 %v9232_v36  ;;  %v8944_v33 = vor.u32 %v10557_v6, %v8943_v60  ;;  %v9711_v44 = vld [vmem:[#allocation7 + $0x610] sm:$0xf] }
 0x59e   : > { %v13929_v5 = vadd.f32 %v4579_v13, %v4531_v7  ;;  %4899 = vmatpush.bf16.msra.mxu1 %v9488_v15  ;;  %v10749_v36 = vld [vmem:[#allocation7 + $0x62c] sm:$0xf0] }
 0x59f   : > { %v4434_v14 = vpop.f32.mrf.mxu3  ;;  %4802 = vmatpush.bf16.msrb.mxu3 %v8944_v33  ;;  %v9199_v15 = vld [vmem:[#allocation7 + $0x210] sm:$0xf] }
 0x5a0   : > { %17230 = vst [vmem:[#allocation79_spill] sm:$0xff] %v13929_v5  ;;  %v4435_v40 = vadd.f32 %v4434_v14, %v13866_v26 }
 0x5a1   : > { %4686 = vmatmul.bf16.gmra.mxu0 %v13491_v42 }
 0x5a2   : > { %4735 = vmatmul.bf16.gmra.mxu1 %v17228_v32  ;;  %v4484_v58 = vadd.f32 %v4483_v55, %v4435_v40  ;;  %v4535_v46 = vpop.f32.mrf.mxu1 }
 0x5a3   : > { %4637 = vmatmul.bf16.gmra.mxu3 %v13489_v8  ;;  %4784 = vmatmul.bf16.gmra.mxu2 %v17229_v22 }
 0x5a4   : > { %v4533_v22 = vadd.f32 %v4532_v43, %v4484_v58  ;;  %v4584_v7 = vpop.f32.mrf.mxu2 }
 0x5a5   : > { %v4486_v39 = vpop.f32.mrf.mxu0 }
 0x5a6   : > { %v13932_v13 = vadd.f32 %v4581_v19, %v4533_v22 }
 0x5a7   : > { %v4437_v54 = vpop.f32.mrf.mxu3 }
 0x5a8   : > { %17231 = vst [vmem:[#allocation80_spill] sm:$0xff] %v13932_v13  ;;  %v4438_v55 = vadd.f32 %v4437_v54, %v13866_v26  ;;  %v10621_v54 = vld [vmem:[#allocation7 + $0x22c] sm:$0xf0] }
 0x5a9   : > { %v9200_v60 = vor.u32 %v10621_v54, %v9199_v15 }
 0x5aa   : > { %v4487_v43 = vadd.f32 %v4486_v39, %v4438_v55  ;;  %v4537_v19 = vpop.f32.mrf.mxu1  ;;  %v9712_v39 = vor.u32 %v10749_v36, %v9711_v44  ;;  %v9455_v55 = vld [vmem:[#allocation7 + $0x410] sm:$0xf] }
 0x5ab   : > { %4851 = vmatpush.bf16.msrb.mxu0 %v9200_v60 }
 0x5ac   : > { %v4536_v22 = vadd.f32 %v4535_v46, %v4487_v43  ;;  %v4586_v3 = vpop.f32.mrf.mxu2  ;;  %4949 = vmatpush.bf16.msrb.mxu2 %v9712_v39  ;;  %v5781_v39 = vmul.f32 %v13899_v27, %v13899_v27 }
 0x5ad   : > { %v4488_v14 = vpop.f32.mrf.mxu0 }
 0x5ae   : > { %v13939_v40 = vadd.f32 %v4584_v7, %v4536_v22 }
 0x5af   : > { %v4439_v58 = vpop.f32.mrf.mxu3 }
 0x5b0   : > { %17232 = vst [vmem:[#allocation81_spill] sm:$0xff] %v13939_v40  ;;  %v4440_v50 = vadd.f32 %v4439_v58, %v13866_v26  ;;  %v5621_v58 = vadd.f32 %v13879_v48, %v13876_v18 }
 0x5b1   : > { %4691 = vmatmul.bf16.gmra.mxu0 %v13529_v29 }
 0x5b2   : > { %4740 = vmatmul.bf16.gmra.mxu1 %v13534_v25  ;;  %v4489_v37 = vadd.f32 %v4488_v14, %v4440_v50  ;;  %v4540_v6 = vpop.f32.mrf.mxu1  ;;  %v5622_v15 = vadd.f32 %v5621_v58, %v13887_v20 }
 0x5b3   : > { %4642 = vmatmul.bf16.gmra.mxu3 %v13522_v45  ;;  %4789 = vmatmul.bf16.gmra.mxu2 %v13192_v9  ;;  %v10685_v9 = vld [vmem:[#allocation7 + $0x42c] sm:$0xf0] }
 0x5b4   : > { %v4538_v25 = vadd.f32 %v4537_v19, %v4489_v37  ;;  %v9456_v46 = vor.u32 %v10685_v9, %v9455_v55  ;;  %v4589_v22 = vpop.f32.mrf.mxu2  ;;  %v5765_v9 = vmul.f32 %v13879_v48, %v13879_v48  ;;  %v9873_v48 = vld [vmem:[#allocation7 + $0x770] sm:$0xf0] }
 0x5b5   : > { %v4491_v43 = vpop.f32.mrf.mxu0 }
 0x5b6   : > { %v13942_v7 = vadd.f32 %v4586_v3, %v4538_v25  ;;  %4900 = vmatpush.bf16.msra.mxu1 %v9456_v46  ;;  %v5757_v25 = vmul.f32 %v13876_v18, %v13876_v18  ;;  %v5773_v3 = vmul.f32 %v13887_v20, %v13887_v20 }
 0x5b7   : > { %v4442_v33 = vpop.f32.mrf.mxu3 }
 0x5b8   : > { %17233 = vst [vmem:[#allocation82_spill] sm:$0xff] %v13942_v7  ;;  %v4443_v14 = vadd.f32 %v4442_v33, %v13866_v26  ;;  %v5925_v36 = vadd.f32 %v5765_v9, %v5757_v25  ;;  %v5789_v33 = vmul.f32 %v13909_v30, %v13909_v30 }
 0x5ba   : > { %v4492_v19 = vadd.f32 %v4491_v43, %v4443_v14  ;;  %v4542_v44 = vpop.f32.mrf.mxu1  ;;  %v5926_v46 = vadd.f32 %v5925_v36, %v5773_v3  ;;  %v5623_v43 = vadd.f32 %v5622_v15, %v13899_v27  ;;  %v5805_v3 = vmul.f32 %v13919_v16, %v13919_v16 }
 0x5bc   : > { %v4541_v50 = vadd.f32 %v4540_v6, %v4492_v19  ;;  %v4591_v60 = vpop.f32.mrf.mxu2  ;;  %v5927_v14 = vadd.f32 %v5926_v46, %v5781_v39  ;;  %v5624_v9 = vadd.f32 %v5623_v43, %v13909_v30  ;;  %v5797_v19 = vmul.f32 %v13912_v10, %v13912_v10  ;;  %v10785_v30 = vld [vmem:[#allocation7 + $0x754] sm:$0xf] }
 0x5bd   : > { %v4493_v37 = vpop.f32.mrf.mxu0  ;;  %v5813_v39 = vmul.f32 %v13922_v11, %v13922_v11 }
 0x5be   : > { %v13960_v54 = vadd.f32 %v4589_v22, %v4541_v50  ;;  %v5928_v58 = vadd.f32 %v5927_v14, %v5789_v33  ;;  %v5625_v22 = vadd.f32 %v5624_v9, %v13912_v10  ;;  %v5829_v9 = vmul.f32 %v13932_v13, %v13932_v13 }
 0x5bf   : > { %v4444_v55 = vpop.f32.mrf.mxu3 }
 0x5c0   : > { %17234 = vst [vmem:[#allocation83_spill] sm:$0xff] %v13960_v54  ;;  %v4445_v6 = vadd.f32 %v4444_v55, %v13866_v26  ;;  %v5929_v27 = vadd.f32 %v5928_v58, %v5797_v19  ;;  %v5626_v20 = vadd.f32 %v5625_v22, %v13919_v16  ;;  %v9937_v16 = vld [vmem:[#allocation7 + $0x7f0] sm:$0xf0] }
 0x5c1   : > { %4852 = vmatmul.bf16.vlgmr.msrb.gmra.mxu0 %v13196_v31 }
 0x5c2   : > { %4901 = vmatmul.bf16.vlgmr.msra.gmra.mxu1 %v17176_v56  ;;  %v4494_v25 = vadd.f32 %v4493_v37, %v4445_v6  ;;  %v4545_v15 = vpop.f32.mrf.mxu1  ;;  %v5930_v37 = vadd.f32 %v5929_v27, %v5805_v3  ;;  %v5627_v33 = vadd.f32 %v5626_v20, %v13922_v11  ;;  %v10801_v11 = vld [vmem:[#allocation7 + $0x7d4] sm:$0xf] }
 0x5c3   : > { %4803 = vmatmul.bf16.vlgmr.msrb.gmra.mxu3 %v13194_v52  ;;  %4950 = vmatmul.bf16.vlgmr.msrb.gmra.mxu2 %v17177_v63 }
 0x5c4   : > { %v4543_v50 = vadd.f32 %v4542_v44, %v4494_v25  ;;  %v4594_v43 = vpop.f32.mrf.mxu2  ;;  %v5821_v44 = vmul.f32 %v13929_v5, %v13929_v5  ;;  %v5931_v14 = vadd.f32 %v5930_v37, %v5813_v39  ;;  %v5837_v25 = vmul.f32 %v13939_v40, %v13939_v40 }
 0x5c5   : > { %v4496_v36 = vpop.f32.mrf.mxu0 }
 0x5c6   : > { %v13975_v55 = vadd.f32 %v4591_v60, %v4543_v50  ;;  %v5628_v60 = vadd.f32 %v5627_v33, %v13929_v5  ;;  %v5932_v27 = vadd.f32 %v5931_v14, %v5821_v44 }
 0x5c7   : > { %v4447_v46 = vpop.f32.mrf.mxu3 }
 0x5c8   : > { %17235 = vst [vmem:[#allocation84_spill] sm:$0xff] %v13975_v55  ;;  %v4448_v6 = vadd.f32 %v4447_v46, %v13866_v26  ;;  %v5629_v20 = vadd.f32 %v5628_v60, %v13932_v13  ;;  %v5933_v50 = vadd.f32 %v5932_v27, %v5829_v9  ;;  %v5845_v46 = vmul.f32 %v13942_v7, %v13942_v7 }
 0x5ca   : > { %v4497_v19 = vadd.f32 %v4496_v36, %v4448_v6  ;;  %v4547_v3 = vpop.f32.mrf.mxu1  ;;  %v5630_v39 = vadd.f32 %v5629_v20, %v13939_v40  ;;  %v5934_v33 = vadd.f32 %v5933_v50, %v5837_v25  ;;  %v5853_v6 = vmul.f32 %v13960_v54, %v13960_v54 }
 0x5cc   : > { %v4546_v58 = vadd.f32 %v4545_v15, %v4497_v19  ;;  %v5631_v44 = vadd.f32 %v5630_v39, %v13942_v7  ;;  %v4596_v15 = vpop.f32.mrf.mxu2  ;;  %v5935_v60 = vadd.f32 %v5934_v33, %v5845_v46  ;;  %v5861_v19 = vmul.f32 %v13975_v55, %v13975_v55 }
 0x5cd   : > { %v4498_v22 = vpop.f32.mrf.mxu0 }
 0x5ce   : > { %v13994_v37 = vadd.f32 %v4594_v43, %v4546_v58  ;;  %v5632_v9 = vadd.f32 %v5631_v44, %v13960_v54  ;;  %v5936_v20 = vadd.f32 %v5935_v60, %v5853_v6  ;;  %v14016_v6 = vperm.slane %v13863_v49, 3 }
 0x5cf   : > { %v4449_v36 = vpop.f32.mrf.mxu3 }
 0x5d0   : > { %17236 = vst [vmem:[#allocation85_spill] sm:$0xff] %v13994_v37  ;;  %v4450_v14 = vadd.f32 %v4449_v36, %v13866_v26  ;;  %v5633_v43 = vadd.f32 %v5632_v9, %v13975_v55  ;;  %v5869_v25 = vmul.f32 %v13994_v37, %v13994_v37  ;;  %v5937_v7 = vadd.f32 %v5936_v20, %v5861_v19 }
 0x5d1   : > { %4857 = vmatmul.bf16.gmra.mxu0 %v13322_v0 }
 0x5d2   : > { %4906 = vmatmul.bf16.gmra.mxu1 %v13338_v21  ;;  %v4499_v27 = vadd.f32 %v4498_v22, %v4450_v14  ;;  %v4706_v39 = vpop.f32.mrf.mxu1  ;;  %v5634_v26 = vadd.f32 %v5633_v43, %v13994_v37  ;;  %v5938_v46 = vadd.f32 %v5937_v7, %v5869_v25 }
 0x5d3   : > { %4808 = vmatmul.bf16.gmra.mxu3 %v13320_v41  ;;  %4955 = vmatmul.bf16.gmra.mxu2 %v13345_v57 }
 0x5d4   : > { %v4548_v58 = vadd.f32 %v4547_v3, %v4499_v27 }
 0x5d5   : > { %v4657_v50 = vpop.f32.mrf.mxu0 }
 0x5d6   : > { %v14007_v36 = vadd.f32 %v4596_v15, %v4548_v58  ;;  %v4755_v15 = vpop.f32.mrf.mxu2 }
 0x5d7   : > { %v4608_v14 = vpop.f32.mrf.mxu3 }
 0x5d8   : > { %v5635_v33 = vadd.f32 %v5634_v26, %v14007_v36  ;;  %v5877_v22 = vmul.f32 %v14007_v36, %v14007_v36  ;;  %v4609_v9 = vadd.f32 %v4608_v14, %v14016_v6 }
 0x5da   : > { %v5636_v3 = vrot.slane %v5635_v33, 4  ;;  %v5939_v44 = vadd.f32 %v5938_v46, %v5877_v22  ;;  %v4708_v27 = vpop.f32.mrf.mxu1  ;;  %v4658_v25 = vadd.f32 %v4657_v50, %v4609_v9  ;;  %v10737_v9 = vld [vmem:[#allocation7 + $0x5d4] sm:$0xf] }
 0x5dc   : > { %v5637_v60 = vadd.f32 %v5636_v3, %v5635_v33  ;;  %v5940_v7 = vrot.slane %v5939_v44, 4  ;;  %v4707_v37 = vadd.f32 %v4706_v39, %v4658_v25  ;;  %v10609_v33 = vld [vmem:[#allocation7 + $0x1d4] sm:$0xf] }
 0x5dd   : > { %v4659_v19 = vpop.f32.mrf.mxu0  ;;  %v9169_v3 = vld [vmem:[#allocation7 + $0x1f0] sm:$0xf0] }
 0x5de   : > { %v5638_v20 = vrot.slane %v5637_v60, 2  ;;  %v5941_v43 = vadd.f32 %v5940_v7, %v5939_v44  ;;  %v14020_v49 = vadd.f32 %v4755_v15, %v4707_v37  ;;  %v4757_v54 = vpop.f32.mrf.mxu2  ;;  %v9172_v5 = vor.u32 %v10609_v33, %v9169_v3  ;;  %v10673_v44 = vld [vmem:[#allocation7 + $0x3d4] sm:$0xf] }
 0x5df   : > { %v4610_v55 = vpop.f32.mrf.mxu3  ;;  %v9940_v37 = vor.u32 %v10801_v11, %v9937_v16  ;;  %v9425_v15 = vld [vmem:[#allocation7 + $0x3f0] sm:$0xf0] }
 0x5e0   : > { %v5639_v58 = vadd.f32 %v5638_v20, %v5637_v60  ;;  %v5942_v26 = vrot.slane %v5941_v43, 2  ;;  %17237 = vst [vmem:[#allocation86_spill] sm:$0xff] %v14020_v49  ;;  %v4611_v14 = vadd.f32 %v4610_v55, %v14016_v6  ;;  %v9681_v20 = vld [vmem:[#allocation7 + $0x5f0] sm:$0xf0]  ;;  %4991 = vmatpush.bf16.msra.mxu3 %v9172_v5  ;;  %v9428_v25 = vor.u32 %v10673_v44, %v9425_v15 }
 0x5e1   : > { %4862 = vmatmul.bf16.gmra.mxu0 %v13364_v4  ;;  %v9137_v55 = vld [vmem:[#allocation7 + $0x1b0] sm:$0xf0]  ;;  %5138 = vmatpush.bf16.msra.mxu2 %v9940_v37 }
 0x5e2   : > { %4911 = vmatmul.bf16.gmra.mxu1 %v13379_v38  ;;  %v5640_v46 = vrot.slane %v5639_v58, 1  ;;  %v5943_v22 = vadd.f32 %v5942_v26, %v5941_v43  ;;  %v4711_v60 = vpop.f32.mrf.mxu1  ;;  %v4660_v43 = vadd.f32 %v4659_v19, %v4611_v14  ;;  %v10601_v26 = vld [vmem:[#allocation7 + $0x194] sm:$0xf]  ;;  %5040 = vmatpush.bf16.msra.mxu0 %v9428_v25 }
 0x5e3   : > { %4813 = vmatmul.bf16.gmra.mxu3 %v13362_v24  ;;  %4960 = vmatmul.bf16.gmra.mxu2 %v13417_v17  ;;  %v9140_v10 = vor.u32 %v10601_v26, %v9137_v55  ;;  %v10665_v16 = vld [vmem:[#allocation7 + $0x394] sm:$0xf] }
 0x5e4   : > { %v5641_v40 = vadd.f32 %v5640_v46, %v5639_v58  ;;  %v5944_v13 = vrot.slane %v5943_v22, 1  ;;  %v9684_v58 = vor.u32 %v10737_v9, %v9681_v20  ;;  %v10793_v46 = vld [vmem:[#allocation7 + $0x794] sm:$0xf] }
 0x5e5   : > { %v4662_v50 = vpop.f32.mrf.mxu0  ;;  %v9393_v11 = vld [vmem:[#allocation7 + $0x3b0] sm:$0xf0]  ;;  %4992 = vmatpush.bf16.msra.mxu3 %v9140_v10 }
 0x5e6   : > { %v14024_v39 = vmul.f32 %v5641_v40, %v17193_v53  ;;  %v5945_v7 = vadd.f32 %v5944_v13, %v5943_v22  ;;  %v4709_v40 = vadd.f32 %v4708_v27, %v4660_v43  ;;  %v9905_v13 = vld [vmem:[#allocation7 + $0x7b0] sm:$0xf0]  ;;  %5089 = vmatpush.bf16.msrb.mxu1 %v9684_v58  ;;  %v9396_v5 = vor.u32 %v10665_v16, %v9393_v11  ;;  %v4760_v37 = vpop.f32.mrf.mxu2 }
 0x5e7   : > { %v9908_v19 = vor.u32 %v10793_v46, %v9905_v13  ;;  %v10729_v22 = vld [vmem:[#allocation7 + $0x594] sm:$0xf]  ;;  %v4613_v27 = vpop.f32.mrf.mxu3  ;;  %v9876_v46 = vor.u32 %v10785_v30, %v9873_v48 }
 0x5e8   : > { %v6053_v33 = vmul.f32 %v5945_v7, %v17193_v53  ;;  %v6061_v3 = vmul.f32 %v14024_v39, %v14024_v39  ;;  %v9649_v14 = vld [vmem:[#allocation7 + $0x5b0] sm:$0xf0]  ;;  %v14029_v9 = vadd.f32 %v4757_v54, %v4709_v40  ;;  %v4614_v54 = vadd.f32 %v4613_v27, %v14016_v6  ;;  %5041 = vmatpush.bf16.msra.mxu0 %v9396_v5 }
 0x5e9   : > { %v10593_v44 = vld [vmem:[#allocation7 + $0x154] sm:$0xf]  ;;  %v9652_v7 = vor.u32 %v10729_v22, %v9649_v14  ;;  %5139 = vmatpush.bf16.msra.mxu2 %v9908_v19 }
 0x5ea   : > { %v6069_v15 = vsub.f32 %v6053_v33, %v6061_v3  ;;  %17238 = vst [vmem:[#allocation87_spill] sm:$0xff] %v14029_v9  ;;  %v9105_v20 = vld [vmem:[#allocation7 + $0x170] sm:$0xf0]  ;;  %v4713_v40 = vpop.f32.mrf.mxu1  ;;  %v4663_v16 = vadd.f32 %v4662_v50, %v4614_v54 }
 0x5eb   : > { %v9108_v43 = vor.u32 %v10593_v44, %v9105_v20  ;;  %v10657_v25 = vld [vmem:[#allocation7 + $0x354] sm:$0xf]  ;;  %5090 = vmatpush.bf16.msrb.mxu1 %v9652_v7 }
 0x5ec   : > { %v9361_v58 = vld [vmem:[#allocation7 + $0x370] sm:$0xf0]  ;;  %v6077_v55 = vadd.f32 0.8, %v6069_v15  ;;  %v4712_v14 = vadd.f32 %v4711_v60, %v4663_v16 }
 0x5ed   : > { %v10721_v26 = vld [vmem:[#allocation7 + $0x554] sm:$0xf]  ;;  %v4664_v3 = vpop.f32.mrf.mxu0  ;;  %v9364_v13 = vor.u32 %v10657_v25, %v9361_v58  ;;  %4993 = vmatpush.bf16.msra.mxu3 %v9108_v43  ;;  %5140 = vmatpush.bf16.msra.mxu2 %v9876_v46 }
 0x5ee   : > { %v9617_v33 = vld [vmem:[#allocation7 + $0x570] sm:$0xf0]  ;;  %11061 = vrsqrt.f32 %v6077_v55  ;;  %v14036_v48 = vadd.f32 %v4760_v37, %v4712_v14  ;;  %v4762_v19 = vpop.f32.mrf.mxu2  ;;  %vm6109_vm14 = vweird.f32 %v6077_v55 }
 0x5ef   : > { %v9620_v10 = vor.u32 %v10721_v26, %v9617_v33  ;;  %v10585_v11 = vld [vmem:[#allocation7 + $0x114] sm:$0xf]  ;;  %5042 = vmatpush.bf16.msra.mxu0 %v9364_v13  ;;  %v4615_v30 = vpop.f32.mrf.mxu3 }
 0x5f0   : > { %v9073_v22 = vld [vmem:[#allocation7 + $0x130] sm:$0xf0]  ;;  %17239 = vst [vmem:[#allocation88_spill] sm:$0xff] %v14036_v48  ;;  %v4616_v15 = vadd.f32 %v4615_v30, %v14016_v6 }
 0x5f1   : > { %4867 = vmatmul.bf16.gmra.mxu0 %v13507_v35  ;;  %v9076_v44 = vor.u32 %v10585_v11, %v9073_v22  ;;  %5091 = vmatpush.bf16.msrb.mxu1 %v9620_v10  ;;  %v10777_v43 = vld [vmem:[#allocation7 + $0x714] sm:$0xf] }
 0x5f2   : > { %4916 = vmatmul.bf16.gmra.mxu1 %v13509_v28  ;;  %v4716_v20 = vpop.f32.mrf.mxu1  ;;  %v4665_v27 = vadd.f32 %v4664_v3, %v4616_v15  ;;  %v9841_v25 = vld [vmem:[#allocation7 + $0x730] sm:$0xf0] }
 0x5f3   : > { %4818 = vmatmul.bf16.gmra.mxu3 %v13481_v34  ;;  %4965 = vmatmul.bf16.gmra.mxu2 %v13513_v2  ;;  %v9844_v60 = vor.u32 %v10777_v43, %v9841_v25  ;;  %v10649_v26 = vld [vmem:[#allocation7 + $0x314] sm:$0xf] }
 0x5f4   : > { %4994 = vmatpush.bf16.msra.mxu3 %v9076_v44  ;;  %v11062_v5 = vpop.eup %11061  ;;  %v9329_v54 = vld [vmem:[#allocation7 + $0x330] sm:$0xf0]  ;;  %v4714_v33 = vadd.f32 %v4713_v40, %v4665_v27  ;;  %v14043_v44 = vld [vmem:[#allocation8 + $0x1b] sm:$0xff] }
 0x5f5   : > { %v6104_v7 = vmul.f32 %v11062_v5, %v6077_v55  ;;  %v4667_v50 = vpop.f32.mrf.mxu0  ;;  %v10713_v46 = vld [vmem:[#allocation7 + $0x514] sm:$0xf]  ;;  %v9332_v37 = vor.u32 %v10649_v26, %v9329_v54  ;;  %5141 = vmatpush.bf16.msra.mxu2 %v9844_v60  ;;  %vm6110_vm8 = vweird.f32 %v11062_v5  ;;  %v6166_v40 = vperm.slane %v14043_v44, 2 }
 0x5f6   : > { %v9585_v13 = vld [vmem:[#allocation7 + $0x530] sm:$0xf0]  ;;  %v14039_v11 = vadd.f32 %v4762_v19, %v4714_v33  ;;  %v4765_v14 = vpop.f32.mrf.mxu2  ;;  %vm6111_vm15 = vmor %vm6109_vm14, %vm6110_vm8 }
 0x5f7   : > { %v6105_v58 = vmul.f32 %v11062_v5, %v6104_v7  ;;  %v9588_v16 = vor.u32 %v10713_v46, %v9585_v13  ;;  %5043 = vmatpush.bf16.msra.mxu0 %v9332_v37  ;;  %v4618_v3 = vpop.f32.mrf.mxu3  ;;  %v10577_v43 = vld [vmem:[#allocation7 + $0xd4] sm:$0xf] }
 0x5f8   : > { %17240 = vst [vmem:[#allocation89_spill] sm:$0xff] %v14039_v11  ;;  %v4619_v30 = vadd.f32 %v4618_v3, %v14016_v6  ;;  %v9041_v25 = vld [vmem:[#allocation7 + $0xf0] sm:$0xf0] }
 0x5f9   : > { %v6106_v10 = vmul.f32 0.5, %v6105_v58  ;;  %5092 = vmatpush.bf16.msrb.mxu1 %v9588_v16  ;;  %v9044_v60 = vor.u32 %v10577_v43, %v9041_v25  ;;  %v10769_v16 = vld [vmem:[#allocation7 + $0x6d4] sm:$0xf] }
 0x5fa   : > { %v4718_v7 = vpop.f32.mrf.mxu1  ;;  %v4668_v27 = vadd.f32 %v4667_v50, %v4619_v30  ;;  %v10641_v3 = vld [vmem:[#allocation7 + $0x2d4] sm:$0xf] }
 0x5fb   : > { %v6107_v22 = vsub.f32 1.5, %v6106_v10  ;;  %4995 = vmatpush.bf16.msra.mxu3 %v9044_v60  ;;  %v9297_v30 = vld [vmem:[#allocation7 + $0x2f0] sm:$0xf0] }
 0x5fc   : > { %v4717_v54 = vadd.f32 %v4716_v20, %v4668_v27  ;;  %v9553_v27 = vld [vmem:[#allocation7 + $0x4f0] sm:$0xf0] }
 0x5fd   : > { %v6108_v19 = vmul.f32 %v11062_v5, %v6107_v22  ;;  %v4669_v15 = vpop.f32.mrf.mxu0  ;;  %v9809_v22 = vld [vmem:[#allocation7 + $0x6f0] sm:$0xf0] }
 0x5fe   : > { %v14054_v33 = vadd.f32 %v4765_v14, %v4717_v54  ;;  %v4767_v37 = vpop.f32.mrf.mxu2  ;;  %v9300_v14 = vor.u32 %v10641_v3, %v9297_v30 }
 0x5ff   : > { %v6112_v58 = vsel %vm6111_vm15, %v11062_v5, %v6108_v19  ;;  %v4620_v55 = vpop.f32.mrf.mxu3  ;;  %v10705_v19 = vld [vmem:[#allocation7 + $0x4d4] sm:$0xf] }
 0x600   : > { %v14049_v26 = vmul.f32 %v6166_v40, %v6112_v58  ;;  %17242 = vst [vmem:[#allocation91_spill] sm:$0xff] %v14054_v33  ;;  %v4621_v13 = vadd.f32 %v4620_v55, %v14016_v6  ;;  %v9812_v40 = vor.u32 %v10769_v16, %v9809_v22  ;;  %v9556_v43 = vor.u32 %v10705_v19, %v9553_v27  ;;  %v9009_v16 = vld [vmem:[#allocation7 + $0xb0] sm:$0xf0] }
 0x601   : > { %4872 = vmatmul.bf16.gmra.mxu0 %v13424_v23 }
 0x602   : > { %4921 = vmatmul.bf16.gmra.mxu1 %v17202_v59  ;;  %v14052_v46 = vperm.slane %v14049_v26, 0  ;;  %v4721_v5 = vpop.f32.mrf.mxu1  ;;  %v4670_v20 = vadd.f32 %v4669_v15, %v4621_v13  ;;  %5142 = vmatpush.bf16.msra.mxu2 %v9812_v40 }
 0x603   : > { %4823 = vmatmul.bf16.gmra.mxu3 %v13422_v1  ;;  %4970 = vmatmul.bf16.gmra.mxu2 %v17203_v61 }
 0x604   : > { %17241 = vst [vmem:[#allocation90_spill] sm:$0xff] %v14052_v46  ;;  %v14058_v50 = vmul.f32 %v14052_v46, %v14007_v36  ;;  %v4719_v25 = vadd.f32 %v4718_v7, %v4670_v20  ;;  %5044 = vmatpush.bf16.msra.mxu0 %v9300_v14  ;;  %5093 = vmatpush.bf16.msrb.mxu1 %v9556_v43  ;;  %v10569_v7 = vld [vmem:[#allocation7 + $0x94] sm:$0xf] }
 0x605   : > { %v4672_v10 = vpop.f32.mrf.mxu0  ;;  %v9012_v22 = vor.u32 %v10569_v7, %v9009_v16  ;;  %v10761_v43 = vld [vmem:[#allocation7 + $0x694] sm:$0xf] }
 0x606   : > { %17243 = vst [vmem:[#allocation92_spill] sm:$0xff] %v14058_v50  ;;  %v14061_v36 = vadd.f32 %v4767_v37, %v4719_v25  ;;  %v4770_v60 = vpop.f32.mrf.mxu2  ;;  %v9777_v25 = vld [vmem:[#allocation7 + $0x6b0] sm:$0xf0] }
 0x607   : > { %v4623_v58 = vpop.f32.mrf.mxu3  ;;  %4996 = vmatpush.bf16.msra.mxu3 %v9012_v22  ;;  %v10697_v50 = vld [vmem:[#allocation7 + $0x494] sm:$0xf] }
 0x608   : > { %17244 = vst [vmem:[#allocation93_spill] sm:$0xff] %v14061_v36  ;;  %v4624_v15 = vadd.f32 %v4623_v58, %v14016_v6  ;;  %v10633_v58 = vld [vmem:[#allocation7 + $0x294] sm:$0xf] }
 0x609   : > { %v9521_v46 = vld [vmem:[#allocation7 + $0x4b0] sm:$0xf0] }
 0x60a   : > { %v4723_v55 = vpop.f32.mrf.mxu1  ;;  %v4673_v13 = vadd.f32 %v4672_v10, %v4624_v15  ;;  %v9780_v10 = vor.u32 %v10761_v43, %v9777_v25  ;;  %v9265_v15 = vld [vmem:[#allocation7 + $0x2b0] sm:$0xf0] }
 0x60b   : > { %v9268_v7 = vor.u32 %v10633_v58, %v9265_v15 }
 0x60c   : > { %v4722_v37 = vadd.f32 %v4721_v5, %v4673_v13  ;;  %v9524_v5 = vor.u32 %v10697_v50, %v9521_v46  ;;  %5143 = vmatpush.bf16.msra.mxu2 %v9780_v10  ;;  %v10561_v46 = vld [vmem:[#allocation7 + $0x54] sm:$0xf] }
 0x60d   : > { %v4674_v54 = vpop.f32.mrf.mxu0  ;;  %5045 = vmatpush.bf16.msra.mxu0 %v9268_v7  ;;  %v10753_v7 = vld [vmem:[#allocation7 + $0x654] sm:$0xf] }
 0x60e   : > { %v14068_v3 = vadd.f32 %v4770_v60, %v4722_v37  ;;  %v4772_v40 = vpop.f32.mrf.mxu2  ;;  %5094 = vmatpush.bf16.msrb.mxu1 %v9524_v5  ;;  %v9745_v5 = vld [vmem:[#allocation7 + $0x670] sm:$0xf0] }
 0x60f   : > { %v4625_v20 = vpop.f32.mrf.mxu3 }
 0x610   : > { %17245 = vst [vmem:[#allocation94_spill] sm:$0xff] %v14068_v3  ;;  %v4626_v30 = vadd.f32 %v4625_v20, %v14016_v6  ;;  %v17247_v20 = vld [vmem:[#allocation35_spill] sm:$0xff] }
 0x611   : > { %4877 = vmatmul.bf16.gmra.mxu0 %v17223_v47 }
 0x612   : > { %4926 = vmatmul.bf16.gmra.mxu1 %v17224_v12  ;;  %v4726_v27 = vpop.f32.mrf.mxu1  ;;  %v4675_v14 = vadd.f32 %v4674_v54, %v4626_v30 }
 0x613   : > { %4828 = vmatmul.bf16.gmra.mxu3 %v13462_v51  ;;  %4975 = vmatmul.bf16.gmra.mxu2 %v17225_v62 }
 0x614   : > { %v4724_v18 = vadd.f32 %v4723_v55, %v4675_v14 }
 0x615   : > { %v4677_v19 = vpop.f32.mrf.mxu0 }
 0x616   : > { %v14071_v60 = vadd.f32 %v4772_v40, %v4724_v18  ;;  %v4775_v16 = vpop.f32.mrf.mxu2  ;;  %v8977_v18 = vld [vmem:[#allocation7 + $0x70] sm:$0xf0] }
 0x617   : > { %v4628_v13 = vpop.f32.mrf.mxu3  ;;  %v8980_v50 = vor.u32 %v10561_v46, %v8977_v18 }
 0x618   : > { %17246 = vst [vmem:[#allocation95_spill] sm:$0xff] %v14071_v60  ;;  %v4629_v54 = vadd.f32 %v4628_v13, %v14016_v6  ;;  %v10625_v13 = vld [vmem:[#allocation7 + $0x254] sm:$0xf] }
 0x619   : > { %4997 = vmatpush.bf16.msra.mxu3 %v8980_v50  ;;  %v17250_v50 = vld [vmem:[#allocation38_spill] sm:$0xff] }
 0x61a   : > { %v4728_v37 = vpop.f32.mrf.mxu1  ;;  %v4678_v55 = vadd.f32 %v4677_v19, %v4629_v54  ;;  %v9748_v19 = vor.u32 %v10753_v7, %v9745_v5  ;;  %v9233_v54 = vld [vmem:[#allocation7 + $0x270] sm:$0xf0] }
 0x61b   : > { %v9236_v46 = vor.u32 %v10625_v13, %v9233_v54 }
 0x61c   : > { %v4727_v40 = vadd.f32 %v4726_v27, %v4678_v55  ;;  %5144 = vmatpush.bf16.msra.mxu2 %v9748_v19 }
 0x61d   : > { %v4679_v22 = vpop.f32.mrf.mxu0  ;;  %5046 = vmatpush.bf16.msra.mxu0 %v9236_v46 }
 0x61e   : > { %v14078_v30 = vadd.f32 %v4775_v16, %v4727_v40  ;;  %v4777_v43 = vpop.f32.mrf.mxu2 }
 0x61f   : > { %v4630_v14 = vpop.f32.mrf.mxu3 }
 0x620   : > { %17248 = vst [vmem:[#allocation96_spill] sm:$0xff] %v14078_v30  ;;  %v4631_v25 = vadd.f32 %v4630_v14, %v14016_v6 }
 0x621   : > { %4882 = vmatmul.bf16.gmra.mxu0 %v13491_v42 }
 0x622   : > { %4931 = vmatmul.bf16.gmra.mxu1 %v17228_v32  ;;  %v4731_v10 = vpop.f32.mrf.mxu1  ;;  %v4680_v15 = vadd.f32 %v4679_v22, %v4631_v25  ;;  %v9489_v32 = vld [vmem:[#allocation7 + $0x470] sm:$0xf0] }
 0x623   : > { %4833 = vmatmul.bf16.gmra.mxu3 %v13489_v8  ;;  %4980 = vmatmul.bf16.gmra.mxu2 %v17247_v20  ;;  %v10689_v20 = vld [vmem:[#allocation7 + $0x454] sm:$0xf] }
 0x624   : > { %v4729_v42 = vadd.f32 %v4728_v37, %v4680_v15  ;;  %v9492_v27 = vor.u32 %v10689_v20, %v9489_v32  ;;  %v17251_v25 = vld [vmem:[#allocation25_spill] sm:$0xff] }
 0x625   : > { %v4682_v58 = vpop.f32.mrf.mxu0  ;;  %v10553_v32 = vld [vmem:[#allocation7 + $0x14] sm:$0xf] }
 0x626   : > { %v14081_v16 = vadd.f32 %v4777_v43, %v4729_v42  ;;  %5095 = vmatpush.bf16.msrb.mxu1 %v9492_v27  ;;  %v4780_v18 = vpop.f32.mrf.mxu2  ;;  %v8945_v42 = vld [vmem:[#allocation7 + $0x30] sm:$0xf0] }
 0x627   : > { %v4633_v55 = vpop.f32.mrf.mxu3  ;;  %v8948_v20 = vor.u32 %v10553_v32, %v8945_v42  ;;  %v10745_v27 = vld [vmem:[#allocation7 + $0x614] sm:$0xf] }
 0x628   : > { %17249 = vst [vmem:[#allocation97_spill] sm:$0xff] %v14081_v16  ;;  %v4634_v22 = vadd.f32 %v4633_v55, %v14016_v6  ;;  %v9713_v55 = vld [vmem:[#allocation7 + $0x630] sm:$0xf0] }
 0x629   : > { %4998 = vmatpush.bf16.msra.mxu3 %v8948_v20 }
 0x62a   : > { %v4733_v14 = vpop.f32.mrf.mxu1  ;;  %v4683_v37 = vadd.f32 %v4682_v58, %v4634_v22  ;;  %v9716_v58 = vor.u32 %v10745_v27, %v9713_v55  ;;  %v9201_v22 = vld [vmem:[#allocation7 + $0x230] sm:$0xf0] }
 0x62c   : > { %v4732_v43 = vadd.f32 %v4731_v10, %v4683_v37  ;;  %5145 = vmatpush.bf16.msra.mxu2 %v9716_v58 }
 0x62d   : > { %v4684_v40 = vpop.f32.mrf.mxu0 }
 0x62e   : > { %v14088_v15 = vadd.f32 %v4780_v18, %v4732_v43  ;;  %v4782_v5 = vpop.f32.mrf.mxu2 }
 0x62f   : > { %v4635_v7 = vpop.f32.mrf.mxu3 }
 0x630   : > { %17252 = vst [vmem:[#allocation98_spill] sm:$0xff] %v14088_v15  ;;  %v4636_v13 = vadd.f32 %v4635_v7, %v14016_v6 }
 0x631   : > { %4887 = vmatmul.bf16.gmra.mxu0 %v13529_v29  ;;  %v9457_v29 = vld [vmem:[#allocation7 + $0x430] sm:$0xf0] }
 0x632   : > { %4936 = vmatmul.bf16.gmra.mxu1 %v17250_v50  ;;  %v4736_v54 = vpop.f32.mrf.mxu1  ;;  %v4685_v46 = vadd.f32 %v4684_v40, %v4636_v13  ;;  %v10617_v50 = vld [vmem:[#allocation7 + $0x214] sm:$0xf] }
 0x633   : > { %4838 = vmatmul.bf16.gmra.mxu3 %v13522_v45  ;;  %4985 = vmatmul.bf16.gmra.mxu2 %v17251_v25  ;;  %v10681_v25 = vld [vmem:[#allocation7 + $0x414] sm:$0xf]  ;;  %v9204_v32 = vor.u32 %v10617_v50, %v9201_v22 }
 0x634   : > { %v4734_v45 = vadd.f32 %v4733_v14, %v4685_v46  ;;  %v9460_v10 = vor.u32 %v10681_v25, %v9457_v29  ;;  %v5766_v29 = vmul.f32 %v14029_v9, %v14029_v9  ;;  %v5642_v14 = vadd.f32 %v14029_v9, %v14020_v49  ;;  %v9879_v9 = vld [vmem:[#allocation7 + $0x758] sm:$0xf] }
 0x635   : > { %v4687_v19 = vpop.f32.mrf.mxu0  ;;  %5047 = vmatpush.bf16.msra.mxu0 %v9204_v32  ;;  %v5774_v25 = vmul.f32 %v14036_v48, %v14036_v48  ;;  %v5782_v46 = vmul.f32 %v14039_v11, %v14039_v11  ;;  %v5790_v32 = vmul.f32 %v14054_v33, %v14054_v33 }
 0x636   : > { %v14091_v18 = vadd.f32 %v4782_v5, %v4734_v45  ;;  %5096 = vmatpush.bf16.msrb.mxu1 %v9460_v10  ;;  %v4785_v42 = vpop.f32.mrf.mxu2  ;;  %v5758_v45 = vmul.f32 %v14020_v49, %v14020_v49  ;;  %v5643_v13 = vadd.f32 %v5642_v14, %v14036_v48 }
 0x637   : > { %v4638_v37 = vpop.f32.mrf.mxu3 }
 0x638   : > { %17253 = vst [vmem:[#allocation99_spill] sm:$0xff] %v14091_v18  ;;  %v4639_v40 = vadd.f32 %v4638_v37, %v14016_v6  ;;  %v5946_v5 = vadd.f32 %v5766_v29, %v5758_v45  ;;  %v5644_v22 = vadd.f32 %v5643_v13, %v14039_v11 }
 0x63a   : > { %v4738_v43 = vpop.f32.mrf.mxu1  ;;  %v4688_v50 = vadd.f32 %v4687_v19, %v4639_v40  ;;  %v5947_v58 = vadd.f32 %v5946_v5, %v5774_v25  ;;  %v5645_v29 = vadd.f32 %v5644_v22, %v14054_v33  ;;  %v5806_v25 = vmul.f32 %v14068_v3, %v14068_v3  ;;  %v9911_v33 = vld [vmem:[#allocation7 + $0x798] sm:$0xf] }
 0x63c   : > { %v4737_v7 = vadd.f32 %v4736_v54, %v4688_v50  ;;  %v5948_v40 = vadd.f32 %v5947_v58, %v5782_v46  ;;  %v5798_v50 = vmul.f32 %v14061_v36, %v14061_v36  ;;  %v5646_v14 = vadd.f32 %v5645_v29, %v14061_v36  ;;  %v10606_v36 = vld [vmem:[#allocation7 + $0x1b4] sm:$0xf0] }
 0x63d   : > { %v4689_v20 = vpop.f32.mrf.mxu0 }
 0x63e   : > { %v14109_v27 = vadd.f32 %v4785_v42, %v4737_v7  ;;  %v4787_v55 = vpop.f32.mrf.mxu2  ;;  %v5949_v45 = vadd.f32 %v5948_v40, %v5790_v32  ;;  %v5647_v13 = vadd.f32 %v5646_v14, %v14068_v3 }
 0x63f   : > { %v4640_v19 = vpop.f32.mrf.mxu3 }
 0x640   : > { %17254 = vst [vmem:[#allocation100_spill] sm:$0xff] %v14109_v27  ;;  %v4641_v10 = vadd.f32 %v4640_v19, %v14016_v6  ;;  %v5950_v5 = vadd.f32 %v5949_v45, %v5798_v50  ;;  %v5814_v19 = vmul.f32 %v14071_v60, %v14071_v60  ;;  %v5648_v32 = vadd.f32 %v5647_v13, %v14071_v60 }
 0x641   : > { %5048 = vmatmul.bf16.vlgmr.msra.gmra.mxu0 %v13196_v31 }
 0x642   : > { %5097 = vmatmul.bf16.vlgmr.msrb.gmra.mxu1 %v17176_v56  ;;  %v4741_v54 = vpop.f32.mrf.mxu1  ;;  %v4690_v42 = vadd.f32 %v4689_v20, %v4641_v10  ;;  %v5951_v20 = vadd.f32 %v5950_v5, %v5806_v25  ;;  %v5822_v10 = vmul.f32 %v14078_v30, %v14078_v30  ;;  %v5649_v50 = vadd.f32 %v5648_v32, %v14078_v30 }
 0x643   : > { %4999 = vmatmul.bf16.vlgmr.msra.gmra.mxu3 %v13194_v52  ;;  %5146 = vmatmul.bf16.vlgmr.msra.gmra.mxu2 %v17177_v63 }
 0x644   : > { %v4739_v7 = vadd.f32 %v4738_v43, %v4690_v42  ;;  %v5830_v42 = vmul.f32 %v14081_v16, %v14081_v16  ;;  %v5650_v25 = vadd.f32 %v5649_v50, %v14081_v16 }
 0x645   : > { %v4692_v37 = vpop.f32.mrf.mxu0 }
 0x646   : > { %v14124_v46 = vadd.f32 %v4787_v55, %v4739_v7  ;;  %v4790_v22 = vpop.f32.mrf.mxu2  ;;  %v5952_v55 = vadd.f32 %v5951_v20, %v5814_v19  ;;  %v5838_v7 = vmul.f32 %v14088_v15, %v14088_v15  ;;  %v5846_v19 = vmul.f32 %v14091_v18, %v14091_v18 }
 0x647   : > { %v4643_v58 = vpop.f32.mrf.mxu3 }
 0x648   : > { %17255 = vst [vmem:[#allocation101_spill] sm:$0xff] %v14124_v46  ;;  %v4644_v43 = vadd.f32 %v4643_v58, %v14016_v6  ;;  %v5953_v14 = vadd.f32 %v5952_v55, %v5822_v10  ;;  %v5651_v58 = vadd.f32 %v5650_v25, %v14088_v15  ;;  %v5854_v10 = vmul.f32 %v14109_v27, %v14109_v27 }
 0x64a   : > { %v4743_v29 = vpop.f32.mrf.mxu1  ;;  %v4693_v45 = vadd.f32 %v4692_v37, %v4644_v43  ;;  %v5954_v13 = vadd.f32 %v5953_v14, %v5830_v42  ;;  %v5652_v43 = vadd.f32 %v5651_v58, %v14091_v18  ;;  %v5862_v14 = vmul.f32 %v14124_v46, %v14124_v46 }
 0x64c   : > { %v4742_v5 = vadd.f32 %v4741_v54, %v4693_v45  ;;  %v5955_v37 = vadd.f32 %v5954_v13, %v5838_v7  ;;  %v5653_v45 = vadd.f32 %v5652_v43, %v14109_v27 }
 0x64d   : > { %v4694_v40 = vpop.f32.mrf.mxu0 }
 0x64e   : > { %v14143_v20 = vadd.f32 %v4790_v22, %v4742_v5  ;;  %v4792_v30 = vpop.f32.mrf.mxu2  ;;  %v5956_v42 = vadd.f32 %v5955_v37, %v5846_v19  ;;  %v5654_v5 = vadd.f32 %v5653_v45, %v14124_v46 }
 0x64f   : > { %v4645_v32 = vpop.f32.mrf.mxu3 }
 0x650   : > { %17256 = vst [vmem:[#allocation102_spill] sm:$0xff] %v14143_v20  ;;  %v4646_v55 = vadd.f32 %v4645_v32, %v14016_v6  ;;  %v5957_v25 = vadd.f32 %v5956_v42, %v5854_v10  ;;  %v5870_v7 = vmul.f32 %v14143_v20, %v14143_v20  ;;  %v5655_v18 = vadd.f32 %v5654_v5, %v14143_v20  ;;  %v14158_v32 = vld [vmem:[#allocation8 + $0x13] sm:$0xff] }
 0x651   : > { %5053 = vmatmul.bf16.gmra.mxu0 %v13322_v0  ;;  %v14161_v19 = vperm.slane %v14158_v32, 4 }
 0x652   : > { %5102 = vmatmul.bf16.gmra.mxu1 %v13338_v21  ;;  %v4902_v54 = vpop.f32.mrf.mxu1  ;;  %v4695_v22 = vadd.f32 %v4694_v40, %v4646_v55  ;;  %v5958_v58 = vadd.f32 %v5957_v25, %v5862_v14 }
 0x653   : > { %5004 = vmatmul.bf16.gmra.mxu3 %v13320_v41  ;;  %5151 = vmatmul.bf16.gmra.mxu2 %v13345_v57 }
 0x654   : > { %v4744_v13 = vadd.f32 %v4743_v29, %v4695_v22  ;;  %v5959_v40 = vadd.f32 %v5958_v58, %v5870_v7 }
 0x655   : > { %v4853_v50 = vpop.f32.mrf.mxu0 }
 0x656   : > { %v14156_v6 = vadd.f32 %v4792_v30, %v4744_v13  ;;  %v4951_v43 = vpop.f32.mrf.mxu2 }
 0x657   : > { %v4804_v37 = vpop.f32.mrf.mxu3 }
 0x658   : > { %v5656_v10 = vadd.f32 %v5655_v18, %v14156_v6  ;;  %v5878_v29 = vmul.f32 %v14156_v6, %v14156_v6  ;;  %v4805_v55 = vadd.f32 %v4804_v37, %v14161_v19 }
 0x65a   : > { %v4904_v30 = vpop.f32.mrf.mxu1  ;;  %v5657_v45 = vrot.slane %v5656_v10, 4  ;;  %v5960_v14 = vadd.f32 %v5959_v40, %v5878_v29  ;;  %v4854_v22 = vadd.f32 %v4853_v50, %v4805_v55 }
 0x65c   : > { %v5658_v25 = vadd.f32 %v5657_v45, %v5656_v10  ;;  %v5961_v5 = vrot.slane %v5960_v14, 4  ;;  %v4903_v7 = vadd.f32 %v4902_v54, %v4854_v22  ;;  %v10614_v22 = vld [vmem:[#allocation7 + $0x1f4] sm:$0xf0] }
 0x65d   : > { %v4855_v42 = vpop.f32.mrf.mxu0 }
 0x65e   : > { %v5659_v18 = vrot.slane %v5658_v25, 2  ;;  %v5962_v13 = vadd.f32 %v5961_v5, %v5960_v14  ;;  %v14171_v58 = vadd.f32 %v4951_v43, %v4903_v7  ;;  %v4953_v37 = vpop.f32.mrf.mxu2  ;;  %v9175_v14 = vld [vmem:[#allocation7 + $0x1d8] sm:$0xf] }
 0x65f   : > { %v4806_v20 = vpop.f32.mrf.mxu3 }
 0x660   : > { %17257 = vst [vmem:[#allocation103_spill] sm:$0xff] %v14171_v58  ;;  %v5660_v46 = vadd.f32 %v5659_v18, %v5658_v25  ;;  %v5963_v27 = vrot.slane %v5962_v13, 2  ;;  %v4807_v15 = vadd.f32 %v4806_v20, %v14161_v19  ;;  %v9943_v25 = vld [vmem:[#allocation7 + $0x7d8] sm:$0xf] }
 0x661   : > { %5058 = vmatmul.bf16.gmra.mxu0 %v13364_v4 }
 0x662   : > { %5107 = vmatmul.bf16.gmra.mxu1 %v13379_v38  ;;  %v4907_v60 = vpop.f32.mrf.mxu1  ;;  %v5661_v3 = vrot.slane %v5660_v46, 1  ;;  %v5964_v40 = vadd.f32 %v5963_v27, %v5962_v13  ;;  %v4856_v50 = vadd.f32 %v4855_v42, %v4807_v15  ;;  %v9176_v15 = vor.u32 %v10614_v22, %v9175_v14  ;;  %v10806_v27 = vld [vmem:[#allocation7 + $0x7f4] sm:$0xf0] }
 0x663   : > { %5009 = vmatmul.bf16.gmra.mxu3 %v13362_v24  ;;  %5156 = vmatmul.bf16.gmra.mxu2 %v13417_v17  ;;  %v10678_v42 = vld [vmem:[#allocation7 + $0x3f4] sm:$0xf0] }
 0x664   : > { %v5662_v29 = vadd.f32 %v5661_v3, %v5660_v46  ;;  %v5965_v55 = vrot.slane %v5964_v40, 1  ;;  %v4905_v10 = vadd.f32 %v4904_v30, %v4856_v50  ;;  %v9431_v46 = vld [vmem:[#allocation7 + $0x3d8] sm:$0xf]  ;;  %v9944_v30 = vor.u32 %v10806_v27, %v9943_v25  ;;  %5187 = vmatpush.bf16.msrb.mxu3 %v9176_v15 }
 0x665   : > { %v4858_v16 = vpop.f32.mrf.mxu0  ;;  %v9432_v18 = vor.u32 %v10678_v42, %v9431_v46  ;;  %v9687_v13 = vld [vmem:[#allocation7 + $0x5d8] sm:$0xf] }
 0x666   : > { %v14175_v54 = vmul.f32 %v5662_v29, %v17193_v53  ;;  %v5966_v45 = vadd.f32 %v5965_v55, %v5964_v40  ;;  %v14177_v43 = vadd.f32 %v4953_v37, %v4905_v10  ;;  %v4956_v7 = vpop.f32.mrf.mxu2  ;;  %v10742_v37 = vld [vmem:[#allocation7 + $0x5f4] sm:$0xf0]  ;;  %5334 = vmatpush.bf16.msrb.mxu2 %v9944_v30 }
 0x667   : > { %v4809_v5 = vpop.f32.mrf.mxu3  ;;  %v9143_v40 = vld [vmem:[#allocation7 + $0x198] sm:$0xf]  ;;  %5236 = vmatpush.bf16.msrb.mxu0 %v9432_v18 }
 0x668   : > { %17258 = vst [vmem:[#allocation104_spill] sm:$0xff] %v14177_v43  ;;  %v6054_v20 = vmul.f32 %v5966_v45, %v17193_v53  ;;  %v6062_v3 = vmul.f32 %v14175_v54, %v14175_v54  ;;  %v4810_v50 = vadd.f32 %v4809_v5, %v14161_v19  ;;  %v9688_v45 = vor.u32 %v10742_v37, %v9687_v13  ;;  %v10798_v14 = vld [vmem:[#allocation7 + $0x7b4] sm:$0xf0] }
 0x669   : > { %v9144_v22 = vor.u32 %v10606_v36, %v9143_v40  ;;  %v9399_v27 = vld [vmem:[#allocation7 + $0x398] sm:$0xf]  ;;  %v9912_v11 = vor.u32 %v10798_v14, %v9911_v33 }
 0x66a   : > { %v4909_v55 = vpop.f32.mrf.mxu1  ;;  %v6070_v10 = vsub.f32 %v6054_v20, %v6062_v3  ;;  %v4859_v25 = vadd.f32 %v4858_v16, %v4810_v50  ;;  %v10670_v46 = vld [vmem:[#allocation7 + $0x3b4] sm:$0xf0]  ;;  %5285 = vmatpush.bf16.msra.mxu1 %v9688_v45 }
 0x66b   : > { %v9655_v42 = vld [vmem:[#allocation7 + $0x598] sm:$0xf]  ;;  %v9400_v48 = vor.u32 %v10670_v46, %v9399_v27  ;;  %5188 = vmatpush.bf16.msrb.mxu3 %v9144_v22  ;;  %5335 = vmatpush.bf16.msrb.mxu2 %v9912_v11 }
 0x66c   : > { %v14186_v5 = vadd.f32 0.8, %v6070_v10  ;;  %v10734_v20 = vld [vmem:[#allocation7 + $0x5b4] sm:$0xf0]  ;;  %v4908_v15 = vadd.f32 %v4907_v60, %v4859_v25 }
 0x66d   : > { %v4860_v29 = vpop.f32.mrf.mxu0  ;;  %v9111_v3 = vld [vmem:[#allocation7 + $0x158] sm:$0xf]  ;;  %v9656_v13 = vor.u32 %v10734_v20, %v9655_v42  ;;  %5237 = vmatpush.bf16.msrb.mxu0 %v9400_v48 }
 0x66e   : > { %v10598_v37 = vld [vmem:[#allocation7 + $0x174] sm:$0xf0]  ;;  %11063 = vrsqrt.f32 %v14186_v5  ;;  %v14190_v50 = vadd.f32 %v4956_v7, %v4908_v15  ;;  %v4958_v10 = vpop.f32.mrf.mxu2  ;;  %vm6119_vm1 = vweird.f32 %v14186_v5 }
 0x66f   : > { %v10790_v30 = vld [vmem:[#allocation7 + $0x774] sm:$0xf0]  ;;  %v9112_v36 = vor.u32 %v10598_v37, %v9111_v3  ;;  %v4811_v33 = vpop.f32.mrf.mxu3  ;;  %5286 = vmatpush.bf16.msra.mxu1 %v9656_v13 }
 0x670   : > { %v9367_v16 = vld [vmem:[#allocation7 + $0x358] sm:$0xf]  ;;  %17259 = vst [vmem:[#allocation105_spill] sm:$0xff] %v14190_v50  ;;  %v9880_v45 = vor.u32 %v10790_v30, %v9879_v9  ;;  %v4812_v46 = vadd.f32 %v4811_v33, %v14161_v19 }
 0x671   : > { %5063 = vmatmul.bf16.gmra.mxu0 %v13507_v35  ;;  %v10662_v18 = vld [vmem:[#allocation7 + $0x374] sm:$0xf0]  ;;  %5189 = vmatpush.bf16.msrb.mxu3 %v9112_v36 }
 0x672   : > { %5112 = vmatmul.bf16.gmra.mxu1 %v13509_v28  ;;  %v9623_v40 = vld [vmem:[#allocation7 + $0x558] sm:$0xf]  ;;  %v9368_v14 = vor.u32 %v10662_v18, %v9367_v16  ;;  %v4912_v20 = vpop.f32.mrf.mxu1  ;;  %v4861_v3 = vadd.f32 %v4860_v29, %v4812_v46  ;;  %5336 = vmatpush.bf16.msrb.mxu2 %v9880_v45 }
 0x673   : > { %5014 = vmatmul.bf16.gmra.mxu3 %v13481_v34  ;;  %5161 = vmatmul.bf16.gmra.mxu2 %v13513_v2  ;;  %v10726_v60 = vld [vmem:[#allocation7 + $0x574] sm:$0xf0] }
 0x674   : > { %v9079_v25 = vld [vmem:[#allocation7 + $0x118] sm:$0xf]  ;;  %v9624_v42 = vor.u32 %v10726_v60, %v9623_v40  ;;  %5238 = vmatpush.bf16.msrb.mxu0 %v9368_v14  ;;  %v11064_v18 = vpop.eup %11063  ;;  %v4910_v49 = vadd.f32 %v4909_v55, %v4861_v3 }
 0x675   : > { %v10590_v27 = vld [vmem:[#allocation7 + $0x134] sm:$0xf0]  ;;  %v4863_v22 = vpop.f32.mrf.mxu0  ;;  %v6114_v40 = vmul.f32 %v11064_v18, %v14186_v5  ;;  %vm6120_vm0 = vweird.f32 %v11064_v18 }
 0x676   : > { %v9080_v37 = vor.u32 %v10590_v27, %v9079_v25  ;;  %v9847_v7 = vld [vmem:[#allocation7 + $0x718] sm:$0xf]  ;;  %5287 = vmatpush.bf16.msra.mxu1 %v9624_v42  ;;  %v14194_v60 = vadd.f32 %v4958_v10, %v4910_v49  ;;  %v4961_v25 = vpop.f32.mrf.mxu2  ;;  %vm6121_vm2 = vmor %vm6119_vm1, %vm6120_vm0  ;;  %vm6216_vm0 = vcmask 1046534   ;;  %vm6218_vm1 = vcmask 1045508  }
 0x677   : > { %v10782_v15 = vld [vmem:[#allocation7 + $0x734] sm:$0xf0]  ;;  %v6115_v29 = vmul.f32 %v11064_v18, %v6114_v40  ;;  %v4814_v36 = vpop.f32.mrf.mxu3 }
 0x678   : > { %v9335_v11 = vld [vmem:[#allocation7 + $0x318] sm:$0xf]  ;;  %v9848_v48 = vor.u32 %v10782_v15, %v9847_v7  ;;  %17260 = vst [vmem:[#allocation106_spill] sm:$0xff] %v14194_v60  ;;  %5190 = vmatpush.bf16.msrb.mxu3 %v9080_v37  ;;  %v4815_v45 = vadd.f32 %v4814_v36, %v14161_v19  ;;  %v6167_v37 = vperm.slane %v14043_v44, 3 }
 0x679   : > { %v10654_v9 = vld [vmem:[#allocation7 + $0x334] sm:$0xf0]  ;;  %v6116_v14 = vmul.f32 0.5, %v6115_v29 }
 0x67a   : > { %v9591_v30 = vld [vmem:[#allocation7 + $0x518] sm:$0xf]  ;;  %v9336_v13 = vor.u32 %v10654_v9, %v9335_v11  ;;  %5337 = vmatpush.bf16.msrb.mxu2 %v9848_v48  ;;  %v4914_v27 = vpop.f32.mrf.mxu1  ;;  %v4864_v46 = vadd.f32 %v4863_v22, %v4815_v45  ;;  %v6190_v11 = vmul.f32 %v14049_v26, %v14024_v39 }
 0x67b   : > { %v10718_v16 = vld [vmem:[#allocation7 + $0x534] sm:$0xf0]  ;;  %v6117_v42 = vsub.f32 1.5, %v6116_v14 }
 0x67c   : > { %v9592_v33 = vor.u32 %v10718_v16, %v9591_v30  ;;  %5239 = vmatpush.bf16.msrb.mxu0 %v9336_v13  ;;  %v9047_v49 = vld [vmem:[#allocation7 + $0xd8] sm:$0xf]  ;;  %v4913_v7 = vadd.f32 %v4912_v20, %v4864_v46 }
 0x67d   : > { %v4865_v55 = vpop.f32.mrf.mxu0  ;;  %v10582_v10 = vld [vmem:[#allocation7 + $0xf4] sm:$0xf0]  ;;  %v6118_v15 = vmul.f32 %v11064_v18, %v6117_v42 }
 0x67e   : > { %5288 = vmatpush.bf16.msra.mxu1 %v9592_v33  ;;  %v9048_v3 = vor.u32 %v10582_v10, %v9047_v49  ;;  %v14205_v22 = vadd.f32 %v4961_v25, %v4913_v7  ;;  %v4963_v30 = vpop.f32.mrf.mxu2  ;;  %v6205_v33 = vrot.slane %v6190_v11, 6  ;;  %v9815_v36 = vld [vmem:[#allocation7 + $0x6d8] sm:$0xf] }
 0x67f   : > { %v6122_v48 = vsel %vm6121_vm2, %v11064_v18, %v6118_v15  ;;  %v4816_v9 = vpop.f32.mrf.mxu3  ;;  %v10774_v45 = vld [vmem:[#allocation7 + $0x6f4] sm:$0xf0]  ;;  %vm6220_vm2 = vcmask 1043456  }
 0x680   : > { %5191 = vmatpush.bf16.msrb.mxu3 %v9048_v3  ;;  %17261 = vst [vmem:[#allocation107_spill] sm:$0xff] %v14205_v22  ;;  %v6183_v16 = vmul.f32 %v6167_v37, %v6122_v48  ;;  %v4817_v13 = vadd.f32 %v4816_v9, %v14161_v19  ;;  %v9816_v39 = vor.u32 %v10774_v45, %v9815_v36  ;;  %v9303_v26 = vld [vmem:[#allocation7 + $0x2d8] sm:$0xf] }
 0x681   : > { %5068 = vmatmul.bf16.gmra.mxu0 %v13424_v23  ;;  %v10646_v25 = vld [vmem:[#allocation7 + $0x2f4] sm:$0xf0] }
 0x682   : > { %5117 = vmatmul.bf16.gmra.mxu1 %v17202_v59  ;;  %v4917_v20 = vpop.f32.mrf.mxu1  ;;  %v6191_v40 = vmul.f32 %v6183_v16, %v14175_v54  ;;  %v14209_v29 = vperm.slane %v6183_v16, 0  ;;  %v4866_v5 = vadd.f32 %v4865_v55, %v4817_v13  ;;  %v9559_v14 = vld [vmem:[#allocation7 + $0x4d8] sm:$0xf]  ;;  %v9304_v10 = vor.u32 %v10646_v25, %v9303_v26  ;;  %5338 = vmatpush.bf16.msrb.mxu2 %v9816_v39  ;;  %v17265_v55 = vld [vmem:[#allocation76_spill] sm:$0xff] }
 0x683   : > { %5019 = vmatmul.bf16.gmra.mxu3 %v13422_v1  ;;  %5166 = vmatmul.bf16.gmra.mxu2 %v17203_v61  ;;  %v10710_v42 = vld [vmem:[#allocation7 + $0x4f4] sm:$0xf0] }
 0x684   : > { %17262 = vst [vmem:[#allocation108_spill] sm:$0xff] %v14209_v29  ;;  %v6206_v18 = vrot.slane %v6191_v40, 5  ;;  %v14213_v46 = vmul.f32 %v14209_v29, %v14156_v6  ;;  %v4915_v49 = vadd.f32 %v4914_v27, %v4866_v5  ;;  %v9560_v3 = vor.u32 %v10710_v42, %v9559_v14  ;;  %5240 = vmatpush.bf16.msrb.mxu0 %v9304_v10  ;;  %v10574_v16 = vld [vmem:[#allocation7 + $0xb4] sm:$0xf0] }
 0x685   : > { %v4868_v44 = vpop.f32.mrf.mxu0  ;;  %v9783_v14 = vld [vmem:[#allocation7 + $0x698] sm:$0xf] }
 0x686   : > { %17263 = vst [vmem:[#allocation109_spill] sm:$0xff] %v14213_v46  ;;  %v6212_v54 = vsel %vm2151_vm5, %v6205_v33, %v6206_v18  ;;  %v14216_v37 = vadd.f32 %v4963_v30, %v4915_v49  ;;  %v4966_v11 = vpop.f32.mrf.mxu2  ;;  %5289 = vmatpush.bf16.msra.mxu1 %v9560_v3  ;;  %v9015_v30 = vld [vmem:[#allocation7 + $0x98] sm:$0xf] }
 0x687   : > { %v14220_v7 = vsel %vm2153_vm6, %v17265_v55, %v6212_v54  ;;  %v4819_v15 = vpop.f32.mrf.mxu3  ;;  %v9016_v13 = vor.u32 %v10574_v16, %v9015_v30  ;;  %v9271_v18 = vld [vmem:[#allocation7 + $0x298] sm:$0xf]  ;;  %v17269_v16 = vld [vmem:[#allocation48_spill] sm:$0xff] }
 0x688   : > { %17264 = vst [vmem:[#allocation110_spill] sm:$0xff] %v14216_v37  ;;  %v4820_v6 = vadd.f32 %v4819_v15, %v14161_v19  ;;  %v10638_v10 = vld [vmem:[#allocation7 + $0x2b4] sm:$0xf0] }
 0x689   : > { %17266 = vst [vmem:[#allocation76_spill] sm:$0xff] %v14220_v7  ;;  %5192 = vmatpush.bf16.msrb.mxu3 %v9016_v13  ;;  %v9527_v42 = vld [vmem:[#allocation7 + $0x498] sm:$0xf]  ;;  %v9272_v54 = vor.u32 %v10638_v10, %v9271_v18 }
 0x68a   : > { %v4919_v48 = vpop.f32.mrf.mxu1  ;;  %v4869_v9 = vadd.f32 %v4868_v44, %v4820_v6  ;;  %v10766_v44 = vld [vmem:[#allocation7 + $0x6b4] sm:$0xf0] }
 0x68b   : > { %v9784_v49 = vor.u32 %v10766_v44, %v9783_v14  ;;  %v10702_v3 = vld [vmem:[#allocation7 + $0x4b4] sm:$0xf0]  ;;  %5241 = vmatpush.bf16.msrb.mxu0 %v9272_v54 }
 0x68c   : > { %v4918_v33 = vadd.f32 %v4917_v20, %v4869_v9  ;;  %v9528_v55 = vor.u32 %v10702_v3, %v9527_v42  ;;  %v9239_v54 = vld [vmem:[#allocation7 + $0x258] sm:$0xf] }
 0x68d   : > { %v4870_v27 = vpop.f32.mrf.mxu0  ;;  %5339 = vmatpush.bf16.msrb.mxu2 %v9784_v49  ;;  %v17276_v7 = vld [vmem:[#allocation38_spill] sm:$0xff] }
 0x68e   : > { %v14227_v40 = vadd.f32 %v4966_v11, %v4918_v33  ;;  %v4968_v36 = vpop.f32.mrf.mxu2  ;;  %5290 = vmatpush.bf16.msra.mxu1 %v9528_v55  ;;  %v17270_v33 = vld [vmem:[#allocation43_spill] sm:$0xff]  ;;  %v9719_v29 = vld [vmem:[#allocation7 + $0x618] sm:$0xf] }
 0x68f   : > { %v4821_v5 = vpop.f32.mrf.mxu3 }
 0x690   : > { %17267 = vst [vmem:[#allocation111_spill] sm:$0xff] %v14227_v40  ;;  %v4822_v45 = vadd.f32 %v4821_v5, %v14161_v19  ;;  %v10566_v5 = vld [vmem:[#allocation7 + $0x74] sm:$0xf0] }
 0x691   : > { %5073 = vmatmul.bf16.gmra.mxu0 %v17223_v47 }
 0x692   : > { %5122 = vmatmul.bf16.gmra.mxu1 %v17224_v12  ;;  %v4922_v26 = vpop.f32.mrf.mxu1  ;;  %v4871_v25 = vadd.f32 %v4870_v27, %v4822_v45 }
 0x693   : > { %5024 = vmatmul.bf16.gmra.mxu3 %v13462_v51  ;;  %5171 = vmatmul.bf16.gmra.mxu2 %v17225_v62 }
 0x694   : > { %v4920_v20 = vadd.f32 %v4919_v48, %v4871_v25  ;;  %v8983_v48 = vld [vmem:[#allocation7 + $0x58] sm:$0xf]  ;;  %v17271_v25 = vld [vmem:[#allocation35_spill] sm:$0xff] }
 0x695   : > { %v4873_v39 = vpop.f32.mrf.mxu0  ;;  %v8984_v45 = vor.u32 %v10566_v5, %v8983_v48  ;;  %v10694_v48 = vld [vmem:[#allocation7 + $0x474] sm:$0xf0] }
 0x696   : > { %v14230_v15 = vadd.f32 %v4968_v36, %v4920_v20  ;;  %v4971_v6 = vpop.f32.mrf.mxu2  ;;  %v9751_v20 = vld [vmem:[#allocation7 + $0x658] sm:$0xf] }
 0x697   : > { %v4824_v11 = vpop.f32.mrf.mxu3  ;;  %5193 = vmatpush.bf16.msrb.mxu3 %v8984_v45 }
 0x698   : > { %17268 = vst [vmem:[#allocation112_spill] sm:$0xff] %v14230_v15  ;;  %v4825_v9 = vadd.f32 %v4824_v11, %v14161_v19  ;;  %v10630_v11 = vld [vmem:[#allocation7 + $0x274] sm:$0xf0] }
 0x69a   : > { %v4924_v30 = vpop.f32.mrf.mxu1  ;;  %v4874_v13 = vadd.f32 %v4873_v39, %v4825_v9  ;;  %v10758_v39 = vld [vmem:[#allocation7 + $0x674] sm:$0xf0] }
 0x69b   : > { %v9752_v55 = vor.u32 %v10758_v39, %v9751_v20  ;;  %v9495_v9 = vld [vmem:[#allocation7 + $0x458] sm:$0xf]  ;;  %v17275_v20 = vld [vmem:[#allocation41_spill] sm:$0xff] }
 0x69c   : > { %v4923_v36 = vadd.f32 %v4922_v26, %v4874_v13  ;;  %v9240_v13 = vor.u32 %v10630_v11, %v9239_v54  ;;  %v9496_v5 = vor.u32 %v10694_v48, %v9495_v9 }
 0x69d   : > { %v4875_v27 = vpop.f32.mrf.mxu0  ;;  %5340 = vmatpush.bf16.msrb.mxu2 %v9752_v55  ;;  %v17277_v55 = vld [vmem:[#allocation25_spill] sm:$0xff] }
 0x69e   : > { %v14237_v14 = vadd.f32 %v4971_v6, %v4923_v36  ;;  %v4973_v18 = vpop.f32.mrf.mxu2  ;;  %5242 = vmatpush.bf16.msrb.mxu0 %v9240_v13  ;;  %5291 = vmatpush.bf16.msra.mxu1 %v9496_v5 }
 0x69f   : > { %v4826_v44 = vpop.f32.mrf.mxu3 }
 0x6a0   : > { %17272 = vst [vmem:[#allocation48_spill] sm:$0xff] %v14237_v14  ;;  %v4827_v49 = vadd.f32 %v4826_v44, %v14161_v19 }
 0x6a1   : > { %5078 = vmatmul.bf16.gmra.mxu0 %v17269_v16 }
 0x6a2   : > { %5127 = vmatmul.bf16.gmra.mxu1 %v17270_v33  ;;  %v4927_v42 = vpop.f32.mrf.mxu1  ;;  %v4876_v3 = vadd.f32 %v4875_v27, %v4827_v49  ;;  %v17274_v27 = vld [vmem:[#allocation52_spill] sm:$0xff] }
 0x6a3   : > { %5029 = vmatmul.bf16.gmra.mxu3 %v13489_v8  ;;  %5176 = vmatmul.bf16.gmra.mxu2 %v17271_v25 }
 0x6a4   : > { %v4925_v26 = vadd.f32 %v4924_v30, %v4876_v3  ;;  %v8951_v30 = vld [vmem:[#allocation7 + $0x18] sm:$0xf] }
 0x6a5   : > { %v4878_v10 = vpop.f32.mrf.mxu0  ;;  %v10558_v3 = vld [vmem:[#allocation7 + $0x34] sm:$0xf0] }
 0x6a6   : > { %v14240_v6 = vadd.f32 %v4973_v18, %v4925_v26  ;;  %v4976_v36 = vpop.f32.mrf.mxu2  ;;  %v8952_v54 = vor.u32 %v10558_v3, %v8951_v30  ;;  %v10686_v30 = vld [vmem:[#allocation7 + $0x434] sm:$0xf0] }
 0x6a7   : > { %v4829_v45 = vpop.f32.mrf.mxu3 }
 0x6a8   : > { %17273 = vst [vmem:[#allocation43_spill] sm:$0xff] %v14240_v6  ;;  %v4830_v44 = vadd.f32 %v4829_v45, %v14161_v19  ;;  %5194 = vmatpush.bf16.msrb.mxu3 %v8952_v54 }
 0x6aa   : > { %v4929_v46 = vpop.f32.mrf.mxu1  ;;  %v4879_v39 = vadd.f32 %v4878_v10, %v4830_v44  ;;  %v10750_v10 = vld [vmem:[#allocation7 + $0x634] sm:$0xf0] }
 0x6ab   : > { %v9207_v44 = vld [vmem:[#allocation7 + $0x218] sm:$0xf]  ;;  %v9720_v53 = vor.u32 %v10750_v10, %v9719_v29 }
 0x6ac   : > { %v4928_v18 = vadd.f32 %v4927_v42, %v4879_v39 }
 0x6ad   : > { %v4880_v49 = vpop.f32.mrf.mxu0  ;;  %5341 = vmatpush.bf16.msrb.mxu2 %v9720_v53 }
 0x6ae   : > { %v14247_v11 = vadd.f32 %v4976_v36, %v4928_v18  ;;  %v4978_v48 = vpop.f32.mrf.mxu2 }
 0x6af   : > { %v4831_v9 = vpop.f32.mrf.mxu3 }
 0x6b0   : > { %17278 = vst [vmem:[#allocation35_spill] sm:$0xff] %v14247_v11  ;;  %v4832_v26 = vadd.f32 %v4831_v9, %v14161_v19 }
 0x6b1   : > { %5083 = vmatmul.bf16.gmra.mxu0 %v17275_v20  ;;  %v9463_v20 = vld [vmem:[#allocation7 + $0x418] sm:$0xf] }
 0x6b2   : > { %5132 = vmatmul.bf16.gmra.mxu1 %v17276_v7  ;;  %v4932_v5 = vpop.f32.mrf.mxu1  ;;  %v4881_v45 = vadd.f32 %v4880_v49, %v4832_v26  ;;  %v10622_v7 = vld [vmem:[#allocation7 + $0x234] sm:$0xf0]  ;;  %v9464_v3 = vor.u32 %v10686_v30, %v9463_v20 }
 0x6b3   : > { %5034 = vmatmul.bf16.gmra.mxu3 %v17274_v27  ;;  %5181 = vmatmul.bf16.gmra.mxu2 %v17277_v55  ;;  %v9208_v39 = vor.u32 %v10622_v7, %v9207_v44 }
 0x6b4   : > { %v4930_v42 = vadd.f32 %v4929_v46, %v4881_v45  ;;  %5292 = vmatpush.bf16.msra.mxu1 %v9464_v3 }
 0x6b5   : > { %v4883_v13 = vpop.f32.mrf.mxu0  ;;  %5243 = vmatpush.bf16.msrb.mxu0 %v9208_v39 }
 0x6b6   : > { %v14250_v36 = vadd.f32 %v4978_v48, %v4930_v42  ;;  %v4981_v18 = vpop.f32.mrf.mxu2 }
 0x6b7   : > { %v4834_v54 = vpop.f32.mrf.mxu3 }
 0x6b8   : > { %17279 = vst [vmem:[#allocation52_spill] sm:$0xff] %v14250_v36  ;;  %v4835_v9 = vadd.f32 %v4834_v54, %v14161_v19 }
 0x6ba   : > { %v4934_v26 = vpop.f32.mrf.mxu1  ;;  %v4884_v29 = vadd.f32 %v4883_v13, %v4835_v9 }
 0x6bc   : > { %v4933_v46 = vadd.f32 %v4932_v5, %v4884_v29 }
 0x6bd   : > { %v4885_v49 = vpop.f32.mrf.mxu0 }
 0x6be   : > { %v14257_v53 = vadd.f32 %v4981_v18, %v4933_v46  ;;  %v4983_v20 = vpop.f32.mrf.mxu2 }
 0x6bf   : > { %v4836_v7 = vpop.f32.mrf.mxu3 }
 0x6c0   : > { %17280 = vst [vmem:[#allocation25_spill] sm:$0xff] %v14257_v53  ;;  %v4837_v48 = vadd.f32 %v4836_v7, %v14161_v19 }
 0x6c1   : > { %5244 = vmatmul.bf16.vlgmr.msrb.gmra.mxu0 %v13196_v31 }
 0x6c2   : > { %5293 = vmatmul.bf16.vlgmr.msra.gmra.mxu1 %v17176_v56  ;;  %v4937_v10 = vpop.f32.mrf.mxu1  ;;  %v4886_v44 = vadd.f32 %v4885_v49, %v4837_v48  ;;  %v10786_v56 = vld [vmem:[#allocation7 + $0x75c] sm:$0xf] }
 0x6c3   : > { %5195 = vmatmul.bf16.vlgmr.msrb.gmra.mxu3 %v13194_v52  ;;  %5342 = vmatmul.bf16.vlgmr.msrb.gmra.mxu2 %v17177_v63  ;;  %v9113_v63 = vld [vmem:[#allocation7 + $0x178] sm:$0xf0] }
 0x6c4   : > { %v4935_v30 = vadd.f32 %v4934_v26, %v4886_v44 }
 0x6c5   : > { %v4888_v45 = vpop.f32.mrf.mxu0 }
 0x6c6   : > { %v14260_v42 = vadd.f32 %v4983_v20, %v4935_v30  ;;  %v4986_v3 = vpop.f32.mrf.mxu2 }
 0x6c7   : > { %v4839_v39 = vpop.f32.mrf.mxu3 }
 0x6c8   : > { %17281 = vst [vmem:[#allocation113_spill] sm:$0xff] %v14260_v42  ;;  %v4840_v13 = vadd.f32 %v4839_v39, %v14161_v19  ;;  %v14273_v39 = vperm.slane %v14158_v32, 5 }
 0x6ca   : > { %v4939_v54 = vpop.f32.mrf.mxu1  ;;  %v4889_v18 = vadd.f32 %v4888_v45, %v4840_v13 }
 0x6cc   : > { %v4938_v9 = vadd.f32 %v4937_v10, %v4889_v18 }
 0x6cd   : > { %v4890_v5 = vpop.f32.mrf.mxu0 }
 0x6ce   : > { %v14267_v49 = vadd.f32 %v4986_v3, %v4938_v9  ;;  %v4988_v29 = vpop.f32.mrf.mxu2 }
 0x6cf   : > { %v4841_v26 = vpop.f32.mrf.mxu3 }
 0x6d0   : > { %17282 = vst [vmem:[#allocation114_spill] sm:$0xff] %v14267_v49  ;;  %v4842_v46 = vadd.f32 %v4841_v26, %v14161_v19 }
 0x6d1   : > { %5249 = vmatmul.bf16.gmra.mxu0 %v13322_v0  ;;  %v9145_v0 = vld [vmem:[#allocation7 + $0x1b8] sm:$0xf0] }
 0x6d2   : > { %5298 = vmatmul.bf16.gmra.mxu1 %v13338_v21  ;;  %v5098_v20 = vpop.f32.mrf.mxu1  ;;  %v4891_v48 = vadd.f32 %v4890_v5, %v4842_v46 }
 0x6d3   : > { %5200 = vmatmul.bf16.gmra.mxu3 %v13320_v41  ;;  %5347 = vmatmul.bf16.gmra.mxu2 %v13345_v57 }
 0x6d4   : > { %v4940_v44 = vadd.f32 %v4939_v54, %v4891_v48 }
 0x6d5   : > { %v5049_v7 = vpop.f32.mrf.mxu0 }
 0x6d6   : > { %v14270_v30 = vadd.f32 %v4988_v29, %v4940_v44  ;;  %v5147_v13 = vpop.f32.mrf.mxu2  ;;  %v10610_v44 = vld [vmem:[#allocation7 + $0x1dc] sm:$0xf] }
 0x6d7   : > { %v5000_v45 = vpop.f32.mrf.mxu3 }
 0x6d8   : > { %17283 = vst [vmem:[#allocation115_spill] sm:$0xff] %v14270_v30  ;;  %v5001_v10 = vadd.f32 %v5000_v45, %v14273_v39  ;;  %v9177_v45 = vld [vmem:[#allocation7 + $0x1f8] sm:$0xf0] }
 0x6d9   : > { %v9180_v57 = vor.u32 %v10610_v44, %v9177_v45  ;;  %v9401_v44 = vld [vmem:[#allocation7 + $0x3b8] sm:$0xf0] }
 0x6da   : > { %v5100_v18 = vpop.f32.mrf.mxu1  ;;  %v5050_v19 = vadd.f32 %v5049_v7, %v5001_v10  ;;  %v9945_v7 = vld [vmem:[#allocation7 + $0x7f8] sm:$0xf0] }
 0x6db   : > { %v10674_v10 = vld [vmem:[#allocation7 + $0x3dc] sm:$0xf]  ;;  %5383 = vmatpush.bf16.msra.mxu3 %v9180_v57 }
 0x6dc   : > { %v5099_v5 = vadd.f32 %v5098_v20, %v5050_v19  ;;  %v9433_v20 = vld [vmem:[#allocation7 + $0x3f8] sm:$0xf0] }
 0x6dd   : > { %v5051_v3 = vpop.f32.mrf.mxu0  ;;  %v10738_v19 = vld [vmem:[#allocation7 + $0x5dc] sm:$0xf] }
 0x6de   : > { %v14280_v54 = vadd.f32 %v5147_v13, %v5099_v5  ;;  %v5149_v9 = vpop.f32.mrf.mxu2  ;;  %v9436_v5 = vor.u32 %v10674_v10, %v9433_v20  ;;  %v10730_v57 = vld [vmem:[#allocation7 + $0x59c] sm:$0xf] }
 0x6df   : > { %v5002_v32 = vpop.f32.mrf.mxu3  ;;  %v9657_v10 = vld [vmem:[#allocation7 + $0x5b8] sm:$0xf0] }
 0x6e0   : > { %17284 = vst [vmem:[#allocation116_spill] sm:$0xff] %v14280_v54  ;;  %v5003_v26 = vadd.f32 %v5002_v32, %v14273_v39  ;;  %v10602_v32 = vld [vmem:[#allocation7 + $0x19c] sm:$0xf]  ;;  %5432 = vmatpush.bf16.msra.mxu0 %v9436_v5 }
 0x6e1   : > { %5254 = vmatmul.bf16.gmra.mxu0 %v13364_v4  ;;  %v10802_v4 = vld [vmem:[#allocation7 + $0x7dc] sm:$0xf] }
 0x6e2   : > { %5303 = vmatmul.bf16.gmra.mxu1 %v13379_v38  ;;  %v5103_v46 = vpop.f32.mrf.mxu1  ;;  %v5052_v48 = vadd.f32 %v5051_v3, %v5003_v26  ;;  %v9948_v38 = vor.u32 %v10802_v4, %v9945_v7  ;;  %v10794_v26 = vld [vmem:[#allocation7 + $0x79c] sm:$0xf]  ;;  %v9148_v4 = vor.u32 %v10602_v32, %v9145_v0 }
 0x6e3   : > { %5205 = vmatmul.bf16.gmra.mxu3 %v13362_v24  ;;  %5352 = vmatmul.bf16.gmra.mxu2 %v13417_v17  ;;  %v9689_v17 = vld [vmem:[#allocation7 + $0x5f8] sm:$0xf0] }
 0x6e4   : > { %v5101_v24 = vadd.f32 %v5100_v18, %v5052_v48  ;;  %v9692_v21 = vor.u32 %v10738_v19, %v9689_v17  ;;  %5530 = vmatpush.bf16.msra.mxu2 %v9948_v38  ;;  %v9913_v18 = vld [vmem:[#allocation7 + $0x7b8] sm:$0xf0]  ;;  %v9660_v19 = vor.u32 %v10730_v57, %v9657_v10  ;;  %5384 = vmatpush.bf16.msra.mxu3 %v9148_v4 }
 0x6e5   : > { %v5054_v29 = vpop.f32.mrf.mxu0  ;;  %v10666_v48 = vld [vmem:[#allocation7 + $0x39c] sm:$0xf] }
 0x6e6   : > { %v14283_v13 = vadd.f32 %v5149_v9, %v5101_v24  ;;  %v5152_v3 = vpop.f32.mrf.mxu2  ;;  %5481 = vmatpush.bf16.msrb.mxu1 %v9692_v21  ;;  %v9916_v9 = vor.u32 %v10794_v26, %v9913_v18  ;;  %v10594_v17 = vld [vmem:[#allocation7 + $0x15c] sm:$0xf]  ;;  %v9404_v20 = vor.u32 %v10666_v48, %v9401_v44 }
 0x6e7   : > { %v5005_v41 = vpop.f32.mrf.mxu3  ;;  %v9881_v54 = vld [vmem:[#allocation7 + $0x778] sm:$0xf0]  ;;  %v9116_v5 = vor.u32 %v10594_v17, %v9113_v63 }
 0x6e8   : > { %17285 = vst [vmem:[#allocation117_spill] sm:$0xff] %v14283_v13  ;;  %v5006_v45 = vadd.f32 %v5005_v41, %v14273_v39  ;;  %v10658_v21 = vld [vmem:[#allocation7 + $0x35c] sm:$0xf]  ;;  %5531 = vmatpush.bf16.msra.mxu2 %v9916_v9  ;;  %v9884_v41 = vor.u32 %v10786_v56, %v9881_v54  ;;  %5433 = vmatpush.bf16.msra.mxu0 %v9404_v20 }
 0x6e9   : > { %v9369_v0 = vld [vmem:[#allocation7 + $0x378] sm:$0xf0]  ;;  %5385 = vmatpush.bf16.msra.mxu3 %v9116_v5 }
 0x6ea   : > { %v5105_v24 = vpop.f32.mrf.mxu1  ;;  %v5055_v38 = vadd.f32 %v5054_v29, %v5006_v45  ;;  %v10722_v32 = vld [vmem:[#allocation7 + $0x55c] sm:$0xf]  ;;  %5482 = vmatpush.bf16.msrb.mxu1 %v9660_v19  ;;  %v9372_v44 = vor.u32 %v10658_v21, %v9369_v0 }
 0x6eb   : > { %v9625_v26 = vld [vmem:[#allocation7 + $0x578] sm:$0xf0] }
 0x6ec   : > { %v10586_v18 = vld [vmem:[#allocation7 + $0x11c] sm:$0xf]  ;;  %v5104_v48 = vadd.f32 %v5103_v46, %v5055_v38  ;;  %v9628_v57 = vor.u32 %v10722_v32, %v9625_v26  ;;  %5532 = vmatpush.bf16.msra.mxu2 %v9884_v41  ;;  %5434 = vmatpush.bf16.msra.mxu0 %v9372_v44 }
 0x6ed   : > { %v5056_v7 = vpop.f32.mrf.mxu0  ;;  %v9081_v10 = vld [vmem:[#allocation7 + $0x138] sm:$0xf0] }
 0x6ee   : > { %v14290_v63 = vadd.f32 %v5152_v3, %v5104_v48  ;;  %v5154_v4 = vpop.f32.mrf.mxu2  ;;  %v9084_v45 = vor.u32 %v10586_v18, %v9081_v10  ;;  %5483 = vmatpush.bf16.msrb.mxu1 %v9628_v57  ;;  %v10778_v17 = vld [vmem:[#allocation7 + $0x71c] sm:$0xf] }
 0x6ef   : > { %v5007_v29 = vpop.f32.mrf.mxu3  ;;  %v9849_v20 = vld [vmem:[#allocation7 + $0x738] sm:$0xf0] }
 0x6f0   : > { %17286 = vst [vmem:[#allocation118_spill] sm:$0xff] %v14290_v63  ;;  %v5008_v56 = vadd.f32 %v5007_v29, %v14273_v39  ;;  %v10650_v19 = vld [vmem:[#allocation7 + $0x31c] sm:$0xf]  ;;  %5386 = vmatpush.bf16.msra.mxu3 %v9084_v45  ;;  %v9852_v38 = vor.u32 %v10778_v17, %v9849_v20 }
 0x6f1   : > { %5259 = vmatmul.bf16.gmra.mxu0 %v13507_v35  ;;  %v9337_v21 = vld [vmem:[#allocation7 + $0x338] sm:$0xf0] }
 0x6f2   : > { %5308 = vmatmul.bf16.gmra.mxu1 %v13509_v28  ;;  %v5108_v9 = vpop.f32.mrf.mxu1  ;;  %v5057_v46 = vadd.f32 %v5056_v7, %v5008_v56  ;;  %v10714_v3 = vld [vmem:[#allocation7 + $0x51c] sm:$0xf]  ;;  %v9340_v26 = vor.u32 %v10650_v19, %v9337_v21  ;;  %5533 = vmatpush.bf16.msra.mxu2 %v9852_v38 }
 0x6f3   : > { %5210 = vmatmul.bf16.gmra.mxu3 %v13481_v34  ;;  %5357 = vmatmul.bf16.gmra.mxu2 %v13513_v2  ;;  %v9593_v0 = vld [vmem:[#allocation7 + $0x538] sm:$0xf0] }
 0x6f4   : > { %v5106_v32 = vadd.f32 %v5105_v24, %v5057_v46  ;;  %v9596_v5 = vor.u32 %v10714_v3, %v9593_v0  ;;  %5435 = vmatpush.bf16.msra.mxu0 %v9340_v26  ;;  %v10578_v29 = vld [vmem:[#allocation7 + $0xdc] sm:$0xf] }
 0x6f5   : > { %v5059_v54 = vpop.f32.mrf.mxu0  ;;  %v9049_v45 = vld [vmem:[#allocation7 + $0xf8] sm:$0xf0] }
 0x6f6   : > { %v14293_v18 = vadd.f32 %v5154_v4, %v5106_v32  ;;  %5484 = vmatpush.bf16.msrb.mxu1 %v9596_v5  ;;  %v5157_v48 = vpop.f32.mrf.mxu2  ;;  %v9052_v24 = vor.u32 %v10578_v29, %v9049_v45  ;;  %v10770_v21 = vld [vmem:[#allocation7 + $0x6dc] sm:$0xf] }
 0x6f7   : > { %v5010_v41 = vpop.f32.mrf.mxu3  ;;  %v9817_v3 = vld [vmem:[#allocation7 + $0x6f8] sm:$0xf0] }
 0x6f8   : > { %17287 = vst [vmem:[#allocation119_spill] sm:$0xff] %v14293_v18  ;;  %v5011_v7 = vadd.f32 %v5010_v41, %v14273_v39  ;;  %5387 = vmatpush.bf16.msra.mxu3 %v9052_v24  ;;  %v9820_v0 = vor.u32 %v10770_v21, %v9817_v3  ;;  %v10642_v32 = vld [vmem:[#allocation7 + $0x2dc] sm:$0xf] }
 0x6f9   : > { %v9305_v26 = vld [vmem:[#allocation7 + $0x2f8] sm:$0xf0] }
 0x6fa   : > { %v5110_v57 = vpop.f32.mrf.mxu1  ;;  %v5060_v10 = vadd.f32 %v5059_v54, %v5011_v7  ;;  %v9308_v41 = vor.u32 %v10642_v32, %v9305_v26  ;;  %v9561_v7 = vld [vmem:[#allocation7 + $0x4f8] sm:$0xf0]  ;;  %5534 = vmatpush.bf16.msra.mxu2 %v9820_v0 }
 0x6fb   : > { %v9017_v21 = vld [vmem:[#allocation7 + $0xb8] sm:$0xf0] }
 0x6fc   : > { %v5109_v56 = vadd.f32 %v5108_v9, %v5060_v10  ;;  %v10706_v9 = vld [vmem:[#allocation7 + $0x4dc] sm:$0xf]  ;;  %5436 = vmatpush.bf16.msra.mxu0 %v9308_v41 }
 0x6fd   : > { %v5061_v44 = vpop.f32.mrf.mxu0  ;;  %v10762_v41 = vld [vmem:[#allocation7 + $0x69c] sm:$0xf] }
 0x6fe   : > { %v14299_v4 = vadd.f32 %v5157_v48, %v5109_v56  ;;  %v5159_v17 = vpop.f32.mrf.mxu2  ;;  %v9564_v48 = vor.u32 %v10706_v9, %v9561_v7  ;;  %v9785_v7 = vld [vmem:[#allocation7 + $0x6b8] sm:$0xf0] }
 0x6ff   : > { %v5012_v46 = vpop.f32.mrf.mxu3 }
 0x700   : > { %17288 = vst [vmem:[#allocation120_spill] sm:$0xff] %v14299_v4  ;;  %v5013_v20 = vadd.f32 %v5012_v46, %v14273_v39  ;;  %5485 = vmatpush.bf16.msrb.mxu1 %v9564_v48  ;;  %v5767_v48 = vmul.f32 %v14177_v43, %v14177_v43 }
 0x701   : > { %5264 = vmatmul.bf16.gmra.mxu0 %v13424_v23 }
 0x702   : > { %5313 = vmatmul.bf16.gmra.mxu1 %v17202_v59  ;;  %v5113_v19 = vpop.f32.mrf.mxu1  ;;  %v5062_v38 = vadd.f32 %v5061_v44, %v5013_v20  ;;  %v10570_v20 = vld [vmem:[#allocation7 + $0x9c] sm:$0xf] }
 0x703   : > { %5215 = vmatmul.bf16.gmra.mxu3 %v13422_v1  ;;  %5362 = vmatmul.bf16.gmra.mxu2 %v17203_v61 }
 0x704   : > { %v5111_v5 = vadd.f32 %v5110_v57, %v5062_v38  ;;  %v9020_v57 = vor.u32 %v10570_v20, %v9017_v21  ;;  %v9529_v20 = vld [vmem:[#allocation7 + $0x4b8] sm:$0xf0] }
 0x705   : > { %v5064_v54 = vpop.f32.mrf.mxu0 }
 0x706   : > { %v14303_v10 = vadd.f32 %v5159_v17, %v5111_v5  ;;  %v5162_v45 = vpop.f32.mrf.mxu2  ;;  %5388 = vmatpush.bf16.msra.mxu3 %v9020_v57 }
 0x707   : > { %v5015_v29 = vpop.f32.mrf.mxu3 }
 0x708   : > { %17289 = vst [vmem:[#allocation121_spill] sm:$0xff] %v14303_v10  ;;  %v5016_v24 = vadd.f32 %v5015_v29, %v14273_v39 }
 0x70a   : > { %v5115_v56 = vpop.f32.mrf.mxu1  ;;  %v5065_v46 = vadd.f32 %v5064_v54, %v5016_v24  ;;  %v5663_v54 = vadd.f32 %v14177_v43, %v14171_v58  ;;  %v9273_v24 = vld [vmem:[#allocation7 + $0x2b8] sm:$0xf0] }
 0x70c   : > { %v5114_v38 = vadd.f32 %v5113_v19, %v5065_v46  ;;  %v10634_v19 = vld [vmem:[#allocation7 + $0x29c] sm:$0xf]  ;;  %v5664_v29 = vadd.f32 %v5663_v54, %v14190_v50 }
 0x70d   : > { %v5066_v44 = vpop.f32.mrf.mxu0  ;;  %v10698_v46 = vld [vmem:[#allocation7 + $0x49c] sm:$0xf]  ;;  %v9276_v57 = vor.u32 %v10634_v19, %v9273_v24 }
 0x70e   : > { %v14309_v17 = vadd.f32 %v5162_v45, %v5114_v38  ;;  %v5164_v0 = vpop.f32.mrf.mxu2  ;;  %v9788_v45 = vor.u32 %v10762_v41, %v9785_v7  ;;  %v9532_v38 = vor.u32 %v10698_v46, %v9529_v20  ;;  %v5783_v41 = vmul.f32 %v14194_v60, %v14194_v60 }
 0x70f   : > { %v5017_v3 = vpop.f32.mrf.mxu3  ;;  %5437 = vmatpush.bf16.msra.mxu0 %v9276_v57  ;;  %v5791_v46 = vmul.f32 %v14205_v22, %v14205_v22 }
 0x710   : > { %17290 = vst [vmem:[#allocation122_spill] sm:$0xff] %v14309_v17  ;;  %v5018_v32 = vadd.f32 %v5017_v3, %v14273_v39  ;;  %v5759_v3 = vmul.f32 %v14171_v58, %v14171_v58  ;;  %5535 = vmatpush.bf16.msra.mxu2 %v9788_v45  ;;  %5486 = vmatpush.bf16.msrb.mxu1 %v9532_v38  ;;  %v10820_v58 = vld [vmem:[%s16752_s5 + $0x64] sm:$0xf0] }
 0x711   : > { %5269 = vmatmul.bf16.gmra.mxu0 %v17223_v47  ;;  %v5799_v38 = vmul.f32 %v14216_v37, %v14216_v37 }
 0x712   : > { %5318 = vmatmul.bf16.gmra.mxu1 %v17224_v12  ;;  %v5118_v9 = vpop.f32.mrf.mxu1  ;;  %v5067_v5 = vadd.f32 %v5066_v44, %v5018_v32  ;;  %v5775_v44 = vmul.f32 %v14190_v50, %v14190_v50  ;;  %v5665_v32 = vadd.f32 %v5664_v29, %v14194_v60  ;;  %v5967_v54 = vadd.f32 %v5767_v48, %v5759_v3  ;;  %v10562_v48 = vld [vmem:[#allocation7 + $0x5c] sm:$0xf] }
 0x713   : > { %5220 = vmatmul.bf16.gmra.mxu3 %v13462_v51  ;;  %5367 = vmatmul.bf16.gmra.mxu2 %v17225_v62 }
 0x714   : > { %v5116_v21 = vadd.f32 %v5115_v56, %v5067_v5  ;;  %v5666_v56 = vadd.f32 %v5665_v32, %v14205_v22  ;;  %v5968_v24 = vadd.f32 %v5967_v54, %v5775_v44 }
 0x715   : > { %v5069_v26 = vpop.f32.mrf.mxu0 }
 0x716   : > { %v14323_v62 = vadd.f32 %v5164_v0, %v5116_v21  ;;  %v5167_v7 = vpop.f32.mrf.mxu2  ;;  %v5667_v29 = vadd.f32 %v5666_v56, %v14216_v37  ;;  %v8985_v21 = vld [vmem:[#allocation7 + $0x78] sm:$0xf0]  ;;  %v5969_v57 = vadd.f32 %v5968_v24, %v5783_v41 }
 0x717   : > { %v5020_v5 = vpop.f32.mrf.mxu3  ;;  %v8988_v44 = vor.u32 %v10562_v48, %v8985_v21  ;;  %v5823_v48 = vmul.f32 %v14237_v14, %v14237_v14 }
 0x718   : > { %17291 = vst [vmem:[#allocation123_spill] sm:$0xff] %v14323_v62  ;;  %v5021_v19 = vadd.f32 %v5020_v5, %v14273_v39  ;;  %v5668_v3 = vadd.f32 %v5667_v29, %v14227_v40  ;;  %v5970_v54 = vadd.f32 %v5969_v57, %v5791_v46 }
 0x719   : > { %5389 = vmatpush.bf16.msra.mxu3 %v8988_v44  ;;  %v10754_v44 = vld [vmem:[#allocation7 + $0x65c] sm:$0xf] }
 0x71a   : > { %v5120_v45 = vpop.f32.mrf.mxu1  ;;  %v5070_v20 = vadd.f32 %v5069_v26, %v5021_v19  ;;  %v5807_v26 = vmul.f32 %v14227_v40, %v14227_v40  ;;  %v5669_v56 = vadd.f32 %v5668_v3, %v14230_v15  ;;  %v5971_v41 = vadd.f32 %v5970_v54, %v5799_v38  ;;  %v9753_v38 = vld [vmem:[#allocation7 + $0x678] sm:$0xf0] }
 0x71b   : > { %v5815_v19 = vmul.f32 %v14230_v15, %v14230_v15  ;;  %v9756_v40 = vor.u32 %v10754_v44, %v9753_v38 }
 0x71c   : > { %v5119_v32 = vadd.f32 %v5118_v9, %v5070_v20  ;;  %v5670_v24 = vadd.f32 %v5669_v56, %v14237_v14  ;;  %v5972_v20 = vadd.f32 %v5971_v41, %v5807_v26  ;;  %v5831_v56 = vmul.f32 %v14240_v6, %v14240_v6  ;;  %v10690_v26 = vld [vmem:[#allocation7 + $0x45c] sm:$0xf] }
 0x71d   : > { %v5071_v0 = vpop.f32.mrf.mxu0  ;;  %v9497_v41 = vld [vmem:[#allocation7 + $0x478] sm:$0xf0]  ;;  %5536 = vmatpush.bf16.msra.mxu2 %v9756_v40 }
 0x71e   : > { %v14341_v5 = vadd.f32 %v5167_v7, %v5119_v32  ;;  %v5169_v29 = vpop.f32.mrf.mxu2  ;;  %v5671_v21 = vadd.f32 %v5670_v24, %v14240_v6  ;;  %v10626_v32 = vld [vmem:[#allocation7 + $0x25c] sm:$0xf]  ;;  %v5973_v54 = vadd.f32 %v5972_v20, %v5815_v19  ;;  %v9500_v22 = vor.u32 %v10690_v26, %v9497_v41  ;;  %v17294_v26 = vld [vmem:[#allocation41_spill] sm:$0xff] }
 0x71f   : > { %v5022_v9 = vpop.f32.mrf.mxu3 }
 0x720   : > { %17292 = vst [vmem:[#allocation124_spill] sm:$0xff] %v14341_v5  ;;  %v5023_v46 = vadd.f32 %v5022_v9, %v14273_v39  ;;  %v5672_v15 = vadd.f32 %v5671_v21, %v14247_v11  ;;  %v9241_v9 = vld [vmem:[#allocation7 + $0x278] sm:$0xf0]  ;;  %v5974_v24 = vadd.f32 %v5973_v54, %v5823_v48  ;;  %5487 = vmatpush.bf16.msrb.mxu1 %v9500_v22 }
 0x721   : > { %5274 = vmatmul.bf16.gmra.mxu0 %v17269_v16  ;;  %v9244_v14 = vor.u32 %v10626_v32, %v9241_v9  ;;  %v5847_v21 = vmul.f32 %v14250_v36, %v14250_v36  ;;  %v5855_v32 = vmul.f32 %v14257_v53, %v14257_v53  ;;  %v10554_v22 = vld [vmem:[#allocation7 + $0x1c] sm:$0xf] }
 0x722   : > { %5323 = vmatmul.bf16.gmra.mxu1 %v17270_v33  ;;  %v5123_v57 = vpop.f32.mrf.mxu1  ;;  %v5072_v3 = vadd.f32 %v5071_v0, %v5023_v46  ;;  %v5839_v0 = vmul.f32 %v14247_v11, %v14247_v11  ;;  %v5673_v46 = vadd.f32 %v5672_v15, %v14250_v36  ;;  %v5975_v20 = vadd.f32 %v5974_v24, %v5831_v56 }
 0x723   : > { %5225 = vmatmul.bf16.gmra.mxu3 %v13489_v8  ;;  %5372 = vmatmul.bf16.gmra.mxu2 %v17271_v25  ;;  %v5863_v56 = vmul.f32 %v14260_v42, %v14260_v42 }
 0x724   : > { %v5121_v37 = vadd.f32 %v5120_v45, %v5072_v3  ;;  %5438 = vmatpush.bf16.msra.mxu0 %v9244_v14  ;;  %v5674_v44 = vadd.f32 %v5673_v46, %v14257_v53  ;;  %v5976_v38 = vadd.f32 %v5975_v20, %v5839_v0  ;;  %v17295_v0 = vld [vmem:[#allocation38_spill] sm:$0xff] }
 0x725   : > { %v5074_v7 = vpop.f32.mrf.mxu0  ;;  %v10682_v53 = vld [vmem:[#allocation7 + $0x41c] sm:$0xf] }
 0x726   : > { %v14357_v19 = vadd.f32 %v5169_v29, %v5121_v37  ;;  %v5172_v3 = vpop.f32.mrf.mxu2  ;;  %v5675_v40 = vadd.f32 %v5674_v44, %v14260_v42  ;;  %v8953_v29 = vld [vmem:[#allocation7 + $0x38] sm:$0xf0]  ;;  %v5977_v54 = vadd.f32 %v5976_v38, %v5847_v21 }
 0x727   : > { %v5025_v45 = vpop.f32.mrf.mxu3  ;;  %v8956_v41 = vor.u32 %v10554_v22, %v8953_v29  ;;  %v9209_v42 = vld [vmem:[#allocation7 + $0x238] sm:$0xf0] }
 0x728   : > { %17293 = vst [vmem:[#allocation125_spill] sm:$0xff] %v14357_v19  ;;  %v5026_v48 = vadd.f32 %v5025_v45, %v14273_v39  ;;  %v5676_v9 = vadd.f32 %v5675_v40, %v14267_v49  ;;  %v5978_v46 = vadd.f32 %v5977_v54, %v5855_v32  ;;  %v5879_v45 = vmul.f32 %v14270_v30, %v14270_v30  ;;  %v10746_v54 = vld [vmem:[#allocation7 + $0x61c] sm:$0xf] }
 0x729   : > { %5390 = vmatpush.bf16.msra.mxu3 %v8956_v41  ;;  %v10618_v41 = vld [vmem:[#allocation7 + $0x21c] sm:$0xf] }
 0x72a   : > { %v5125_v15 = vpop.f32.mrf.mxu1  ;;  %v5075_v14 = vadd.f32 %v5074_v7, %v5026_v48  ;;  %v5871_v7 = vmul.f32 %v14267_v49, %v14267_v49  ;;  %v5677_v20 = vadd.f32 %v5676_v9, %v14270_v30  ;;  %v5979_v21 = vadd.f32 %v5978_v46, %v5863_v56  ;;  %v9721_v9 = vld [vmem:[#allocation7 + $0x638] sm:$0xf0] }
 0x72b   : > { %v9465_v56 = vld [vmem:[#allocation7 + $0x438] sm:$0xf0]  ;;  %v9212_v36 = vor.u32 %v10618_v41, %v9209_v42 }
 0x72c   : > { %v5124_v24 = vadd.f32 %v5123_v57, %v5075_v14  ;;  %v5980_v40 = vadd.f32 %v5979_v21, %v5871_v7  ;;  %v5678_v32 = vrot.slane %v5677_v20, 4  ;;  %v9468_v11 = vor.u32 %v10682_v53, %v9465_v56 }
 0x72d   : > { %v5076_v37 = vpop.f32.mrf.mxu0  ;;  %5439 = vmatpush.bf16.msra.mxu0 %v9212_v36  ;;  %v17298_v36 = vld [vmem:[#allocation116_spill] sm:$0xff] }
 0x72e   : > { %v14375_v44 = vadd.f32 %v5172_v3, %v5124_v24  ;;  %v5174_v38 = vpop.f32.mrf.mxu2  ;;  %v5981_v3 = vadd.f32 %v5980_v40, %v5879_v45  ;;  %v9724_v24 = vor.u32 %v10746_v54, %v9721_v9  ;;  %5488 = vmatpush.bf16.msrb.mxu1 %v9468_v11  ;;  %v5679_v7 = vadd.f32 %v5678_v32, %v5677_v20  ;;  %v17299_v32 = vld [vmem:[#allocation27_spill] sm:$0xff] }
 0x72f   : > { %v5027_v48 = vpop.f32.mrf.mxu3  ;;  %v5768_v40 = vmul.f32 %v14283_v13, %v14283_v13  ;;  %v5760_v11 = vmul.f32 %v17298_v36, %v17298_v36  ;;  %v5776_v20 = vmul.f32 %v14290_v63, %v14290_v63 }
 0x730   : > { %17296 = vst [vmem:[#allocation41_spill] sm:$0xff] %v14375_v44  ;;  %v5028_v57 = vadd.f32 %v5027_v48, %v14273_v39  ;;  %5537 = vmatpush.bf16.msra.mxu2 %v9724_v24  ;;  %v5982_v21 = vrot.slane %v5981_v3, 4  ;;  %v5680_v53 = vrot.slane %v5679_v7, 2 }
 0x731   : > { %5279 = vmatmul.bf16.gmra.mxu0 %v17294_v26 }
 0x732   : > { %5328 = vmatmul.bf16.gmra.mxu1 %v17295_v0  ;;  %v5128_v22 = vpop.f32.mrf.mxu1  ;;  %v5077_v29 = vadd.f32 %v5076_v37, %v5028_v57  ;;  %v5983_v42 = vadd.f32 %v5982_v21, %v5981_v3  ;;  %v5681_v41 = vadd.f32 %v5680_v53, %v5679_v7 }
 0x733   : > { %5230 = vmatmul.bf16.gmra.mxu3 %v17274_v27  ;;  %5377 = vmatmul.bf16.gmra.mxu2 %v17277_v55 }
 0x734   : > { %v5126_v46 = vadd.f32 %v5125_v15, %v5077_v29  ;;  %v5684_v15 = vadd.f32 %v14283_v13, %v17298_v36  ;;  %v5988_v29 = vadd.f32 %v5768_v40, %v5760_v11  ;;  %v5984_v3 = vrot.slane %v5983_v42, 2 }
 0x735   : > { %v5079_v14 = vpop.f32.mrf.mxu0  ;;  %v5800_v11 = vmul.f32 %v14303_v10, %v14303_v10  ;;  %v5682_v53 = vrot.slane %v5681_v41, 1 }
 0x736   : > { %v14381_v6 = vadd.f32 %v5174_v38, %v5126_v46  ;;  %v5177_v37 = vpop.f32.mrf.mxu2  ;;  %v5989_v46 = vadd.f32 %v5988_v29, %v5776_v20 }
 0x737   : > { %v5030_v48 = vpop.f32.mrf.mxu3 }
 0x738   : > { %17297 = vst [vmem:[#allocation38_spill] sm:$0xff] %v14381_v6  ;;  %v5031_v57 = vadd.f32 %v5030_v48, %v14273_v39 }
 0x73a   : > { %v5130_v45 = vpop.f32.mrf.mxu1  ;;  %v5080_v54 = vadd.f32 %v5079_v14, %v5031_v57  ;;  %v5685_v14 = vadd.f32 %v5684_v15, %v14290_v63  ;;  %v5985_v15 = vadd.f32 %v5984_v3, %v5983_v42 }
 0x73c   : > { %v5129_v38 = vadd.f32 %v5128_v22, %v5080_v54  ;;  %v5686_v21 = vadd.f32 %v5685_v14, %v14293_v18  ;;  %v5792_v22 = vmul.f32 %v14299_v4, %v14299_v4 }
 0x73d   : > { %v5081_v60 = vpop.f32.mrf.mxu0 }
 0x73e   : > { %v14398_v9 = vadd.f32 %v5177_v37, %v5129_v38  ;;  %v5179_v56 = vpop.f32.mrf.mxu2  ;;  %v5687_v37 = vadd.f32 %v5686_v21, %v14299_v4  ;;  %v5986_v21 = vrot.slane %v5985_v15, 1 }
 0x73f   : > { %v5032_v24 = vpop.f32.mrf.mxu3 }
 0x740   : > { %17300 = vst [vmem:[#allocation27_spill] sm:$0xff] %v14398_v9  ;;  %v5033_v48 = vadd.f32 %v5032_v24, %v14273_v39  ;;  %v5688_v20 = vadd.f32 %v5687_v37, %v14303_v10 }
 0x741   : > { %5440 = vmatmul.bf16.vlgmr.msra.gmra.mxu0 %v13196_v31  ;;  %v17301_v31 = vld [vmem:[#allocation30_spill] sm:$0xff] }
 0x742   : > { %5489 = vmatmul.bf16.vlgmr.msrb.gmra.mxu1 %v17299_v32  ;;  %v5133_v40 = vpop.f32.mrf.mxu1  ;;  %v5082_v7 = vadd.f32 %v5081_v60, %v5033_v48  ;;  %v5808_v32 = vmul.f32 %v14309_v17, %v14309_v17 }
 0x743   : > { %5391 = vmatmul.bf16.vlgmr.msra.gmra.mxu3 %v13194_v52  ;;  %v5784_v52 = vmul.f32 %v14293_v18, %v14293_v18  ;;  %5538 = vmatmul.bf16.vlgmr.msra.gmra.mxu2 %v17301_v31  ;;  %v5689_v31 = vadd.f32 %v5688_v20, %v14309_v17 }
 0x744   : > { %v5131_v29 = vadd.f32 %v5130_v45, %v5082_v7 }
 0x745   : > { %v5084_v57 = vpop.f32.mrf.mxu0  ;;  %v5990_v54 = vadd.f32 %v5989_v46, %v5784_v52  ;;  %v5816_v52 = vmul.f32 %v14323_v62, %v14323_v62  ;;  %v5683_v46 = vadd.f32 %v5682_v53, %v5681_v41  ;;  %v5690_v3 = vadd.f32 %v5689_v31, %v14323_v62  ;;  %v17303_v53 = vld [vmem:[#allocation32_spill] sm:$0xff] }
 0x746   : > { %v14414_v24 = vadd.f32 %v5179_v56, %v5131_v29  ;;  %v5182_v48 = vpop.f32.mrf.mxu2  ;;  %v5832_v56 = vmul.f32 %v14357_v19, %v14357_v19  ;;  %v17305_v29 = vld [vmem:[#allocation29_spill] sm:$0xff] }
 0x747   : > { %v5991_v38 = vadd.f32 %v5990_v54, %v5792_v22  ;;  %v5035_v60 = vpop.f32.mrf.mxu3  ;;  %v5824_v22 = vmul.f32 %v14341_v5, %v14341_v5  ;;  %v5691_v7 = vadd.f32 %v5690_v3, %v14341_v5 }
 0x748   : > { %17302 = vst [vmem:[#allocation30_spill] sm:$0xff] %v14414_v24  ;;  %v5036_v45 = vadd.f32 %v5035_v60, %v14273_v39 }
 0x749   : > { %v5992_v14 = vadd.f32 %v5991_v38, %v5800_v11  ;;  %v17304_v38 = vld [vmem:[#allocation17_spill] sm:$0xff]  ;;  %v5692_v31 = vadd.f32 %v5691_v7, %v14357_v19 }
 0x74a   : > { %v5135_v37 = vpop.f32.mrf.mxu1  ;;  %v5085_v41 = vadd.f32 %v5084_v57, %v5036_v45  ;;  %v14425_v20 = vmul.f32 %v5683_v46, %v17304_v38  ;;  %v5848_v45 = vmul.f32 %v14381_v6, %v14381_v6 }
 0x74b   : > { %v5993_v42 = vadd.f32 %v5992_v14, %v5808_v32  ;;  %v5987_v32 = vadd.f32 %v5986_v21, %v5985_v15  ;;  %v5693_v57 = vadd.f32 %v5692_v31, %v14375_v44  ;;  %v17308_v15 = vld [vmem:[#allocation34_spill] sm:$0xff] }
 0x74c   : > { %v5134_v60 = vadd.f32 %v5133_v40, %v5085_v41 }
 0x74d   : > { %v5086_v54 = vpop.f32.mrf.mxu0  ;;  %v5994_v11 = vadd.f32 %v5993_v42, %v5816_v52  ;;  %v5840_v52 = vmul.f32 %v14375_v44, %v14375_v44  ;;  %v17306_v42 = vld [vmem:[#allocation31_spill] sm:$0xff]  ;;  %v6055_v21 = vmul.f32 %v5987_v32, %v17304_v38  ;;  %v5694_v41 = vadd.f32 %v5693_v57, %v14381_v6 }
 0x74e   : > { %v14435_v46 = vadd.f32 %v5182_v48, %v5134_v60  ;;  %v5184_v7 = vpop.f32.mrf.mxu2  ;;  %v5864_v32 = vmul.f32 %v14414_v24, %v14414_v24 }
 0x74f   : > { %v5995_v14 = vadd.f32 %v5994_v11, %v5824_v22  ;;  %v6063_v22 = vmul.f32 %v14425_v20, %v14425_v20  ;;  %v5037_v11 = vpop.f32.mrf.mxu3  ;;  %v5695_v31 = vadd.f32 %v5694_v41, %v14398_v9 }
 0x750   : > { %17307 = vst [vmem:[#allocation32_spill] sm:$0xff] %v14435_v46 }
 0x751   : > { %5445 = vmatmul.bf16.gmra.mxu0 %v17305_v29  ;;  %v5996_v3 = vadd.f32 %v5995_v14, %v5832_v56  ;;  %v5856_v56 = vmul.f32 %v14398_v9, %v14398_v9 }
 0x752   : > { %5494 = vmatmul.bf16.gmra.mxu1 %v17306_v42  ;;  %v5294_v48 = vpop.f32.mrf.mxu1  ;;  %v6071_v42 = vsub.f32 %v6055_v21, %v6063_v22 }
 0x753   : > { %5396 = vmatmul.bf16.gmra.mxu3 %v17303_v53  ;;  %5543 = vmatmul.bf16.gmra.mxu2 %v17308_v15  ;;  %v5997_v40 = vadd.f32 %v5996_v3, %v5840_v52  ;;  %v5038_v53 = vadd.f32 %v5037_v11, %v14273_v39  ;;  %v5696_v52 = vadd.f32 %v5695_v31, %v14414_v24 }
 0x754   : > { %v5872_v3 = vmul.f32 %v14435_v46, %v14435_v46  ;;  %v14459_v41 = vadd.f32 0.8, %v6071_v42 }
 0x755   : > { %v5245_v29 = vpop.f32.mrf.mxu0  ;;  %v5998_v14 = vadd.f32 %v5997_v40, %v5848_v45  ;;  %v5087_v60 = vadd.f32 %v5086_v54, %v5038_v53  ;;  %v5697_v39 = vadd.f32 %v5696_v52, %v14435_v46  ;;  %v14454_v45 = vld [vmem:[#allocation8 + $0x13] sm:$0xff] }
 0x756   : > { %v14457_v40 = vperm.slane %v14454_v45, 6  ;;  %v5343_v21 = vpop.f32.mrf.mxu2  ;;  %v17311_v52 = vld [vmem:[#allocation33_spill] sm:$0xff]  ;;  %11065 = vrsqrt.f32 %v14459_v41  ;;  %vm6129_vm4 = vweird.f32 %v14459_v41 }
 0x757   : > { %v5999_v15 = vadd.f32 %v5998_v14, %v5856_v56  ;;  %v5136_v57 = vadd.f32 %v5135_v37, %v5087_v60  ;;  %v5196_v54 = vpop.f32.mrf.mxu3 }
 0x758   : > { %v5197_v53 = vadd.f32 %v5196_v54, %v14457_v40  ;;  %v17314_v54 = vld [vmem:[#allocation36_spill] sm:$0xff] }
 0x759   : > { %v6000_v6 = vadd.f32 %v5999_v15, %v5864_v32  ;;  %v14452_v11 = vadd.f32 %v5184_v7, %v5136_v57  ;;  %v17310_v15 = vld [vmem:[#allocation39_spill] sm:$0xff]  ;;  %v17312_v57 = vld [vmem:[#allocation40_spill] sm:$0xff] }
 0x75a   : > { %v5296_v7 = vpop.f32.mrf.mxu1  ;;  %v5246_v60 = vadd.f32 %v5245_v29, %v5197_v53 }
 0x75b   : > { %17309 = vst [vmem:[#allocation29_spill] sm:$0xff] %v14452_v11  ;;  %v6001_v22 = vadd.f32 %v6000_v6, %v5872_v3  ;;  %v5698_v56 = vadd.f32 %v5697_v39, %v14452_v11  ;;  %v5880_v37 = vmul.f32 %v14452_v11, %v14452_v11 }
 0x75c   : > { %v5295_v3 = vadd.f32 %v5294_v48, %v5246_v60  ;;  %v11066_v19 = vpop.eup %11065 }
 0x75d   : > { %v5247_v14 = vpop.f32.mrf.mxu0  ;;  %v5699_v31 = vrot.slane %v5698_v56, 4  ;;  %v6002_v32 = vadd.f32 %v6001_v22, %v5880_v37  ;;  %vm6130_vm3 = vweird.f32 %v11066_v19 }
 0x75e   : > { %v14469_v9 = vadd.f32 %v5343_v21, %v5295_v3  ;;  %v5345_v22 = vpop.f32.mrf.mxu2  ;;  %v6124_v21 = vmul.f32 %v11066_v19, %v14459_v41  ;;  %vm6131_vm5 = vmor %vm6129_vm4, %vm6130_vm3 }
 0x75f   : > { %v5700_v42 = vadd.f32 %v5699_v31, %v5698_v56  ;;  %v6003_v6 = vrot.slane %v6002_v32, 4  ;;  %v5198_v44 = vpop.f32.mrf.mxu3 }
 0x760   : > { %17313 = vst [vmem:[#allocation31_spill] sm:$0xff] %v14469_v9  ;;  %v5199_v53 = vadd.f32 %v5198_v44, %v14457_v40  ;;  %v5761_v30 = vmul.f32 %v14469_v9, %v14469_v9 }
 0x761   : > { %5450 = vmatmul.bf16.gmra.mxu0 %v17311_v52  ;;  %v5701_v39 = vrot.slane %v5700_v42, 2  ;;  %v6004_v24 = vadd.f32 %v6003_v6, %v6002_v32 }
 0x762   : > { %5499 = vmatmul.bf16.gmra.mxu1 %v17312_v57  ;;  %v5299_v52 = vpop.f32.mrf.mxu1  ;;  %v5248_v48 = vadd.f32 %v5247_v14, %v5199_v53 }
 0x763   : > { %5401 = vmatmul.bf16.gmra.mxu3 %v17310_v15  ;;  %5548 = vmatmul.bf16.gmra.mxu2 %v17314_v54  ;;  %v5702_v29 = vadd.f32 %v5701_v39, %v5700_v42  ;;  %v6005_v37 = vrot.slane %v6004_v24, 2 }
 0x764   : > { %v5297_v5 = vadd.f32 %v5296_v7, %v5248_v48 }
 0x765   : > { %v5250_v15 = vpop.f32.mrf.mxu0  ;;  %v5703_v56 = vrot.slane %v5702_v29, 1  ;;  %v6006_v31 = vadd.f32 %v6005_v37, %v6004_v24  ;;  %v6125_v24 = vmul.f32 %v11066_v19, %v6124_v21 }
 0x766   : > { %v14477_v3 = vadd.f32 %v5345_v22, %v5297_v5  ;;  %v5348_v39 = vpop.f32.mrf.mxu2 }
 0x767   : > { %v5704_v60 = vadd.f32 %v5703_v56, %v5702_v29  ;;  %v6007_v57 = vrot.slane %v6006_v31, 1  ;;  %v5201_v42 = vpop.f32.mrf.mxu3  ;;  %v6126_v22 = vmul.f32 0.5, %v6125_v24  ;;  %v14493_v24 = vld [vmem:[#allocation8 + $0x1b] sm:$0xff] }
 0x768   : > { %17315 = vst [vmem:[#allocation34_spill] sm:$0xff] %v14477_v3  ;;  %v5202_v14 = vadd.f32 %v5201_v42, %v14457_v40 }
 0x769   : > { %v14475_v32 = vmul.f32 %v5704_v60, %v17304_v38  ;;  %v6008_v6 = vadd.f32 %v6007_v57, %v6006_v31  ;;  %v6127_v21 = vsub.f32 1.5, %v6126_v22  ;;  %17318 = vst [vmem:[#allocation40_spill] sm:$0xff] %v14493_v24 }
 0x76a   : > { %v5301_v7 = vpop.f32.mrf.mxu1  ;;  %v5251_v53 = vadd.f32 %v5250_v15, %v5202_v14  ;;  %v6168_v14 = vperm.slane %v14493_v24, 4 }
 0x76b   : > { %v6056_v44 = vmul.f32 %v6008_v6, %v17304_v38  ;;  %v6064_v54 = vmul.f32 %v14475_v32, %v14475_v32 }
 0x76c   : > { %v5300_v56 = vadd.f32 %v5299_v52, %v5251_v53 }
 0x76d   : > { %v5252_v29 = vpop.f32.mrf.mxu0  ;;  %v6072_v37 = vsub.f32 %v6056_v44, %v6064_v54  ;;  %v6128_v44 = vmul.f32 %v11066_v19, %v6127_v21 }
 0x76e   : > { %v14487_v31 = vadd.f32 %v5348_v39, %v5300_v56  ;;  %v5350_v60 = vpop.f32.mrf.mxu2 }
 0x76f   : > { %v6080_v5 = vadd.f32 0.8, %v6072_v37  ;;  %v5203_v48 = vpop.f32.mrf.mxu3 }
 0x770   : > { %17316 = vst [vmem:[#allocation39_spill] sm:$0xff] %v14487_v31  ;;  %v5204_v57 = vadd.f32 %v5203_v48, %v14457_v40 }
 0x771   : > { %5455 = vmatmul.bf16.gmra.mxu0 %v13507_v35  ;;  %11067 = vrsqrt.f32 %v6080_v5  ;;  %vm6139_vm7 = vweird.f32 %v6080_v5 }
 0x772   : > { %5504 = vmatmul.bf16.gmra.mxu1 %v13509_v28  ;;  %v5253_v15 = vadd.f32 %v5252_v29, %v5204_v57  ;;  %v6132_v29 = vsel %vm6131_vm5, %v11066_v19, %v6128_v44 }
 0x773   : > { %5406 = vmatmul.bf16.gmra.mxu3 %v13481_v34  ;;  %5553 = vmatmul.bf16.gmra.mxu2 %v13513_v2  ;;  %v5304_v34 = vpop.f32.mrf.mxu1  ;;  %v14499_v41 = vmul.f32 %v6168_v14, %v6132_v29 }
 0x774   : > { %v5302_v35 = vadd.f32 %v5301_v7, %v5253_v15 }
 0x775   : > { %v5255_v6 = vpop.f32.mrf.mxu0  ;;  %17319 = vst [vmem:[#allocation36_spill] sm:$0xff] %v14499_v41 }
 0x776   : > { %v14490_v54 = vadd.f32 %v5350_v60, %v5302_v35  ;;  %v5353_v39 = vpop.f32.mrf.mxu2  ;;  %v6169_v60 = vperm.slane %v14493_v24, 5 }
 0x777   : > { %v11068_v42 = vpop.eup %11067  ;;  %v5206_v52 = vpop.f32.mrf.mxu3 }
 0x778   : > { %v6134_v28 = vmul.f32 %v11068_v42, %v6080_v5  ;;  %17317 = vst [vmem:[#allocation33_spill] sm:$0xff] %v14490_v54  ;;  %v5207_v37 = vadd.f32 %v5206_v52, %v14457_v40  ;;  %vm6140_vm6 = vweird.f32 %v11068_v42 }
 0x779   : > { %vm6141_vm9 = vmor %vm6139_vm7, %vm6140_vm6 }
 0x77a   : > { %v6135_v2 = vmul.f32 %v11068_v42, %v6134_v28  ;;  %v5256_v56 = vadd.f32 %v5255_v6, %v5207_v37 }
 0x77b   : > { %v5306_v22 = vpop.f32.mrf.mxu1 }
 0x77c   : > { %v6136_v53 = vmul.f32 0.5, %v6135_v2  ;;  %v5305_v57 = vadd.f32 %v5304_v34, %v5256_v56 }
 0x77d   : > { %v5257_v7 = vpop.f32.mrf.mxu0 }
 0x77e   : > { %v6137_v48 = vsub.f32 1.5, %v6136_v53  ;;  %v14503_v19 = vadd.f32 %v5353_v39, %v5305_v57  ;;  %v5355_v15 = vpop.f32.mrf.mxu2 }
 0x780   : > { %v6138_v21 = vmul.f32 %v11068_v42, %v6137_v48  ;;  %17320 = vst [vmem:[#allocation126_spill] sm:$0xff] %v14503_v19 }
 0x781   : > { %5460 = vmatmul.bf16.gmra.mxu0 %v13424_v23  ;;  %v6192_v23 = vmul.f32 %v14499_v41, %v14425_v20  ;;  %v5777_v41 = vmul.f32 %v14487_v31, %v14487_v31 }
 0x782   : > { %5509 = vmatmul.bf16.gmra.mxu1 %v17202_v59  ;;  %v6142_v6 = vsel %vm6141_vm9, %v11068_v42, %v6138_v21 }
 0x783   : > { %5411 = vmatmul.bf16.gmra.mxu3 %v13422_v1  ;;  %5558 = vmatmul.bf16.gmra.mxu2 %v17203_v61  ;;  %v5208_v1 = vpop.f32.mrf.mxu3  ;;  %v14508_v35 = vmul.f32 %v6169_v60, %v6142_v6  ;;  %v5309_v28 = vpop.f32.mrf.mxu1  ;;  %v6207_v2 = vrot.slane %v6192_v23, 4 }
 0x784   : > { %v5209_v44 = vadd.f32 %v5208_v1, %v14457_v40 }
 0x785   : > { %17321 = vst [vmem:[#allocation127_spill] sm:$0xff] %v14508_v35  ;;  %v5260_v34 = vpop.f32.mrf.mxu0  ;;  %v6193_v59 = vmul.f32 %v14508_v35, %v14475_v32  ;;  %v5705_v35 = vadd.f32 %v14477_v3, %v14469_v9 }
 0x786   : > { %v5258_v5 = vadd.f32 %v5257_v7, %v5209_v44  ;;  %v5358_v20 = vpop.f32.mrf.mxu2 }
 0x787   : > { %v6208_v52 = vrot.slane %v6193_v59, 3  ;;  %v5706_v38 = vadd.f32 %v5705_v35, %v14487_v31 }
 0x788   : > { %v5307_v61 = vadd.f32 %v5306_v22, %v5258_v5  ;;  %v17325_v22 = vld [vmem:[#allocation42_spill] sm:$0xff] }
 0x789   : > { %v14513_v42 = vsel %vm6214_vm10, %v6207_v2, %v6208_v52 }
 0x78a   : > { %17322 = vst [vmem:[#allocation128_spill] sm:$0xff] %v14513_v42  ;;  %v14515_v39 = vadd.f32 %v5355_v15, %v5307_v61 }
 0x78b   : > { %v5211_v14 = vpop.f32.mrf.mxu3  ;;  %v5311_v53 = vpop.f32.mrf.mxu1 }
 0x78c   : > { %17323 = vst [vmem:[#allocation129_spill] sm:$0xff] %v14515_v39  ;;  %v5212_v37 = vadd.f32 %v5211_v14, %v14457_v40 }
 0x78d   : > { %v5262_v29 = vpop.f32.mrf.mxu0 }
 0x78e   : > { %v5261_v56 = vadd.f32 %v5260_v34, %v5212_v37  ;;  %v5360_v60 = vpop.f32.mrf.mxu2 }
 0x790   : > { %v5310_v32 = vadd.f32 %v5309_v28, %v5261_v56 }
 0x791   : > { %5465 = vmatmul.bf16.gmra.mxu0 %v17223_v47 }
 0x792   : > { %5514 = vmatmul.bf16.gmra.mxu1 %v17224_v12  ;;  %v14521_v7 = vadd.f32 %v5358_v20, %v5310_v32 }
 0x793   : > { %5416 = vmatmul.bf16.gmra.mxu3 %v13462_v51  ;;  %5563 = vmatmul.bf16.gmra.mxu2 %v17325_v22  ;;  %v5213_v48 = vpop.f32.mrf.mxu3  ;;  %v5314_v6 = vpop.f32.mrf.mxu1 }
 0x794   : > { %17324 = vst [vmem:[#allocation130_spill] sm:$0xff] %v14521_v7  ;;  %v5214_v57 = vadd.f32 %v5213_v48, %v14457_v40  ;;  %v5809_v31 = vmul.f32 %v14521_v7, %v14521_v7 }
 0x795   : > { %v5265_v21 = vpop.f32.mrf.mxu0 }
 0x796   : > { %v5263_v1 = vadd.f32 %v5262_v29, %v5214_v57  ;;  %v5363_v44 = vpop.f32.mrf.mxu2 }
 0x798   : > { %v5312_v15 = vadd.f32 %v5311_v53, %v5263_v1 }
 0x79a   : > { %v14525_v23 = vadd.f32 %v5360_v60, %v5312_v15 }
 0x79b   : > { %v5216_v51 = vpop.f32.mrf.mxu3  ;;  %v14530_v12 = vpop.f32.mrf.mxu1 }
 0x79c   : > { %17326 = vst [vmem:[#allocation42_spill] sm:$0xff] %v14525_v23  ;;  %v5217_v47 = vadd.f32 %v5216_v51, %v14457_v40 }
 0x79d   : > { %v14528_v34 = vpop.f32.mrf.mxu0 }
 0x79e   : > { %v5266_v28 = vadd.f32 %v5265_v21, %v5217_v47  ;;  %v14540_v52 = vpop.f32.mrf.mxu2 }
 0x7a0   : > { %v5315_v59 = vadd.f32 %v5314_v6, %v5266_v28 }
 0x7a1   : > { %5470 = vmatmul.bf16.gmra.mxu0 %v17269_v16 }
 0x7a2   : > { %5519 = vmatmul.bf16.gmra.mxu1 %v17270_v33  ;;  %v14535_v5 = vadd.f32 %v5363_v44, %v5315_v59 }
 0x7a3   : > { %5421 = vmatmul.bf16.gmra.mxu3 %v13489_v8  ;;  %5568 = vmatmul.bf16.gmra.mxu2 %v17271_v25  ;;  %v14538_v2 = vpop.f32.mrf.mxu3  ;;  %v5319_v14 = vpop.f32.mrf.mxu1 }
 0x7a4   : > { %17327 = vst [vmem:[#allocation131_spill] sm:$0xff] %v14535_v5 }
 0x7a5   : > { %v5270_v61 = vpop.f32.mrf.mxu0 }
 0x7a6   : > { %v5368_v37 = vpop.f32.mrf.mxu2 }
 0x7ab   : > { %v5221_v20 = vpop.f32.mrf.mxu3  ;;  %v14545_v16 = vpop.f32.mrf.mxu1 }
 0x7ac   : > { %v5222_v29 = vadd.f32 %v5221_v20, %v14457_v40 }
 0x7ad   : > { %v14543_v8 = vpop.f32.mrf.mxu0 }
 0x7ae   : > { %v5271_v53 = vadd.f32 %v5270_v61, %v5222_v29  ;;  %v14555_v32 = vpop.f32.mrf.mxu2 }
 0x7b0   : > { %v5320_v33 = vadd.f32 %v5319_v14, %v5271_v53 }
 0x7b1   : > { %5475 = vmatmul.bf16.gmra.mxu0 %v17294_v26 }
 0x7b2   : > { %5524 = vmatmul.bf16.gmra.mxu1 %v17295_v0  ;;  %v14550_v25 = vadd.f32 %v5368_v37, %v5320_v33 }
 0x7b3   : > { %5426 = vmatmul.bf16.gmra.mxu3 %v17274_v27  ;;  %5573 = vmatmul.bf16.gmra.mxu2 %v17277_v55  ;;  %v14553_v56 = vpop.f32.mrf.mxu3  ;;  %v5324_v48 = vpop.f32.mrf.mxu1 }
 0x7b4   : > { %17328 = vst [vmem:[#allocation132_spill] sm:$0xff] %v14550_v25 }
 0x7b5   : > { %v5275_v22 = vpop.f32.mrf.mxu0 }
 0x7b6   : > { %v5373_v57 = vpop.f32.mrf.mxu2 }
 0x7bb   : > { %v5226_v60 = vpop.f32.mrf.mxu3  ;;  %v14560_v26 = vpop.f32.mrf.mxu1 }
 0x7bc   : > { %v5227_v21 = vadd.f32 %v5226_v60, %v14457_v40  ;;  %v14580_v60 = vperm.slane %v14454_v45, 7 }
 0x7bd   : > { %v14558_v27 = vpop.f32.mrf.mxu0 }
 0x7be   : > { %v5276_v6 = vadd.f32 %v5275_v22, %v5227_v21  ;;  %v14566_v55 = vpop.f32.mrf.mxu2 }
 0x7c0   : > { %v5325_v0 = vadd.f32 %v5324_v48, %v5276_v6 }
 0x7c2   : > { %v14562_v1 = vadd.f32 %v5373_v57, %v5325_v0 }
 0x7c3   : > { %v14564_v15 = vpop.f32.mrf.mxu3  ;;  %v5329_v44 = vpop.f32.mrf.mxu1 }
 0x7c4   : > { %17329 = vst [vmem:[#allocation133_spill] sm:$0xff] %v14562_v1 }
 0x7c5   : > { %v5280_v51 = vpop.f32.mrf.mxu0 }
 0x7c6   : > { %v5378_v28 = vpop.f32.mrf.mxu2 }
 0x7cb   : > { %v5231_v47 = vpop.f32.mrf.mxu3  ;;  %v14571_v14 = vpop.f32.mrf.mxu1 }
 0x7cc   : > { %v5232_v59 = vadd.f32 %v5231_v47, %v14457_v40 }
 0x7cd   : > { %v14569_v61 = vpop.f32.mrf.mxu0 }
 0x7ce   : > { %v5281_v20 = vadd.f32 %v5280_v51, %v5232_v59  ;;  %v14577_v33 = vpop.f32.mrf.mxu2 }
 0x7d0   : > { %v5330_v37 = vadd.f32 %v5329_v44, %v5281_v20 }
 0x7d2   : > { %v14573_v29 = vadd.f32 %v5378_v28, %v5330_v37 }
 0x7d3   : > { %v14575_v53 = vpop.f32.mrf.mxu3  ;;  %v5490_v48 = vpop.f32.mrf.mxu1 }
 0x7d4   : > { %17330 = vst [vmem:[#allocation134_spill] sm:$0xff] %v14573_v29 }
 0x7d5   : > { %v5441_v22 = vpop.f32.mrf.mxu0 }
 0x7d6   : > { %v5539_v21 = vpop.f32.mrf.mxu2 }
 0x7db   : > { %v5392_v57 = vpop.f32.mrf.mxu3  ;;  %v14585_v47 = vpop.f32.mrf.mxu1 }
 0x7dc   : > { %v5393_v6 = vadd.f32 %v5392_v57, %v14580_v60 }
 0x7dd   : > { %v14583_v0 = vpop.f32.mrf.mxu0 }
 0x7de   : > { %v5442_v51 = vadd.f32 %v5441_v22, %v5393_v6  ;;  %v14591_v20 = vpop.f32.mrf.mxu2 }
 0x7e0   : > { %v5491_v44 = vadd.f32 %v5490_v48, %v5442_v51 }
 0x7e2   : > { %v14587_v28 = vadd.f32 %v5539_v21, %v5491_v44 }
 0x7e3   : > { %v14589_v59 = vpop.f32.mrf.mxu3  ;;  %v5495_v62 = vpop.f32.mrf.mxu1 }
 0x7e4   : > { %17331 = vst [vmem:[#allocation135_spill] sm:$0xff] %v14587_v28 }
 0x7e5   : > { %v5446_v37 = vpop.f32.mrf.mxu0 }
 0x7e6   : > { %v5544_v17 = vpop.f32.mrf.mxu2 }
 0x7eb   : > { %v5397_v45 = vpop.f32.mrf.mxu3  ;;  %v14596_v57 = vpop.f32.mrf.mxu1 }
 0x7ec   : > { %v5398_v10 = vadd.f32 %v5397_v45, %v14580_v60 }
 0x7ed   : > { %v14594_v4 = vpop.f32.mrf.mxu0 }
 0x7ee   : > { %v5447_v18 = vadd.f32 %v5446_v37, %v5398_v10  ;;  %v14602_v21 = vpop.f32.mrf.mxu2 }
 0x7f0   : > { %v5496_v63 = vadd.f32 %v5495_v62, %v5447_v18  ;;  %v10007_v62 = vld [vmem:[%s16752_s5 + $0x70] sm:$0xf] }
 0x7f2   : > { %v14598_v22 = vadd.f32 %v5544_v17, %v5496_v63  ;;  %v10822_v63 = vld [vmem:[%s16752_s5 + $0x74] sm:$0xf0] }
 0x7f3   : > { %v14600_v48 = vpop.f32.mrf.mxu3  ;;  %v5500_v51 = vpop.f32.mrf.mxu1  ;;  %v10008_v18 = vor.u32 %v10822_v63, %v10007_v62  ;;  %v10870_v62 = vld [vmem:[%s16752_s5 + $0x1f4] sm:$0xf0] }
 0x7f4   : > { %17332 = vst [vmem:[#allocation136_spill] sm:$0xff] %v14598_v22 }
 0x7f5   : > { %v5451_v6 = vpop.f32.mrf.mxu0  ;;  %7598 = vmatpush.bf16.msrb.mxu3 %v10008_v18 }
 0x7f6   : > { %v5549_v50 = vpop.f32.mrf.mxu2 }
 0x7fb   : > { %v5402_v44 = vpop.f32.mrf.mxu3  ;;  %v14607_v45 = vpop.f32.mrf.mxu1 }
 0x7fc   : > { %v5403_v46 = vadd.f32 %v5402_v44, %v14580_v60 }
 0x7fd   : > { %v14605_v13 = vpop.f32.mrf.mxu0 }
 0x7fe   : > { %v5452_v36 = vadd.f32 %v5451_v6, %v5403_v46  ;;  %v14619_v44 = vpop.f32.mrf.mxu2  ;;  %v10199_v6 = vld [vmem:[%s16752_s5 + $0x1f0] sm:$0xf] }
 0x800   : > { %v5501_v10 = vadd.f32 %v5500_v51, %v5452_v36  ;;  %v10200_v36 = vor.u32 %v10870_v62, %v10199_v6  ;;  %v10838_v51 = vld [vmem:[%s16752_s5 + $0xf4] sm:$0xf0]  ;;  %v5769_v6 = vmul.f32 %v14477_v3, %v14477_v3  ;;  %v10135_v62 = vld [vmem:[%s16752_s5 + $0x170] sm:$0xf] }
 0x802   : > { %v14615_v17 = vadd.f32 %v5549_v50, %v5501_v10  ;;  %v10071_v50 = vld [vmem:[%s16752_s5 + $0xf0] sm:$0xf]  ;;  %7745 = vmatpush.bf16.msrb.mxu2 %v10200_v36  ;;  %v10854_v36 = vld [vmem:[%s16752_s5 + $0x174] sm:$0xf0]  ;;  %v6009_v24 = vadd.f32 %v5769_v6, %v5761_v30  ;;  %v5793_v30 = vmul.f32 %v14503_v19, %v14503_v19 }
 0x803   : > { %v14617_v37 = vpop.f32.mrf.mxu3  ;;  %v14623_v46 = vpop.f32.mrf.mxu1  ;;  %v10072_v63 = vor.u32 %v10838_v51, %v10071_v50  ;;  %v9999_v50 = vld [vmem:[%s16752_s5 + $0x60] sm:$0xf]  ;;  %v5219_v51 = vadd.f32 %v14538_v2, %v14457_v40  ;;  %v5785_v2 = vmul.f32 %v14490_v54, %v14490_v54 }
 0x804   : > { %17333 = vst [vmem:[#allocation137_spill] sm:$0xff] %v14615_v17  ;;  %v10000_v42 = vor.u32 %v10820_v58, %v9999_v50  ;;  %v6010_v9 = vadd.f32 %v6009_v24, %v5777_v41  ;;  %v5707_v58 = vadd.f32 %v5706_v38, %v14490_v54  ;;  %v10868_v24 = vld [vmem:[%s16752_s5 + $0x1e4] sm:$0xf0]  ;;  %v10063_v38 = vld [vmem:[%s16752_s5 + $0xe0] sm:$0xf]  ;;  %v5801_v41 = vmul.f32 %v14515_v39, %v14515_v39 }
 0x805   : > { %v14621_v43 = vpop.f32.mrf.mxu0  ;;  %7647 = vmatpush.bf16.msrb.mxu0 %v10072_v63  ;;  %v10136_v63 = vor.u32 %v10854_v36, %v10135_v62  ;;  %v5268_v62 = vadd.f32 %v14528_v34, %v5219_v51  ;;  %v5224_v36 = vadd.f32 %v14553_v56, %v14457_v40  ;;  %v10191_v56 = vld [vmem:[%s16752_s5 + $0x1e0] sm:$0xf] }
 0x806   : > { %v14639_v10 = vpop.f32.mrf.mxu2  ;;  %7599 = vmatpush.bf16.msrb.mxu3 %v10000_v42  ;;  %v6011_v42 = vadd.f32 %v6010_v9, %v5785_v2  ;;  %v5708_v34 = vadd.f32 %v5707_v58, %v14503_v19  ;;  %v10192_v51 = vor.u32 %v10868_v24, %v10191_v56  ;;  %v5229_v58 = vadd.f32 %v14564_v15, %v14457_v40 }
 0x807   : > { %17334 = vst [vmem:[#allocation138_spill] sm:$0xff] %v14639_v10  ;;  %7696 = vmatpush.bf16.msra.mxu1 %v10136_v63  ;;  %v5317_v50 = vadd.f32 %v14530_v12, %v5268_v62  ;;  %v5273_v9 = vadd.f32 %v14543_v8, %v5224_v36  ;;  %v10836_v63 = vld [vmem:[%s16752_s5 + $0xe4] sm:$0xf0]  ;;  %v5817_v62 = vmul.f32 %v14525_v23, %v14525_v23 }
 0x808   : > { %v5709_v2 = vadd.f32 %v5708_v34, %v14515_v39  ;;  %v10064_v19 = vor.u32 %v10836_v63, %v10063_v38  ;;  %v6012_v54 = vadd.f32 %v6011_v42, %v5793_v30  ;;  %7746 = vmatpush.bf16.msrb.mxu2 %v10192_v51  ;;  %v5278_v42 = vadd.f32 %v14558_v27, %v5229_v58  ;;  %v10852_v27 = vld [vmem:[%s16752_s5 + $0x164] sm:$0xf0]  ;;  %v10818_v51 = vld [vmem:[%s16752_s5 + $0x54] sm:$0xf0] }
 0x809   : > { %v14710_v36 = vadd.f32 %v14540_v52, %v5317_v50  ;;  %v5322_v34 = vadd.f32 %v14545_v16, %v5273_v9  ;;  %v5825_v24 = vmul.f32 %v14535_v5, %v14535_v5  ;;  %v17420_v39 = vld [vmem:[#allocation86_spill] sm:$0xff] }
 0x80a   : > { %v5710_v12 = vadd.f32 %v5709_v2, %v14521_v7  ;;  %7648 = vmatpush.bf16.msrb.mxu0 %v10064_v19  ;;  %v6013_v8 = vadd.f32 %v6012_v54, %v5801_v41  ;;  %v5234_v19 = vadd.f32 %v14575_v53, %v14457_v40  ;;  %v10127_v41 = vld [vmem:[%s16752_s5 + $0x160] sm:$0xf]  ;;  %v9991_v40 = vld [vmem:[%s16752_s5 + $0x50] sm:$0xf]  ;;  %v5327_v2 = vadd.f32 %v14560_v26, %v5278_v42  ;;  %v17414_v7 = vld [vmem:[#allocation82_spill] sm:$0xff] }
 0x80b   : > { %v14637_v18 = vpop.f32.mrf.mxu3  ;;  %v14643_v49 = vpop.f32.mrf.mxu1  ;;  %17335 = vst [vmem:[#allocation139_spill] sm:$0xff] %v14710_v36  ;;  %v5833_v53 = vmul.f32 %v14710_v36, %v14710_v36  ;;  %v14740_v50 = vadd.f32 %v14555_v32, %v5322_v34  ;;  %v10128_v9 = vor.u32 %v10852_v27, %v10127_v41 }
 0x80c   : > { %v5711_v30 = vadd.f32 %v5710_v12, %v14525_v23  ;;  %v6014_v54 = vadd.f32 %v6013_v8, %v5809_v31  ;;  %v5283_v58 = vadd.f32 %v14569_v61, %v5234_v19  ;;  %v9992_v12 = vor.u32 %v10818_v51, %v9991_v40  ;;  %v10834_v51 = vld [vmem:[%s16752_s5 + $0xd4] sm:$0xf0]  ;;  %v17412_v23 = vld [vmem:[#allocation81_spill] sm:$0xff] }
 0x80d   : > { %v14641_v11 = vpop.f32.mrf.mxu0  ;;  %17336 = vst [vmem:[#allocation140_spill] sm:$0xff] %v14740_v50  ;;  %7697 = vmatpush.bf16.msra.mxu1 %v10128_v9  ;;  %v14759_v61 = vadd.f32 %v14566_v55, %v5327_v2  ;;  %v5857_v40 = vmul.f32 %v14562_v1, %v14562_v1  ;;  %v10866_v55 = vld [vmem:[%s16752_s5 + $0x1d4] sm:$0xf0] }
 0x80e   : > { %v14675_v3 = vpop.f32.mrf.mxu2  ;;  %v5712_v16 = vadd.f32 %v5711_v30, %v14535_v5  ;;  %v6015_v31 = vadd.f32 %v6014_v54, %v5817_v62  ;;  %v5841_v62 = vmul.f32 %v14550_v25, %v14550_v25  ;;  %7600 = vmatpush.bf16.msrb.mxu3 %v9992_v12  ;;  %v5849_v30 = vmul.f32 %v14740_v50, %v14740_v50 }
 0x80f   : > { %17337 = vst [vmem:[#allocation141_spill] sm:$0xff] %v14759_v61  ;;  %v5332_v42 = vadd.f32 %v14571_v14, %v5283_v58  ;;  %v10055_v14 = vld [vmem:[%s16752_s5 + $0xd0] sm:$0xf]  ;;  %v5865_v2 = vmul.f32 %v14759_v61, %v14759_v61 }
 0x810   : > { %v5713_v63 = vadd.f32 %v5712_v16, %v14710_v36  ;;  %v6016_v8 = vadd.f32 %v6015_v31, %v5825_v24  ;;  %v10183_v31 = vld [vmem:[%s16752_s5 + $0x1d0] sm:$0xf]  ;;  %v10056_v12 = vor.u32 %v10834_v51, %v10055_v14  ;;  %v9983_v14 = vld [vmem:[%s16752_s5 + $0x40] sm:$0xf] }
 0x811   : > { %v10184_v9 = vor.u32 %v10866_v55, %v10183_v31  ;;  %v14785_v58 = vadd.f32 %v14577_v33, %v5332_v42  ;;  %v5395_v33 = vadd.f32 %v14589_v59, %v14580_v60  ;;  %v10119_v31 = vld [vmem:[%s16752_s5 + $0x150] sm:$0xf]  ;;  %v10850_v55 = vld [vmem:[%s16752_s5 + $0x154] sm:$0xf0]  ;;  %v10816_v59 = vld [vmem:[%s16752_s5 + $0x44] sm:$0xf0] }
 0x812   : > { %v5714_v32 = vadd.f32 %v5713_v63, %v14550_v25  ;;  %v6017_v34 = vadd.f32 %v6016_v8, %v5833_v53  ;;  %7649 = vmatpush.bf16.msrb.mxu0 %v10056_v12  ;;  %v9984_v12 = vor.u32 %v10816_v59, %v9983_v14  ;;  %v10327_v36 = vld [vmem:[%s16752_s5 + $0x2f0] sm:$0xf] }
 0x813   : > { %v14673_v10 = vpop.f32.mrf.mxu3  ;;  %v14682_v6 = vpop.f32.mrf.mxu1  ;;  %17338 = vst [vmem:[#allocation142_spill] sm:$0xff] %v14785_v58  ;;  %7747 = vmatpush.bf16.msrb.mxu2 %v10184_v9  ;;  %v10120_v9 = vor.u32 %v10850_v55, %v10119_v31 }
 0x814   : > { %v5715_v26 = vadd.f32 %v5714_v32, %v14740_v50  ;;  %v6018_v19 = vadd.f32 %v6017_v34, %v5841_v62  ;;  %v5873_v32 = vmul.f32 %v14573_v29, %v14573_v29  ;;  %7601 = vmatpush.bf16.msrb.mxu3 %v9984_v12  ;;  %v17380_v50 = vld [vmem:[#allocation51_spill] sm:$0xff] }
 0x815   : > { %v14680_v35 = vpop.f32.mrf.mxu0  ;;  %7698 = vmatpush.bf16.msra.mxu1 %v10120_v9 }
 0x816   : > { %v14715_v15 = vpop.f32.mrf.mxu2  ;;  %v5716_v27 = vadd.f32 %v5715_v26, %v14562_v1  ;;  %v6019_v53 = vadd.f32 %v6018_v19, %v5849_v30  ;;  %v17374_v1 = vld [vmem:[#allocation58_spill] sm:$0xff] }
 0x818   : > { %v5717_v63 = vadd.f32 %v5716_v27, %v14759_v61  ;;  %v6020_v8 = vadd.f32 %v6019_v53, %v5857_v40  ;;  %v5881_v27 = vmul.f32 %v14785_v58, %v14785_v58 }
 0x81a   : > { %v5718_v62 = vadd.f32 %v5717_v63, %v14573_v29  ;;  %v6021_v26 = vadd.f32 %v6020_v8, %v5865_v2  ;;  %v5444_v2 = vadd.f32 %v14583_v0, %v5395_v33  ;;  %v5400_v8 = vadd.f32 %v14600_v48, %v14580_v60  ;;  %v10175_v0 = vld [vmem:[%s16752_s5 + $0x1c0] sm:$0xf]  ;;  %v10864_v48 = vld [vmem:[%s16752_s5 + $0x1c4] sm:$0xf0] }
 0x81b   : > { %v14713_v56 = vpop.f32.mrf.mxu3  ;;  %v14725_v52 = vpop.f32.mrf.mxu1 }
 0x81c   : > { %v5719_v19 = vadd.f32 %v5718_v62, %v14785_v58  ;;  %v6022_v40 = vadd.f32 %v6021_v26, %v5873_v32  ;;  %v5493_v31 = vadd.f32 %v14585_v47, %v5444_v2  ;;  %v5449_v55 = vadd.f32 %v14594_v4, %v5400_v8 }
 0x81d   : > { %v14723_v38 = vpop.f32.mrf.mxu0  ;;  %v5408_v47 = vadd.f32 %v14637_v18, %v14580_v60  ;;  %v10176_v4 = vor.u32 %v10864_v48, %v10175_v0  ;;  %v5410_v18 = vadd.f32 %v14673_v10, %v14580_v60 }
 0x81e   : > { %v14755_v16 = vpop.f32.mrf.mxu2  ;;  %v5720_v51 = vrot.slane %v5719_v19, 4  ;;  %v6023_v63 = vadd.f32 %v6022_v40, %v5881_v27  ;;  %v5405_v27 = vadd.f32 %v14617_v37, %v14580_v60  ;;  %v10832_v37 = vld [vmem:[%s16752_s5 + $0xc4] sm:$0xf0]  ;;  %v14839_v9 = vadd.f32 %v14591_v20, %v5493_v31 }
 0x81f   : > { %7748 = vmatpush.bf16.msrb.mxu2 %v10176_v4  ;;  %v5457_v8 = vadd.f32 %v14621_v43, %v5408_v47 }
 0x820   : > { %v5721_v26 = vadd.f32 %v5720_v51, %v5719_v19  ;;  %v6024_v61 = vrot.slane %v6023_v63, 4  ;;  %v10047_v19 = vld [vmem:[%s16752_s5 + $0xc0] sm:$0xf]  ;;  %17339 = vst [vmem:[#allocation143_spill] sm:$0xff] %v14839_v9  ;;  %v5498_v51 = vadd.f32 %v14596_v57, %v5449_v55  ;;  %v5454_v2 = vadd.f32 %v14605_v13, %v5405_v27 }
 0x821   : > { %v10048_v59 = vor.u32 %v10832_v37, %v10047_v19  ;;  %v5770_v13 = vmul.f32 %v14839_v9, %v14839_v9  ;;  %v5459_v55 = vadd.f32 %v14641_v11, %v5410_v18  ;;  %v5506_v27 = vadd.f32 %v14623_v46, %v5457_v8 }
 0x822   : > { %v5722_v40 = vrot.slane %v5721_v26, 2  ;;  %v6025_v14 = vadd.f32 %v6024_v61, %v6023_v63  ;;  %v5413_v61 = vadd.f32 %v14713_v56, %v14580_v60  ;;  %v14855_v57 = vadd.f32 %v14602_v21, %v5498_v51  ;;  %v17342_v51 = vld [vmem:[#allocation138_spill] sm:$0xff] }
 0x823   : > { %v14753_v54 = vpop.f32.mrf.mxu3  ;;  %v14764_v41 = vpop.f32.mrf.mxu1  ;;  %7650 = vmatpush.bf16.msrb.mxu0 %v10048_v59  ;;  %v5503_v10 = vadd.f32 %v14607_v45, %v5454_v2  ;;  %v5762_v56 = vmul.f32 %v14587_v28, %v14587_v28  ;;  %v5726_v11 = vadd.f32 %v14839_v9, %v14587_v28  ;;  %v5508_v37 = vadd.f32 %v14643_v49, %v5459_v55  ;;  %v17423_v28 = vld [vmem:[#allocation85_spill] sm:$0xff] }
 0x824   : > { %v5723_v31 = vadd.f32 %v5722_v40, %v5721_v26  ;;  %v6026_v0 = vrot.slane %v6025_v14, 2  ;;  %17340 = vst [vmem:[#allocation144_spill] sm:$0xff] %v14855_v57  ;;  %v5415_v43 = vadd.f32 %v14753_v54, %v14580_v60  ;;  %v5778_v26 = vmul.f32 %v14598_v22, %v14598_v22 }
 0x825   : > { %v14762_v24 = vpop.f32.mrf.mxu0  ;;  %v5462_v48 = vadd.f32 %v14680_v35, %v5413_v61  ;;  %v6030_v45 = vadd.f32 %v5770_v13, %v5762_v56  ;;  %v5786_v54 = vmul.f32 %v14855_v57, %v14855_v57  ;;  %v14873_v4 = vadd.f32 %v14619_v44, %v5503_v10 }
 0x826   : > { %v14790_v30 = vpop.f32.mrf.mxu2  ;;  %v5724_v19 = vrot.slane %v5723_v31, 1  ;;  %v6027_v47 = vadd.f32 %v6026_v0, %v6025_v14  ;;  %v5464_v46 = vadd.f32 %v14723_v38, %v5415_v43  ;;  %v5727_v35 = vadd.f32 %v5726_v11, %v14598_v22 }
 0x827   : > { %17341 = vst [vmem:[#allocation145_spill] sm:$0xff] %v14873_v4  ;;  %v5794_v59 = vmul.f32 %v14615_v17, %v14615_v17  ;;  %v14882_v2 = vadd.f32 %v17342_v51, %v5506_v27  ;;  %v5511_v18 = vadd.f32 %v14682_v6, %v5462_v48  ;;  %v14891_v55 = vadd.f32 %v14675_v3, %v5508_v37  ;;  %v17346_v3 = vld [vmem:[#allocation17_spill] sm:$0xff] }
 0x828   : > { %v5725_v61 = vadd.f32 %v5724_v19, %v5723_v31  ;;  %v6028_v38 = vrot.slane %v6027_v47, 1  ;;  %v5728_v0 = vadd.f32 %v5727_v35, %v14855_v57  ;;  %v5513_v43 = vadd.f32 %v14725_v52, %v5464_v46  ;;  %v17421_v57 = vld [vmem:[#allocation108_spill] sm:$0xff] }
 0x829   : > { %17343 = vst [vmem:[#allocation138_spill] sm:$0xff] %v14882_v2  ;;  %v14900_v27 = vadd.f32 %v14715_v15, %v5511_v18  ;;  %v6235_v22 = vmul.f32 %v17421_v57, %v17420_v39 }
 0x82a   : > { %17344 = vst [vmem:[#allocation146_spill] sm:$0xff] %v14891_v55  ;;  %v6029_v11 = vadd.f32 %v6028_v38, %v6027_v47 }
 0x82b   : > { %v5417_v34 = vpop.f32.mrf.mxu3  ;;  %v14808_v53 = vpop.f32.mrf.mxu1  ;;  %17345 = vst [vmem:[#allocation147_spill] sm:$0xff] %v14900_v27  ;;  %v5826_v35 = vmul.f32 %v14900_v27, %v14900_v27 }
 0x82c   : > { %v5418_v21 = vadd.f32 %v5417_v34, %v14580_v60  ;;  %v6031_v34 = vadd.f32 %v6030_v45, %v5778_v26  ;;  %v5818_v45 = vmul.f32 %v14891_v55, %v14891_v55  ;;  %v6057_v51 = vmul.f32 %v6029_v11, %v17346_v3 }
 0x82d   : > { %v14797_v42 = vpop.f32.mrf.mxu0 }
 0x82e   : > { %v14816_v32 = vpop.f32.mrf.mxu2  ;;  %v5467_v44 = vadd.f32 %v14762_v24, %v5418_v21  ;;  %v6032_v10 = vadd.f32 %v6031_v34, %v5786_v54  ;;  %v5729_v24 = vadd.f32 %v5728_v0, %v14615_v17  ;;  %v14904_v21 = vmul.f32 %v5725_v61, %v17346_v3  ;;  %v17418_v17 = vld [vmem:[#allocation84_spill] sm:$0xff] }
 0x82f   : > { %v14911_v54 = vadd.f32 %v14755_v16, %v5513_v43 }
 0x830   : > { %v6033_v26 = vadd.f32 %v6032_v10, %v5794_v59  ;;  %v5516_v48 = vadd.f32 %v14764_v41, %v5467_v44  ;;  %v5730_v52 = vadd.f32 %v5729_v24, %v14873_v4 }
 0x831   : > { %17347 = vst [vmem:[#allocation17_spill] sm:$0xff] %v14911_v54  ;;  %v5834_v18 = vmul.f32 %v14911_v54, %v14911_v54 }
 0x832   : > { %v5731_v15 = vadd.f32 %v5730_v52, %v14882_v2  ;;  %v14918_v34 = vadd.f32 %v14790_v30, %v5516_v48 }
 0x833   : > { %v5419_v62 = vpop.f32.mrf.mxu3  ;;  %v14845_v12 = vpop.f32.mrf.mxu1 }
 0x834   : > { %v5420_v14 = vadd.f32 %v5419_v62, %v14580_v60  ;;  %v5802_v62 = vmul.f32 %v14873_v4, %v14873_v4  ;;  %17348 = vst [vmem:[#allocation148_spill] sm:$0xff] %v14918_v34  ;;  %v5842_v0 = vmul.f32 %v14918_v34, %v14918_v34  ;;  %v17416_v4 = vld [vmem:[#allocation83_spill] sm:$0xff] }
 0x835   : > { %v14833_v33 = vpop.f32.mrf.mxu0 }
 0x836   : > { %v14850_v20 = vpop.f32.mrf.mxu2  ;;  %v5469_v56 = vadd.f32 %v14797_v42, %v5420_v14  ;;  %v6034_v42 = vadd.f32 %v6033_v26, %v5802_v62  ;;  %v5732_v14 = vadd.f32 %v5731_v15, %v14891_v55  ;;  %v17385_v55 = vld [vmem:[#allocation59_spill] sm:$0xff] }
 0x838   : > { %v5518_v37 = vadd.f32 %v14808_v53, %v5469_v56  ;;  %v6065_v53 = vmul.f32 %v14904_v21, %v14904_v21  ;;  %v5733_v30 = vadd.f32 %v5732_v14, %v14900_v27  ;;  %v10934_v27 = vld [vmem:[%s16752_s5 + $0x3f4] sm:$0xf0] }
 0x83a   : > { %v5734_v10 = vadd.f32 %v5733_v30, %v14911_v54  ;;  %v6073_v24 = vsub.f32 %v6057_v51, %v6065_v53  ;;  %v10263_v54 = vld [vmem:[%s16752_s5 + $0x270] sm:$0xf] }
 0x83b   : > { %v5422_v63 = vpop.f32.mrf.mxu3  ;;  %v5522_v8 = vpop.f32.mrf.mxu1 }
 0x83c   : > { %v5423_v13 = vadd.f32 %v5422_v63, %v14580_v60  ;;  %v5810_v63 = vmul.f32 %v14882_v2, %v14882_v2  ;;  %v14949_v11 = vadd.f32 0.8, %v6073_v24 }
 0x83d   : > { %v5473_v40 = vpop.f32.mrf.mxu0 }
 0x83e   : > { %v5571_v6 = vpop.f32.mrf.mxu2  ;;  %v5472_v19 = vadd.f32 %v14833_v33, %v5423_v13  ;;  %v6035_v46 = vadd.f32 %v6034_v42, %v5810_v63  ;;  %11069 = vrsqrt.f32 %v14949_v11  ;;  %vm6149_vm12 = vweird.f32 %v14949_v11 }
 0x840   : > { %v5521_v59 = vadd.f32 %v14845_v12, %v5472_v19 }
 0x842   : > { %v14936_v62 = vadd.f32 %v14850_v20, %v5521_v59 }
 0x843   : > { %v5424_v49 = vpop.f32.mrf.mxu3  ;;  %v5525_v44 = vpop.f32.mrf.mxu1 }
 0x844   : > { %v5425_v31 = vadd.f32 %v5424_v49, %v14580_v60  ;;  %v14930_v49 = vadd.f32 %v14816_v32, %v5518_v37  ;;  %17350 = vst [vmem:[#allocation150_spill] sm:$0xff] %v14936_v62  ;;  %v5858_v52 = vmul.f32 %v14936_v62, %v14936_v62  ;;  %v14964_v30 = vpop.eup %11069 }
 0x845   : > { %v5476_v33 = vpop.f32.mrf.mxu0  ;;  %vm6150_vm11 = vweird.f32 %v14964_v30 }
 0x846   : > { %v5474_v41 = vadd.f32 %v5473_v40, %v5425_v31  ;;  %v6036_v40 = vadd.f32 %v6035_v46, %v5818_v45  ;;  %17349 = vst [vmem:[#allocation149_spill] sm:$0xff] %v14930_v49  ;;  %v5574_v13 = vpop.f32.mrf.mxu2  ;;  %v5735_v31 = vadd.f32 %v5734_v10, %v14918_v34  ;;  %v5850_v32 = vmul.f32 %v14930_v49, %v14930_v49  ;;  %vm15099_vm13 = vmor %vm6149_vm12, %vm6150_vm11 }
 0x848   : > { %v5523_v61 = vadd.f32 %v5522_v8, %v5474_v41  ;;  %v6037_v12 = vadd.f32 %v6036_v40, %v5826_v35  ;;  %v5736_v48 = vadd.f32 %v5735_v31, %v14930_v49  ;;  %v17376_v49 = vld [vmem:[#allocation60_spill] sm:$0xff] }
 0x84a   : > { %v6038_v56 = vadd.f32 %v6037_v12, %v5834_v18  ;;  %v14941_v8 = vadd.f32 %v5571_v6, %v5523_v61  ;;  %v5737_v15 = vadd.f32 %v5736_v48, %v14936_v62 }
 0x84b   : > { %v5427_v47 = vpop.f32.mrf.mxu3  ;;  %v5527_v41 = vpop.f32.mrf.mxu1 }
 0x84c   : > { %v5428_v16 = vadd.f32 %v5427_v47, %v14580_v60  ;;  %17351 = vst [vmem:[#allocation151_spill] sm:$0xff] %v14941_v8  ;;  %v6039_v26 = vadd.f32 %v6038_v56, %v5842_v0  ;;  %v5866_v6 = vmul.f32 %v14941_v8, %v14941_v8  ;;  %v5738_v35 = vadd.f32 %v5737_v15, %v14941_v8 }
 0x84d   : > { %v5478_v42 = vpop.f32.mrf.mxu0 }
 0x84e   : > { %v5477_v38 = vadd.f32 %v5476_v33, %v5428_v16  ;;  %v6040_v45 = vadd.f32 %v6039_v26, %v5850_v32  ;;  %v5576_v14 = vpop.f32.mrf.mxu2 }
 0x850   : > { %v5526_v43 = vadd.f32 %v5525_v44, %v5477_v38  ;;  %v6041_v46 = vadd.f32 %v6040_v45, %v5858_v52 }
 0x852   : > { %v14946_v19 = vadd.f32 %v5574_v13, %v5526_v43  ;;  %v6144_v13 = vmul.f32 %v14964_v30, %v14949_v11  ;;  %v10902_v11 = vld [vmem:[%s16752_s5 + $0x2f4] sm:$0xf0] }
 0x853   : > { %v5429_v63 = vpop.f32.mrf.mxu3 }
 0x854   : > { %17352 = vst [vmem:[#allocation152_spill] sm:$0xff] %v14946_v19  ;;  %v5430_v20 = vadd.f32 %v5429_v63, %v14580_v60  ;;  %v5874_v33 = vmul.f32 %v14946_v19, %v14946_v19  ;;  %v6042_v60 = vadd.f32 %v6041_v46, %v5866_v6  ;;  %v5739_v59 = vadd.f32 %v5738_v35, %v14946_v19  ;;  %v10814_v35 = vld [vmem:[%s16752_s5 + $0x34] sm:$0xf0]  ;;  %v17425_v19 = vld [vmem:[#allocation128_spill] sm:$0xff] }
 0x855   : > { %v6145_v31 = vmul.f32 %v14964_v30, %v6144_v13  ;;  %v17354_v13 = vld [vmem:[#allocation44_spill] sm:$0xff] }
 0x856   : > { %v5479_v37 = vadd.f32 %v5478_v42, %v5430_v20  ;;  %v6043_v51 = vadd.f32 %v6042_v60, %v5874_v33  ;;  %v10167_v33 = vld [vmem:[%s16752_s5 + $0x1b0] sm:$0xf] }
 0x857   : > { %v6146_v52 = vmul.f32 0.5, %v6145_v31  ;;  %v10039_v60 = vld [vmem:[%s16752_s5 + $0xb0] sm:$0xf] }
 0x858   : > { %v5528_v47 = vadd.f32 %v5527_v41, %v5479_v37  ;;  %v10111_v37 = vld [vmem:[%s16752_s5 + $0x140] sm:$0xf]  ;;  %v10848_v41 = vld [vmem:[%s16752_s5 + $0x144] sm:$0xf0] }
 0x859   : > { %v6147_v15 = vsub.f32 1.5, %v6146_v52  ;;  %v10112_v46 = vor.u32 %v10848_v41, %v10111_v37  ;;  %v10095_v52 = vld [vmem:[%s16752_s5 + $0x120] sm:$0xf]  ;;  %v10844_v37 = vld [vmem:[%s16752_s5 + $0x124] sm:$0xf0] }
 0x85a   : > { %v14959_v16 = vadd.f32 %v5576_v14, %v5528_v47  ;;  %v10862_v14 = vld [vmem:[%s16752_s5 + $0x1b4] sm:$0xf0]  ;;  %v9959_v41 = vld [vmem:[%s16752_s5 + $0x10] sm:$0xf] }
 0x85b   : > { %7699 = vmatpush.bf16.msra.mxu1 %v10112_v46  ;;  %v10810_v46 = vld [vmem:[%s16752_s5 + $0x14] sm:$0xf0] }
 0x85c   : > { %17353 = vst [vmem:[#allocation153_spill] sm:$0xff] %v14959_v16  ;;  %v5740_v53 = vadd.f32 %v5739_v59, %v14959_v16  ;;  %v5882_v40 = vmul.f32 %v14959_v16, %v14959_v16  ;;  %v10830_v59 = vld [vmem:[%s16752_s5 + $0xb4] sm:$0xf0] }
 0x85e   : > { %v5741_v18 = vrot.slane %v5740_v53, 4  ;;  %v6044_v44 = vadd.f32 %v6043_v51, %v5882_v40  ;;  %v10168_v51 = vor.u32 %v10862_v14, %v10167_v33  ;;  %v10103_v40 = vld [vmem:[%s16752_s5 + $0x130] sm:$0xf]  ;;  %v17359_v33 = vld [vmem:[#allocation20_spill] sm:$0xff]  ;;  %v10096_v14 = vor.u32 %v10844_v37, %v10095_v52 }
 0x85f   : > { %v17363_v52 = vld [vmem:[#allocation24_spill] sm:$0xff] }
 0x860   : > { %v5742_v61 = vadd.f32 %v5741_v18, %v5740_v53  ;;  %v6045_v38 = vrot.slane %v6044_v44, 4  ;;  %v10040_v53 = vor.u32 %v10830_v59, %v10039_v60  ;;  %v10846_v18 = vld [vmem:[%s16752_s5 + $0x134] sm:$0xf0]  ;;  %7749 = vmatpush.bf16.msrb.mxu2 %v10168_v51  ;;  %v10151_v60 = vld [vmem:[%s16752_s5 + $0x190] sm:$0xf] }
 0x861   : > { %v10858_v59 = vld [vmem:[%s16752_s5 + $0x194] sm:$0xf0]  ;;  %v10023_v51 = vld [vmem:[%s16752_s5 + $0x90] sm:$0xf] }
 0x862   : > { %v5743_v12 = vrot.slane %v5742_v61, 2  ;;  %v6046_v0 = vadd.f32 %v6045_v38, %v6044_v44  ;;  %v9967_v44 = vld [vmem:[%s16752_s5 + $0x20] sm:$0xf]  ;;  %v10812_v38 = vld [vmem:[%s16752_s5 + $0x24] sm:$0xf0]  ;;  %7651 = vmatpush.bf16.msrb.mxu0 %v10040_v53  ;;  %v17360_v53 = vld [vmem:[#allocation18_spill] sm:$0xff] }
 0x863   : > { %v9968_v31 = vor.u32 %v10812_v38, %v9967_v44 }
 0x864   : > { %v5744_v10 = vadd.f32 %v5743_v12, %v5742_v61  ;;  %v6047_v43 = vrot.slane %v6046_v0, 2  ;;  %v10104_v61 = vor.u32 %v10846_v18, %v10103_v40  ;;  %v10159_v12 = vld [vmem:[%s16752_s5 + $0x1a0] sm:$0xf]  ;;  %v17361_v18 = vld [vmem:[#allocation49_spill] sm:$0xff] }
 0x866   : > { %v5745_v24 = vrot.slane %v5744_v10, 1  ;;  %v6048_v56 = vadd.f32 %v6047_v43, %v6046_v0  ;;  %v10860_v0 = vld [vmem:[%s16752_s5 + $0x1a4] sm:$0xf0]  ;;  %7700 = vmatpush.bf16.msra.mxu1 %v10104_v61  ;;  %v17362_v61 = vld [vmem:[#allocation22_spill] sm:$0xff] }
 0x868   : > { %v5746_v32 = vadd.f32 %v5745_v24, %v5744_v10  ;;  %v6049_v26 = vrot.slane %v6048_v56, 1  ;;  %v17355_v10 = vld [vmem:[#allocation64_spill] sm:$0xff]  ;;  %v17356_v24 = vld [vmem:[#allocation46_spill] sm:$0xff] }
 0x869   : > { %v15022_v43 = vmul.f32 %v17355_v10, %v17354_v13  ;;  %v15070_v40 = vmul.f32 %v17355_v10, %v17360_v53  ;;  %v15074_v44 = vmul.f32 %v17355_v10, %v17361_v18  ;;  %v15078_v38 = vmul.f32 %v17355_v10, %v17362_v61  ;;  %v10143_v53 = vld [vmem:[%s16752_s5 + $0x180] sm:$0xf]  ;;  %v10856_v18 = vld [vmem:[%s16752_s5 + $0x184] sm:$0xf0] }
 0x86a   : > { %v14970_v63 = vmul.f32 %v5746_v32, %v17346_v3  ;;  %v6050_v48 = vadd.f32 %v6049_v26, %v6048_v56  ;;  %v15026_v56 = vmul.f32 %v17355_v10, %v17356_v24  ;;  %v10160_v32 = vor.u32 %v10860_v0, %v10159_v12  ;;  %v10031_v26 = vld [vmem:[%s16752_s5 + $0xa0] sm:$0xf]  ;;  %v10826_v24 = vld [vmem:[%s16752_s5 + $0x94] sm:$0xf0]  ;;  %v17370_v61 = vld [vmem:[#allocation28_spill] sm:$0xff]  ;;  %7701 = vmatpush.bf16.msra.mxu1 %v10096_v14 }
 0x86b   : > { %v6148_v0 = vmul.f32 %v14964_v30, %v6147_v15  ;;  %v9960_v13 = vor.u32 %v10810_v46, %v9959_v41  ;;  %v17366_v15 = vld [vmem:[#allocation40_spill] sm:$0xff]  ;;  %v10152_v41 = vor.u32 %v10858_v59, %v10151_v60  ;;  %v10024_v46 = vor.u32 %v10826_v24, %v10023_v51  ;;  %v17368_v59 = vld [vmem:[#allocation26_spill] sm:$0xff] }
 0x86c   : > { %v6058_v20 = vmul.f32 %v6050_v48, %v17346_v3  ;;  %v6066_v42 = vmul.f32 %v14970_v63, %v14970_v63  ;;  %v9975_v3 = vld [vmem:[%s16752_s5 + $0x30] sm:$0xf]  ;;  %v10828_v48 = vld [vmem:[%s16752_s5 + $0xa4] sm:$0xf0]  ;;  %7750 = vmatpush.bf16.msrb.mxu2 %v10160_v32  ;;  %v10015_v32 = vld [vmem:[%s16752_s5 + $0x80] sm:$0xf]  ;;  %v15127_v51 = vmul.f32 %v17355_v10, %v17368_v59  ;;  %v15131_v24 = vmul.f32 %v17355_v10, %v17370_v61 }
 0x86d   : > { %v9976_v47 = vor.u32 %v10814_v35, %v9975_v3  ;;  %v17358_v3 = vld [vmem:[#allocation21_spill] sm:$0xff]  ;;  %v10079_v59 = vld [vmem:[%s16752_s5 + $0x100] sm:$0xf]  ;;  %v10840_v61 = vld [vmem:[%s16752_s5 + $0x104] sm:$0xf0]  ;;  %v15153_v14 = vmul.f32 %v17355_v10, %v17376_v49 }
 0x86e   : > { %v6074_v45 = vsub.f32 %v6058_v20, %v6066_v42  ;;  %v17357_v20 = vld [vmem:[#allocation19_spill] sm:$0xff]  ;;  %v15053_v35 = vmul.f32 %v17355_v10, %v17358_v3  ;;  %17369 = vst [vmem:[#allocation44_spill] sm:$0xff] %v15127_v51  ;;  %v10455_v49 = vld [vmem:[%s16752_s5 + $0x3f0] sm:$0xf] }
 0x86f   : > { %7602 = vmatpush.bf16.msrb.mxu3 %v9976_v47  ;;  %v15039_v42 = vmul.f32 %v17355_v10, %v17357_v20  ;;  %v15057_v47 = vmul.f32 %v17355_v10, %v17359_v33  ;;  %v15095_v20 = vmul.f32 %v17355_v10, %v17363_v52  ;;  %v9951_v3 = vld [vmem:[%s16752_s5] sm:$0xf]  ;;  %v10808_v33 = vld [vmem:[%s16752_s5 + $0x4] sm:$0xf0]  ;;  %17371 = vst [vmem:[#allocation64_spill] sm:$0xff] %v15131_v24 }
 0x870   : > { %v14975_v6 = vadd.f32 0.8, %v6074_v45  ;;  %v10032_v45 = vor.u32 %v10828_v48, %v10031_v26  ;;  %v10087_v26 = vld [vmem:[%s16752_s5 + $0x110] sm:$0xf]  ;;  %v10842_v48 = vld [vmem:[%s16752_s5 + $0x114] sm:$0xf0]  ;;  %7751 = vmatpush.bf16.msrb.mxu2 %v10152_v41 }
 0x871   : > { %v17372_v52 = vld [vmem:[#allocation56_spill] sm:$0xff]  ;;  %v10088_v62 = vor.u32 %v10842_v48, %v10087_v26  ;;  %17377 = vst [vmem:[#allocation21_spill] sm:$0xff] %v15153_v14  ;;  %v9952_v26 = vor.u32 %v10808_v33, %v9951_v3  ;;  %v17378_v48 = vld [vmem:[#allocation62_spill] sm:$0xff]  ;;  %v10144_v33 = vor.u32 %v10856_v18, %v10143_v53  ;;  %v10080_v53 = vor.u32 %v10840_v61, %v10079_v59 }
 0x872   : > { %11071 = vrsqrt.f32 %v14975_v6  ;;  %7652 = vmatpush.bf16.msrb.mxu0 %v10032_v45  ;;  %v17367_v45 = vld [vmem:[#allocation23_spill] sm:$0xff]  ;;  %v10328_v18 = vor.u32 %v10902_v11, %v10327_v36  ;;  %vm6159_vm14 = vweird.f32 %v14975_v6 }
 0x873   : > { %7603 = vmatpush.bf16.msrb.mxu3 %v9968_v31  ;;  %v6170_v31 = vperm.slane %v17366_v15, 6  ;;  %v15123_v60 = vmul.f32 %v17355_v10, %v17367_v45  ;;  %v15135_v15 = vmul.f32 %v17355_v10, %v17372_v52  ;;  %v10824_v45 = vld [vmem:[%s16752_s5 + $0x84] sm:$0xf0]  ;;  %v15149_v52 = vmul.f32 %v17355_v10, %v17374_v1  ;;  %v10886_v1 = vld [vmem:[%s16752_s5 + $0x274] sm:$0xf0]  ;;  %7702 = vmatpush.bf16.msra.mxu1 %v10088_v62  ;;  %v17387_v36 = vld [vmem:[#allocation63_spill] sm:$0xff] }
 0x874   : > { %v17381_v10 = vld [vmem:[#allocation50_spill] sm:$0xff]  ;;  %v10264_v5 = vor.u32 %v10886_v1, %v10263_v54  ;;  %7752 = vmatpush.bf16.msrb.mxu2 %v10144_v33 }
 0x875   : > { %17373 = vst [vmem:[#allocation46_spill] sm:$0xff] %v15135_v15 }
 0x876   : > { %17375 = vst [vmem:[#allocation19_spill] sm:$0xff] %v15149_v52  ;;  %7653 = vmatpush.bf16.msrb.mxu0 %v10024_v46  ;;  %v17383_v46 = vld [vmem:[#allocation57_spill] sm:$0xff] }
 0x877   : > { %7604 = vmatpush.bf16.msrb.mxu3 %v9960_v13  ;;  %7703 = vmatpush.bf16.msra.mxu1 %v10080_v53  ;;  %v17401_v53 = vld [vmem:[#allocation70_spill] sm:$0xff] }
 0x878   : > { %v15080_v12 = vpop.eup %11071 }
 0x879   : > { %v6154_v37 = vmul.f32 %v15080_v12, %v14975_v6  ;;  %vm6160_vm8 = vweird.f32 %v15080_v12  ;;  %v17389_v6 = vld [vmem:[#allocation47_spill] sm:$0xff] }
 0x87a   : > { %vm6161_vm15 = vmor %vm6159_vm14, %vm6160_vm8 }
 0x87b   : > { %v6155_v8 = vmul.f32 %v15080_v12, %v6154_v37  ;;  %v17379_v37 = vld [vmem:[#allocation73_spill] sm:$0xff]  ;;  %7605 = vmatpush.bf16.msrb.mxu3 %v9952_v26 }
 0x87c   : > { %v15157_v34 = vmul.f32 %v17379_v37, %v17378_v48  ;;  %v15161_v25 = vmul.f32 %v17379_v37, %v17380_v50  ;;  %v15174_v13 = vmul.f32 %v17379_v37, %v17381_v10  ;;  %v6152_v50 = vsel %vm15099_vm13, %v14964_v30, %v6148_v0  ;;  %v10918_v30 = vld [vmem:[%s16752_s5 + $0x374] sm:$0xf0]  ;;  %v17382_v0 = vld [vmem:[#allocation55_spill] sm:$0xff]  ;;  %v17390_v26 = vld [vmem:[#allocation65_spill] sm:$0xff] }
 0x87d   : > { %v6156_v3 = vmul.f32 0.5, %v6155_v8  ;;  %v10016_v48 = vor.u32 %v10824_v45, %v10015_v32  ;;  %v10456_v10 = vor.u32 %v10934_v27, %v10455_v49  ;;  %v10391_v8 = vld [vmem:[%s16752_s5 + $0x370] sm:$0xf]  ;;  %v15196_v41 = vmul.f32 %v17379_v37, %v17382_v0  ;;  %v11142_v45 = vld [vmem:[#allocation8 + $0x1b] sm:$0xff] }
 0x87e   : > { %v15200_v54 = vmul.f32 %v17379_v37, %v17383_v46  ;;  %v15203_v32 = vmul.f32 %v6170_v31, %v6152_v50  ;;  %v6171_v1 = vperm.slane %v11142_v45, 7  ;;  %v10392_v49 = vor.u32 %v10918_v30, %v10391_v8  ;;  %v17397_v46 = vld [vmem:[#allocation68_spill] sm:$0xff] }
 0x87f   : > { %v6157_v27 = vsub.f32 1.5, %v6156_v3  ;;  %v15207_v0 = vmul.f32 %v17379_v37, %v17385_v55  ;;  %7654 = vmatpush.bf16.msrb.mxu0 %v10016_v48  ;;  %v17386_v3 = vld [vmem:[#allocation61_spill] sm:$0xff]  ;;  %v15217_v31 = vmul.f32 %v17379_v37, %v17387_v36  ;;  %7794 = vmatpush.bf16.msra.mxu3 %v10264_v5  ;;  %v15227_v61 = vmul.f32 %v17379_v37, %v17389_v6  ;;  %v17392_v48 = vld [vmem:[#allocation66_spill] sm:$0xff] }
 0x880   : > { %17384 = vst [vmem:[#allocation20_spill] sm:$0xff] %v15203_v32  ;;  %v15213_v62 = vmul.f32 %v17379_v37, %v17386_v3  ;;  %7941 = vmatpush.bf16.msra.mxu2 %v10456_v10  ;;  %v17388_v55 = vld [vmem:[#allocation45_spill] sm:$0xff]  ;;  %v15231_v50 = vmul.f32 %v17379_v37, %v17390_v26  ;;  %v15236_v5 = vmul.f32 %v17379_v37, %v17392_v48  ;;  %v17394_v10 = vld [vmem:[#allocation67_spill] sm:$0xff] }
 0x881   : > { %v6158_v2 = vmul.f32 %v15080_v12, %v6157_v27  ;;  %v15223_v59 = vmul.f32 %v17379_v37, %v17388_v55  ;;  %v15240_v11 = vmul.f32 %v17379_v37, %v17394_v10  ;;  %v6194_v8 = vmul.f32 %v15203_v32, %v14904_v21  ;;  %7892 = vmatpush.bf16.msrb.mxu1 %v10392_v49  ;;  %v17403_v3 = vld [vmem:[#allocation71_spill] sm:$0xff]  ;;  %v17404_v55 = vld [vmem:[#allocation72_spill] sm:$0xff]  ;;  %v17406_v26 = vld [vmem:[#allocation77_spill] sm:$0xff] }
 0x882   : > { %17391 = vst [vmem:[#allocation18_spill] sm:$0xff] %v15231_v50  ;;  %v15248_v27 = vmul.f32 %v17379_v37, %v17397_v46  ;;  %v17408_v10 = vld [vmem:[#allocation53_spill] sm:$0xff] }
 0x883   : > { %v6162_v33 = vsel %vm6161_vm15, %v15080_v12, %v6158_v2  ;;  %7843 = vmatpush.bf16.msra.mxu0 %v10328_v18  ;;  %17393 = vst [vmem:[#allocation49_spill] sm:$0xff] %v15236_v5  ;;  %v17399_v2 = vld [vmem:[#allocation69_spill] sm:$0xff]  ;;  %v17402_v18 = vld [vmem:[#allocation90_spill] sm:$0xff] }
 0x884   : > { %17395 = vst [vmem:[#allocation22_spill] sm:$0xff] %v15240_v11  ;;  %v15244_v30 = vmul.f32 %v6171_v1, %v6162_v33  ;;  %v15252_v12 = vmul.f32 %v17379_v37, %v17399_v2  ;;  %v6234_v45 = vmul.f32 %v17402_v18, %v17401_v53  ;;  %v6242_v36 = vmul.f32 %v17402_v18, %v17403_v3  ;;  %v17405_v1 = vld [vmem:[#allocation75_spill] sm:$0xff]  ;;  %v17407_v33 = vld [vmem:[#allocation78_spill] sm:$0xff]  ;;  %v17409_v2 = vld [vmem:[#allocation37_spill] sm:$0xff] }
 0x885   : > { %17398 = vst [vmem:[#allocation40_spill] sm:$0xff] %v15248_v27  ;;  %v15260_v21 = vmul.f32 %v17402_v18, %v17404_v55  ;;  %v15264_v49 = vmul.f32 %v17402_v18, %v17405_v1  ;;  %v15270_v37 = vmul.f32 %v17402_v18, %v17406_v26  ;;  %v15274_v48 = vmul.f32 %v17402_v18, %v17407_v33  ;;  %v17410_v3 = vld [vmem:[#allocation79_spill] sm:$0xff]  ;;  %v17411_v55 = vld [vmem:[#allocation80_spill] sm:$0xff] }
 0x886   : > { %17396 = vst [vmem:[#allocation24_spill] sm:$0xff] %v15244_v30  ;;  %v6195_v6 = vmul.f32 %v15244_v30, %v14970_v63  ;;  %v15278_v46 = vmul.f32 %v17402_v18, %v17408_v10  ;;  %v15282_v53 = vmul.f32 %v17402_v18, %v17409_v2  ;;  %v15286_v63 = vmul.f32 %v17402_v18, %v17410_v3 }
 0x887   : > { %17400 = vst [vmem:[#allocation23_spill] sm:$0xff] %v15252_v12  ;;  %v15290_v1 = vmul.f32 %v17402_v18, %v17411_v55  ;;  %v6209_v26 = vrot.slane %v6194_v8, 2  ;;  %v15294_v10 = vmul.f32 %v17402_v18, %v17412_v23  ;;  %v15298_v2 = vmul.f32 %v17402_v18, %v17414_v7  ;;  %v355_v8 = vld [vmem:[#allocation8 + $0x23] sm:$0xff] }
 0x888   : > { %v6210_v33 = vrot.slane %v6195_v6, 1  ;;  %v15302_v3 = vmul.f32 %v17402_v18, %v17416_v4  ;;  %v15306_v55 = vmul.f32 %v17402_v18, %v17418_v17  ;;  %v17422_v23 = vld [vmem:[#allocation87_spill] sm:$0xff]  ;;  %v15314_v7 = vmul.f32 %v17402_v18, %v17423_v28  ;;  %v17426_v4 = vld [vmem:[#allocation88_spill] sm:$0xff]  ;;  %v17427_v17 = vld [vmem:[#allocation89_spill] sm:$0xff] }
 0x889   : > { %17413 = vst [vmem:[#allocation26_spill] sm:$0xff] %v15294_v10  ;;  %v6243_v9 = vmul.f32 %v17421_v57, %v17422_v23  ;;  %v15319_v29 = vmul.f32 %v17421_v57, %v17426_v4  ;;  %v15323_v58 = vmul.f32 %v17421_v57, %v17427_v17  ;;  %v10255_v28 = vld [vmem:[%s16752_s5 + $0x260] sm:$0xf]  ;;  %v17431_v17 = vld [vmem:[#allocation94_spill] sm:$0xff]  ;;  %v17434_v12 = vld [vmem:[#allocation96_spill] sm:$0xff] }
 0x88a   : > { %17415 = vst [vmem:[#allocation28_spill] sm:$0xff] %v15298_v2  ;;  %v6217_v6 = vsel %vm6216_vm0, %v6209_v26, %v6210_v33  ;;  %v17428_v26 = vld [vmem:[#allocation91_spill] sm:$0xff]  ;;  %v17429_v33 = vld [vmem:[#allocation76_spill] sm:$0xff]  ;;  %v15364_v14 = vmul.f32 %v17421_v57, %v17434_v12 }
 0x88b   : > { %17417 = vst [vmem:[#allocation56_spill] sm:$0xff] %v15302_v3  ;;  %v6219_v16 = vsel %vm6218_vm1, %v17425_v19, %v6217_v6  ;;  %v15327_v39 = vmul.f32 %v17421_v57, %v17428_v26  ;;  %v10884_v19 = vld [vmem:[%s16752_s5 + $0x264] sm:$0xf0]  ;;  %v10447_v18 = vld [vmem:[%s16752_s5 + $0x3e0] sm:$0xf]  ;;  %v17430_v6 = vld [vmem:[#allocation93_spill] sm:$0xff]  ;;  %v15345_v26 = vmul.f32 %v17421_v57, %v17431_v17 }
 0x88c   : > { %17419 = vst [vmem:[#allocation58_spill] sm:$0xff] %v15306_v55  ;;  %v6221_v23 = vsel %vm6220_vm2, %v17429_v33, %v6219_v16  ;;  %v15341_v4 = vmul.f32 %v17421_v57, %v17430_v6  ;;  %v17432_v16 = vld [vmem:[#allocation95_spill] sm:$0xff]  ;;  %v10256_v32 = vor.u32 %v10884_v19, %v10255_v28  ;;  %v10900_v17 = vld [vmem:[%s16752_s5 + $0x2e4] sm:$0xf0]  ;;  %v17438_v19 = vld [vmem:[#allocation98_spill] sm:$0xff] }
 0x88d   : > { %17424 = vst [vmem:[#allocation60_spill] sm:$0xff] %v15314_v7  ;;  %v15349_v33 = vmul.f32 %v17421_v57, %v17432_v16  ;;  %v15351_v30 = vsub.f32 %v355_v8, %v6221_v23  ;;  %v10932_v7 = vld [vmem:[%s16752_s5 + $0x3e4] sm:$0xf0]  ;;  %v10319_v6 = vld [vmem:[%s16752_s5 + $0x2e0] sm:$0xf]  ;;  %v17436_v16 = vld [vmem:[#allocation97_spill] sm:$0xff]  ;;  %v15372_v55 = vmul.f32 %v17421_v57, %v17438_v19 }
 0x88e   : > { %17435 = vst [vmem:[#allocation73_spill] sm:$0xff] %v15364_v14  ;;  %v15368_v8 = vmul.f32 %v17421_v57, %v17436_v16  ;;  %v10448_v23 = vor.u32 %v10932_v7, %v10447_v18  ;;  %v10320_v28 = vor.u32 %v10900_v17, %v10319_v6  ;;  %v17440_v3 = vld [vmem:[#allocation99_spill] sm:$0xff]  ;;  %7795 = vmatpush.bf16.msra.mxu3 %v10256_v32  ;;  %v17442_v18 = vld [vmem:[#allocation100_spill] sm:$0xff]  ;;  %v17446_v16 = vld [vmem:[#allocation102_spill] sm:$0xff] }
 0x88f   : > { %17433 = vst [vmem:[#allocation62_spill] sm:$0xff] %v15351_v30  ;;  %v15376_v27 = vmul.f32 %v17421_v57, %v17440_v3  ;;  %v15379_v11 = vperm.slane %v15351_v30, 0  ;;  %v15382_v12 = vperm.slane %v15351_v30, 1  ;;  %v15385_v52 = vperm.slane %v15351_v30, 2  ;;  %v17444_v3 = vld [vmem:[#allocation101_spill] sm:$0xff] }
 0x890   : > { %17437 = vst [vmem:[#allocation51_spill] sm:$0xff] %v15368_v8  ;;  %v15388_v7 = vperm.slane %v15351_v30, 3  ;;  %7942 = vmatpush.bf16.msra.mxu2 %v10448_v23  ;;  %7844 = vmatpush.bf16.msra.mxu0 %v10320_v28  ;;  %v15392_v6 = vmul.f32 %v17421_v57, %v17442_v18  ;;  %v15396_v17 = vmul.f32 %v17421_v57, %v17444_v3 }
 0x891   : > { %17439 = vst [vmem:[#allocation50_spill] sm:$0xff] %v15372_v55  ;;  %v15400_v19 = vmul.f32 %v17421_v57, %v17446_v16  ;;  %v6377_v15 = vadd.f32 %v15379_v11, %v15022_v43  ;;  %v6385_v32 = vadd.f32 %v15379_v11, %v15026_v56  ;;  %v6378_v23 = vadd.f32 %v15382_v12, %v15157_v34 }
 0x892   : > { %17441 = vst [vmem:[#allocation55_spill] sm:$0xff] %v15376_v27  ;;  %v6386_v28 = vadd.f32 %v15382_v12, %v15161_v25  ;;  %v6379_v18 = vadd.f32 %v15385_v52, %v6234_v45  ;;  %v6387_v3 = vadd.f32 %v15385_v52, %v6242_v36  ;;  %v6380_v30 = vadd.f32 %v15388_v7, %v6235_v22 }
 0x893   : > { %17443 = vst [vmem:[#allocation57_spill] sm:$0xff] %v15392_v6  ;;  %v6388_v57 = vadd.f32 %v15388_v7, %v6243_v9  ;;  %v6505_v16 = vmul.f32 0.2, %v6377_v15  ;;  %v6506_v43 = vmul.f32 0.2, %v6378_v23  ;;  %v6393_v56 = vadd.f32 %v15379_v11, %v15039_v42 }
 0x894   : > { %17445 = vst [vmem:[#allocation59_spill] sm:$0xff] %v15396_v17  ;;  %v6514_v17 = vmul.f32 0.2, %v6386_v28  ;;  %v6507_v6 = vmul.f32 0.2, %v6379_v18  ;;  %v6401_v25 = vadd.f32 %v15379_v11, %v15053_v35  ;;  %v6394_v35 = vadd.f32 %v15382_v12, %v15174_v13 }
 0x895   : > { %17447 = vst [vmem:[#allocation61_spill] sm:$0xff] %v15400_v19  ;;  %v6513_v19 = vmul.f32 0.2, %v6385_v32  ;;  %v6515_v34 = vmul.f32 0.2, %v6387_v3  ;;  %v6633_v27 = vmax.f32 %v6377_v15, %v6505_v16  ;;  %v6634_v55 = vmax.f32 %v6378_v23, %v6506_v43 }
 0x896   : > { %v6508_v36 = vmul.f32 0.2, %v6380_v30  ;;  %v6642_v2 = vmax.f32 %v6386_v28, %v6514_v17  ;;  %v6635_v22 = vmax.f32 %v6379_v18, %v6507_v6  ;;  %v6516_v9 = vmul.f32 0.2, %v6388_v57 }
 0x897   : > { %v6641_v45 = vmax.f32 %v6385_v32, %v6513_v19  ;;  %v6643_v10 = vmax.f32 %v6387_v3, %v6515_v34  ;;  %v6521_v24 = vmul.f32 0.2, %v6393_v56  ;;  %v6529_v51 = vmul.f32 0.2, %v6401_v25 }
 0x898   : > { %v6636_v50 = vmax.f32 %v6380_v30, %v6508_v36  ;;  %v15420_v42 = vpack.c.bf16 %v6642_v2, %v6634_v55  ;;  %v6644_v14 = vmax.f32 %v6388_v57, %v6516_v9  ;;  %v6402_v6 = vadd.f32 %v15382_v12, %v15196_v41 }
 0x899   : > { %v15418_v5 = vpack.c.bf16 %v6641_v45, %v6633_v27  ;;  %v15422_v8 = vpack.c.bf16 %v6643_v10, %v6635_v22  ;;  %v6649_v15 = vmax.f32 %v6393_v56, %v6521_v24  ;;  %v6657_v17 = vmax.f32 %v6401_v25, %v6529_v51  ;;  %v10383_v27 = vld [vmem:[%s16752_s5 + $0x360] sm:$0xf]  ;;  %v10916_v10 = vld [vmem:[%s16752_s5 + $0x364] sm:$0xf0] }
 0x89a   : > { %v6395_v30 = vadd.f32 %v15385_v52, %v15260_v21  ;;  %7655 = vmatmul.bf16.vlgmr.msrb.gmra.mxu0 %v15420_v42  ;;  %v15439_v24 = vpack.c.bf16 %v6644_v14, %v6636_v50  ;;  %v6522_v51 = vmul.f32 0.2, %v6394_v35  ;;  %v6403_v13 = vadd.f32 %v15385_v52, %v15264_v49 }
 0x89b   : > { %7606 = vmatmul.bf16.vlgmr.msrb.gmra.mxu3 %v15418_v5  ;;  %7704 = vmatmul.bf16.vlgmr.msra.gmra.mxu1 %v15422_v8  ;;  %v6396_v41 = vadd.f32 %v15388_v7, %v15319_v29  ;;  %v15445_v21 = vpack.c.bf16 %v6657_v17, %v6649_v15  ;;  %v6530_v2 = vmul.f32 0.2, %v6402_v6  ;;  %v6404_v19 = vadd.f32 %v15388_v7, %v15323_v58  ;;  %v10439_v17 = vld [vmem:[%s16752_s5 + $0x3d0] sm:$0xf] }
 0x89c   : > { %v6523_v55 = vmul.f32 0.2, %v6395_v30  ;;  %7753 = vmatmul.bf16.vlgmr.msrb.gmra.mxu2 %v15439_v24  ;;  %v6650_v32 = vmax.f32 %v6394_v35, %v6522_v51  ;;  %v6531_v23 = vmul.f32 0.2, %v6403_v13  ;;  %v10384_v50 = vor.u32 %v10916_v10, %v10383_v27  ;;  %v10311_v51 = vld [vmem:[%s16752_s5 + $0x2d0] sm:$0xf] }
 0x89d   : > { %v6524_v14 = vmul.f32 0.2, %v6396_v41  ;;  %v6658_v28 = vmax.f32 %v6402_v6, %v6530_v2  ;;  %v6532_v3 = vmul.f32 0.2, %v6404_v19  ;;  %v6409_v49 = vadd.f32 %v15379_v11, %v15057_v47  ;;  %v10247_v47 = vld [vmem:[%s16752_s5 + $0x250] sm:$0xf] }
 0x89e   : > { %v6651_v18 = vmax.f32 %v6395_v30, %v6523_v55  ;;  %v6659_v29 = vmax.f32 %v6403_v13, %v6531_v23  ;;  %7893 = vmatpush.bf16.msrb.mxu1 %v10384_v50  ;;  %v6417_v16 = vadd.f32 %v15379_v11, %v15070_v40  ;;  %v6410_v58 = vadd.f32 %v15382_v12, %v15200_v54  ;;  %v10882_v54 = vld [vmem:[%s16752_s5 + $0x254] sm:$0xf0] }
 0x89f   : > { %v6652_v57 = vmax.f32 %v6396_v41, %v6524_v14  ;;  %v15456_v43 = vpack.c.bf16 %v6658_v28, %v6650_v32  ;;  %v6660_v56 = vmax.f32 %v6404_v19, %v6532_v3  ;;  %v6537_v34 = vmul.f32 0.2, %v6409_v49  ;;  %v10930_v6 = vld [vmem:[%s16752_s5 + $0x3d4] sm:$0xf0]  ;;  %v10375_v19 = vld [vmem:[%s16752_s5 + $0x350] sm:$0xf] }
 0x8a0   : > { %v6418_v25 = vadd.f32 %v15382_v12, %v15207_v0  ;;  %v15463_v45 = vpack.c.bf16 %v6659_v29, %v6651_v18  ;;  %v6545_v36 = vmul.f32 0.2, %v6417_v16  ;;  %v6538_v22 = vmul.f32 0.2, %v6410_v58 }
 0x8a1   : > { %v6411_v40 = vadd.f32 %v15385_v52, %v15270_v37  ;;  %v15470_v9 = vpack.c.bf16 %v6660_v56, %v6652_v57  ;;  %v6665_v35 = vmax.f32 %v6409_v49, %v6537_v34  ;;  %v6419_v0 = vadd.f32 %v15385_v52, %v15274_v48  ;;  %v10898_v48 = vld [vmem:[%s16752_s5 + $0x2d4] sm:$0xf0] }
 0x8a2   : > { %v6546_v15 = vmul.f32 0.2, %v6418_v25  ;;  %v6673_v37 = vmax.f32 %v6417_v16, %v6545_v36  ;;  %v6666_v30 = vmax.f32 %v6410_v58, %v6538_v22  ;;  %v6412_v10 = vadd.f32 %v15388_v7, %v15327_v39  ;;  %v10914_v39 = vld [vmem:[%s16752_s5 + $0x354] sm:$0xf0] }
 0x8a3   : > { %v6539_v27 = vmul.f32 0.2, %v6411_v40  ;;  %v6547_v41 = vmul.f32 0.2, %v6419_v0  ;;  %v6420_v2 = vadd.f32 %v15388_v7, %v15341_v4  ;;  %v10248_v55 = vor.u32 %v10882_v54, %v10247_v47 }
 0x8a4   : > { %v6674_v13 = vmax.f32 %v6418_v25, %v6546_v15  ;;  %v15496_v32 = vpack.c.bf16 %v6673_v37, %v6665_v35  ;;  %v6540_v14 = vmul.f32 0.2, %v6412_v10  ;;  %v10440_v50 = vor.u32 %v10930_v6, %v10439_v17 }
 0x8a5   : > { %v6667_v23 = vmax.f32 %v6411_v40, %v6539_v27  ;;  %v6675_v18 = vmax.f32 %v6419_v0, %v6547_v41  ;;  %v6548_v3 = vmul.f32 0.2, %v6420_v2  ;;  %7796 = vmatpush.bf16.msra.mxu3 %v10248_v55  ;;  %v10312_v4 = vor.u32 %v10898_v48, %v10311_v51  ;;  %v10239_v27 = vld [vmem:[%s16752_s5 + $0x240] sm:$0xf]  ;;  %v10928_v55 = vld [vmem:[%s16752_s5 + $0x3c4] sm:$0xf0] }
 0x8a6   : > { %v15498_v28 = vpack.c.bf16 %v6674_v13, %v6666_v30  ;;  %v6668_v49 = vmax.f32 %v6412_v10, %v6540_v14  ;;  %7943 = vmatpush.bf16.msra.mxu2 %v10440_v50  ;;  %v10376_v29 = vor.u32 %v10914_v39, %v10375_v19  ;;  %v6425_v57 = vadd.f32 %v15379_v11, %v15074_v44  ;;  %v10880_v10 = vld [vmem:[%s16752_s5 + $0x244] sm:$0xf0]  ;;  %v10431_v51 = vld [vmem:[%s16752_s5 + $0x3c0] sm:$0xf] }
 0x8a7   : > { %v6433_v16 = vadd.f32 %v15379_v11, %v15078_v38  ;;  %v15504_v58 = vpack.c.bf16 %v6675_v18, %v6667_v23  ;;  %v6676_v56 = vmax.f32 %v6420_v2, %v6548_v3  ;;  %7845 = vmatpush.bf16.msra.mxu0 %v10312_v4  ;;  %v6426_v34 = vadd.f32 %v15382_v12, %v15213_v62  ;;  %v10303_v19 = vld [vmem:[%s16752_s5 + $0x2c0] sm:$0xf]  ;;  %v10912_v50 = vld [vmem:[%s16752_s5 + $0x344] sm:$0xf0] }
 0x8a8   : > { %v6434_v25 = vadd.f32 %v15382_v12, %v15217_v31  ;;  %7894 = vmatpush.bf16.msrb.mxu1 %v10376_v29  ;;  %v6553_v47 = vmul.f32 0.2, %v6425_v57  ;;  %v6427_v22 = vadd.f32 %v15385_v52, %v15278_v46  ;;  %v6435_v44 = vadd.f32 %v15385_v52, %v15282_v53  ;;  %v10367_v14 = vld [vmem:[%s16752_s5 + $0x340] sm:$0xf] }
 0x8a9   : > { %v6561_v36 = vmul.f32 0.2, %v6433_v16  ;;  %v15515_v38 = vpack.c.bf16 %v6676_v56, %v6668_v49  ;;  %v6554_v40 = vmul.f32 0.2, %v6426_v34  ;;  %v6428_v62 = vadd.f32 %v15388_v7, %v15345_v26 }
 0x8aa   : > { %v6562_v54 = vmul.f32 0.2, %v6434_v25  ;;  %7660 = vmatmul.bf16.gmra.mxu0 %v15456_v43  ;;  %v6681_v31 = vmax.f32 %v6425_v57, %v6553_v47  ;;  %v6555_v15 = vmul.f32 0.2, %v6427_v22  ;;  %v6563_v46 = vmul.f32 0.2, %v6435_v44 }
 0x8ab   : > { %7611 = vmatmul.bf16.gmra.mxu3 %v15445_v21  ;;  %7709 = vmatmul.bf16.gmra.mxu1 %v15463_v45  ;;  %v6689_v35 = vmax.f32 %v6433_v16, %v6561_v36  ;;  %v6682_v0 = vmax.f32 %v6426_v34, %v6554_v40  ;;  %v6436_v53 = vadd.f32 %v15388_v7, %v15349_v33  ;;  %v6556_v6 = vmul.f32 0.2, %v6428_v62 }
 0x8ac   : > { %v6690_v17 = vmax.f32 %v6434_v25, %v6562_v54  ;;  %7758 = vmatmul.bf16.gmra.mxu2 %v15470_v9  ;;  %v6683_v30 = vmax.f32 %v6427_v22, %v6555_v15  ;;  %v6691_v26 = vmax.f32 %v6435_v44, %v6563_v46  ;;  %v6441_v33 = vadd.f32 %v15379_v11, %v15095_v20  ;;  %v10896_v20 = vld [vmem:[%s16752_s5 + $0x2c4] sm:$0xf0] }
 0x8ad   : > { %v15524_v37 = vpack.c.bf16 %v6689_v35, %v6681_v31  ;;  %v6564_v13 = vmul.f32 0.2, %v6436_v53  ;;  %v6684_v41 = vmax.f32 %v6428_v62, %v6556_v6  ;;  %v10240_v2 = vor.u32 %v10880_v10, %v10239_v27  ;;  %v17450_v62 = vld [vmem:[#allocation73_spill] sm:$0xff]  ;;  %v17451_v31 = vld [vmem:[#allocation51_spill] sm:$0xff] }
 0x8ae   : > { %v15537_v48 = vpack.c.bf16 %v6690_v17, %v6682_v0  ;;  %v15545_v39 = vpack.c.bf16 %v6691_v26, %v6683_v30  ;;  %v10432_v23 = vor.u32 %v10928_v55, %v10431_v51  ;;  %v6449_v18 = vadd.f32 %v15379_v11, %v15123_v60 }
 0x8af   : > { %v6442_v3 = vadd.f32 %v15382_v12, %v15223_v59  ;;  %v6692_v4 = vmax.f32 %v6436_v53, %v6564_v13  ;;  %7797 = vmatpush.bf16.msra.mxu3 %v10240_v2  ;;  %v10304_v49 = vor.u32 %v10896_v20, %v10303_v19  ;;  %v10368_v29 = vor.u32 %v10912_v50, %v10367_v14  ;;  %v17454_v53 = vld [vmem:[#allocation64_spill] sm:$0xff] }
 0x8b0   : > { %17448 = vst [vmem:[#allocation63_spill] sm:$0xff] %v15545_v39  ;;  %v6569_v57 = vmul.f32 0.2, %v6441_v33  ;;  %7944 = vmatpush.bf16.msra.mxu2 %v10432_v23  ;;  %v6577_v16 = vmul.f32 0.2, %v6449_v18  ;;  %v6450_v56 = vadd.f32 %v15382_v12, %v15227_v61  ;;  %v6443_v25 = vadd.f32 %v15385_v52, %v15286_v63  ;;  %v17452_v63 = vld [vmem:[#allocation44_spill] sm:$0xff] }
 0x8b1   : > { %v6570_v34 = vmul.f32 0.2, %v6442_v3  ;;  %v15564_v47 = vpack.c.bf16 %v6692_v4, %v6684_v41  ;;  %7846 = vmatpush.bf16.msra.mxu0 %v10304_v49  ;;  %7895 = vmatpush.bf16.msrb.mxu1 %v10368_v29  ;;  %v6451_v59 = vadd.f32 %v15385_v52, %v15290_v1  ;;  %v6444_v61 = vadd.f32 %v15388_v7, %v17450_v62  ;;  %v17457_v41 = vld [vmem:[#allocation49_spill] sm:$0xff]  ;;  %v17461_v29 = vld [vmem:[#allocation28_spill] sm:$0xff]  ;;  %v17465_v62 = vld [vmem:[#allocation46_spill] sm:$0xff] }
 0x8b2   : > { %v6697_v60 = vmax.f32 %v6441_v33, %v6569_v57  ;;  %v6705_v36 = vmax.f32 %v6449_v18, %v6577_v16  ;;  %v6578_v22 = vmul.f32 0.2, %v6450_v56  ;;  %v6571_v40 = vmul.f32 0.2, %v6443_v25  ;;  %v17456_v33 = vld [vmem:[#allocation18_spill] sm:$0xff] }
 0x8b3   : > { %17449 = vst [vmem:[#allocation45_spill] sm:$0xff] %v15564_v47  ;;  %v6698_v44 = vmax.f32 %v6442_v3, %v6570_v34  ;;  %v6579_v54 = vmul.f32 0.2, %v6451_v59  ;;  %v6452_v35 = vadd.f32 %v15388_v7, %v17451_v31  ;;  %v6457_v15 = vadd.f32 %v15379_v11, %v17452_v63  ;;  %v17459_v3 = vld [vmem:[#allocation26_spill] sm:$0xff]  ;;  %v17463_v34 = vld [vmem:[#allocation55_spill] sm:$0xff] }
 0x8b4   : > { %v15574_v46 = vpack.c.bf16 %v6705_v36, %v6697_v60  ;;  %v6706_v0 = vmax.f32 %v6450_v56, %v6578_v22  ;;  %v6699_v17 = vmax.f32 %v6443_v25, %v6571_v40  ;;  %v6465_v1 = vadd.f32 %v15379_v11, %v17454_v53  ;;  %v17462_v16 = vld [vmem:[#allocation50_spill] sm:$0xff]  ;;  %v10231_v31 = vld [vmem:[%s16752_s5 + $0x230] sm:$0xf] }
 0x8b5   : > { %v6707_v6 = vmax.f32 %v6451_v59, %v6579_v54  ;;  %v6572_v30 = vmul.f32 0.2, %v6444_v61  ;;  %v6580_v26 = vmul.f32 0.2, %v6452_v35  ;;  %v6585_v27 = vmul.f32 0.2, %v6457_v15 }
 0x8b6   : > { %17453 = vst [vmem:[#allocation47_spill] sm:$0xff] %v15574_v46  ;;  %v15578_v10 = vpack.c.bf16 %v6706_v0, %v6698_v44  ;;  %v6593_v51 = vmul.f32 0.2, %v6465_v1  ;;  %v6458_v13 = vadd.f32 %v15382_v12, %v17456_v33  ;;  %v6466_v2 = vadd.f32 %v15382_v12, %v17457_v41  ;;  %v10423_v63 = vld [vmem:[%s16752_s5 + $0x3b0] sm:$0xf] }
 0x8b7   : > { %v15584_v55 = vpack.c.bf16 %v6707_v6, %v6699_v17  ;;  %v6700_v19 = vmax.f32 %v6444_v61, %v6572_v30  ;;  %v6708_v23 = vmax.f32 %v6452_v35, %v6580_v26  ;;  %v6713_v20 = vmax.f32 %v6457_v15, %v6585_v27  ;;  %v10878_v35 = vld [vmem:[%s16752_s5 + $0x234] sm:$0xf0]  ;;  %v17467_v17 = vld [vmem:[#allocation19_spill] sm:$0xff]  ;;  %v10295_v27 = vld [vmem:[%s16752_s5 + $0x2b0] sm:$0xf] }
 0x8b8   : > { %17455 = vst [vmem:[#allocation65_spill] sm:$0xff] %v15578_v10  ;;  %v6721_v14 = vmax.f32 %v6465_v1, %v6593_v51  ;;  %v6586_v50 = vmul.f32 0.2, %v6458_v13  ;;  %v6594_v18 = vmul.f32 0.2, %v6466_v2  ;;  %v6459_v4 = vadd.f32 %v15385_v52, %v17459_v3  ;;  %v17468_v1 = vld [vmem:[#allocation22_spill] sm:$0xff] }
 0x8b9   : > { %17458 = vst [vmem:[#allocation66_spill] sm:$0xff] %v15584_v55  ;;  %v15589_v49 = vpack.c.bf16 %v6708_v23, %v6700_v19  ;;  %v6467_v57 = vadd.f32 %v15385_v52, %v17461_v29  ;;  %v6460_v56 = vadd.f32 %v15388_v7, %v17462_v16  ;;  %v6468_v25 = vadd.f32 %v15388_v7, %v17463_v34  ;;  %v10926_v26 = vld [vmem:[%s16752_s5 + $0x3b4] sm:$0xf0]  ;;  %v10359_v23 = vld [vmem:[%s16752_s5 + $0x330] sm:$0xf] }
 0x8ba   : > { %7665 = vmatmul.bf16.gmra.mxu0 %v15498_v28  ;;  %v15599_v60 = vpack.c.bf16 %v6721_v14, %v6713_v20  ;;  %v6714_v59 = vmax.f32 %v6458_v13, %v6586_v50  ;;  %v6722_v36 = vmax.f32 %v6466_v2, %v6594_v18  ;;  %v6587_v22 = vmul.f32 0.2, %v6459_v4  ;;  %v10894_v51 = vld [vmem:[%s16752_s5 + $0x2b4] sm:$0xf0]  ;;  %v17469_v50 = vld [vmem:[#allocation40_spill] sm:$0xff] }
 0x8bb   : > { %7616 = vmatmul.bf16.gmra.mxu3 %v15496_v32  ;;  %17460 = vst [vmem:[#allocation67_spill] sm:$0xff] %v15589_v49  ;;  %7714 = vmatmul.bf16.gmra.mxu1 %v15504_v58  ;;  %v6595_v44 = vmul.f32 0.2, %v6467_v57  ;;  %v6588_v40 = vmul.f32 0.2, %v6460_v56  ;;  %v6473_v61 = vadd.f32 %v15379_v11, %v17465_v62  ;;  %v6481_v53 = vadd.f32 %v15379_v11, %v17467_v17  ;;  %v17475_v62 = vld [vmem:[#allocation59_spill] sm:$0xff] }
 0x8bc   : > { %17464 = vst [vmem:[#allocation68_spill] sm:$0xff] %v15599_v60  ;;  %v6596_v54 = vmul.f32 0.2, %v6468_v25  ;;  %7763 = vmatmul.bf16.gmra.mxu2 %v15515_v38  ;;  %v15613_v15 = vpack.c.bf16 %v6722_v36, %v6714_v59  ;;  %v6715_v0 = vmax.f32 %v6459_v4, %v6587_v22  ;;  %v6474_v6 = vadd.f32 %v15382_v12, %v17468_v1  ;;  %v10910_v20 = vld [vmem:[%s16752_s5 + $0x334] sm:$0xf0] }
 0x8bd   : > { %v10232_v30 = vor.u32 %v10878_v35, %v10231_v31  ;;  %v6723_v33 = vmax.f32 %v6467_v57, %v6595_v44  ;;  %v6716_v13 = vmax.f32 %v6460_v56, %v6588_v40  ;;  %v10424_v2 = vor.u32 %v10926_v26, %v10423_v63  ;;  %v17473_v22 = vld [vmem:[#allocation58_spill] sm:$0xff]  ;;  %v17474_v40 = vld [vmem:[#allocation57_spill] sm:$0xff] }
 0x8be   : > { %17466 = vst [vmem:[#allocation69_spill] sm:$0xff] %v15613_v15  ;;  %v6724_v41 = vmax.f32 %v6468_v25, %v6596_v54  ;;  %v10296_v19 = vor.u32 %v10894_v51, %v10295_v27  ;;  %v6601_v14 = vmul.f32 0.2, %v6473_v61  ;;  %v6482_v18 = vadd.f32 %v15382_v12, %v17469_v50  ;;  %v17472_v25 = vld [vmem:[#allocation56_spill] sm:$0xff] }
 0x8bf   : > { %7798 = vmatpush.bf16.msra.mxu3 %v10232_v30  ;;  %v10360_v3 = vor.u32 %v10910_v20, %v10359_v23  ;;  %v15636_v4 = vpack.c.bf16 %v6723_v33, %v6715_v0  ;;  %v6609_v57 = vmul.f32 0.2, %v6481_v53  ;;  %7945 = vmatpush.bf16.msra.mxu2 %v10424_v2  ;;  %v6602_v56 = vmul.f32 0.2, %v6474_v6  ;;  %v17479_v33 = vld [vmem:[#allocation54_spill] sm:$0xff]  ;;  %v17480_v23 = vld [vmem:[#allocation23_spill] sm:$0xff] }
 0x8c0   : > { %v15638_v29 = vpack.c.bf16 %v6724_v41, %v6716_v13  ;;  %7847 = vmatpush.bf16.msra.mxu0 %v10296_v19  ;;  %v6729_v16 = vmax.f32 %v6473_v61, %v6601_v14  ;;  %v6610_v34 = vmul.f32 0.2, %v6482_v18  ;;  %v6475_v59 = vadd.f32 %v15385_v52, %v17472_v25  ;;  %v17476_v61 = vld [vmem:[#allocation21_spill] sm:$0xff]  ;;  %v17485_v25 = vld [vmem:[#allocation92_spill] sm:$0xff] }
 0x8c1   : > { %17470 = vst [vmem:[#allocation70_spill] sm:$0xff] %v15636_v4  ;;  %7896 = vmatpush.bf16.msrb.mxu1 %v10360_v3  ;;  %v6737_v36 = vmax.f32 %v6481_v53, %v6609_v57  ;;  %v6483_v44 = vadd.f32 %v15385_v52, %v17473_v22  ;;  %v6476_v54 = vadd.f32 %v15388_v7, %v17474_v40  ;;  %v17482_v57 = vld [vmem:[#allocation60_spill] sm:$0xff]  ;;  %v17486_v40 = vld [vmem:[#allocation61_spill] sm:$0xff] }
 0x8c2   : > { %17471 = vst [vmem:[#allocation90_spill] sm:$0xff] %v15638_v29  ;;  %v6484_v31 = vadd.f32 %v15388_v7, %v17475_v62  ;;  %v6730_v35 = vmax.f32 %v6474_v6, %v6602_v56  ;;  %v6738_v63 = vmax.f32 %v6482_v18, %v6610_v34  ;;  %v6603_v0 = vmul.f32 0.2, %v6475_v59  ;;  %v17481_v18 = vld [vmem:[#allocation74_spill] sm:$0xff] }
 0x8c3   : > { %v6489_v17 = vadd.f32 %v15379_v11, %v17476_v61  ;;  %v15650_v1 = vpack.c.bf16 %v6737_v36, %v6729_v16  ;;  %v6611_v30 = vmul.f32 0.2, %v6483_v44  ;;  %v6604_v26 = vmul.f32 0.2, %v6476_v54 }
 0x8c4   : > { %v6612_v53 = vmul.f32 0.2, %v6484_v31  ;;  %v15652_v27 = vpack.c.bf16 %v6738_v63, %v6730_v35  ;;  %v6731_v51 = vmax.f32 %v6475_v59, %v6603_v0  ;;  %v6497_v13 = vadd.f32 %v15379_v11, %v17479_v33 }
 0x8c5   : > { %17477 = vst [vmem:[#allocation71_spill] sm:$0xff] %v15650_v1  ;;  %v6617_v41 = vmul.f32 0.2, %v6489_v17  ;;  %v6739_v2 = vmax.f32 %v6483_v44, %v6611_v30  ;;  %v6732_v19 = vmax.f32 %v6476_v54, %v6604_v26  ;;  %v6490_v20 = vadd.f32 %v15382_v12, %v17480_v23  ;;  %v10223_v26 = vld [vmem:[%s16752_s5 + $0x220] sm:$0xf] }
 0x8c6   : > { %17478 = vst [vmem:[#allocation72_spill] sm:$0xff] %v15652_v27  ;;  %v6740_v6 = vmax.f32 %v6484_v31, %v6612_v53  ;;  %v6625_v14 = vmul.f32 0.2, %v6497_v13  ;;  %v6498_v3 = vadd.f32 %v15382_v12, %v17481_v18  ;;  %v6491_v16 = vadd.f32 %v15385_v52, %v17482_v57  ;;  %v17487_v31 = vld [vmem:[#allocation109_spill] sm:$0xff]  ;;  %v10415_v53 = vld [vmem:[%s16752_s5 + $0x3a0] sm:$0xf] }
 0x8c7   : > { %v6745_v50 = vmax.f32 %v6489_v17, %v6617_v41  ;;  %v15662_v56 = vpack.c.bf16 %v6739_v2, %v6731_v51  ;;  %v6618_v11 = vmul.f32 0.2, %v6490_v20  ;;  %v6499_v59 = vadd.f32 %v15385_v52, %v17485_v25  ;;  %v10924_v41 = vld [vmem:[%s16752_s5 + $0x3a4] sm:$0xf0]  ;;  %v10287_v2 = vld [vmem:[%s16752_s5 + $0x2a0] sm:$0xf] }
 0x8c8   : > { %v15664_v34 = vpack.c.bf16 %v6740_v6, %v6732_v19  ;;  %v6753_v36 = vmax.f32 %v6497_v13, %v6625_v14  ;;  %v6626_v22 = vmul.f32 0.2, %v6498_v3  ;;  %v6619_v44 = vmul.f32 0.2, %v6491_v16  ;;  %v10892_v19 = vld [vmem:[%s16752_s5 + $0x2a4] sm:$0xf0] }
 0x8c9   : > { %17483 = vst [vmem:[#allocation75_spill] sm:$0xff] %v15662_v56  ;;  %v6492_v54 = vadd.f32 %v15388_v7, %v17486_v40  ;;  %v6746_v12 = vmax.f32 %v6490_v20, %v6618_v11  ;;  %v6627_v62 = vmul.f32 0.2, %v6499_v59  ;;  %v6500_v35 = vadd.f32 %v15388_v7, %v17487_v31  ;;  %v10876_v7 = vld [vmem:[%s16752_s5 + $0x224] sm:$0xf0] }
 0x8ca   : > { %17484 = vst [vmem:[#allocation77_spill] sm:$0xff] %v15664_v34  ;;  %7670 = vmatmul.bf16.gmra.mxu0 %v15537_v48  ;;  %v15675_v63 = vpack.c.bf16 %v6753_v36, %v6745_v50  ;;  %v6754_v52 = vmax.f32 %v6498_v3, %v6626_v22  ;;  %v6747_v0 = vmax.f32 %v6491_v16, %v6619_v44  ;;  %v10351_v50 = vld [vmem:[%s16752_s5 + $0x320] sm:$0xf]  ;;  %v10908_v18 = vld [vmem:[%s16752_s5 + $0x324] sm:$0xf0] }
 0x8cb   : > { %7621 = vmatmul.bf16.gmra.mxu3 %v15524_v37  ;;  %7719 = vmatmul.bf16.gmra.mxu1 %v15545_v39  ;;  %v6620_v61 = vmul.f32 0.2, %v6492_v54  ;;  %v6755_v17 = vmax.f32 %v6499_v59, %v6627_v62  ;;  %v6628_v30 = vmul.f32 0.2, %v6500_v35  ;;  %v10224_v13 = vor.u32 %v10876_v7, %v10223_v26  ;;  %v10215_v16 = vld [vmem:[%s16752_s5 + $0x210] sm:$0xf] }
 0x8cc   : > { %17488 = vst [vmem:[#allocation78_spill] sm:$0xff] %v15675_v63  ;;  %7768 = vmatmul.bf16.gmra.mxu2 %v15564_v47  ;;  %v15687_v51 = vpack.c.bf16 %v6754_v52, %v6746_v12  ;;  %v10416_v20 = vor.u32 %v10924_v41, %v10415_v53  ;;  %v10288_v14 = vor.u32 %v10892_v19, %v10287_v2  ;;  %v10874_v11 = vld [vmem:[%s16752_s5 + $0x214] sm:$0xf0]  ;;  %v10407_v25 = vld [vmem:[%s16752_s5 + $0x390] sm:$0xf]  ;;  %v17492_v2 = vld [vmem:[#allocation36_spill] sm:$0xff] }
 0x8cd   : > { %v6748_v33 = vmax.f32 %v6492_v54, %v6620_v61  ;;  %v15698_v6 = vpack.c.bf16 %v6755_v17, %v6747_v0  ;;  %v6756_v23 = vmax.f32 %v6500_v35, %v6628_v30  ;;  %7799 = vmatpush.bf16.msra.mxu3 %v10224_v13  ;;  %v10352_v3 = vor.u32 %v10908_v18, %v10351_v50  ;;  %v10922_v36 = vld [vmem:[%s16752_s5 + $0x394] sm:$0xf0]  ;;  %v10279_v22 = vld [vmem:[%s16752_s5 + $0x290] sm:$0xf]  ;;  %v10207_v35 = vld [vmem:[%s16752_s5 + $0x200] sm:$0xf] }
 0x8ce   : > { %17489 = vst [vmem:[#allocation53_spill] sm:$0xff] %v15687_v51  ;;  %7946 = vmatpush.bf16.msra.mxu2 %v10416_v20  ;;  %7848 = vmatpush.bf16.msra.mxu0 %v10288_v14  ;;  %v10216_v59 = vor.u32 %v10874_v11, %v10215_v16  ;;  %v10890_v44 = vld [vmem:[%s16752_s5 + $0x294] sm:$0xf0]  ;;  %v10408_v40 = vor.u32 %v10922_v36, %v10407_v25  ;;  %v10343_v12 = vld [vmem:[%s16752_s5 + $0x310] sm:$0xf]  ;;  %v15768_v19 = vperm.slane %v17492_v2, 0 }
 0x8cf   : > { %17490 = vst [vmem:[#allocation37_spill] sm:$0xff] %v15698_v6  ;;  %v15706_v57 = vpack.c.bf16 %v6756_v23, %v6748_v33  ;;  %7897 = vmatpush.bf16.msrb.mxu1 %v10352_v3  ;;  %v10280_v54 = vor.u32 %v10890_v44, %v10279_v22  ;;  %v10906_v62 = vld [vmem:[%s16752_s5 + $0x314] sm:$0xf0]  ;;  %v10872_v52 = vld [vmem:[%s16752_s5 + $0x204] sm:$0xf0]  ;;  %v17493_v14 = vld [vmem:[#allocation127_spill] sm:$0xff] }
 0x8d0   : > { %v10344_v31 = vor.u32 %v10906_v62, %v10343_v12  ;;  %v10399_v0 = vld [vmem:[%s16752_s5 + $0x380] sm:$0xf]  ;;  %v10208_v61 = vor.u32 %v10872_v52, %v10207_v35  ;;  %v10920_v17 = vld [vmem:[%s16752_s5 + $0x384] sm:$0xf0]  ;;  %v10821_v23 = vld [vmem:[%s16752_s5 + $0x74] sm:$0xf] }
 0x8d1   : > { %17491 = vst [vmem:[#allocation79_spill] sm:$0xff] %v15706_v57  ;;  %7800 = vmatpush.bf16.msra.mxu3 %v10216_v59  ;;  %v10271_v30 = vld [vmem:[%s16752_s5 + $0x280] sm:$0xf]  ;;  %v10888_v26 = vld [vmem:[%s16752_s5 + $0x284] sm:$0xf0]  ;;  %v10400_v7 = vor.u32 %v10920_v17, %v10399_v0  ;;  %v15778_v50 = vperm.slane %v17493_v14, 0 }
 0x8d2   : > { %7947 = vmatpush.bf16.msra.mxu2 %v10408_v40  ;;  %7849 = vmatpush.bf16.msra.mxu0 %v10280_v54  ;;  %v10272_v53 = vor.u32 %v10888_v26, %v10271_v30  ;;  %v10335_v33 = vld [vmem:[%s16752_s5 + $0x300] sm:$0xf]  ;;  %v10904_v13 = vld [vmem:[%s16752_s5 + $0x304] sm:$0xf0]  ;;  %v10009_v20 = vld [vmem:[%s16752_s5 + $0x78] sm:$0xf0] }
 0x8d3   : > { %7898 = vmatpush.bf16.msrb.mxu1 %v10344_v31  ;;  %v10336_v41 = vor.u32 %v10904_v13, %v10335_v33  ;;  %v10012_v18 = vor.u32 %v10821_v23, %v10009_v20  ;;  %v17494_v3 = vld [vmem:[#allocation62_spill] sm:$0xff]  ;;  %v17495_v11 = vld [vmem:[#allocation20_spill] sm:$0xff]  ;;  %v17496_v59 = vld [vmem:[#allocation115_spill] sm:$0xff] }
 0x8d4   : > { %v15781_v16 = vperm.slane %v17494_v3, 4  ;;  %v15784_v25 = vperm.slane %v17495_v11, 0  ;;  %v6356_v36 = vmul.f32 %v15768_v19, %v17496_v59  ;;  %v15789_v22 = vperm.slane %v17494_v3, 5  ;;  %v17497_v44 = vld [vmem:[#allocation103_spill] sm:$0xff]  ;;  %v17498_v54 = vld [vmem:[#allocation114_spill] sm:$0xff]  ;;  %v17499_v62 = vld [vmem:[#allocation29_spill] sm:$0xff] }
 0x8d5   : > { %7801 = vmatpush.bf16.msra.mxu3 %v10208_v61  ;;  %v6236_v40 = vmul.f32 %v15768_v19, %v17497_v44  ;;  %v6348_v12 = vmul.f32 %v15768_v19, %v17498_v54  ;;  %v6357_v31 = vmul.f32 %v15778_v50, %v17499_v62  ;;  %v17500_v35 = vld [vmem:[#allocation24_spill] sm:$0xff]  ;;  %v15805_v26 = vperm.slane %v17494_v3, 6  ;;  %v17505_v2 = vld [vmem:[#allocation142_spill] sm:$0xff]  ;;  %v17506_v20 = vld [vmem:[#allocation31_spill] sm:$0xff] }
 0x8d6   : > { %7948 = vmatpush.bf16.msra.mxu2 %v10400_v7  ;;  %7850 = vmatpush.bf16.msra.mxu0 %v10272_v53  ;;  %v15798_v52 = vperm.slane %v17500_v35, 0  ;;  %v17501_v0 = vld [vmem:[#allocation104_spill] sm:$0xff]  ;;  %v17503_v7 = vld [vmem:[#allocation117_spill] sm:$0xff]  ;;  %v6358_v23 = vmul.f32 %v15784_v25, %v17505_v2  ;;  %v6238_v14 = vmul.f32 %v15784_v25, %v17506_v20  ;;  %v10201_v44 = vld [vmem:[%s16752_s5 + $0x1f8] sm:$0xf0] }
 0x8d7   : > { %7899 = vmatpush.bf16.msrb.mxu1 %v10336_v41  ;;  %v6244_v61 = vmul.f32 %v15768_v19, %v17501_v0  ;;  %v17502_v17 = vld [vmem:[#allocation116_spill] sm:$0xff]  ;;  %v6245_v53 = vmul.f32 %v15778_v50, %v17503_v7  ;;  %v6493_v33 = vadd.f32 %v15781_v16, %v6348_v12  ;;  %v10869_v59 = vld [vmem:[%s16752_s5 + $0x1f4] sm:$0xf]  ;;  %v6501_v12 = vadd.f32 %v15781_v16, %v6356_v36  ;;  %v10073_v35 = vld [vmem:[%s16752_s5 + $0xf8] sm:$0xf0] }
 0x8d8   : > { %v6237_v30 = vmul.f32 %v15778_v50, %v17502_v17  ;;  %v17504_v13 = vld [vmem:[#allocation32_spill] sm:$0xff]  ;;  %v10837_v54 = vld [vmem:[%s16752_s5 + $0xf4] sm:$0xf]  ;;  %v10204_v62 = vor.u32 %v10869_v59, %v10201_v44  ;;  %v10137_v17 = vld [vmem:[%s16752_s5 + $0x178] sm:$0xf0]  ;;  %v15844_v59 = vperm.slane %v17494_v3, 7  ;;  %v6503_v3 = vadd.f32 %v15805_v26, %v6358_v23 }
 0x8d9   : > { %7990 = vmatpush.bf16.msrb.mxu3 %v10012_v18  ;;  %v6349_v41 = vmul.f32 %v15778_v50, %v17504_v13  ;;  %v17507_v18 = vld [vmem:[#allocation34_spill] sm:$0xff]  ;;  %v6502_v13 = vadd.f32 %v15789_v22, %v6357_v31  ;;  %v17509_v20 = vld [vmem:[#allocation153_spill] sm:$0xff]  ;;  %v10076_v44 = vor.u32 %v10837_v54, %v10073_v35  ;;  %v15851_v31 = vadd.f32 %v15781_v16, %v6244_v61  ;;  %v17552_v47 = vld [vmem:[#allocation48_spill] sm:$0xff] }
 0x8da   : > { %7675 = vmatmul.bf16.gmra.mxu0 %v15578_v10  ;;  %v6246_v11 = vmul.f32 %v15784_v25, %v17507_v18  ;;  %v10853_v0 = vld [vmem:[%s16752_s5 + $0x174] sm:$0xf]  ;;  %v6359_v18 = vmul.f32 %v15798_v52, %v17509_v20  ;;  %8137 = vmatpush.bf16.msrb.mxu2 %v10204_v62  ;;  %v15855_v54 = vadd.f32 %v15789_v22, %v6237_v30  ;;  %v17540_v10 = vld [vmem:[#allocation111_spill] sm:$0xff] }
 0x8db   : > { %7626 = vmatmul.bf16.gmra.mxu3 %v15574_v46  ;;  %7724 = vmatmul.bf16.gmra.mxu1 %v15584_v55  ;;  %v6494_v7 = vadd.f32 %v15789_v22, %v6349_v41  ;;  %v17508_v2 = vld [vmem:[#allocation134_spill] sm:$0xff]  ;;  %v6630_v20 = vmul.f32 0.2, %v6502_v13  ;;  %v17565_v39 = vld [vmem:[#allocation35_spill] sm:$0xff] }
 0x8dc   : > { %7773 = vmatmul.bf16.gmra.mxu2 %v15589_v49  ;;  %v6350_v36 = vmul.f32 %v15784_v25, %v17508_v2  ;;  %8039 = vmatpush.bf16.msrb.mxu0 %v10076_v44  ;;  %v17528_v49 = vld [vmem:[#allocation107_spill] sm:$0xff] }
 0x8dd   : > { %v6622_v2 = vmul.f32 0.2, %v6494_v7 }
 0x8de   : > { %v6495_v41 = vadd.f32 %v15805_v26, %v6350_v36  ;;  %v6631_v36 = vmul.f32 0.2, %v6503_v3 }
 0x8df   : > { %v6750_v62 = vmax.f32 %v6494_v7, %v6622_v2  ;;  %v6391_v7 = vadd.f32 %v15805_v26, %v6246_v11 }
 0x8ea   : > { %7680 = vmatmul.bf16.gmra.mxu0 %v15613_v15 }
 0x8eb   : > { %7631 = vmatmul.bf16.gmra.mxu3 %v15599_v60  ;;  %7729 = vmatmul.bf16.gmra.mxu1 %v15636_v4 }
 0x8ec   : > { %7778 = vmatmul.bf16.gmra.mxu2 %v15638_v29  ;;  %v17510_v29 = vld [vmem:[#allocation152_spill] sm:$0xff] }
 0x8ed   : > { %v6351_v61 = vmul.f32 %v15798_v52, %v17510_v29  ;;  %v6383_v29 = vadd.f32 %v15805_v26, %v6238_v14 }
 0x8fa   : > { %7685 = vmatmul.bf16.gmra.mxu0 %v15652_v27  ;;  %v6621_v27 = vmul.f32 0.2, %v6493_v33 }
 0x8fb   : > { %7636 = vmatmul.bf16.gmra.mxu3 %v15650_v1  ;;  %7734 = vmatmul.bf16.gmra.mxu1 %v15662_v56  ;;  %v15847_v56 = vadd.f32 %v15781_v16, %v6236_v40  ;;  %v6629_v1 = vmul.f32 0.2, %v6501_v12 }
 0x8fc   : > { %7783 = vmatmul.bf16.gmra.mxu2 %v15664_v34  ;;  %v10140_v34 = vor.u32 %v10853_v0, %v10137_v17  ;;  %v6749_v35 = vmax.f32 %v6493_v33, %v6621_v27  ;;  %v6623_v0 = vmul.f32 0.2, %v6495_v41  ;;  %v6758_v17 = vmax.f32 %v6502_v13, %v6630_v20  ;;  %v17511_v13 = vld [vmem:[#allocation135_spill] sm:$0xff] }
 0x8fd   : > { %v6757_v40 = vmax.f32 %v6501_v12, %v6629_v1  ;;  %v6759_v1 = vmax.f32 %v6503_v3, %v6631_v36  ;;  %v6496_v33 = vadd.f32 %v15844_v59, %v6351_v61  ;;  %v6504_v12 = vadd.f32 %v15844_v59, %v6359_v18  ;;  %v10001_v18 = vld [vmem:[%s16752_s5 + $0x68] sm:$0xf0] }
 0x8fe   : > { %8088 = vmatpush.bf16.msra.mxu1 %v10140_v34  ;;  %v6390_v34 = vadd.f32 %v15789_v22, %v6245_v53  ;;  %v6751_v30 = vmax.f32 %v6495_v41, %v6623_v0  ;;  %v15865_v27 = vpack.c.bf16 %v6758_v17, %v6750_v62  ;;  %v6239_v44 = vmul.f32 %v15798_v52, %v17511_v13  ;;  %v17512_v53 = vld [vmem:[#allocation143_spill] sm:$0xff] }
 0x8ff   : > { %v15863_v23 = vpack.c.bf16 %v6757_v40, %v6749_v35  ;;  %v6247_v2 = vmul.f32 %v15798_v52, %v17512_v53  ;;  %v10819_v41 = vld [vmem:[%s16752_s5 + $0x64] sm:$0xf]  ;;  %v6624_v14 = vmul.f32 0.2, %v6496_v33  ;;  %v6632_v35 = vmul.f32 0.2, %v6504_v12 }
 0x900   : > { %v10004_v20 = vor.u32 %v10819_v41, %v10001_v18  ;;  %v15882_v3 = vpack.c.bf16 %v6759_v1, %v6751_v30  ;;  %v6509_v11 = vmul.f32 0.2, %v15847_v56  ;;  %v6384_v40 = vadd.f32 %v15844_v59, %v6239_v44 }
 0x901   : > { %v6392_v0 = vadd.f32 %v15844_v59, %v6247_v2  ;;  %v6517_v62 = vmul.f32 0.2, %v15851_v31  ;;  %v6510_v17 = vmul.f32 0.2, %v15855_v54  ;;  %v6752_v36 = vmax.f32 %v6496_v33, %v6624_v14  ;;  %v10193_v33 = vld [vmem:[%s16752_s5 + $0x1e8] sm:$0xf0] }
 0x902   : > { %7991 = vmatpush.bf16.msrb.mxu3 %v10004_v20  ;;  %v6760_v61 = vmax.f32 %v6504_v12, %v6632_v35  ;;  %v6518_v13 = vmul.f32 0.2, %v6390_v34  ;;  %v6511_v53 = vmul.f32 0.2, %v6383_v29  ;;  %v6519_v41 = vmul.f32 0.2, %v6391_v7 }
 0x903   : > { %v6512_v1 = vmul.f32 0.2, %v6384_v40  ;;  %v6520_v18 = vmul.f32 0.2, %v6392_v0  ;;  %v6645_v44 = vmax.f32 %v15851_v31, %v6517_v62  ;;  %v6638_v2 = vmax.f32 %v15855_v54, %v6510_v17  ;;  %v10835_v12 = vld [vmem:[%s16752_s5 + $0xe4] sm:$0xf] }
 0x904   : > { %v15889_v30 = vpack.c.bf16 %v6760_v61, %v6752_v36  ;;  %v6646_v20 = vmax.f32 %v6390_v34, %v6518_v13  ;;  %v6639_v14 = vmax.f32 %v6383_v29, %v6511_v53  ;;  %v6647_v35 = vmax.f32 %v6391_v7, %v6519_v41  ;;  %v10065_v31 = vld [vmem:[%s16752_s5 + $0xe8] sm:$0xf0]  ;;  %v10851_v54 = vld [vmem:[%s16752_s5 + $0x164] sm:$0xf] }
 0x905   : > { %v10068_v62 = vor.u32 %v10835_v12, %v10065_v31  ;;  %v6640_v36 = vmax.f32 %v6384_v40, %v6512_v1  ;;  %v6648_v61 = vmax.f32 %v6392_v0, %v6520_v18  ;;  %v356_v34 = vld [vmem:[#allocation8 + $0x2b] sm:$0x3]  ;;  %v17516_v41 = vld [vmem:[#allocation105_spill] sm:$0xff]  ;;  %v17517_v40 = vld [vmem:[#allocation106_spill] sm:$0xff] }
 0x906   : > { %v15914_v13 = vpack.c.bf16 %v6646_v20, %v6638_v2  ;;  %v15916_v53 = vpack.c.bf16 %v6647_v35, %v6639_v14  ;;  %v15921_v12 = vperm.slane %v356_v34, 0  ;;  %v6260_v0 = vmul.f32 %v15768_v19, %v17517_v40  ;;  %v17518_v1 = vld [vmem:[#allocation118_spill] sm:$0xff]  ;;  %v17519_v18 = vld [vmem:[#allocation119_spill] sm:$0xff]  ;;  %v17522_v35 = vld [vmem:[#allocation33_spill] sm:$0xff] }
 0x907   : > { %8040 = vmatpush.bf16.msrb.mxu0 %v10068_v62  ;;  %v15931_v2 = vpack.c.bf16 %v6648_v61, %v6640_v36  ;;  %v17521_v20 = vld [vmem:[#allocation39_spill] sm:$0xff]  ;;  %v17523_v34 = vld [vmem:[#allocation136_spill] sm:$0xff] }
 0x908   : > { %17514 = vst [vmem:[#allocation81_spill] sm:$0xff] %v15914_v13  ;;  %v6254_v14 = vmul.f32 %v15784_v25, %v17521_v20  ;;  %v17524_v40 = vld [vmem:[#allocation144_spill] sm:$0xff] }
 0x909   : > { %17515 = vst [vmem:[#allocation82_spill] sm:$0xff] %v15916_v53 }
 0x90a   : > { %7690 = vmatmul.bf16.gmra.mxu0 %v15687_v51  ;;  %17520 = vst [vmem:[#allocation83_spill] sm:$0xff] %v15931_v2  ;;  %v6399_v36 = vadd.f32 %v15805_v26, %v6254_v14 }
 0x90b   : > { %7641 = vmatmul.bf16.gmra.mxu3 %v15675_v63  ;;  %7739 = vmatmul.bf16.gmra.mxu1 %v15698_v6  ;;  %v10867_v6 = vld [vmem:[%s16752_s5 + $0x1e4] sm:$0xf] }
 0x90c   : > { %7788 = vmatmul.bf16.gmra.mxu2 %v15706_v57  ;;  %v6637_v57 = vmax.f32 %v15847_v56, %v6509_v11  ;;  %v10196_v56 = vor.u32 %v10867_v6, %v10193_v33  ;;  %v10129_v11 = vld [vmem:[%s16752_s5 + $0x168] sm:$0xf0]  ;;  %v6252_v33 = vmul.f32 %v15768_v19, %v17516_v41  ;;  %v6255_v41 = vmul.f32 %v15798_v52, %v17523_v34 }
 0x90d   : > { %v10132_v17 = vor.u32 %v10851_v54, %v10129_v11  ;;  %v6405_v54 = vadd.f32 %v15781_v16, %v6260_v0  ;;  %v9993_v0 = vld [vmem:[%s16752_s5 + $0x58] sm:$0xf0] }
 0x90e   : > { %8138 = vmatpush.bf16.msrb.mxu2 %v10196_v56  ;;  %v15912_v7 = vpack.c.bf16 %v6645_v44, %v6637_v57  ;;  %v6253_v57 = vmul.f32 %v15778_v50, %v17518_v1  ;;  %v6261_v44 = vmul.f32 %v15778_v50, %v17519_v18  ;;  %v6262_v56 = vmul.f32 %v15784_v25, %v17522_v35 }
 0x90f   : > { %8089 = vmatpush.bf16.msra.mxu1 %v10132_v17  ;;  %v6397_v31 = vadd.f32 %v15781_v16, %v6252_v33  ;;  %v6263_v1 = vmul.f32 %v15798_v52, %v17524_v40  ;;  %v10817_v33 = vld [vmem:[%s16752_s5 + $0x54] sm:$0xf]  ;;  %v6533_v40 = vmul.f32 0.2, %v6405_v54 }
 0x910   : > { %17513 = vst [vmem:[#allocation80_spill] sm:$0xff] %v15912_v7  ;;  %v6398_v11 = vadd.f32 %v15789_v22, %v6253_v57  ;;  %v6406_v62 = vadd.f32 %v15789_v22, %v6261_v44  ;;  %v6407_v61 = vadd.f32 %v15805_v26, %v6262_v56  ;;  %v9996_v18 = vor.u32 %v10817_v33, %v9993_v0 }
 0x911   : > { %v6400_v44 = vadd.f32 %v15844_v59, %v6255_v41  ;;  %v6408_v20 = vadd.f32 %v15844_v59, %v6263_v1  ;;  %v6525_v34 = vmul.f32 0.2, %v6397_v31  ;;  %v6661_v41 = vmax.f32 %v6405_v54, %v6533_v40  ;;  %v10185_v1 = vld [vmem:[%s16752_s5 + $0x1d8] sm:$0xf0] }
 0x912   : > { %7992 = vmatpush.bf16.msrb.mxu3 %v9996_v18  ;;  %v6535_v51 = vmul.f32 0.2, %v6407_v61  ;;  %v10121_v54 = vld [vmem:[%s16752_s5 + $0x158] sm:$0xf0] }
 0x913   : > { %v6528_v4 = vmul.f32 0.2, %v6400_v44  ;;  %v6536_v15 = vmul.f32 0.2, %v6408_v20  ;;  %v6653_v33 = vmax.f32 %v6397_v31, %v6525_v34  ;;  %v10849_v31 = vld [vmem:[%s16752_s5 + $0x154] sm:$0xf] }
 0x914   : > { %v10124_v40 = vor.u32 %v10849_v31, %v10121_v54 }
 0x916   : > { %8090 = vmatpush.bf16.msra.mxu1 %v10124_v40  ;;  %v17535_v40 = vld [vmem:[#allocation137_spill] sm:$0xff] }
 0x917   : > { %v7656_v29 = vpop.f32.mrf.mxu0 }
 0x918   : > { %v7705_v6 = vpop.f32.mrf.mxu1 }
 0x91a   : > { %7851 = vmatmul.bf16.vlgmr.msra.gmra.mxu0 %v15914_v13  ;;  %v6534_v13 = vmul.f32 0.2, %v6406_v62 }
 0x91b   : > { %7802 = vmatmul.bf16.vlgmr.msra.gmra.mxu3 %v15912_v7  ;;  %7900 = vmatmul.bf16.vlgmr.msrb.gmra.mxu1 %v15916_v53  ;;  %v6527_v7 = vmul.f32 0.2, %v6399_v36 }
 0x91c   : > { %7949 = vmatmul.bf16.vlgmr.msra.gmra.mxu2 %v15931_v2  ;;  %v6526_v2 = vmul.f32 0.2, %v6398_v11  ;;  %v6662_v18 = vmax.f32 %v6406_v62, %v6534_v13  ;;  %v6656_v13 = vmax.f32 %v6400_v44, %v6528_v4  ;;  %v17530_v44 = vld [vmem:[#allocation120_spill] sm:$0xff] }
 0x91e   : > { %v7607_v17 = vpop.f32.mrf.mxu3  ;;  %v6654_v0 = vmax.f32 %v6398_v11, %v6526_v2  ;;  %v10057_v2 = vld [vmem:[%s16752_s5 + $0xd8] sm:$0xf0] }
 0x91f   : > { %v7608_v57 = vadd.f32 %v7607_v17, %v15921_v12  ;;  %v7754_v35 = vpop.f32.mrf.mxu2  ;;  %v7658_v56 = vpop.f32.mrf.mxu0 }
 0x920   : > { %v7707_v53 = vpop.f32.mrf.mxu1 }
 0x921   : > { %v7657_v14 = vadd.f32 %v7656_v29, %v7608_v57  ;;  %v10865_v29 = vld [vmem:[%s16752_s5 + $0x1d4] sm:$0xf] }
 0x922   : > { %v10833_v57 = vld [vmem:[%s16752_s5 + $0xd4] sm:$0xf] }
 0x923   : > { %v7706_v63 = vadd.f32 %v7705_v6, %v7657_v14  ;;  %v6655_v14 = vmax.f32 %v6399_v36, %v6527_v7  ;;  %v10060_v34 = vor.u32 %v10833_v57, %v10057_v2  ;;  %v6664_v7 = vmax.f32 %v6408_v20, %v6536_v15  ;;  %v17529_v57 = vld [vmem:[#allocation110_spill] sm:$0xff] }
 0x924   : > { %v6276_v4 = vmul.f32 %v15768_v19, %v17529_v57  ;;  %v6269_v20 = vmul.f32 %v15778_v50, %v17530_v44 }
 0x925   : > { %v15957_v17 = vadd.f32 %v7754_v35, %v7706_v63  ;;  %v6663_v63 = vmax.f32 %v6407_v61, %v6535_v51  ;;  %v10188_v35 = vor.u32 %v10865_v29, %v10185_v1  ;;  %v15978_v61 = vpack.c.bf16 %v6661_v41, %v6653_v33  ;;  %8041 = vmatpush.bf16.msrb.mxu0 %v10060_v34  ;;  %v17532_v41 = vld [vmem:[#allocation126_spill] sm:$0xff] }
 0x926   : > { %v7609_v6 = vpop.f32.mrf.mxu3  ;;  %v15980_v1 = vpack.c.bf16 %v6662_v18, %v6654_v0  ;;  %v6270_v0 = vmul.f32 %v15784_v25, %v17532_v41  ;;  %v6414_v2 = vadd.f32 %v15789_v22, %v6269_v20 }
 0x927   : > { %v7610_v11 = vadd.f32 %v7609_v6, %v15921_v12  ;;  %8139 = vmatpush.bf16.msrb.mxu2 %v10188_v35  ;;  %v7756_v62 = vpop.f32.mrf.mxu2  ;;  %v7661_v36 = vpop.f32.mrf.mxu0  ;;  %17525 = vst [vmem:[#allocation84_spill] sm:$0xff] %v15978_v61  ;;  %v15982_v60 = vpack.c.bf16 %v6663_v63, %v6655_v14  ;;  %v6268_v6 = vmul.f32 %v15768_v19, %v17528_v49 }
 0x928   : > { %v7710_v29 = vpop.f32.mrf.mxu1  ;;  %17526 = vst [vmem:[#allocation86_spill] sm:$0xff] %v15980_v1  ;;  %v15997_v49 = vpack.c.bf16 %v6664_v7, %v6656_v13  ;;  %v6421_v35 = vadd.f32 %v15781_v16, %v6276_v4  ;;  %v6271_v13 = vmul.f32 %v15798_v52, %v17535_v40  ;;  %v17536_v7 = vld [vmem:[#allocation145_spill] sm:$0xff] }
 0x929   : > { %v7659_v51 = vadd.f32 %v7658_v56, %v7610_v11  ;;  %17527 = vst [vmem:[#allocation108_spill] sm:$0xff] %v15982_v60  ;;  %v17531_v56 = vld [vmem:[#allocation121_spill] sm:$0xff]  ;;  %v6413_v18 = vadd.f32 %v15781_v16, %v6268_v6  ;;  %v6415_v11 = vadd.f32 %v15805_v26, %v6270_v0 }
 0x92a   : > { %v6277_v33 = vmul.f32 %v15778_v50, %v17531_v56  ;;  %7856 = vmatmul.bf16.gmra.mxu0 %v15980_v1  ;;  %17533 = vst [vmem:[#allocation87_spill] sm:$0xff] %v15997_v49  ;;  %v9985_v6 = vld [vmem:[%s16752_s5 + $0x48] sm:$0xf0]  ;;  %v6549_v0 = vmul.f32 0.2, %v6421_v35 }
 0x92b   : > { %v7708_v15 = vadd.f32 %v7707_v53, %v7659_v51  ;;  %7807 = vmatmul.bf16.gmra.mxu3 %v15978_v61  ;;  %7905 = vmatmul.bf16.gmra.mxu1 %v15982_v60  ;;  %v17534_v53 = vld [vmem:[#allocation129_spill] sm:$0xff]  ;;  %v6279_v51 = vmul.f32 %v15798_v52, %v17536_v7  ;;  %v6541_v41 = vmul.f32 0.2, %v6413_v18  ;;  %v6543_v7 = vmul.f32 0.2, %v6415_v11 }
 0x92c   : > { %v6278_v14 = vmul.f32 %v15784_v25, %v17534_v53  ;;  %v6422_v31 = vadd.f32 %v15789_v22, %v6277_v33  ;;  %7954 = vmatmul.bf16.gmra.mxu2 %v15997_v49  ;;  %v6542_v53 = vmul.f32 0.2, %v6414_v2 }
 0x92d   : > { %v16002_v63 = vadd.f32 %v7756_v62, %v7708_v15  ;;  %v10815_v62 = vld [vmem:[%s16752_s5 + $0x44] sm:$0xf]  ;;  %v6416_v15 = vadd.f32 %v15844_v59, %v6271_v13  ;;  %v6424_v44 = vadd.f32 %v15844_v59, %v6279_v51  ;;  %v6677_v13 = vmax.f32 %v6421_v35, %v6549_v0  ;;  %v10177_v51 = vld [vmem:[%s16752_s5 + $0x1c8] sm:$0xf0] }
 0x92e   : > { %v7612_v54 = vpop.f32.mrf.mxu3  ;;  %v6423_v34 = vadd.f32 %v15805_v26, %v6278_v14  ;;  %v9988_v4 = vor.u32 %v10815_v62, %v9985_v6  ;;  %v6550_v40 = vmul.f32 0.2, %v6422_v31  ;;  %v6669_v62 = vmax.f32 %v6413_v18, %v6541_v41  ;;  %v10049_v18 = vld [vmem:[%s16752_s5 + $0xc8] sm:$0xf0]  ;;  %v10847_v35 = vld [vmem:[%s16752_s5 + $0x144] sm:$0xf] }
 0x92f   : > { %v7613_v57 = vadd.f32 %v7612_v54, %v15921_v12  ;;  %v7759_v56 = vpop.f32.mrf.mxu2  ;;  %v7663_v33 = vpop.f32.mrf.mxu0  ;;  %v6544_v1 = vmul.f32 0.2, %v6416_v15  ;;  %v6552_v61 = vmul.f32 0.2, %v6424_v44  ;;  %v6670_v6 = vmax.f32 %v6414_v2, %v6542_v53  ;;  %v10113_v2 = vld [vmem:[%s16752_s5 + $0x148] sm:$0xf0] }
 0x930   : > { %7993 = vmatpush.bf16.msrb.mxu3 %v9988_v4  ;;  %v7712_v14 = vpop.f32.mrf.mxu1  ;;  %v6551_v49 = vmul.f32 0.2, %v6423_v34  ;;  %v6678_v4 = vmax.f32 %v6422_v31, %v6550_v40  ;;  %v10116_v53 = vor.u32 %v10847_v35, %v10113_v2 }
 0x931   : > { %v7662_v20 = vadd.f32 %v7661_v36, %v7613_v57  ;;  %v10863_v36 = vld [vmem:[%s16752_s5 + $0x1c4] sm:$0xf]  ;;  %v6672_v31 = vmax.f32 %v6416_v15, %v6544_v1  ;;  %v17542_v15 = vld [vmem:[#allocation122_spill] sm:$0xff] }
 0x932   : > { %v10831_v57 = vld [vmem:[%s16752_s5 + $0xc4] sm:$0xf]  ;;  %8091 = vmatpush.bf16.msra.mxu1 %v10116_v53  ;;  %v17547_v53 = vld [vmem:[#allocation138_spill] sm:$0xff] }
 0x933   : > { %v7711_v60 = vadd.f32 %v7710_v29, %v7662_v20  ;;  %v6671_v20 = vmax.f32 %v6415_v11, %v6543_v7  ;;  %v10052_v0 = vor.u32 %v10831_v57, %v10049_v18  ;;  %v6680_v11 = vmax.f32 %v6424_v44, %v6552_v61  ;;  %v17541_v57 = vld [vmem:[#allocation112_spill] sm:$0xff] }
 0x934   : > { %v16044_v7 = vpack.c.bf16 %v6677_v13, %v6669_v62  ;;  %v6292_v1 = vmul.f32 %v15768_v19, %v17541_v57  ;;  %v6285_v44 = vmul.f32 %v15778_v50, %v17542_v15  ;;  %v17544_v13 = vld [vmem:[#allocation130_spill] sm:$0xff] }
 0x935   : > { %v16023_v54 = vadd.f32 %v7759_v56, %v7711_v60  ;;  %v6679_v60 = vmax.f32 %v6423_v34, %v6551_v49  ;;  %v10180_v56 = vor.u32 %v10863_v36, %v10177_v51  ;;  %8042 = vmatpush.bf16.msrb.mxu0 %v10052_v0  ;;  %v16046_v51 = vpack.c.bf16 %v6678_v4, %v6670_v6 }
 0x936   : > { %v7614_v29 = vpop.f32.mrf.mxu3  ;;  %17537 = vst [vmem:[#allocation85_spill] sm:$0xff] %v16044_v7  ;;  %v6286_v6 = vmul.f32 %v15784_v25, %v17544_v13  ;;  %v6430_v18 = vadd.f32 %v15789_v22, %v6285_v44 }
 0x937   : > { %v7615_v41 = vadd.f32 %v7614_v29, %v15921_v12  ;;  %8140 = vmatpush.bf16.msrb.mxu2 %v10180_v56  ;;  %v7761_v34 = vpop.f32.mrf.mxu2  ;;  %v7666_v40 = vpop.f32.mrf.mxu0  ;;  %17538 = vst [vmem:[#allocation128_spill] sm:$0xff] %v16046_v51  ;;  %v16048_v55 = vpack.c.bf16 %v6679_v60, %v6671_v20  ;;  %v6284_v29 = vmul.f32 %v15768_v19, %v17540_v10 }
 0x938   : > { %v7715_v36 = vpop.f32.mrf.mxu1  ;;  %v16063_v10 = vpack.c.bf16 %v6680_v11, %v6672_v31  ;;  %v6437_v56 = vadd.f32 %v15781_v16, %v6292_v1  ;;  %v6287_v31 = vmul.f32 %v15798_v52, %v17547_v53  ;;  %v17548_v11 = vld [vmem:[#allocation146_spill] sm:$0xff] }
 0x939   : > { %v7664_v49 = vadd.f32 %v7663_v33, %v7615_v41  ;;  %17539 = vst [vmem:[#allocation88_spill] sm:$0xff] %v16048_v55  ;;  %v17543_v33 = vld [vmem:[#allocation123_spill] sm:$0xff]  ;;  %v6429_v4 = vadd.f32 %v15781_v16, %v6284_v29  ;;  %v6431_v41 = vadd.f32 %v15805_v26, %v6286_v6 }
 0x93a   : > { %v6293_v62 = vmul.f32 %v15778_v50, %v17543_v33  ;;  %7861 = vmatmul.bf16.gmra.mxu0 %v16046_v51  ;;  %17545 = vst [vmem:[#allocation89_spill] sm:$0xff] %v16063_v10  ;;  %v9977_v29 = vld [vmem:[%s16752_s5 + $0x38] sm:$0xf0]  ;;  %v6565_v6 = vmul.f32 0.2, %v6437_v56 }
 0x93b   : > { %v7713_v61 = vadd.f32 %v7712_v14, %v7664_v49  ;;  %7812 = vmatmul.bf16.gmra.mxu3 %v16044_v7  ;;  %7910 = vmatmul.bf16.gmra.mxu1 %v16048_v55  ;;  %v17546_v14 = vld [vmem:[#allocation42_spill] sm:$0xff]  ;;  %v6295_v49 = vmul.f32 %v15798_v52, %v17548_v11  ;;  %v6557_v13 = vmul.f32 0.2, %v6429_v4  ;;  %v6559_v11 = vmul.f32 0.2, %v6431_v41 }
 0x93c   : > { %v6294_v20 = vmul.f32 %v15784_v25, %v17546_v14  ;;  %v6438_v35 = vadd.f32 %v15789_v22, %v6293_v62  ;;  %7959 = vmatmul.bf16.gmra.mxu2 %v16063_v10  ;;  %v6558_v14 = vmul.f32 0.2, %v6430_v18 }
 0x93d   : > { %v16068_v60 = vadd.f32 %v7761_v34, %v7713_v61  ;;  %v10813_v34 = vld [vmem:[%s16752_s5 + $0x34] sm:$0xf]  ;;  %v6432_v61 = vadd.f32 %v15844_v59, %v6287_v31  ;;  %v6440_v15 = vadd.f32 %v15844_v59, %v6295_v49  ;;  %v6693_v31 = vmax.f32 %v6437_v56, %v6565_v6  ;;  %v10169_v49 = vld [vmem:[%s16752_s5 + $0x1b8] sm:$0xf0] }
 0x93e   : > { %v7617_v2 = vpop.f32.mrf.mxu3  ;;  %v6439_v0 = vadd.f32 %v15805_v26, %v6294_v20  ;;  %v9980_v1 = vor.u32 %v10813_v34, %v9977_v29  ;;  %v6566_v53 = vmul.f32 0.2, %v6438_v35  ;;  %v6685_v34 = vmax.f32 %v6429_v4, %v6557_v13  ;;  %v10041_v4 = vld [vmem:[%s16752_s5 + $0xb8] sm:$0xf0]  ;;  %v10845_v56 = vld [vmem:[%s16752_s5 + $0x134] sm:$0xf] }
 0x93f   : > { %v7618_v57 = vadd.f32 %v7617_v2, %v15921_v12  ;;  %v7764_v33 = vpop.f32.mrf.mxu2  ;;  %v7668_v62 = vpop.f32.mrf.mxu0  ;;  %v6560_v51 = vmul.f32 0.2, %v6432_v61  ;;  %v6568_v7 = vmul.f32 0.2, %v6440_v15  ;;  %v6686_v29 = vmax.f32 %v6430_v18, %v6558_v14  ;;  %v10105_v18 = vld [vmem:[%s16752_s5 + $0x138] sm:$0xf0] }
 0x940   : > { %7994 = vmatpush.bf16.msrb.mxu3 %v9980_v1  ;;  %v7717_v20 = vpop.f32.mrf.mxu1  ;;  %v6567_v10 = vmul.f32 0.2, %v6439_v0  ;;  %v6694_v1 = vmax.f32 %v6438_v35, %v6566_v53  ;;  %v10108_v14 = vor.u32 %v10845_v56, %v10105_v18 }
 0x941   : > { %v7667_v44 = vadd.f32 %v7666_v40, %v7618_v57  ;;  %v10861_v40 = vld [vmem:[%s16752_s5 + $0x1b4] sm:$0xf]  ;;  %v6688_v35 = vmax.f32 %v6432_v61, %v6560_v51  ;;  %v17554_v61 = vld [vmem:[#allocation124_spill] sm:$0xff] }
 0x942   : > { %v10829_v57 = vld [vmem:[%s16752_s5 + $0xb4] sm:$0xf]  ;;  %8092 = vmatpush.bf16.msra.mxu1 %v10108_v14  ;;  %v17559_v14 = vld [vmem:[#allocation147_spill] sm:$0xff] }
 0x943   : > { %v7716_v55 = vadd.f32 %v7715_v36, %v7667_v44  ;;  %v6687_v44 = vmax.f32 %v6431_v41, %v6559_v11  ;;  %v10044_v6 = vor.u32 %v10829_v57, %v10041_v4  ;;  %v6696_v41 = vmax.f32 %v6440_v15, %v6568_v7  ;;  %v17553_v57 = vld [vmem:[#allocation43_spill] sm:$0xff] }
 0x944   : > { %v16110_v11 = vpack.c.bf16 %v6693_v31, %v6685_v34  ;;  %v6308_v51 = vmul.f32 %v15768_v19, %v17553_v57  ;;  %v6301_v15 = vmul.f32 %v15778_v50, %v17554_v61  ;;  %v17556_v31 = vld [vmem:[#allocation131_spill] sm:$0xff] }
 0x945   : > { %v16089_v2 = vadd.f32 %v7764_v33, %v7716_v55  ;;  %v6695_v55 = vmax.f32 %v6439_v0, %v6567_v10  ;;  %v10172_v33 = vor.u32 %v10861_v40, %v10169_v49  ;;  %8043 = vmatpush.bf16.msrb.mxu0 %v10044_v6  ;;  %v16112_v49 = vpack.c.bf16 %v6694_v1, %v6686_v29 }
 0x946   : > { %v7619_v36 = vpop.f32.mrf.mxu3  ;;  %17549 = vst [vmem:[#allocation91_spill] sm:$0xff] %v16110_v11  ;;  %v6302_v29 = vmul.f32 %v15784_v25, %v17556_v31  ;;  %v6446_v4 = vadd.f32 %v15789_v22, %v6301_v15 }
 0x947   : > { %v7620_v13 = vadd.f32 %v7619_v36, %v15921_v12  ;;  %8141 = vmatpush.bf16.msrb.mxu2 %v10172_v33  ;;  %v7766_v0 = vpop.f32.mrf.mxu2  ;;  %v7671_v53 = vpop.f32.mrf.mxu0  ;;  %17550 = vst [vmem:[#allocation76_spill] sm:$0xff] %v16112_v49  ;;  %v16114_v46 = vpack.c.bf16 %v6695_v55, %v6687_v44  ;;  %v6300_v36 = vmul.f32 %v15768_v19, %v17552_v47 }
 0x948   : > { %v7720_v40 = vpop.f32.mrf.mxu1  ;;  %v16129_v47 = vpack.c.bf16 %v6696_v41, %v6688_v35  ;;  %v6453_v33 = vadd.f32 %v15781_v16, %v6308_v51  ;;  %v6303_v35 = vmul.f32 %v15798_v52, %v17559_v14  ;;  %v17560_v41 = vld [vmem:[#allocation17_spill] sm:$0xff] }
 0x949   : > { %v7669_v10 = vadd.f32 %v7668_v62, %v7620_v13  ;;  %17551 = vst [vmem:[#allocation93_spill] sm:$0xff] %v16114_v46  ;;  %v17555_v62 = vld [vmem:[#allocation125_spill] sm:$0xff]  ;;  %v6445_v1 = vadd.f32 %v15781_v16, %v6300_v36  ;;  %v6447_v13 = vadd.f32 %v15805_v26, %v6302_v29 }
 0x94a   : > { %v6309_v34 = vmul.f32 %v15778_v50, %v17555_v62  ;;  %7866 = vmatmul.bf16.gmra.mxu0 %v16112_v49  ;;  %17557 = vst [vmem:[#allocation94_spill] sm:$0xff] %v16129_v47  ;;  %v9969_v36 = vld [vmem:[%s16752_s5 + $0x28] sm:$0xf0]  ;;  %v6581_v29 = vmul.f32 0.2, %v6453_v33 }
 0x94b   : > { %v7718_v7 = vadd.f32 %v7717_v20, %v7669_v10  ;;  %7817 = vmatmul.bf16.gmra.mxu3 %v16110_v11  ;;  %7915 = vmatmul.bf16.gmra.mxu1 %v16114_v46  ;;  %v17558_v20 = vld [vmem:[#allocation139_spill] sm:$0xff]  ;;  %v6311_v10 = vmul.f32 %v15798_v52, %v17560_v41  ;;  %v6573_v31 = vmul.f32 0.2, %v6445_v1  ;;  %v6575_v41 = vmul.f32 0.2, %v6447_v13 }
 0x94c   : > { %v6310_v44 = vmul.f32 %v15784_v25, %v17558_v20  ;;  %v6454_v56 = vadd.f32 %v15789_v22, %v6309_v34  ;;  %7964 = vmatmul.bf16.gmra.mxu2 %v16129_v47  ;;  %v6574_v20 = vmul.f32 0.2, %v6446_v4 }
 0x94d   : > { %v16134_v55 = vadd.f32 %v7766_v0, %v7718_v7  ;;  %v10811_v0 = vld [vmem:[%s16752_s5 + $0x24] sm:$0xf]  ;;  %v6448_v7 = vadd.f32 %v15844_v59, %v6303_v35  ;;  %v6456_v61 = vadd.f32 %v15844_v59, %v6311_v10  ;;  %v6709_v35 = vmax.f32 %v6453_v33, %v6581_v29  ;;  %v10161_v10 = vld [vmem:[%s16752_s5 + $0x1a8] sm:$0xf0] }
 0x94e   : > { %v7622_v18 = vpop.f32.mrf.mxu3  ;;  %v6455_v6 = vadd.f32 %v15805_v26, %v6310_v44  ;;  %v9972_v51 = vor.u32 %v10811_v0, %v9969_v36  ;;  %v6582_v14 = vmul.f32 0.2, %v6454_v56  ;;  %v6701_v0 = vmax.f32 %v6445_v1, %v6573_v31  ;;  %v10033_v1 = vld [vmem:[%s16752_s5 + $0xa8] sm:$0xf0]  ;;  %v10843_v33 = vld [vmem:[%s16752_s5 + $0x124] sm:$0xf] }
 0x94f   : > { %v7623_v57 = vadd.f32 %v7622_v18, %v15921_v12  ;;  %v7769_v62 = vpop.f32.mrf.mxu2  ;;  %v7673_v34 = vpop.f32.mrf.mxu0  ;;  %v6576_v49 = vmul.f32 0.2, %v6448_v7  ;;  %v6584_v11 = vmul.f32 0.2, %v6456_v61  ;;  %v6702_v36 = vmax.f32 %v6446_v4, %v6574_v20  ;;  %v10097_v4 = vld [vmem:[%s16752_s5 + $0x128] sm:$0xf0] }
 0x950   : > { %7995 = vmatpush.bf16.msrb.mxu3 %v9972_v51  ;;  %v7722_v44 = vpop.f32.mrf.mxu1  ;;  %v6583_v47 = vmul.f32 0.2, %v6455_v6  ;;  %v6710_v51 = vmax.f32 %v6454_v56, %v6582_v14  ;;  %v10100_v20 = vor.u32 %v10843_v33, %v10097_v4 }
 0x951   : > { %v7672_v15 = vadd.f32 %v7671_v53, %v7623_v57  ;;  %v10859_v53 = vld [vmem:[%s16752_s5 + $0x1a4] sm:$0xf]  ;;  %v6704_v56 = vmax.f32 %v6448_v7, %v6576_v49  ;;  %v17567_v7 = vld [vmem:[#allocation41_spill] sm:$0xff] }
 0x952   : > { %v10827_v57 = vld [vmem:[%s16752_s5 + $0xa4] sm:$0xf]  ;;  %8093 = vmatpush.bf16.msra.mxu1 %v10100_v20 }
 0x953   : > { %v7721_v46 = vadd.f32 %v7720_v40, %v7672_v15  ;;  %v6703_v15 = vmax.f32 %v6447_v13, %v6575_v41  ;;  %v10036_v29 = vor.u32 %v10827_v57, %v10033_v1  ;;  %v6712_v13 = vmax.f32 %v6456_v61, %v6584_v11  ;;  %v17566_v57 = vld [vmem:[#allocation52_spill] sm:$0xff] }
 0x954   : > { %v16176_v41 = vpack.c.bf16 %v6709_v35, %v6701_v0  ;;  %v6324_v49 = vmul.f32 %v15768_v19, %v17566_v57  ;;  %v6317_v61 = vmul.f32 %v15778_v50, %v17567_v7  ;;  %v17569_v35 = vld [vmem:[#allocation132_spill] sm:$0xff] }
 0x955   : > { %v16155_v18 = vadd.f32 %v7769_v62, %v7721_v46  ;;  %v6711_v46 = vmax.f32 %v6455_v6, %v6583_v47  ;;  %v10164_v62 = vor.u32 %v10859_v53, %v10161_v10  ;;  %8044 = vmatpush.bf16.msrb.mxu0 %v10036_v29  ;;  %v16178_v10 = vpack.c.bf16 %v6710_v51, %v6702_v36  ;;  %v17573_v20 = vld [vmem:[#allocation148_spill] sm:$0xff] }
 0x956   : > { %v7624_v40 = vpop.f32.mrf.mxu3  ;;  %17562 = vst [vmem:[#allocation96_spill] sm:$0xff] %v16176_v41  ;;  %v6318_v36 = vmul.f32 %v15784_v25, %v17569_v35  ;;  %v6462_v1 = vadd.f32 %v15789_v22, %v6317_v61 }
 0x957   : > { %17561 = vst [vmem:[#allocation95_spill] sm:$0xff] %v16155_v18  ;;  %v7625_v31 = vadd.f32 %v7624_v40, %v15921_v12  ;;  %8142 = vmatpush.bf16.msrb.mxu2 %v10164_v62  ;;  %v7771_v6 = vpop.f32.mrf.mxu2  ;;  %v7676_v14 = vpop.f32.mrf.mxu0  ;;  %v16180_v18 = vpack.c.bf16 %v6711_v46, %v6703_v15  ;;  %v6316_v40 = vmul.f32 %v15768_v19, %v17565_v39 }
 0x958   : > { %v7725_v53 = vpop.f32.mrf.mxu1  ;;  %17563 = vst [vmem:[#allocation97_spill] sm:$0xff] %v16178_v10  ;;  %v16195_v39 = vpack.c.bf16 %v6712_v13, %v6704_v56  ;;  %v6469_v62 = vadd.f32 %v15781_v16, %v6324_v49  ;;  %v6319_v56 = vmul.f32 %v15798_v52, %v17573_v20  ;;  %v17574_v13 = vld [vmem:[#allocation149_spill] sm:$0xff] }
 0x959   : > { %v7674_v47 = vadd.f32 %v7673_v34, %v7625_v31  ;;  %17564 = vst [vmem:[#allocation98_spill] sm:$0xff] %v16180_v18  ;;  %v17568_v34 = vld [vmem:[#allocation38_spill] sm:$0xff]  ;;  %v6461_v51 = vadd.f32 %v15781_v16, %v6316_v40  ;;  %v6463_v31 = vadd.f32 %v15805_v26, %v6318_v36 }
 0x95a   : > { %v6325_v0 = vmul.f32 %v15778_v50, %v17568_v34  ;;  %7871 = vmatmul.bf16.gmra.mxu0 %v16178_v10  ;;  %17570 = vst [vmem:[#allocation99_spill] sm:$0xff] %v16195_v39  ;;  %v9961_v40 = vld [vmem:[%s16752_s5 + $0x18] sm:$0xf0]  ;;  %v6597_v36 = vmul.f32 0.2, %v6469_v62 }
 0x95b   : > { %v7723_v11 = vadd.f32 %v7722_v44, %v7674_v47  ;;  %7822 = vmatmul.bf16.gmra.mxu3 %v16176_v41  ;;  %7920 = vmatmul.bf16.gmra.mxu1 %v16180_v18  ;;  %v17571_v44 = vld [vmem:[#allocation140_spill] sm:$0xff]  ;;  %v6327_v47 = vmul.f32 %v15798_v52, %v17574_v13  ;;  %v6589_v35 = vmul.f32 0.2, %v6461_v51  ;;  %v6591_v13 = vmul.f32 0.2, %v6463_v31 }
 0x95c   : > { %v6326_v15 = vmul.f32 %v15784_v25, %v17571_v44  ;;  %v6470_v33 = vadd.f32 %v15789_v22, %v6325_v0  ;;  %7969 = vmatmul.bf16.gmra.mxu2 %v16195_v39  ;;  %v6590_v44 = vmul.f32 0.2, %v6462_v1 }
 0x95d   : > { %v16200_v46 = vadd.f32 %v7771_v6, %v7723_v11  ;;  %v10809_v6 = vld [vmem:[%s16752_s5 + $0x14] sm:$0xf]  ;;  %v6464_v11 = vadd.f32 %v15844_v59, %v6319_v56  ;;  %v6472_v7 = vadd.f32 %v15844_v59, %v6327_v47  ;;  %v6725_v56 = vmax.f32 %v6469_v62, %v6597_v36  ;;  %v10153_v47 = vld [vmem:[%s16752_s5 + $0x198] sm:$0xf0] }
 0x95e   : > { %v7627_v4 = vpop.f32.mrf.mxu3  ;;  %v6471_v29 = vadd.f32 %v15805_v26, %v6326_v15  ;;  %v9964_v49 = vor.u32 %v10809_v6, %v9961_v40  ;;  %v6598_v20 = vmul.f32 0.2, %v6470_v33  ;;  %v6717_v6 = vmax.f32 %v6461_v51, %v6589_v35  ;;  %v10025_v51 = vld [vmem:[%s16752_s5 + $0x98] sm:$0xf0]  ;;  %v10841_v62 = vld [vmem:[%s16752_s5 + $0x114] sm:$0xf] }
 0x95f   : > { %17572 = vst [vmem:[#allocation100_spill] sm:$0xff] %v16200_v46  ;;  %v7628_v57 = vadd.f32 %v7627_v4, %v15921_v12  ;;  %v7774_v34 = vpop.f32.mrf.mxu2  ;;  %v7678_v0 = vpop.f32.mrf.mxu0  ;;  %v6592_v10 = vmul.f32 0.2, %v6464_v11  ;;  %v6600_v41 = vmul.f32 0.2, %v6472_v7  ;;  %v6718_v40 = vmax.f32 %v6462_v1, %v6590_v44  ;;  %v17576_v46 = vld [vmem:[#allocation25_spill] sm:$0xff] }
 0x960   : > { %7996 = vmatpush.bf16.msrb.mxu3 %v9964_v49  ;;  %v7727_v15 = vpop.f32.mrf.mxu1  ;;  %v6599_v39 = vmul.f32 0.2, %v6471_v29  ;;  %v6726_v49 = vmax.f32 %v6470_v33, %v6598_v20  ;;  %v10089_v1 = vld [vmem:[%s16752_s5 + $0x118] sm:$0xf0] }
 0x961   : > { %v7677_v61 = vadd.f32 %v7676_v14, %v7628_v57  ;;  %v10857_v14 = vld [vmem:[%s16752_s5 + $0x194] sm:$0xf]  ;;  %v10092_v44 = vor.u32 %v10841_v62, %v10089_v1  ;;  %v6720_v33 = vmax.f32 %v6464_v11, %v6592_v10  ;;  %v17578_v11 = vld [vmem:[#allocation27_spill] sm:$0xff] }
 0x962   : > { %v10825_v57 = vld [vmem:[%s16752_s5 + $0x94] sm:$0xf] }
 0x963   : > { %v7726_v18 = vadd.f32 %v7725_v53, %v7677_v61  ;;  %v6719_v61 = vmax.f32 %v6463_v31, %v6591_v13  ;;  %v10028_v36 = vor.u32 %v10825_v57, %v10025_v51  ;;  %v6728_v31 = vmax.f32 %v6472_v7, %v6600_v41  ;;  %8094 = vmatpush.bf16.msra.mxu1 %v10092_v44  ;;  %v17577_v57 = vld [vmem:[#allocation113_spill] sm:$0xff]  ;;  %v17583_v44 = vld [vmem:[#allocation151_spill] sm:$0xff] }
 0x964   : > { %v16242_v13 = vpack.c.bf16 %v6725_v56, %v6717_v6  ;;  %v6340_v10 = vmul.f32 %v15768_v19, %v17577_v57  ;;  %v6333_v7 = vmul.f32 %v15778_v50, %v17578_v11  ;;  %v17580_v56 = vld [vmem:[#allocation133_spill] sm:$0xff] }
 0x965   : > { %v16221_v4 = vadd.f32 %v7774_v34, %v7726_v18  ;;  %v6727_v18 = vmax.f32 %v6471_v29, %v6599_v39  ;;  %v10156_v34 = vor.u32 %v10857_v14, %v10153_v47  ;;  %8045 = vmatpush.bf16.msrb.mxu0 %v10028_v36  ;;  %v16244_v47 = vpack.c.bf16 %v6726_v49, %v6718_v40 }
 0x966   : > { %v7629_v53 = vpop.f32.mrf.mxu3  ;;  %v6334_v40 = vmul.f32 %v15784_v25, %v17580_v56 }
 0x967   : > { %17575 = vst [vmem:[#allocation101_spill] sm:$0xff] %v16221_v4  ;;  %v7630_v35 = vadd.f32 %v7629_v53, %v15921_v12  ;;  %8143 = vmatpush.bf16.msrb.mxu2 %v10156_v34  ;;  %v7776_v29 = vpop.f32.mrf.mxu2  ;;  %v7681_v20 = vpop.f32.mrf.mxu0  ;;  %v16246_v4 = vpack.c.bf16 %v6727_v18, %v6719_v61  ;;  %v6332_v53 = vmul.f32 %v15768_v19, %v17576_v46 }
 0x968   : > { %v7730_v14 = vpop.f32.mrf.mxu1  ;;  %v16261_v46 = vpack.c.bf16 %v6728_v31, %v6720_v33  ;;  %v6485_v18 = vadd.f32 %v15781_v16, %v6340_v10  ;;  %v6479_v62 = vadd.f32 %v15805_v26, %v6334_v40 }
 0x969   : > { %v7679_v39 = vadd.f32 %v7678_v0, %v7630_v35  ;;  %v17579_v0 = vld [vmem:[#allocation30_spill] sm:$0xff]  ;;  %v6477_v19 = vadd.f32 %v15781_v16, %v6332_v53  ;;  %v10807_v16 = vld [vmem:[%s16752_s5 + $0x4] sm:$0xf] }
 0x96a   : > { %v6341_v6 = vmul.f32 %v15778_v50, %v17579_v0  ;;  %7876 = vmatmul.bf16.gmra.mxu0 %v16244_v47  ;;  %v6478_v50 = vadd.f32 %v15789_v22, %v6333_v7  ;;  %v17582_v35 = vld [vmem:[#allocation150_spill] sm:$0xff]  ;;  %v6607_v0 = vmul.f32 0.2, %v6479_v62 }
 0x96b   : > { %v7728_v41 = vadd.f32 %v7727_v15, %v7679_v39  ;;  %7827 = vmatmul.bf16.gmra.mxu3 %v16242_v13  ;;  %7925 = vmatmul.bf16.gmra.mxu1 %v16246_v4  ;;  %v17581_v15 = vld [vmem:[#allocation141_spill] sm:$0xff]  ;;  %v6335_v36 = vmul.f32 %v15798_v52, %v17582_v35  ;;  %v6605_v10 = vmul.f32 0.2, %v6477_v19 }
 0x96c   : > { %v6342_v49 = vmul.f32 %v15784_v25, %v17581_v15  ;;  %v6486_v34 = vadd.f32 %v15789_v22, %v6341_v6  ;;  %7974 = vmatmul.bf16.gmra.mxu2 %v16261_v46  ;;  %v6343_v25 = vmul.f32 %v15798_v52, %v17583_v44  ;;  %v9953_v22 = vld [vmem:[%s16752_s5 + $0x8] sm:$0xf0]  ;;  %v6613_v52 = vmul.f32 0.2, %v6485_v18  ;;  %v10823_v44 = vld [vmem:[%s16752_s5 + $0x84] sm:$0xf] }
 0x96d   : > { %v16266_v61 = vadd.f32 %v7776_v29, %v7728_v41  ;;  %v9956_v31 = vor.u32 %v10807_v16, %v9953_v22  ;;  %v6480_v39 = vadd.f32 %v15844_v59, %v6335_v36  ;;  %v6606_v41 = vmul.f32 0.2, %v6478_v50 }
 0x96e   : > { %v7632_v51 = vpop.f32.mrf.mxu3  ;;  %v6487_v1 = vadd.f32 %v15805_v26, %v6342_v49  ;;  %v6488_v26 = vadd.f32 %v15844_v59, %v6343_v25  ;;  %v6614_v7 = vmul.f32 0.2, %v6486_v34  ;;  %v6741_v35 = vmax.f32 %v6485_v18, %v6613_v52  ;;  %v10855_v59 = vld [vmem:[%s16752_s5 + $0x184] sm:$0xf] }
 0x96f   : > { %v7633_v33 = vadd.f32 %v7632_v51, %v15921_v12  ;;  %v7779_v53 = vpop.f32.mrf.mxu2  ;;  %v7683_v57 = vpop.f32.mrf.mxu0  ;;  %7997 = vmatpush.bf16.msrb.mxu3 %v9956_v31  ;;  %v6608_v40 = vmul.f32 0.2, %v6480_v39  ;;  %v6733_v51 = vmax.f32 %v6477_v19, %v6605_v10  ;;  %v6734_v36 = vmax.f32 %v6478_v50, %v6606_v41  ;;  %v10017_v19 = vld [vmem:[%s16752_s5 + $0x88] sm:$0xf0]  ;;  %v10839_v18 = vld [vmem:[%s16752_s5 + $0x104] sm:$0xf] }
 0x970   : > { %v7732_v11 = vpop.f32.mrf.mxu1  ;;  %v6615_v6 = vmul.f32 0.2, %v6487_v1  ;;  %v6616_v15 = vmul.f32 0.2, %v6488_v26  ;;  %v6742_v25 = vmax.f32 %v6486_v34, %v6614_v7  ;;  %v6735_v16 = vmax.f32 %v6479_v62, %v6607_v0  ;;  %v10081_v50 = vld [vmem:[%s16752_s5 + $0x108] sm:$0xf0] }
 0x971   : > { %v7682_v29 = vadd.f32 %v7681_v20, %v7633_v33  ;;  %v10145_v20 = vld [vmem:[%s16752_s5 + $0x188] sm:$0xf0]  ;;  %v6736_v34 = vmax.f32 %v6480_v39, %v6608_v40  ;;  %v16308_v41 = vpack.c.bf16 %v6741_v35, %v6733_v51  ;;  %v10885_v40 = vld [vmem:[%s16752_s5 + $0x274] sm:$0xf] }
 0x972   : > { %v6743_v22 = vmax.f32 %v6487_v1, %v6615_v6  ;;  %v10148_v33 = vor.u32 %v10855_v59, %v10145_v20  ;;  %v6744_v62 = vmax.f32 %v6488_v26, %v6616_v15  ;;  %v16310_v0 = vpack.c.bf16 %v6742_v25, %v6734_v36 }
 0x973   : > { %v7731_v56 = vadd.f32 %v7730_v14, %v7682_v29  ;;  %v10020_v29 = vor.u32 %v10823_v44, %v10017_v19 }
 0x974   : > { %8144 = vmatpush.bf16.msrb.mxu2 %v10148_v33  ;;  %v16312_v6 = vpack.c.bf16 %v6743_v22, %v6735_v16  ;;  %v16317_v39 = vpack.c.bf16 %v6744_v62, %v6736_v34  ;;  %v10457_v34 = vld [vmem:[%s16752_s5 + $0x3f8] sm:$0xf0]  ;;  %v10901_v62 = vld [vmem:[%s16752_s5 + $0x2f4] sm:$0xf] }
 0x975   : > { %v16287_v49 = vadd.f32 %v7779_v53, %v7731_v56  ;;  %v10084_v53 = vor.u32 %v10839_v18, %v10081_v50  ;;  %8046 = vmatpush.bf16.msrb.mxu0 %v10020_v29 }
 0x976   : > { %v7634_v14 = vpop.f32.mrf.mxu3 }
 0x977   : > { %v7635_v31 = vadd.f32 %v7634_v14, %v15921_v12  ;;  %v7781_v10 = vpop.f32.mrf.mxu2  ;;  %v7686_v52 = vpop.f32.mrf.mxu0  ;;  %8095 = vmatpush.bf16.msra.mxu1 %v10084_v53  ;;  %v10933_v53 = vld [vmem:[%s16752_s5 + $0x3f4] sm:$0xf] }
 0x978   : > { %v7735_v7 = vpop.f32.mrf.mxu1 }
 0x979   : > { %v7684_v1 = vadd.f32 %v7683_v57, %v7635_v31 }
 0x97a   : > { %7881 = vmatmul.bf16.gmra.mxu0 %v16310_v0 }
 0x97b   : > { %v7733_v56 = vadd.f32 %v7732_v11, %v7684_v1  ;;  %7832 = vmatmul.bf16.gmra.mxu3 %v16308_v41  ;;  %7930 = vmatmul.bf16.gmra.mxu1 %v16312_v6  ;;  %v10265_v11 = vld [vmem:[%s16752_s5 + $0x278] sm:$0xf0] }
 0x97c   : > { %7979 = vmatmul.bf16.gmra.mxu2 %v16317_v39  ;;  %v10268_v51 = vor.u32 %v10885_v40, %v10265_v11 }
 0x97d   : > { %v16319_v26 = vadd.f32 %v7781_v10, %v7733_v56  ;;  %v10460_v10 = vor.u32 %v10933_v53, %v10457_v34  ;;  %v10393_v56 = vld [vmem:[%s16752_s5 + $0x378] sm:$0xf0] }
 0x97e   : > { %v7637_v57 = vpop.f32.mrf.mxu3  ;;  %8186 = vmatpush.bf16.msra.mxu3 %v10268_v51 }
 0x97f   : > { %v7638_v15 = vadd.f32 %v7637_v57, %v15921_v12  ;;  %v7784_v36 = vpop.f32.mrf.mxu2  ;;  %v7688_v59 = vpop.f32.mrf.mxu0  ;;  %8333 = vmatpush.bf16.msra.mxu2 %v10460_v10  ;;  %v10385_v10 = vld [vmem:[%s16752_s5 + $0x368] sm:$0xf0] }
 0x980   : > { %v7737_v20 = vpop.f32.mrf.mxu1 }
 0x981   : > { %v7687_v35 = vadd.f32 %v7686_v52, %v7638_v15  ;;  %v10329_v52 = vld [vmem:[%s16752_s5 + $0x2f8] sm:$0xf0] }
 0x982   : > { %v10332_v57 = vor.u32 %v10901_v62, %v10329_v52  ;;  %v10449_v62 = vld [vmem:[%s16752_s5 + $0x3e8] sm:$0xf0] }
 0x983   : > { %v7736_v44 = vadd.f32 %v7735_v7, %v7687_v35  ;;  %v10917_v7 = vld [vmem:[%s16752_s5 + $0x374] sm:$0xf] }
 0x984   : > { %v10396_v40 = vor.u32 %v10917_v7, %v10393_v56  ;;  %8235 = vmatpush.bf16.msra.mxu0 %v10332_v57 }
 0x985   : > { %v16329_v14 = vadd.f32 %v7784_v36, %v7736_v44  ;;  %v10883_v44 = vld [vmem:[%s16752_s5 + $0x264] sm:$0xf] }
 0x986   : > { %v7639_v25 = vpop.f32.mrf.mxu3  ;;  %8284 = vmatpush.bf16.msrb.mxu1 %v10396_v40 }
 0x987   : > { %v7640_v16 = vadd.f32 %v7639_v25, %v15921_v12  ;;  %v7786_v33 = vpop.f32.mrf.mxu2  ;;  %v7691_v19 = vpop.f32.mrf.mxu0  ;;  %v10257_v25 = vld [vmem:[%s16752_s5 + $0x268] sm:$0xf0] }
 0x988   : > { %v7740_v18 = vpop.f32.mrf.mxu1 }
 0x989   : > { %v7689_v22 = vadd.f32 %v7688_v59, %v7640_v16 }
 0x98a   : > { %7886 = vmatmul.bf16.gmra.mxu0 %v15865_v27 }
 0x98b   : > { %v7738_v50 = vadd.f32 %v7737_v20, %v7689_v22  ;;  %7837 = vmatmul.bf16.gmra.mxu3 %v15863_v23  ;;  %7935 = vmatmul.bf16.gmra.mxu1 %v15882_v3  ;;  %v10260_v22 = vor.u32 %v10883_v44, %v10257_v25 }
 0x98c   : > { %7984 = vmatmul.bf16.gmra.mxu2 %v15889_v30 }
 0x98d   : > { %v16335_v31 = vadd.f32 %v7786_v33, %v7738_v50  ;;  %8187 = vmatpush.bf16.msra.mxu3 %v10260_v22 }
 0x98e   : > { %v7642_v29 = vpop.f32.mrf.mxu3 }
 0x98f   : > { %v7643_v1 = vadd.f32 %v7642_v29, %v15921_v12  ;;  %v7789_v15 = vpop.f32.mrf.mxu2  ;;  %v7693_v51 = vpop.f32.mrf.mxu0 }
 0x990   : > { %v7742_v35 = vpop.f32.mrf.mxu1 }
 0x991   : > { %v7692_v11 = vadd.f32 %v7691_v19, %v7643_v1  ;;  %v10915_v1 = vld [vmem:[%s16752_s5 + $0x364] sm:$0xf] }
 0x992   : > { %v10388_v7 = vor.u32 %v10915_v1, %v10385_v10 }
 0x993   : > { %v7741_v36 = vadd.f32 %v7740_v18, %v7692_v11 }
 0x994   : > { %8285 = vmatpush.bf16.msrb.mxu1 %v10388_v7 }
 0x995   : > { %v16357_v59 = vadd.f32 %v7789_v15, %v7741_v36  ;;  %v10249_v36 = vld [vmem:[%s16752_s5 + $0x258] sm:$0xf0] }
 0x996   : > { %v7644_v20 = vpop.f32.mrf.mxu3 }
 0x997   : > { %v7645_v16 = vadd.f32 %v7644_v20, %v15921_v12  ;;  %v7791_v19 = vpop.f32.mrf.mxu2  ;;  %v7852_v50 = vpop.f32.mrf.mxu0  ;;  %v10931_v12 = vld [vmem:[%s16752_s5 + $0x3e4] sm:$0xf] }
 0x998   : > { %v7901_v29 = vpop.f32.mrf.mxu1 }
 0x999   : > { %v7694_v33 = vadd.f32 %v7693_v51, %v7645_v16 }
 0x99a   : > { %8047 = vmatmul.bf16.vlgmr.msrb.gmra.mxu0 %v15420_v42  ;;  %v10452_v42 = vor.u32 %v10931_v12, %v10449_v62  ;;  %v10913_v12 = vld [vmem:[%s16752_s5 + $0x354] sm:$0xf]  ;;  %v10377_v62 = vld [vmem:[%s16752_s5 + $0x358] sm:$0xf0] }
 0x99b   : > { %v7743_v18 = vadd.f32 %v7742_v35, %v7694_v33  ;;  %7998 = vmatmul.bf16.vlgmr.msrb.gmra.mxu3 %v15418_v5  ;;  %8096 = vmatmul.bf16.vlgmr.msra.gmra.mxu1 %v15422_v8  ;;  %v10899_v5 = vld [vmem:[%s16752_s5 + $0x2e4] sm:$0xf]  ;;  %v10881_v35 = vld [vmem:[%s16752_s5 + $0x254] sm:$0xf] }
 0x99c   : > { %8145 = vmatmul.bf16.vlgmr.msrb.gmra.mxu2 %v15439_v24  ;;  %v10321_v24 = vld [vmem:[%s16752_s5 + $0x2e8] sm:$0xf0]  ;;  %v10252_v44 = vor.u32 %v10881_v35, %v10249_v36 }
 0x99d   : > { %v16369_v53 = vadd.f32 %v7791_v19, %v7743_v18  ;;  %v10324_v52 = vor.u32 %v10899_v5, %v10321_v24  ;;  %8334 = vmatpush.bf16.msra.mxu2 %v10452_v42  ;;  %v10929_v18 = vld [vmem:[%s16752_s5 + $0x3d4] sm:$0xf] }
 0x99e   : > { %v7803_v34 = vpop.f32.mrf.mxu3  ;;  %8188 = vmatpush.bf16.msra.mxu3 %v10252_v44 }
 0x99f   : > { %v7804_v8 = vadd.f32 %v7803_v34, %v15957_v17  ;;  %v7950_v57 = vpop.f32.mrf.mxu2  ;;  %v7854_v40 = vpop.f32.mrf.mxu0  ;;  %8236 = vmatpush.bf16.msra.mxu0 %v10324_v52 }
 0x9a0   : > { %v7903_v17 = vpop.f32.mrf.mxu1 }
 0x9a1   : > { %v7853_v56 = vadd.f32 %v7852_v50, %v7804_v8  ;;  %v10380_v8 = vor.u32 %v10913_v12, %v10377_v62  ;;  %v10877_v12 = vld [vmem:[%s16752_s5 + $0x234] sm:$0xf]  ;;  %v10233_v62 = vld [vmem:[%s16752_s5 + $0x238] sm:$0xf0] }
 0x9a3   : > { %v7902_v11 = vadd.f32 %v7901_v29, %v7853_v56  ;;  %8286 = vmatpush.bf16.msrb.mxu1 %v10380_v8  ;;  %v10236_v8 = vor.u32 %v10877_v12, %v10233_v62  ;;  %v17590_v12 = vld [vmem:[#allocation66_spill] sm:$0xff] }
 0x9a5   : > { %v7951_v15 = vadd.f32 %v7950_v57, %v7902_v11  ;;  %v10879_v57 = vld [vmem:[%s16752_s5 + $0x244] sm:$0xf] }
 0x9a6   : > { %v7805_v51 = vpop.f32.mrf.mxu3 }
 0x9a7   : > { %11073 = vtanh.f32 %v7951_v15  ;;  %v7806_v20 = vadd.f32 %v7805_v51, %v16002_v63  ;;  %v7952_v16 = vpop.f32.mrf.mxu2  ;;  %v7857_v22 = vpop.f32.mrf.mxu0 }
 0x9a8   : > { %v7906_v33 = vpop.f32.mrf.mxu1 }
 0x9a9   : > { %v7855_v25 = vadd.f32 %v7854_v40, %v7806_v20  ;;  %v10241_v40 = vld [vmem:[%s16752_s5 + $0x248] sm:$0xf0] }
 0x9aa   : > { %8052 = vmatmul.bf16.gmra.mxu0 %v15456_v43  ;;  %v10897_v43 = vld [vmem:[%s16752_s5 + $0x2d4] sm:$0xf]  ;;  %v10244_v11 = vor.u32 %v10879_v57, %v10241_v40 }
 0x9ab   : > { %v7904_v19 = vadd.f32 %v7903_v17, %v7855_v25  ;;  %8003 = vmatmul.bf16.gmra.mxu3 %v15445_v21  ;;  %8101 = vmatmul.bf16.gmra.mxu1 %v15463_v45  ;;  %v10441_v21 = vld [vmem:[%s16752_s5 + $0x3d8] sm:$0xf0]  ;;  %v17585_v57 = vld [vmem:[#allocation45_spill] sm:$0xff] }
 0x9ac   : > { %8150 = vmatmul.bf16.gmra.mxu2 %v15470_v9  ;;  %v10444_v34 = vor.u32 %v10929_v18, %v10441_v21  ;;  %v10313_v9 = vld [vmem:[%s16752_s5 + $0x2d8] sm:$0xf0]  ;;  %8189 = vmatpush.bf16.msra.mxu3 %v10244_v11 }
 0x9ad   : > { %v11074_v50 = vpop.eup %11073  ;;  %v7953_v29 = vadd.f32 %v7952_v16, %v7904_v19  ;;  %v10316_v5 = vor.u32 %v10897_v43, %v10313_v9 }
 0x9ae   : > { %8414 = vst [vmem:[%s16404_s8] sm:$0xff] %v11074_v50  ;;  %v7808_v63 = vpop.f32.mrf.mxu3  ;;  %8335 = vmatpush.bf16.msra.mxu2 %v10444_v34  ;;  %v10369_v50 = vld [vmem:[%s16752_s5 + $0x348] sm:$0xf0] }
 0x9af   : > { %11075 = vtanh.f32 %v7953_v29  ;;  %v7809_v45 = vadd.f32 %v7808_v63, %v16023_v54  ;;  %v7955_v24 = vpop.f32.mrf.mxu2  ;;  %v7859_v1 = vpop.f32.mrf.mxu0  ;;  %8237 = vmatpush.bf16.msra.mxu0 %v10316_v5 }
 0x9b0   : > { %v7908_v54 = vpop.f32.mrf.mxu1  ;;  %8190 = vmatpush.bf16.msra.mxu3 %v10236_v8  ;;  %v17591_v8 = vld [vmem:[#allocation67_spill] sm:$0xff] }
 0x9b1   : > { %v7858_v42 = vadd.f32 %v7857_v22, %v7809_v45  ;;  %v10433_v22 = vld [vmem:[%s16752_s5 + $0x3c8] sm:$0xf0] }
 0x9b3   : > { %v7907_v10 = vadd.f32 %v7906_v33, %v7858_v42  ;;  %v10911_v33 = vld [vmem:[%s16752_s5 + $0x344] sm:$0xf] }
 0x9b4   : > { %v10372_v18 = vor.u32 %v10911_v33, %v10369_v50  ;;  %v10875_v33 = vld [vmem:[%s16752_s5 + $0x224] sm:$0xf] }
 0x9b5   : > { %v11076_v52 = vpop.eup %11075  ;;  %v7956_v7 = vadd.f32 %v7955_v24, %v7907_v10  ;;  %v17587_v50 = vld [vmem:[#allocation100_spill] sm:$0xff] }
 0x9b6   : > { %8416 = vst [vmem:[%s16404_s8 + $0x10] sm:$0xff] %v11076_v52  ;;  %v7810_v56 = vpop.f32.mrf.mxu3  ;;  %8287 = vmatpush.bf16.msrb.mxu1 %v10372_v18  ;;  %v17584_v52 = vld [vmem:[#allocation63_spill] sm:$0xff] }
 0x9b7   : > { %11077 = vtanh.f32 %v7956_v7  ;;  %v7811_v17 = vadd.f32 %v7810_v56, %v16068_v60  ;;  %v7957_v51 = vpop.f32.mrf.mxu2  ;;  %v7862_v35 = vpop.f32.mrf.mxu0  ;;  %v10927_v60 = vld [vmem:[%s16752_s5 + $0x3c4] sm:$0xf] }
 0x9b8   : > { %v7911_v36 = vpop.f32.mrf.mxu1 }
 0x9b9   : > { %v7860_v15 = vadd.f32 %v7859_v1, %v7811_v17  ;;  %v10425_v17 = vld [vmem:[%s16752_s5 + $0x3b8] sm:$0xf0] }
 0x9ba   : > { %8057 = vmatmul.bf16.gmra.mxu0 %v15498_v28  ;;  %v10436_v28 = vor.u32 %v10927_v60, %v10433_v22 }
 0x9bb   : > { %v7909_v20 = vadd.f32 %v7908_v54, %v7860_v15  ;;  %8008 = vmatmul.bf16.gmra.mxu3 %v15496_v32  ;;  %8106 = vmatmul.bf16.gmra.mxu1 %v15504_v58  ;;  %v10895_v58 = vld [vmem:[%s16752_s5 + $0x2c4] sm:$0xf]  ;;  %v10893_v15 = vld [vmem:[%s16752_s5 + $0x2b4] sm:$0xf] }
 0x9bc   : > { %8155 = vmatmul.bf16.gmra.mxu2 %v15515_v38  ;;  %v10305_v38 = vld [vmem:[%s16752_s5 + $0x2c8] sm:$0xf0] }
 0x9bd   : > { %v11078_v44 = vpop.eup %11077  ;;  %v7958_v25 = vadd.f32 %v7957_v51, %v7909_v20  ;;  %v10308_v19 = vor.u32 %v10895_v58, %v10305_v38  ;;  %8336 = vmatpush.bf16.msra.mxu2 %v10436_v28  ;;  %v10297_v51 = vld [vmem:[%s16752_s5 + $0x2b8] sm:$0xf0] }
 0x9be   : > { %8418 = vst [vmem:[%s16404_s8 + $0x20] sm:$0xff] %v11078_v44  ;;  %v7813_v16 = vpop.f32.mrf.mxu3  ;;  %v10361_v20 = vld [vmem:[%s16752_s5 + $0x338] sm:$0xf0] }
 0x9bf   : > { %11079 = vtanh.f32 %v7958_v25  ;;  %v7814_v32 = vadd.f32 %v7813_v16, %v16089_v2  ;;  %v7960_v29 = vpop.f32.mrf.mxu2  ;;  %v7864_v63 = vpop.f32.mrf.mxu0  ;;  %8238 = vmatpush.bf16.msra.mxu0 %v10308_v19  ;;  %v10225_v19 = vld [vmem:[%s16752_s5 + $0x228] sm:$0xf0] }
 0x9c0   : > { %v7913_v21 = vpop.f32.mrf.mxu1 }
 0x9c1   : > { %v7863_v2 = vadd.f32 %v7862_v35, %v7814_v32  ;;  %v10909_v35 = vld [vmem:[%s16752_s5 + $0x334] sm:$0xf] }
 0x9c2   : > { %v10364_v60 = vor.u32 %v10909_v35, %v10361_v20 }
 0x9c3   : > { %v7912_v43 = vadd.f32 %v7911_v36, %v7863_v2  ;;  %v10300_v36 = vor.u32 %v10893_v15, %v10297_v51 }
 0x9c4   : > { %8288 = vmatpush.bf16.msrb.mxu1 %v10364_v60 }
 0x9c5   : > { %v11080_v45 = vpop.eup %11079  ;;  %v7961_v34 = vadd.f32 %v7960_v29, %v7912_v43  ;;  %8239 = vmatpush.bf16.msra.mxu0 %v10300_v36  ;;  %v10228_v29 = vor.u32 %v10875_v33, %v10225_v19  ;;  %v17593_v33 = vld [vmem:[#allocation68_spill] sm:$0xff]  ;;  %v17594_v19 = vld [vmem:[#allocation69_spill] sm:$0xff] }
 0x9c6   : > { %8420 = vst [vmem:[%s16404_s8 + $0x30] sm:$0xff] %v11080_v45  ;;  %v7815_v9 = vpop.f32.mrf.mxu3 }
 0x9c7   : > { %11081 = vtanh.f32 %v7961_v34  ;;  %v7816_v5 = vadd.f32 %v7815_v9, %v16134_v55  ;;  %v7962_v24 = vpop.f32.mrf.mxu2  ;;  %v7867_v1 = vpop.f32.mrf.mxu0  ;;  %v10925_v55 = vld [vmem:[%s16752_s5 + $0x3b4] sm:$0xf]  ;;  %8191 = vmatpush.bf16.msra.mxu3 %v10228_v29  ;;  %v17588_v34 = vld [vmem:[#allocation47_spill] sm:$0xff] }
 0x9c8   : > { %v7916_v54 = vpop.f32.mrf.mxu1  ;;  %v17589_v9 = vld [vmem:[#allocation65_spill] sm:$0xff] }
 0x9c9   : > { %v7865_v42 = vadd.f32 %v7864_v63, %v7816_v5 }
 0x9ca   : > { %8062 = vmatmul.bf16.gmra.mxu0 %v15537_v48  ;;  %v10428_v48 = vor.u32 %v10925_v55, %v10425_v17  ;;  %v10353_v55 = vld [vmem:[%s16752_s5 + $0x328] sm:$0xf0] }
 0x9cb   : > { %v7914_v10 = vadd.f32 %v7913_v21, %v7865_v42  ;;  %8013 = vmatmul.bf16.gmra.mxu3 %v15524_v37  ;;  %8111 = vmatmul.bf16.gmra.mxu1 %v17584_v52  ;;  %v17586_v37 = vld [vmem:[#allocation95_spill] sm:$0xff] }
 0x9cc   : > { %8160 = vmatmul.bf16.gmra.mxu2 %v17585_v57  ;;  %v10907_v57 = vld [vmem:[%s16752_s5 + $0x324] sm:$0xf] }
 0x9cd   : > { %v11082_v7 = vpop.eup %11081  ;;  %v7963_v56 = vadd.f32 %v7962_v24, %v7914_v10  ;;  %8337 = vmatpush.bf16.msra.mxu2 %v10428_v48  ;;  %v10923_v24 = vld [vmem:[%s16752_s5 + $0x3a4] sm:$0xf]  ;;  %v10356_v48 = vor.u32 %v10907_v57, %v10353_v55  ;;  %v10209_v57 = vld [vmem:[%s16752_s5 + $0x208] sm:$0xf0] }
 0x9ce   : > { %8422 = vst [vmem:[%s16404_s8 + $0x40] sm:$0xff] %v11082_v7  ;;  %v7818_v40 = vpop.f32.mrf.mxu3  ;;  %v10891_v7 = vld [vmem:[%s16752_s5 + $0x2a4] sm:$0xf] }
 0x9cf   : > { %11083 = vtanh.f32 %v7963_v56  ;;  %v7819_v11 = vadd.f32 %v7818_v40, %v17586_v37  ;;  %v7965_v25 = vpop.f32.mrf.mxu2  ;;  %v7869_v16 = vpop.f32.mrf.mxu0  ;;  %v10289_v56 = vld [vmem:[%s16752_s5 + $0x2a8] sm:$0xf0]  ;;  %8289 = vmatpush.bf16.msrb.mxu1 %v10356_v48 }
 0x9d0   : > { %v7918_v22 = vpop.f32.mrf.mxu1  ;;  %v10292_v40 = vor.u32 %v10891_v7, %v10289_v56  ;;  %v10871_v56 = vld [vmem:[%s16752_s5 + $0x204] sm:$0xf] }
 0x9d1   : > { %v7868_v44 = vadd.f32 %v7867_v1, %v7819_v11  ;;  %v10417_v1 = vld [vmem:[%s16752_s5 + $0x3a8] sm:$0xf0]  ;;  %v10212_v55 = vor.u32 %v10871_v56, %v10209_v57 }
 0x9d2   : > { %v10420_v52 = vor.u32 %v10923_v24, %v10417_v1  ;;  %8240 = vmatpush.bf16.msra.mxu0 %v10292_v40 }
 0x9d3   : > { %v7917_v32 = vadd.f32 %v7916_v54, %v7868_v44  ;;  %v17592_v54 = vld [vmem:[#allocation101_spill] sm:$0xff] }
 0x9d4   : > { %8338 = vmatpush.bf16.msra.mxu2 %v10420_v52  ;;  %v10873_v44 = vld [vmem:[%s16752_s5 + $0x214] sm:$0xf] }
 0x9d5   : > { %v11084_v28 = vpop.eup %11083  ;;  %v7966_v58 = vadd.f32 %v7965_v25, %v7917_v32  ;;  %v10217_v25 = vld [vmem:[%s16752_s5 + $0x218] sm:$0xf0] }
 0x9d6   : > { %8424 = vst [vmem:[%s16404_s8 + $0x50] sm:$0xff] %v11084_v28  ;;  %v7820_v38 = vpop.f32.mrf.mxu3  ;;  %v10220_v60 = vor.u32 %v10873_v44, %v10217_v25  ;;  %v17600_v25 = vld [vmem:[#allocation77_spill] sm:$0xff] }
 0x9d7   : > { %11085 = vtanh.f32 %v7966_v58  ;;  %v7821_v2 = vadd.f32 %v7820_v38, %v17587_v50  ;;  %v7967_v18 = vpop.f32.mrf.mxu2  ;;  %v7872_v21 = vpop.f32.mrf.mxu0  ;;  %v17595_v50 = vld [vmem:[#allocation70_spill] sm:$0xff] }
 0x9d8   : > { %v7921_v43 = vpop.f32.mrf.mxu1  ;;  %8192 = vmatpush.bf16.msra.mxu3 %v10220_v60  ;;  %v10401_v60 = vld [vmem:[%s16752_s5 + $0x388] sm:$0xf0] }
 0x9d9   : > { %v7870_v63 = vadd.f32 %v7869_v16, %v7821_v2 }
 0x9da   : > { %8067 = vmatmul.bf16.gmra.mxu0 %v17589_v9  ;;  %v10281_v9 = vld [vmem:[%s16752_s5 + $0x298] sm:$0xf0] }
 0x9db   : > { %v7919_v45 = vadd.f32 %v7918_v22, %v7870_v63  ;;  %8018 = vmatmul.bf16.gmra.mxu3 %v17588_v34  ;;  %8116 = vmatmul.bf16.gmra.mxu1 %v17590_v12  ;;  %v17596_v63 = vld [vmem:[#allocation90_spill] sm:$0xff] }
 0x9dc   : > { %8165 = vmatmul.bf16.gmra.mxu2 %v17591_v8  ;;  %v10889_v34 = vld [vmem:[%s16752_s5 + $0x294] sm:$0xf]  ;;  %8193 = vmatpush.bf16.msra.mxu3 %v10212_v55 }
 0x9dd   : > { %v11086_v62 = vpop.eup %11085  ;;  %v7968_v5 = vadd.f32 %v7967_v18, %v7919_v45  ;;  %v10905_v12 = vld [vmem:[%s16752_s5 + $0x314] sm:$0xf] }
 0x9de   : > { %8426 = vst [vmem:[%s16404_s8 + $0x60] sm:$0xff] %v11086_v62  ;;  %v7823_v42 = vpop.f32.mrf.mxu3  ;;  %v10284_v62 = vor.u32 %v10889_v34, %v10281_v9 }
 0x9df   : > { %11087 = vtanh.f32 %v7968_v5  ;;  %v7824_v10 = vadd.f32 %v7823_v42, %v17592_v54  ;;  %v7970_v37 = vpop.f32.mrf.mxu2  ;;  %v7874_v11 = vpop.f32.mrf.mxu0  ;;  %v10345_v5 = vld [vmem:[%s16752_s5 + $0x318] sm:$0xf0] }
 0x9e0   : > { %v7923_v15 = vpop.f32.mrf.mxu1  ;;  %v10348_v24 = vor.u32 %v10905_v12, %v10345_v5  ;;  %8241 = vmatpush.bf16.msra.mxu0 %v10284_v62 }
 0x9e1   : > { %v7873_v17 = vadd.f32 %v7872_v21, %v7824_v10  ;;  %v10409_v21 = vld [vmem:[%s16752_s5 + $0x398] sm:$0xf0] }
 0x9e2   : > { %8290 = vmatpush.bf16.msrb.mxu1 %v10348_v24 }
 0x9e3   : > { %v7922_v51 = vadd.f32 %v7921_v43, %v7873_v17 }
 0x9e5   : > { %v11088_v35 = vpop.eup %11087  ;;  %v7971_v36 = vadd.f32 %v7970_v37, %v7922_v51  ;;  %v17597_v51 = vld [vmem:[#allocation71_spill] sm:$0xff] }
 0x9e6   : > { %8428 = vst [vmem:[%s16404_s8 + $0x70] sm:$0xff] %v11088_v35  ;;  %v7825_v20 = vpop.f32.mrf.mxu3  ;;  %v17598_v35 = vld [vmem:[#allocation72_spill] sm:$0xff] }
 0x9e7   : > { %11089 = vtanh.f32 %v7971_v36  ;;  %v7826_v16 = vadd.f32 %v7825_v20, %v16266_v61  ;;  %v7972_v32 = vpop.f32.mrf.mxu2  ;;  %v7877_v28 = vpop.f32.mrf.mxu0  ;;  %v10921_v61 = vld [vmem:[%s16752_s5 + $0x394] sm:$0xf]  ;;  %v17599_v36 = vld [vmem:[#allocation75_spill] sm:$0xff] }
 0x9e8   : > { %v7926_v58 = vpop.f32.mrf.mxu1  ;;  %v10412_v45 = vor.u32 %v10921_v61, %v10409_v21 }
 0x9e9   : > { %v7875_v22 = vadd.f32 %v7874_v11, %v7826_v16 }
 0x9ea   : > { %8072 = vmatmul.bf16.gmra.mxu0 %v17594_v19  ;;  %8339 = vmatpush.bf16.msra.mxu2 %v10412_v45  ;;  %v10337_v19 = vld [vmem:[%s16752_s5 + $0x308] sm:$0xf0] }
 0x9eb   : > { %v7924_v38 = vadd.f32 %v7923_v15, %v7875_v22  ;;  %8023 = vmatmul.bf16.gmra.mxu3 %v17593_v33  ;;  %8121 = vmatmul.bf16.gmra.mxu1 %v17595_v50 }
 0x9ec   : > { %8170 = vmatmul.bf16.gmra.mxu2 %v17596_v63 }
 0x9ed   : > { %v11090_v2 = vpop.eup %11089  ;;  %v7973_v29 = vadd.f32 %v7972_v32, %v7924_v38  ;;  %v10903_v38 = vld [vmem:[%s16752_s5 + $0x304] sm:$0xf] }
 0x9ee   : > { %8430 = vst [vmem:[%s16404_s8 + $0x80] sm:$0xff] %v11090_v2  ;;  %v7828_v18 = vpop.f32.mrf.mxu3 }
 0x9ef   : > { %11091 = vtanh.f32 %v7973_v29  ;;  %v7829_v43 = vadd.f32 %v7828_v18, %v16287_v49  ;;  %v7975_v8 = vpop.f32.mrf.mxu2  ;;  %v7879_v42 = vpop.f32.mrf.mxu0  ;;  %v10340_v29 = vor.u32 %v10903_v38, %v10337_v19 }
 0x9f0   : > { %v7928_v1 = vpop.f32.mrf.mxu1 }
 0x9f1   : > { %v7878_v49 = vadd.f32 %v7877_v28, %v7829_v43  ;;  %v10887_v28 = vld [vmem:[%s16752_s5 + $0x284] sm:$0xf]  ;;  %8291 = vmatpush.bf16.msrb.mxu1 %v10340_v29 }
 0x9f3   : > { %v7927_v54 = vadd.f32 %v7926_v58, %v7878_v49  ;;  %v10273_v58 = vld [vmem:[%s16752_s5 + $0x288] sm:$0xf0]  ;;  %v17601_v49 = vld [vmem:[#allocation78_spill] sm:$0xff] }
 0x9f4   : > { %v10276_v33 = vor.u32 %v10887_v28, %v10273_v58 }
 0x9f5   : > { %v11092_v10 = vpop.eup %11091  ;;  %v7976_v52 = vadd.f32 %v7975_v8, %v7927_v54  ;;  %v17602_v8 = vld [vmem:[#allocation53_spill] sm:$0xff]  ;;  %v17604_v54 = vld [vmem:[#allocation79_spill] sm:$0xff] }
 0x9f6   : > { %8432 = vst [vmem:[%s16404_s8 + $0x90] sm:$0xff] %v11092_v10  ;;  %v7830_v7 = vpop.f32.mrf.mxu3  ;;  %8242 = vmatpush.bf16.msra.mxu0 %v10276_v33 }
 0x9f7   : > { %11093 = vtanh.f32 %v7976_v52  ;;  %v7831_v40 = vadd.f32 %v7830_v7, %v16319_v26  ;;  %v7977_v37 = vpop.f32.mrf.mxu2  ;;  %v7882_v11 = vpop.f32.mrf.mxu0  ;;  %v10919_v26 = vld [vmem:[%s16752_s5 + $0x384] sm:$0xf] }
 0x9f8   : > { %v7931_v48 = vpop.f32.mrf.mxu1  ;;  %v10404_v32 = vor.u32 %v10919_v26, %v10401_v60 }
 0x9f9   : > { %v7880_v17 = vadd.f32 %v7879_v42, %v7831_v40  ;;  %v17603_v42 = vld [vmem:[#allocation37_spill] sm:$0xff] }
 0x9fa   : > { %8077 = vmatmul.bf16.gmra.mxu0 %v17598_v35  ;;  %8340 = vmatpush.bf16.msra.mxu2 %v10404_v32 }
 0x9fb   : > { %v7929_v15 = vadd.f32 %v7928_v1, %v7880_v17  ;;  %8028 = vmatmul.bf16.gmra.mxu3 %v17597_v51  ;;  %8126 = vmatmul.bf16.gmra.mxu1 %v17599_v36 }
 0x9fc   : > { %8175 = vmatmul.bf16.gmra.mxu2 %v17600_v25  ;;  %v17606_v25 = vld [vmem:[#allocation81_spill] sm:$0xff] }
 0x9fd   : > { %v11094_v20 = vpop.eup %11093  ;;  %v7978_v44 = vadd.f32 %v7977_v37, %v7929_v15 }
 0x9fe   : > { %8434 = vst [vmem:[%s16404_s8 + $0xa0] sm:$0xff] %v11094_v20  ;;  %v7833_v16 = vpop.f32.mrf.mxu3  ;;  %v17605_v20 = vld [vmem:[#allocation80_spill] sm:$0xff] }
 0x9ff   : > { %11095 = vtanh.f32 %v7978_v44  ;;  %v7834_v22 = vadd.f32 %v7833_v16, %v16329_v14  ;;  %v7980_v50 = vpop.f32.mrf.mxu2  ;;  %v7884_v2 = vpop.f32.mrf.mxu0  ;;  %v17607_v16 = vld [vmem:[#allocation82_spill] sm:$0xff] }
 0xa00   : > { %v7933_v63 = vpop.f32.mrf.mxu1 }
 0xa01   : > { %v7883_v14 = vadd.f32 %v7882_v11, %v7834_v22  ;;  %v17608_v22 = vld [vmem:[#allocation83_spill] sm:$0xff] }
 0xa03   : > { %v7932_v18 = vadd.f32 %v7931_v48, %v7883_v14 }
 0xa05   : > { %v11096_v61 = vpop.eup %11095  ;;  %v7981_v21 = vadd.f32 %v7980_v50, %v7932_v18 }
 0xa06   : > { %8436 = vst [vmem:[%s16404_s8 + $0xb0] sm:$0xff] %v11096_v61  ;;  %v7835_v43 = vpop.f32.mrf.mxu3 }
 0xa07   : > { %11097 = vtanh.f32 %v7981_v21  ;;  %v7836_v45 = vadd.f32 %v7835_v43, %v16335_v31  ;;  %v7982_v9 = vpop.f32.mrf.mxu2  ;;  %v7887_v12 = vpop.f32.mrf.mxu0 }
 0xa08   : > { %v7936_v62 = vpop.f32.mrf.mxu1 }
 0xa09   : > { %v7885_v34 = vadd.f32 %v7884_v2, %v7836_v45  ;;  %v17609_v45 = vld [vmem:[#allocation84_spill] sm:$0xff] }
 0xa0a   : > { %8082 = vmatmul.bf16.gmra.mxu0 %v17602_v8 }
 0xa0b   : > { %v7934_v5 = vadd.f32 %v7933_v63, %v7885_v34  ;;  %8033 = vmatmul.bf16.gmra.mxu3 %v17601_v49  ;;  %8131 = vmatmul.bf16.gmra.mxu1 %v17603_v42  ;;  %v17610_v34 = vld [vmem:[#allocation86_spill] sm:$0xff] }
 0xa0c   : > { %8180 = vmatmul.bf16.gmra.mxu2 %v17604_v54 }
 0xa0d   : > { %v11098_v24 = vpop.eup %11097  ;;  %v7983_v1 = vadd.f32 %v7982_v9, %v7934_v5  ;;  %v17611_v9 = vld [vmem:[#allocation108_spill] sm:$0xff] }
 0xa0e   : > { %8438 = vst [vmem:[%s16404_s8 + $0xc0] sm:$0xff] %v11098_v24  ;;  %v7838_v10 = vpop.f32.mrf.mxu3 }
 0xa0f   : > { %11099 = vtanh.f32 %v7983_v1  ;;  %v7839_v31 = vadd.f32 %v7838_v10, %v16357_v59  ;;  %v7985_v7 = vpop.f32.mrf.mxu2  ;;  %v7889_v56 = vpop.f32.mrf.mxu0  ;;  %v11143_v59 = vld [vmem:[#allocation8 + $0x2b] sm:$0x3] }
 0xa10   : > { %v7938_v57 = vpop.f32.mrf.mxu1  ;;  %v16598_v44 = vperm.slane %v11143_v59, 1 }
 0xa11   : > { %v7888_v52 = vadd.f32 %v7887_v12, %v7839_v31 }
 0xa13   : > { %v7937_v40 = vadd.f32 %v7936_v62, %v7888_v52  ;;  %v17612_v62 = vld [vmem:[#allocation87_spill] sm:$0xff] }
 0xa15   : > { %v11100_v55 = vpop.eup %11099  ;;  %v7986_v17 = vadd.f32 %v7985_v7, %v7937_v40 }
 0xa16   : > { %8440 = vst [vmem:[%s16404_s8 + $0xd0] sm:$0xff] %v11100_v55  ;;  %v7840_v37 = vpop.f32.mrf.mxu3 }
 0xa17   : > { %11101 = vtanh.f32 %v7986_v17  ;;  %v7841_v11 = vadd.f32 %v7840_v37, %v16369_v53  ;;  %v7987_v15 = vpop.f32.mrf.mxu2  ;;  %v8048_v51 = vpop.f32.mrf.mxu0  ;;  %v17613_v17 = vld [vmem:[#allocation85_spill] sm:$0xff]  ;;  %v17614_v37 = vld [vmem:[#allocation128_spill] sm:$0xff] }
 0xa18   : > { %v8097_v35 = vpop.f32.mrf.mxu1 }
 0xa19   : > { %v7890_v48 = vadd.f32 %v7889_v56, %v7841_v11  ;;  %v17615_v11 = vld [vmem:[#allocation88_spill] sm:$0xff] }
 0xa1a   : > { %8243 = vmatmul.bf16.vlgmr.msra.gmra.mxu0 %v17606_v25 }
 0xa1b   : > { %v7939_v36 = vadd.f32 %v7938_v57, %v7890_v48  ;;  %8194 = vmatmul.bf16.vlgmr.msra.gmra.mxu3 %v17605_v20  ;;  %8292 = vmatmul.bf16.vlgmr.msrb.gmra.mxu1 %v17607_v16 }
 0xa1c   : > { %8341 = vmatmul.bf16.vlgmr.msra.gmra.mxu2 %v17608_v22 }
 0xa1d   : > { %v11102_v26 = vpop.eup %11101  ;;  %v7988_v60 = vadd.f32 %v7987_v15, %v7939_v36  ;;  %v17616_v15 = vld [vmem:[#allocation89_spill] sm:$0xff] }
 0xa1e   : > { %8442 = vst [vmem:[%s16404_s8 + $0xe0] sm:$0xff] %v11102_v26  ;;  %v7999_v53 = vpop.f32.mrf.mxu3 }
 0xa1f   : > { %11103 = vtanh.f32 %v7988_v60  ;;  %v8000_v32 = vadd.f32 %v7999_v53, %v16598_v44  ;;  %v8146_v58 = vpop.f32.mrf.mxu2  ;;  %v8050_v38 = vpop.f32.mrf.mxu0 }
 0xa20   : > { %v8099_v33 = vpop.f32.mrf.mxu1 }
 0xa21   : > { %v8049_v28 = vadd.f32 %v8048_v51, %v8000_v32 }
 0xa23   : > { %v8098_v19 = vadd.f32 %v8097_v35, %v8049_v28 }
 0xa25   : > { %v11104_v14 = vpop.eup %11103  ;;  %v16605_v50 = vadd.f32 %v8146_v58, %v8098_v19  ;;  %v17618_v19 = vld [vmem:[#allocation76_spill] sm:$0xff] }
 0xa26   : > { %8444 = vst [vmem:[%s16404_s8 + $0xf0] sm:$0xff] %v11104_v14  ;;  %v8001_v2 = vpop.f32.mrf.mxu3  ;;  %v17619_v14 = vld [vmem:[#allocation93_spill] sm:$0xff] }
 0xa27   : > { %v8002_v29 = vadd.f32 %v8001_v2, %v16598_v44  ;;  %v8148_v18 = vpop.f32.mrf.mxu2  ;;  %v8053_v61 = vpop.f32.mrf.mxu0 }
 0xa28   : > { %v8102_v21 = vpop.f32.mrf.mxu1 }
 0xa29   : > { %v8051_v63 = vadd.f32 %v8050_v38, %v8002_v29  ;;  %v17620_v29 = vld [vmem:[#allocation94_spill] sm:$0xff] }
 0xa2a   : > { %8248 = vmatmul.bf16.gmra.mxu0 %v17610_v34 }
 0xa2b   : > { %v8100_v43 = vadd.f32 %v8099_v33, %v8051_v63  ;;  %8199 = vmatmul.bf16.gmra.mxu3 %v17609_v45  ;;  %8297 = vmatmul.bf16.gmra.mxu1 %v17611_v9  ;;  %v17617_v33 = vld [vmem:[#allocation91_spill] sm:$0xff] }
 0xa2c   : > { %8346 = vmatmul.bf16.gmra.mxu2 %v17612_v62 }
 0xa2d   : > { %v16612_v12 = vadd.f32 %v8148_v18, %v8100_v43 }
 0xa2e   : > { %v8004_v5 = vpop.f32.mrf.mxu3 }
 0xa2f   : > { %v8005_v49 = vadd.f32 %v8004_v5, %v16598_v44  ;;  %v8151_v42 = vpop.f32.mrf.mxu2  ;;  %v8055_v24 = vpop.f32.mrf.mxu0 }
 0xa30   : > { %v8104_v1 = vpop.f32.mrf.mxu1 }
 0xa31   : > { %v8054_v8 = vadd.f32 %v8053_v61, %v8005_v49 }
 0xa33   : > { %v8103_v54 = vadd.f32 %v8102_v21, %v8054_v8 }
 0xa35   : > { %v16616_v10 = vadd.f32 %v8151_v42, %v8103_v54  ;;  %v17621_v54 = vld [vmem:[#allocation96_spill] sm:$0xff] }
 0xa36   : > { %v8006_v31 = vpop.f32.mrf.mxu3 }
 0xa37   : > { %v8007_v52 = vadd.f32 %v8006_v31, %v16598_v44  ;;  %v8153_v56 = vpop.f32.mrf.mxu2  ;;  %v8058_v57 = vpop.f32.mrf.mxu0  ;;  %v17622_v31 = vld [vmem:[#allocation97_spill] sm:$0xff] }
 0xa38   : > { %v8107_v40 = vpop.f32.mrf.mxu1 }
 0xa39   : > { %v8056_v7 = vadd.f32 %v8055_v24, %v8007_v52  ;;  %v17623_v52 = vld [vmem:[#allocation98_spill] sm:$0xff] }
 0xa3a   : > { %8253 = vmatmul.bf16.gmra.mxu0 %v17614_v37 }
 0xa3b   : > { %v8105_v55 = vadd.f32 %v8104_v1, %v8056_v7  ;;  %8204 = vmatmul.bf16.gmra.mxu3 %v17613_v17  ;;  %8302 = vmatmul.bf16.gmra.mxu1 %v17615_v11 }
 0xa3c   : > { %8351 = vmatmul.bf16.gmra.mxu2 %v17616_v15 }
 0xa3d   : > { %v16622_v48 = vadd.f32 %v8153_v56, %v8105_v55  ;;  %v17624_v56 = vld [vmem:[#allocation99_spill] sm:$0xff] }
 0xa3e   : > { %v8009_v51 = vpop.f32.mrf.mxu3 }
 0xa3f   : > { %v8010_v35 = vadd.f32 %v8009_v51, %v16598_v44  ;;  %v8156_v20 = vpop.f32.mrf.mxu2  ;;  %v8060_v59 = vpop.f32.mrf.mxu0 }
 0xa40   : > { %v8109_v25 = vpop.f32.mrf.mxu1 }
 0xa41   : > { %v8059_v36 = vadd.f32 %v8058_v57, %v8010_v35 }
 0xa43   : > { %v8108_v16 = vadd.f32 %v8107_v40, %v8059_v36 }
 0xa45   : > { %v16626_v26 = vadd.f32 %v8156_v20, %v8108_v16 }
 0xa46   : > { %v8011_v60 = vpop.f32.mrf.mxu3 }
 0xa47   : > { %v8012_v22 = vadd.f32 %v8011_v60, %v16598_v44  ;;  %v8158_v32 = vpop.f32.mrf.mxu2  ;;  %v8063_v28 = vpop.f32.mrf.mxu0 }
 0xa48   : > { %v8112_v58 = vpop.f32.mrf.mxu1 }
 0xa49   : > { %v8061_v53 = vadd.f32 %v8060_v59, %v8012_v22 }
 0xa4a   : > { %8258 = vmatmul.bf16.gmra.mxu0 %v17618_v19 }
 0xa4b   : > { %v8110_v38 = vadd.f32 %v8109_v25, %v8061_v53  ;;  %8209 = vmatmul.bf16.gmra.mxu3 %v17617_v33  ;;  %8307 = vmatmul.bf16.gmra.mxu1 %v17619_v14 }
 0xa4c   : > { %8356 = vmatmul.bf16.gmra.mxu2 %v17620_v29 }
 0xa4d   : > { %v16632_v2 = vadd.f32 %v8158_v32, %v8110_v38 }
 0xa4e   : > { %v8014_v63 = vpop.f32.mrf.mxu3 }
 0xa4f   : > { %v8015_v18 = vadd.f32 %v8014_v63, %v16598_v44  ;;  %v8161_v21 = vpop.f32.mrf.mxu2  ;;  %v8065_v43 = vpop.f32.mrf.mxu0 }
 0xa50   : > { %v8114_v45 = vpop.f32.mrf.mxu1 }
 0xa51   : > { %v8064_v61 = vadd.f32 %v8063_v28, %v8015_v18 }
 0xa53   : > { %v8113_v34 = vadd.f32 %v8112_v58, %v8064_v61 }
 0xa55   : > { %v16636_v9 = vadd.f32 %v8161_v21, %v8113_v34 }
 0xa56   : > { %v8016_v62 = vpop.f32.mrf.mxu3 }
 0xa57   : > { %v8017_v5 = vadd.f32 %v8016_v62, %v16598_v44  ;;  %v8163_v8 = vpop.f32.mrf.mxu2  ;;  %v8068_v42 = vpop.f32.mrf.mxu0 }
 0xa58   : > { %v8117_v24 = vpop.f32.mrf.mxu1 }
 0xa59   : > { %v8066_v49 = vadd.f32 %v8065_v43, %v8017_v5 }
 0xa5a   : > { %8263 = vmatmul.bf16.gmra.mxu0 %v17622_v31 }
 0xa5b   : > { %v8115_v1 = vadd.f32 %v8114_v45, %v8066_v49  ;;  %8214 = vmatmul.bf16.gmra.mxu3 %v17621_v54  ;;  %8312 = vmatmul.bf16.gmra.mxu1 %v17623_v52 }
 0xa5c   : > { %8361 = vmatmul.bf16.gmra.mxu2 %v17624_v56 }
 0xa5d   : > { %v16642_v7 = vadd.f32 %v8163_v8, %v8115_v1 }
 0xa5e   : > { %v8019_v57 = vpop.f32.mrf.mxu3 }
 0xa5f   : > { %v8020_v40 = vadd.f32 %v8019_v57, %v16598_v44  ;;  %v8166_v17 = vpop.f32.mrf.mxu2  ;;  %v8070_v37 = vpop.f32.mrf.mxu0 }
 0xa60   : > { %v8119_v11 = vpop.f32.mrf.mxu1 }
 0xa61   : > { %v8069_v55 = vadd.f32 %v8068_v42, %v8020_v40 }
 0xa63   : > { %v8118_v15 = vadd.f32 %v8117_v24, %v8069_v55 }
 0xa65   : > { %v16646_v51 = vadd.f32 %v8166_v17, %v8118_v15 }
 0xa66   : > { %v8021_v35 = vpop.f32.mrf.mxu3 }
 0xa67   : > { %v8022_v36 = vadd.f32 %v8021_v35, %v16598_v44  ;;  %v8168_v59 = vpop.f32.mrf.mxu2  ;;  %v8073_v25 = vpop.f32.mrf.mxu0 }
 0xa68   : > { %v8122_v16 = vpop.f32.mrf.mxu1 }
 0xa69   : > { %v8071_v20 = vadd.f32 %v8070_v37, %v8022_v36 }
 0xa6a   : > { %8268 = vmatmul.bf16.gmra.mxu0 %v16244_v47 }
 0xa6b   : > { %v8120_v60 = vadd.f32 %v8119_v11, %v8071_v20  ;;  %8219 = vmatmul.bf16.gmra.mxu3 %v16242_v13  ;;  %8317 = vmatmul.bf16.gmra.mxu1 %v16246_v4 }
 0xa6c   : > { %8366 = vmatmul.bf16.gmra.mxu2 %v16261_v46 }
 0xa6d   : > { %v16652_v22 = vadd.f32 %v8168_v59, %v8120_v60 }
 0xa6e   : > { %v8024_v53 = vpop.f32.mrf.mxu3 }
 0xa6f   : > { %v8025_v32 = vadd.f32 %v8024_v53, %v16598_v44  ;;  %v8171_v58 = vpop.f32.mrf.mxu2  ;;  %v8075_v38 = vpop.f32.mrf.mxu0 }
 0xa70   : > { %v8124_v33 = vpop.f32.mrf.mxu1 }
 0xa71   : > { %v8074_v28 = vadd.f32 %v8073_v25, %v8025_v32 }
 0xa73   : > { %v8123_v19 = vadd.f32 %v8122_v16, %v8074_v28 }
 0xa75   : > { %v16656_v14 = vadd.f32 %v8171_v58, %v8123_v19 }
 0xa76   : > { %v8026_v29 = vpop.f32.mrf.mxu3 }
 0xa77   : > { %v8027_v13 = vadd.f32 %v8026_v29, %v16598_v44  ;;  %v8173_v63 = vpop.f32.mrf.mxu2  ;;  %v8078_v4 = vpop.f32.mrf.mxu0 }
 0xa78   : > { %v8127_v18 = vpop.f32.mrf.mxu1 }
 0xa79   : > { %v8076_v47 = vadd.f32 %v8075_v38, %v8027_v13 }
 0xa7a   : > { %8273 = vmatmul.bf16.gmra.mxu0 %v16310_v0 }
 0xa7b   : > { %v8125_v61 = vadd.f32 %v8124_v33, %v8076_v47  ;;  %8224 = vmatmul.bf16.gmra.mxu3 %v16308_v41  ;;  %8322 = vmatmul.bf16.gmra.mxu1 %v16312_v6 }
 0xa7c   : > { %8371 = vmatmul.bf16.gmra.mxu2 %v16317_v39 }
 0xa7d   : > { %v16662_v46 = vadd.f32 %v8173_v63, %v8125_v61 }
 0xa7e   : > { %v8029_v21 = vpop.f32.mrf.mxu3 }
 0xa7f   : > { %v8030_v43 = vadd.f32 %v8029_v21, %v16598_v44  ;;  %v8176_v34 = vpop.f32.mrf.mxu2  ;;  %v8080_v62 = vpop.f32.mrf.mxu0 }
 0xa80   : > { %v8129_v5 = vpop.f32.mrf.mxu1 }
 0xa81   : > { %v8079_v45 = vadd.f32 %v8078_v4, %v8030_v43 }
 0xa83   : > { %v8128_v49 = vadd.f32 %v8127_v18, %v8079_v45 }
 0xa85   : > { %v16666_v8 = vadd.f32 %v8176_v34, %v8128_v49 }
 0xa86   : > { %v8031_v42 = vpop.f32.mrf.mxu3 }
 0xa87   : > { %v8032_v41 = vadd.f32 %v8031_v42, %v16598_v44  ;;  %v8178_v24 = vpop.f32.mrf.mxu2  ;;  %v8083_v6 = vpop.f32.mrf.mxu0 }
 0xa88   : > { %v8132_v1 = vpop.f32.mrf.mxu1 }
 0xa89   : > { %v8081_v0 = vadd.f32 %v8080_v62, %v8032_v41 }
 0xa8a   : > { %8278 = vmatmul.bf16.gmra.mxu0 %v15865_v27 }
 0xa8b   : > { %v8130_v54 = vadd.f32 %v8129_v5, %v8081_v0  ;;  %8229 = vmatmul.bf16.gmra.mxu3 %v15863_v23  ;;  %8327 = vmatmul.bf16.gmra.mxu1 %v15882_v3 }
 0xa8c   : > { %8376 = vmatmul.bf16.gmra.mxu2 %v15889_v30 }
 0xa8d   : > { %v16672_v39 = vadd.f32 %v8178_v24, %v8130_v54 }
 0xa8e   : > { %v8034_v31 = vpop.f32.mrf.mxu3 }
 0xa8f   : > { %v8035_v52 = vadd.f32 %v8034_v31, %v16598_v44  ;;  %v8181_v57 = vpop.f32.mrf.mxu2  ;;  %v8085_v40 = vpop.f32.mrf.mxu0 }
 0xa90   : > { %v8134_v55 = vpop.f32.mrf.mxu1 }
 0xa91   : > { %v8084_v56 = vadd.f32 %v8083_v6, %v8035_v52 }
 0xa93   : > { %v8133_v17 = vadd.f32 %v8132_v1, %v8084_v56 }
 0xa95   : > { %v16676_v37 = vadd.f32 %v8181_v57, %v8133_v17 }
 0xa96   : > { %v8036_v11 = vpop.f32.mrf.mxu3 }
 0xa97   : > { %v8037_v23 = vadd.f32 %v8036_v11, %v16598_v44  ;;  %v8183_v15 = vpop.f32.mrf.mxu2  ;;  %v8244_v3 = vpop.f32.mrf.mxu0 }
 0xa98   : > { %v8293_v35 = vpop.f32.mrf.mxu1 }
 0xa99   : > { %v8086_v27 = vadd.f32 %v8085_v40, %v8037_v23 }
 0xa9b   : > { %v8135_v36 = vadd.f32 %v8134_v55, %v8086_v27 }
 0xa9d   : > { %v16679_v20 = vadd.f32 %v8183_v15, %v8135_v36 }
 0xa9e   : > { %v8195_v30 = vpop.f32.mrf.mxu3 }
 0xa9f   : > { %v8196_v59 = vadd.f32 %v8195_v30, %v16605_v50  ;;  %v8342_v16 = vpop.f32.mrf.mxu2  ;;  %v8246_v60 = vpop.f32.mrf.mxu0 }
 0xaa0   : > { %v8295_v53 = vpop.f32.mrf.mxu1 }
 0xaa1   : > { %v8245_v25 = vadd.f32 %v8244_v3, %v8196_v59 }
 0xaa3   : > { %v8294_v32 = vadd.f32 %v8293_v35, %v8245_v25 }
 0xaa5   : > { %v8343_v28 = vadd.f32 %v8342_v16, %v8294_v32 }
 0xaa6   : > { %v8197_v58 = vpop.f32.mrf.mxu3 }
 0xaa7   : > { %11105 = vtanh.f32 %v8343_v28  ;;  %v8198_v44 = vadd.f32 %v8197_v58, %v16612_v12  ;;  %v8344_v33 = vpop.f32.mrf.mxu2  ;;  %v8249_v19 = vpop.f32.mrf.mxu0 }
 0xaa8   : > { %v8298_v29 = vpop.f32.mrf.mxu1 }
 0xaa9   : > { %v8247_v38 = vadd.f32 %v8246_v60, %v8198_v44 }
 0xaab   : > { %v8296_v13 = vadd.f32 %v8295_v53, %v8247_v38 }
 0xaad   : > { %v11106_v47 = vpop.eup %11105  ;;  %v8345_v63 = vadd.f32 %v8344_v33, %v8296_v13 }
 0xaae   : > { %8415 = vst [vmem:[%s16404_s8 + $0x8] sm:$0xff] %v11106_v47  ;;  %v8200_v50 = vpop.f32.mrf.mxu3 }
 0xaaf   : > { %11107 = vtanh.f32 %v8345_v63  ;;  %v8201_v4 = vadd.f32 %v8200_v50, %v16616_v10  ;;  %v8347_v61 = vpop.f32.mrf.mxu2  ;;  %v8251_v21 = vpop.f32.mrf.mxu0 }
 0xab0   : > { %v8300_v43 = vpop.f32.mrf.mxu1 }
 0xab1   : > { %v8250_v18 = vadd.f32 %v8249_v19, %v8201_v4 }
 0xab3   : > { %v8299_v45 = vadd.f32 %v8298_v29, %v8250_v18 }
 0xab5   : > { %v11108_v12 = vpop.eup %11107  ;;  %v8348_v34 = vadd.f32 %v8347_v61, %v8299_v45 }
 0xab6   : > { %8417 = vst [vmem:[%s16404_s8 + $0x18] sm:$0xff] %v11108_v12  ;;  %v8202_v62 = vpop.f32.mrf.mxu3 }
 0xab7   : > { %11109 = vtanh.f32 %v8348_v34  ;;  %v8203_v5 = vadd.f32 %v8202_v62, %v16622_v48  ;;  %v8349_v42 = vpop.f32.mrf.mxu2  ;;  %v8254_v41 = vpop.f32.mrf.mxu0 }
 0xab8   : > { %v8303_v0 = vpop.f32.mrf.mxu1 }
 0xab9   : > { %v8252_v49 = vadd.f32 %v8251_v21, %v8203_v5 }
 0xabb   : > { %v8301_v24 = vadd.f32 %v8300_v43, %v8252_v49 }
 0xabd   : > { %v11110_v10 = vpop.eup %11109  ;;  %v8350_v6 = vadd.f32 %v8349_v42, %v8301_v24 }
 0xabe   : > { %8419 = vst [vmem:[%s16404_s8 + $0x28] sm:$0xff] %v11110_v10  ;;  %v8205_v1 = vpop.f32.mrf.mxu3 }
 0xabf   : > { %11111 = vtanh.f32 %v8350_v6  ;;  %v8206_v54 = vadd.f32 %v8205_v1, %v16626_v26  ;;  %v8352_v52 = vpop.f32.mrf.mxu2  ;;  %v8256_v56 = vpop.f32.mrf.mxu0 }
 0xac0   : > { %v8305_v57 = vpop.f32.mrf.mxu1 }
 0xac1   : > { %v8255_v31 = vadd.f32 %v8254_v41, %v8206_v54 }
 0xac3   : > { %v8304_v40 = vadd.f32 %v8303_v0, %v8255_v31 }
 0xac5   : > { %v11112_v48 = vpop.eup %11111  ;;  %v8353_v55 = vadd.f32 %v8352_v52, %v8304_v40 }
 0xac6   : > { %8421 = vst [vmem:[%s16404_s8 + $0x38] sm:$0xff] %v11112_v48  ;;  %v8207_v17 = vpop.f32.mrf.mxu3 }
 0xac7   : > { %11113 = vtanh.f32 %v8353_v55  ;;  %v8208_v11 = vadd.f32 %v8207_v17, %v16632_v2  ;;  %v8354_v27 = vpop.f32.mrf.mxu2  ;;  %v8259_v15 = vpop.f32.mrf.mxu0 }
 0xac8   : > { %v8308_v3 = vpop.f32.mrf.mxu1 }
 0xac9   : > { %v8257_v23 = vadd.f32 %v8256_v56, %v8208_v11 }
 0xacb   : > { %v8306_v35 = vadd.f32 %v8305_v57, %v8257_v23 }
 0xacd   : > { %v11114_v26 = vpop.eup %11113  ;;  %v8355_v36 = vadd.f32 %v8354_v27, %v8306_v35 }
 0xace   : > { %8423 = vst [vmem:[%s16404_s8 + $0x48] sm:$0xff] %v11114_v26  ;;  %v8210_v30 = vpop.f32.mrf.mxu3 }
 0xacf   : > { %11115 = vtanh.f32 %v8355_v36  ;;  %v8211_v59 = vadd.f32 %v8210_v30, %v16636_v9  ;;  %v8357_v16 = vpop.f32.mrf.mxu2  ;;  %v8261_v60 = vpop.f32.mrf.mxu0 }
 0xad0   : > { %v8310_v53 = vpop.f32.mrf.mxu1 }
 0xad1   : > { %v8260_v25 = vadd.f32 %v8259_v15, %v8211_v59 }
 0xad3   : > { %v8309_v32 = vadd.f32 %v8308_v3, %v8260_v25 }
 0xad5   : > { %v11116_v2 = vpop.eup %11115  ;;  %v8358_v28 = vadd.f32 %v8357_v16, %v8309_v32 }
 0xad6   : > { %8425 = vst [vmem:[%s16404_s8 + $0x58] sm:$0xff] %v11116_v2  ;;  %v8212_v58 = vpop.f32.mrf.mxu3 }
 0xad7   : > { %11117 = vtanh.f32 %v8358_v28  ;;  %v8213_v44 = vadd.f32 %v8212_v58, %v16642_v7  ;;  %v8359_v33 = vpop.f32.mrf.mxu2  ;;  %v8264_v19 = vpop.f32.mrf.mxu0 }
 0xad8   : > { %v8313_v29 = vpop.f32.mrf.mxu1 }
 0xad9   : > { %v8262_v38 = vadd.f32 %v8261_v60, %v8213_v44 }
 0xadb   : > { %v8311_v13 = vadd.f32 %v8310_v53, %v8262_v38 }
 0xadd   : > { %v11118_v9 = vpop.eup %11117  ;;  %v8360_v47 = vadd.f32 %v8359_v33, %v8311_v13 }
 0xade   : > { %8427 = vst [vmem:[%s16404_s8 + $0x68] sm:$0xff] %v11118_v9  ;;  %v8215_v63 = vpop.f32.mrf.mxu3 }
 0xadf   : > { %11119 = vtanh.f32 %v8360_v47  ;;  %v8216_v50 = vadd.f32 %v8215_v63, %v16646_v51  ;;  %v8362_v18 = vpop.f32.mrf.mxu2  ;;  %v8266_v61 = vpop.f32.mrf.mxu0 }
 0xae0   : > { %v8315_v21 = vpop.f32.mrf.mxu1 }
 0xae1   : > { %v8265_v4 = vadd.f32 %v8264_v19, %v8216_v50 }
 0xae3   : > { %v8314_v43 = vadd.f32 %v8313_v29, %v8265_v4 }
 0xae5   : > { %v11120_v7 = vpop.eup %11119  ;;  %v8363_v45 = vadd.f32 %v8362_v18, %v8314_v43 }
 0xae6   : > { %8429 = vst [vmem:[%s16404_s8 + $0x78] sm:$0xff] %v11120_v7  ;;  %v8217_v12 = vpop.f32.mrf.mxu3 }
 0xae7   : > { %11121 = vtanh.f32 %v8363_v45  ;;  %v8218_v34 = vadd.f32 %v8217_v12, %v16652_v22  ;;  %v8364_v5 = vpop.f32.mrf.mxu2  ;;  %v8269_v49 = vpop.f32.mrf.mxu0 }
 0xae8   : > { %v8318_v42 = vpop.f32.mrf.mxu1 }
 0xae9   : > { %v8267_v62 = vadd.f32 %v8266_v61, %v8218_v34 }
 0xaeb   : > { %v8316_v41 = vadd.f32 %v8315_v21, %v8267_v62 }
 0xaed   : > { %v11122_v51 = vpop.eup %11121  ;;  %v8365_v0 = vadd.f32 %v8364_v5, %v8316_v41 }
 0xaee   : > { %8431 = vst [vmem:[%s16404_s8 + $0x88] sm:$0xff] %v11122_v51  ;;  %v8220_v24 = vpop.f32.mrf.mxu3 }
 0xaef   : > { %11123 = vtanh.f32 %v8365_v0  ;;  %v8221_v10 = vadd.f32 %v8220_v24, %v16656_v14  ;;  %v8367_v1 = vpop.f32.mrf.mxu2  ;;  %v8271_v54 = vpop.f32.mrf.mxu0 }
 0xaf0   : > { %v8320_v31 = vpop.f32.mrf.mxu1 }
 0xaf1   : > { %v8270_v6 = vadd.f32 %v8269_v49, %v8221_v10 }
 0xaf3   : > { %v8319_v52 = vadd.f32 %v8318_v42, %v8270_v6 }
 0xaf5   : > { %v11124_v22 = vpop.eup %11123  ;;  %v8368_v56 = vadd.f32 %v8367_v1, %v8319_v52 }
 0xaf6   : > { %8433 = vst [vmem:[%s16404_s8 + $0x98] sm:$0xff] %v11124_v22  ;;  %v8222_v57 = vpop.f32.mrf.mxu3 }
 0xaf7   : > { %11125 = vtanh.f32 %v8368_v56  ;;  %v8223_v40 = vadd.f32 %v8222_v57, %v16662_v46  ;;  %v8369_v55 = vpop.f32.mrf.mxu2  ;;  %v8274_v17 = vpop.f32.mrf.mxu0 }
 0xaf8   : > { %v8323_v23 = vpop.f32.mrf.mxu1 }
 0xaf9   : > { %v8272_v48 = vadd.f32 %v8271_v54, %v8223_v40 }
 0xafb   : > { %v8321_v11 = vadd.f32 %v8320_v31, %v8272_v48 }
 0xafd   : > { %v11126_v14 = vpop.eup %11125  ;;  %v8370_v27 = vadd.f32 %v8369_v55, %v8321_v11 }
 0xafe   : > { %8435 = vst [vmem:[%s16404_s8 + $0xa8] sm:$0xff] %v11126_v14  ;;  %v8225_v15 = vpop.f32.mrf.mxu3 }
 0xaff   : > { %11127 = vtanh.f32 %v8370_v27  ;;  %v8226_v3 = vadd.f32 %v8225_v15, %v16666_v8  ;;  %v8372_v26 = vpop.f32.mrf.mxu2  ;;  %v8276_v30 = vpop.f32.mrf.mxu0 }
 0xb00   : > { %v8325_v25 = vpop.f32.mrf.mxu1 }
 0xb01   : > { %v8275_v35 = vadd.f32 %v8274_v17, %v8226_v3 }
 0xb03   : > { %v8324_v36 = vadd.f32 %v8323_v23, %v8275_v35 }
 0xb05   : > { %v11128_v59 = vpop.eup %11127  ;;  %v8373_v46 = vadd.f32 %v8372_v26, %v8324_v36 }
 0xb06   : > { %8437 = vst [vmem:[%s16404_s8 + $0xb8] sm:$0xff] %v11128_v59  ;;  %v8227_v16 = vpop.f32.mrf.mxu3 }
 0xb07   : > { %11129 = vtanh.f32 %v8373_v46  ;;  %v8228_v60 = vadd.f32 %v8227_v16, %v16672_v39  ;;  %v8374_v32 = vpop.f32.mrf.mxu2  ;;  %v8279_v8 = vpop.f32.mrf.mxu0 }
 0xb08   : > { %v8328_v33 = vpop.f32.mrf.mxu1 }
 0xb09   : > { %v8277_v53 = vadd.f32 %v8276_v30, %v8228_v60 }
 0xb0b   : > { %v8326_v2 = vadd.f32 %v8325_v25, %v8277_v53 }
 0xb0d   : > { %v11130_v28 = vpop.eup %11129  ;;  %v8375_v58 = vadd.f32 %v8374_v32, %v8326_v2 }
 0xb0e   : > { %8439 = vst [vmem:[%s16404_s8 + $0xc8] sm:$0xff] %v11130_v28  ;;  %v8230_v44 = vpop.f32.mrf.mxu3 }
 0xb0f   : > { %11131 = vtanh.f32 %v8375_v58  ;;  %v8231_v38 = vadd.f32 %v8230_v44, %v16676_v37  ;;  %v8377_v29 = vpop.f32.mrf.mxu2  ;;  %v8281_v50 = vpop.f32.mrf.mxu0 }
 0xb10   : > { %v8330_v18 = vpop.f32.mrf.mxu1 }
 0xb11   : > { %v8280_v19 = vadd.f32 %v8279_v8, %v8231_v38 }
 0xb13   : > { %v8329_v13 = vadd.f32 %v8328_v33, %v8280_v19 }
 0xb15   : > { %v11132_v9 = vpop.eup %11131  ;;  %v8378_v39 = vadd.f32 %v8377_v29, %v8329_v13 }
 0xb16   : > { %8441 = vst [vmem:[%s16404_s8 + $0xd8] sm:$0xff] %v11132_v9  ;;  %v8232_v47 = vpop.f32.mrf.mxu3 }
 0xb17   : > { %11133 = vtanh.f32 %v8378_v39  ;;  %v8233_v63 = vadd.f32 %v8232_v47, %v16679_v20  ;;  %v8379_v61 = vpop.f32.mrf.mxu2 }
 0xb19   : > { %v8282_v4 = vadd.f32 %v8281_v50, %v8233_v63 }
 0xb1b   : > { %v8331_v37 = vadd.f32 %v8330_v18, %v8282_v4 }
 0xb1d   : > { %v11134_v21 = vpop.eup %11133  ;;  %v8380_v43 = vadd.f32 %v8379_v61, %v8331_v37 }
 0xb1e   : > { %8443 = vst [vmem:[%s16404_s8 + $0xe8] sm:$0xff] %v11134_v21 }
 0xb1f   : > { %11135 = vtanh.f32 %v8380_v43 }
 0xb25   : > { %v11136_v20 = vpop.eup %11135 }
 0xb26   : > { %8445 = vst [vmem:[%s16404_s8 + $0xf8] sm:$0xff] %v11136_v20 }
 0xb27   : > { %11291 = shalt.err (!%p11288_p8)
}
 0xb28   : > { %s11351_s20 = smov 256   ;;  %s11352_s8 = smov 16  }
 0xb29   : > { %10969 = dma.vmem_to_hbm [thread:$0]  (%p11431_p5), %s8461_s1, 4096, %s8463_s2, %s8447_s26, %s11351_s20, %s11351_s20, %s11352_s8  }
 0xb2a PF: > { %p10996_p9 = scmp.ge.s32.totalorder %s11338_s27, 2  ;;  %s8477_s15 = sand.u32 1, %s11326_s24  }
 0xb2b   : > { %s8478_s17 = scalar_lea.sflag [#allocation4], %s8477_s15 }
 0xb2c   : > { %p10985_p10 = pnand %p10996_p9, %p11435_p6 }
 0xb2e   : > { %p10986_p11 = pneg %p10985_p10 }
 0xb30   : > { %11321 = dma.done.wait (%p10986_p11), %s8478_s17, 4096  }
 0xb31   : > { %11323 = vsyncadd (%p10986_p11), %s8478_s17, 4294963200  ;;  %s17625_s21 = sld [smem:[#allocation15_spill]]  ;;  %p20_p12 = scmp.ge.s32.totalorder %s11418_s30, 10  }
 0xb32   : > { %s17626_s26 = sld [smem:[#allocation16_spill]]  ;;  %s17627_s24 = smov %s11330_s25 }
 0xb33   : > { %s17629_s27 = smov %s11418_s30  ;;  %22 = sbr.rel (!%p20_p12) target bundleno = 9 (0x9), region = 100 }
 0xb37   : > { %s17628_s25 = smov %s17625_s21 }
 0xb38   :  { %8484 = vsyncpa [#allocation3], 1 }
 0xb39   :  { %8486 = vsyncpa [#allocation3 + $0x1], 1 }
 0xb3a   :  { %8487 = vsyncpa [#allocation6], 1 }
 0xb3b   :  { %8488 = vsyncpa [#allocation9], 1 }
 0xb3c   :  { %8489 = vsyncpa [#allocation4], 1 }
 0xb3d   :  { %8491 = vsyncpa [#allocation4 + $0x1], 1 }

</bundles_post_ra>
